<compile_context>
chip_gen: v7x
topology: tpu7x:2x2x1
jax: 0.10.0
libtpu: 0.0.40
codegen_flags: <defaults>
</compile_context>

<pallas_src>
import functools

import numpy as np
import jax
import jax.numpy as jnp
from jax.experimental import pallas as pl
from jax.experimental.pallas import tpu as pltpu

LRELU_SLOPE = 0.1
LANE = 128
# Stack the K taps into one matmul only while the stacked contraction stays
# small; above this a per-tap accumulating dot avoids the im2col buffer.
STACK_TAP_LIMIT = 100


def get_padding(kernel_size, dilation=1):
    return (kernel_size * dilation - dilation) // 2


def _round_up(x, m):
    return ((x + m - 1) // m) * m


@functools.lru_cache(maxsize=None)
def _vmem_budget():
    """(vmem_limit_bytes, per-step working-set budget) for this generation."""
    cap = 64 * 1024 * 1024                       # safe lower bound (v7x)
    try:
        info = pltpu.get_tpu_info()
        c = getattr(info, "vmem_capacity_bytes", None)
        if c:
            cap = int(c)
    except Exception:
        pass
    limit = int(cap * 0.80)                      # ~100 MiB v5e/v6e, ~52 MiB v7x
    return limit, limit // 4


def _pick_t_tile(cin, cout, K, bytes_act, *, n_w=1, extra_ins=0, mid_rows=0):
    """Largest lane tile whose estimated per-step working set fits the budget."""
    _, budget = _vmem_budget()
    per_lane = (2 * (cin + cout) + 2 * extra_ins * cout) * bytes_act \
        + 4 * (2 * cin + mid_rows + cout)        # f32 temps + accumulator
    fixed = n_w * K * cin * cout * bytes_act * 2 \
        + 2 * cin * LANE * bytes_act + 8 * cout
    t = (budget - fixed) // max(per_lane, 1)
    return int(max(LANE, min(8192, (t // LANE) * LANE)))


# ----------------------------------------------------------------------------
# Kernel 1: tiled dilated Conv1d (stride 1) with fused epilogues.
# ----------------------------------------------------------------------------
def _conv1d_kernel(x_ref, h_ref, w_ref, b_ref, *rest,
                   K, dilation, t_tile, pad_l, pre_slope, act,
                   res_from_input, has_add, stack_taps):
    o_ref = rest[-1]
    cin = x_ref.shape[1]
    # (Cin, t_tile) tile + (Cin, LANE) halo -> full receptive-field window.
    x = jnp.concatenate([x_ref[0], h_ref[0]], axis=-1)
    x_f = x.astype(jnp.float32)
    if pre_slope is not None:
        xl = jnp.where(x_f >= 0, x_f, x_f * pre_slope)   # lrelu(0)=0: padding ok
    else:
        xl = x_f
    xd = xl.astype(w_ref.dtype)                          # bf16 matmul operands
    if stack_taps and K > 1:
        rhs = jnp.concatenate(
            [xd[:, k * dilation:k * dilation + t_tile] for k in range(K)],
            axis=0)                                      # (K*Cin, t_tile)
        acc = jnp.dot(w_ref[...], rhs, preferred_element_type=jnp.float32)
    else:
        acc = None                                       # K accumulating dots
        for k in range(K):
            wk = w_ref[:, k * cin:(k + 1) * cin]
            part = jnp.dot(wk, xd[:, k * dilation:k * dilation + t_tile],
                           preferred_element_type=jnp.float32)
            acc = part if acc is None else acc + part
    acc = acc + b_ref[...].astype(jnp.float32)
    if res_from_input:                                   # fused x + conv(...)
        acc = acc + x_f[:, pad_l:pad_l + t_tile]
    if has_add:                                          # fused xs accumulation
        acc = acc + rest[0][0].astype(jnp.float32)
    if act == "tanh":
        acc = jnp.tanh(acc)
    o_ref[0] = acc.astype(o_ref.dtype)


def conv1d_pallas(x, w2, b2, *, K, dilation=1, padding=0, pre_slope=None,
                  act=None, res_from_input=False, add=None, t_tile=None):
    """'Same' 1-D convolution, stride 1.

    x: (B, Cin, T).  w2: (Cout, K*Cin) tap-stacked.  b2: (Cout, 1).
    padding: int or (left, right); must sum to dilation*(K-1).
    res_from_input: fuse `+ x` (requires Cout == Cin).
    add: optional (B, Cout, T) tensor added to the output (fused).
    """
    B, Cin, T = x.shape
    Cout = w2.shape[0]
    assert w2.shape == (Cout, K * Cin)
    if isinstance(padding, tuple):
        pad_l, pad_r = padding
    else:
        pad_l = pad_r = int(padding)
    halo = dilation * (K - 1)
    assert 0 <= pad_l and 0 <= pad_r and pad_l + pad_r == halo
    assert halo <= LANE
    if res_from_input:
        assert Cout == Cin
    T_out = T

    stack_taps = (K * Cin) < STACK_TAP_LIMIT
    bytes_act = jnp.dtype(x.dtype).itemsize
    if t_tile is None:
        t_tile = _pick_t_tile(Cin, Cout, K, bytes_act, n_w=1,
                              extra_ins=(1 if add is not None else 0))
    t_tile = min(t_tile, _round_up(T_out, LANE))
    t_tile = max(LANE, (t_tile // LANE) * LANE)
    nt = -(-T_out // t_tile)
    r = t_tile // LANE

    # One padded copy of the input: [pad_l zeros | x | zeros up to L].  Keeps
    # every window read exact zeros, so partial last tiles only rely on
    # Pallas's masked OOB stores (masked lanes are never read back).
    # TODO(synk): this jnp.pad is one extra HBM pass per conv; it could be
    # removed by zero-masking the first/last tile halos in-kernel.
    L = nt * t_tile + LANE
    x_pad = jnp.pad(x, ((0, 0), (0, 0), (pad_l, L - pad_l - T)))

    # Deeper pipelining only pays off for narrow layers with many time tiles.
    deep = (max(Cin, Cout) <= 64) and nt > 2

    def _xspec(shape, idx):
        if deep:
            return pl.BlockSpec(shape, idx, pipeline_mode=pl.Buffered(3))
        return pl.BlockSpec(shape, idx)

    in_specs = [
        _xspec((1, Cin, t_tile), lambda bi, ti: (bi, 0, ti)),
        _xspec((1, Cin, LANE), lambda bi, ti: (bi, 0, (ti + 1) * r)),
        pl.BlockSpec((Cout, K * Cin), lambda bi, ti: (0, 0)),
        pl.BlockSpec((Cout, 1), lambda bi, ti: (0, 0)),
    ]
    operands = [x_pad, x_pad, w2, b2]
    if add is not None:
        assert add.shape == (B, Cout, T_out)
        in_specs.append(pl.BlockSpec((1, Cout, t_tile),
                                     lambda bi, ti: (bi, 0, ti)))
        operands.append(add)

    kernel = functools.partial(
        _conv1d_kernel, K=K, dilation=dilation, t_tile=t_tile, pad_l=pad_l,
        pre_slope=pre_slope, act=act, res_from_input=res_from_input,
        has_add=add is not None, stack_taps=stack_taps)

    limit, _ = _vmem_budget()
    cost = pl.CostEstimate(
        flops=int(2 * B * nt * t_tile * K * Cin * Cout),
        transcendentals=int(B * T_out * Cout) if act == "tanh" else 0,
        bytes_accessed=int(bytes_act * (2 * B * Cin * L + B * Cout * T_out
                                        + Cout * (K * Cin + 1))))

    return pl.pallas_call(
        kernel,
        out_shape=jax.ShapeDtypeStruct((B, Cout, T_out), x.dtype),
        grid=(B, nt),
        in_specs=in_specs,
        out_specs=pl.BlockSpec((1, Cout, t_tile), lambda bi, ti: (bi, 0, ti)),
        compiler_params=pltpu.CompilerParams(
            dimension_semantics=("parallel", "parallel"),
            vmem_limit_bytes=limit),
        cost_estimate=cost,
    )(*operands)


# ----------------------------------------------------------------------------
# Kernel 2: fused ResBlock1 step  (conv1(dil) -> lrelu -> conv2 -> + x [+ xs]).
# The intermediate xt stays in VMEM; conv2's zero padding of xt is reproduced
# with an in-kernel position mask.
# ----------------------------------------------------------------------------
def _resblock1_step_kernel(x_ref, h_ref, w1_ref, b1_ref, w2_ref, b2_ref, *rest,
                           K, dilation, t_tile, pad_l, T_sig, has_add,
                           stack_taps):
    o_ref = rest[-1]
    C = x_ref.shape[1]
    p2 = (K - 1) // 2
    t_mid = t_tile + 2 * p2
    x = jnp.concatenate([x_ref[0], h_ref[0]], axis=-1)
    x_f = x.astype(jnp.float32)
    xl = jnp.where(x_f >= 0, x_f, x_f * LRELU_SLOPE).astype(w1_ref.dtype)
    # conv1 (dilation=d), evaluated on t_mid lanes (output tile + conv2 halo)
    if stack_taps and K > 1:
        rhs1 = jnp.concatenate(
            [xl[:, k * dilation:k * dilation + t_mid] for k in range(K)],
            axis=0)
        acc1 = jnp.dot(w1_ref[...], rhs1, preferred_element_type=jnp.float32)
    else:
        acc1 = None
        for k in range(K):
            wk = w1_ref[:, k * C:(k + 1) * C]
            part = jnp.dot(wk, xl[:, k * dilation:k * dilation + t_mid],
                           preferred_element_type=jnp.float32)
            acc1 = part if acc1 is None else acc1 + part
    xt = acc1 + b1_ref[...].astype(jnp.float32)
    # conv2 sees xt zero-padded outside the real signal [0, T_sig): mask it.
    pos = (pl.program_id(1) * t_tile - p2
           + jax.lax.broadcasted_iota(jnp.int32, (1, t_mid), 1))
    xt = jnp.where((pos >= 0) & (pos < T_sig), xt, 0.0)
    xt = jnp.where(xt >= 0, xt, xt * LRELU_SLOPE).astype(w2_ref.dtype)
    # conv2 (dilation=1) on t_tile lanes
    if stack_taps and K > 1:
        rhs2 = jnp.concatenate([xt[:, k:k + t_tile] for k in range(K)], axis=0)
        acc2 = jnp.dot(w2_ref[...], rhs2, preferred_element_type=jnp.float32)
    else:
        acc2 = None
        for k in range(K):
            wk = w2_ref[:, k * C:(k + 1) * C]
            part = jnp.dot(wk, xt[:, k:k + t_tile],
                           preferred_element_type=jnp.float32)
            acc2 = part if acc2 is None else acc2 + part
    acc2 = acc2 + b2_ref[...].astype(jnp.float32)
    acc2 = acc2 + x_f[:, pad_l:pad_l + t_tile]            # residual (+ x)
    if has_add:
        acc2 = acc2 + rest[0][0].astype(jnp.float32)      # fused xs += r
    o_ref[0] = acc2.astype(o_ref.dtype)


def resblock1_step_pallas(x, w1, b1, w2, b2, *, K, dilation, add=None,
                          t_tile=None):
    B, C, T = x.shape
    assert w1.shape == (C, K * C) and w2.shape == (C, K * C)
    p1 = get_padding(K, dilation)
    p2 = get_padding(K, 1)
    pad_l = p1 + p2
    halo = 2 * pad_l
    assert halo <= LANE

    stack_taps = (K * C) < STACK_TAP_LIMIT
    bytes_act = jnp.dtype(x.dtype).itemsize
    if t_tile is None:
        t_tile = _pick_t_tile(C, C, K, bytes_act, n_w=2,
                              extra_ins=(1 if add is not None else 0),
                              mid_rows=C)
    t_tile = min(t_tile, _round_up(T, LANE))
    t_tile = max(LANE, (t_tile // LANE) * LANE)
    nt = -(-T // t_tile)
    r = t_tile // LANE
    L = nt * t_tile + LANE
    x_pad = jnp.pad(x, ((0, 0), (0, 0), (pad_l, L - pad_l - T)))

    in_specs = [
        pl.BlockSpec((1, C, t_tile), lambda bi, ti: (bi, 0, ti)),
        pl.BlockSpec((1, C, LANE), lambda bi, ti: (bi, 0, (ti + 1) * r)),
        pl.BlockSpec((C, K * C), lambda bi, ti: (0, 0)),
        pl.BlockSpec((C, 1), lambda bi, ti: (0, 0)),
        pl.BlockSpec((C, K * C), lambda bi, ti: (0, 0)),
        pl.BlockSpec((C, 1), lambda bi, ti: (0, 0)),
    ]
    operands = [x_pad, x_pad, w1, b1, w2, b2]
    if add is not None:
        assert add.shape == (B, C, T)
        in_specs.append(pl.BlockSpec((1, C, t_tile),
                                     lambda bi, ti: (bi, 0, ti)))
        operands.append(add)

    kernel = functools.partial(
        _resblock1_step_kernel, K=K, dilation=dilation, t_tile=t_tile,
        pad_l=pad_l, T_sig=T, has_add=add is not None, stack_taps=stack_taps)

    limit, _ = _vmem_budget()
    cost = pl.CostEstimate(
        flops=int(4 * B * nt * t_tile * K * C * C),
        transcendentals=0,
        bytes_accessed=int(bytes_act * (2 * B * C * L + 2 * B * C * T
                                        + 2 * C * (K * C + 1))))

    return pl.pallas_call(
        kernel,
        out_shape=jax.ShapeDtypeStruct((B, C, T), x.dtype),
        grid=(B, nt),
        in_specs=in_specs,
        out_specs=pl.BlockSpec((1, C, t_tile), lambda bi, ti: (bi, 0, ti)),
        compiler_params=pltpu.CompilerParams(
            dimension_semantics=("parallel", "parallel"),
            vmem_limit_bytes=limit),
        cost_estimate=cost,
    )(*operands)


# ----------------------------------------------------------------------------
# ConvTranspose1d via polyphase (sub-pixel) decomposition.
# ----------------------------------------------------------------------------
def _polyphase_geometry(K, stride, padding):
    taps = []
    for r in range(stride):
        rho = (r + padding) % stride
        q = (r + padding) // stride
        tr, u = [], 0
        while rho + u * stride < K:
            tr.append((q - u, rho + u * stride))
            u += 1
        taps.append(tr)
    deltas = [d for tr in taps for (d, _) in tr]
    return taps, min(deltas), max(deltas)


def conv_transpose1d_pallas(x, w2_poly, b2_poly, *, kernel_size, stride,
                            padding, pre_slope=None):
    """x: (B, Cin, T) -> (B, Cout, T*stride).  Weights pre-packed phase-major."""
    B, Cin, T = x.shape
    s = stride
    assert (kernel_size - s) % 2 == 0 and padding == (kernel_size - s) // 2, \
        "polyphase path assumes a 'same'-style transposed conv (out = T*stride)"
    taps, d_min, d_max = _polyphase_geometry(kernel_size, s, padding)
    assert d_min <= 0 <= d_max
    K_c = d_max - d_min + 1
    Cout = w2_poly.shape[0] // s
    assert w2_poly.shape == (s * Cout, K_c * Cin)
    y = conv1d_pallas(x, w2_poly, b2_poly, K=K_c, dilation=1,
                      padding=(-d_min, d_max), pre_slope=pre_slope)
    # TODO(synk): this phase interleave is one full XLA pass over the upsampled
    # activation; it could be folded into the kernel's store (sub-pixel store).
    return y.reshape(B, s, Cout, T).transpose(0, 2, 3, 1).reshape(B, Cout,
                                                                  T * s)


# ----------------------------------------------------------------------------
# Offline weight preparation (tap-stacking, polyphase packing, scale folding).
# ----------------------------------------------------------------------------
def _prep_conv(w, b, dtype, w_scale=None):
    Cout, Cin, K = w.shape
    w2 = jnp.transpose(w, (0, 2, 1)).reshape(Cout, K * Cin)
    if w_scale is not None:
        w2 = w2 * jnp.asarray(w_scale, w2.dtype)
    return {"w": w2.astype(dtype), "b": b.reshape(Cout, 1).astype(dtype)}


def _prep_convT(w_t, b, *, kernel_size, stride, padding, dtype, w_scale=None):
    Cin, Cout, K = w_t.shape
    assert K == kernel_size
    s = stride
    taps, d_min, d_max = _polyphase_geometry(K, s, padding)
    K_c = d_max - d_min + 1
    w_poly = jnp.zeros((s * Cout, Cin, K_c), w_t.dtype)
    for r, tr in enumerate(taps):
        for (d, j) in tr:
            w_poly = w_poly.at[r * Cout:(r + 1) * Cout, :, d - d_min].set(
                jnp.transpose(w_t[:, :, j], (1, 0)))
    w2 = jnp.transpose(w_poly, (0, 2, 1)).reshape(s * Cout, K_c * Cin)
    if w_scale is not None:
        w2 = w2 * jnp.asarray(w_scale, w2.dtype)
    b2 = jnp.tile(b, s).reshape(s * Cout, 1)
    return {"w": w2.astype(dtype), "b": b2.astype(dtype)}


def prepare_generator_params(params, h, dtype=jnp.float32):
    """Run once, outside the jitted forward."""
    nk = len(h.resblock_kernel_sizes)
    prep = {"ups": [], "resblocks": []}
    prep["conv_pre"] = _prep_conv(params["conv_pre"]["w"],
                                  params["conv_pre"]["b"], dtype)
    for i, (u, k) in enumerate(zip(h.upsample_rates, h.upsample_kernel_sizes)):
        prep["ups"].append(_prep_convT(
            params["ups"][i]["w"], params["ups"][i]["b"], kernel_size=k,
            stride=u, padding=(k - u) // 2, dtype=dtype,
            w_scale=(1.0 / nk) if i > 0 else None))
    for rb in params["resblocks"]:
        if h.resblock == '1':
            steps = [(_prep_conv(c1["w"], c1["b"], dtype),
                      _prep_conv(c2["w"], c2["b"], dtype))
                     for c1, c2 in zip(rb["convs1"], rb["convs2"])]
        else:
            steps = [_prep_conv(c["w"], c["b"], dtype) for c in rb["convs"]]
        prep["resblocks"].append({"steps": steps})
    prep["conv_post"] = _prep_conv(params["conv_post"]["w"],
                                   params["conv_post"]["b"], dtype,
                                   w_scale=1.0 / nk)
    return prep


# ----------------------------------------------------------------------------
# Generator forward (composition of fused Pallas calls)
# ----------------------------------------------------------------------------
def resblock1_forward(steps, x, kernel_size, dilations, add=None):
    n = len(dilations)
    for idx, d in enumerate(dilations):
        c1, c2 = steps[idx]
        x = resblock1_step_pallas(x, c1["w"], c1["b"], c2["w"], c2["b"],
                                  K=kernel_size, dilation=d,
                                  add=add if idx == n - 1 else None)
    return x


def resblock2_forward(steps, x, kernel_size, dilations, add=None):
    n = len(dilations)
    for idx, d in enumerate(dilations):
        c = steps[idx]
        x = conv1d_pallas(x, c["w"], c["b"], K=kernel_size, dilation=d,
                          padding=get_padding(kernel_size, d),
                          pre_slope=LRELU_SLOPE, res_from_input=True,
                          add=add if idx == n - 1 else None)
    return x


def generator_forward(prep, x, h, dtype=jnp.float32):
    """x: (B, C, T).  Returns (B, 1, T * prod(upsample_rates))."""
    nk = len(h.resblock_kernel_sizes)
    x = x.astype(dtype)

    kp = prep["conv_pre"]["w"].shape[1] // x.shape[1]
    x = conv1d_pallas(x, prep["conv_pre"]["w"], prep["conv_pre"]["b"],
                      K=kp, dilation=1, padding=(kp - 1) // 2)

    for i in range(len(h.upsample_rates)):
        u, k = h.upsample_rates[i], h.upsample_kernel_sizes[i]
        # leaky_relu fused into the up-conv; previous stage's /num_kernels is
        # folded into the (pre-packed) up-conv weights.
        x = conv_transpose1d_pallas(
            x, prep["ups"][i]["w"], prep["ups"][i]["b"], kernel_size=k,
            stride=u, padding=(k - u) // 2, pre_slope=LRELU_SLOPE)
        xs = None
        for j in range(nk):
            rb = prep["resblocks"][i * nk + j]
            ks = h.resblock_kernel_sizes[j]
            ds = h.resblock_dilation_sizes[j]
            if h.resblock == '1':
                xs = resblock1_forward(rb["steps"], x, ks, ds, add=xs)
            else:
                xs = resblock2_forward(rb["steps"], x, ks, ds, add=xs)
        x = xs                                  # /num_kernels folded downstream

    kq = prep["conv_post"]["w"].shape[1] // x.shape[1]
    x = conv1d_pallas(x, prep["conv_post"]["w"], prep["conv_post"]["b"],
                      K=kq, dilation=1, padding=(kq - 1) // 2,
                      pre_slope=0.01, act="tanh")
    return x


# ----------------------------------------------------------------------------
# Deterministic parameter init (weight_norm at init == plain weights)
# ----------------------------------------------------------------------------
def init_generator_params(key, h):
    keys = iter(jax.random.split(key, 512))

    def conv_params(cout, cin, k):          # PyTorch Conv1d layout (Cout,Cin,K)
        w = 0.01 * jax.random.normal(next(keys), (cout, cin, k), jnp.float32)
        b = 0.01 * jax.random.normal(next(keys), (cout,), jnp.float32)
        return {"w": w, "b": b}

    def convT_params(cin, cout, k):         # ConvTranspose1d layout (Cin,Cout,K)
        w = 0.01 * jax.random.normal(next(keys), (cin, cout, k), jnp.float32)
        b = 0.01 * jax.random.normal(next(keys), (cout,), jnp.float32)
        return {"w": w, "b": b}

    params = {"ups": [], "resblocks": []}
    cin0 = getattr(h, "model_in_dim", 128)
    params["conv_pre"] = conv_params(h.upsample_initial_channel, cin0, 7)

    for i, (u, k) in enumerate(zip(h.upsample_rates, h.upsample_kernel_sizes)):
        cin = h.upsample_initial_channel // (2 ** i)
        cout = h.upsample_initial_channel // (2 ** (i + 1))
        params["ups"].append(convT_params(cin, cout, k))

    ch = h.upsample_initial_channel
    for i in range(len(h.upsample_rates)):
        ch = h.upsample_initial_channel // (2 ** (i + 1))
        for ks, ds in zip(h.resblock_kernel_sizes, h.resblock_dilation_sizes):
            if h.resblock == '1':
                rb = {"convs1": [conv_params(ch, ch, ks) for _ in ds],
                      "convs2": [conv_params(ch, ch, ks) for _ in ds]}
            else:
                rb = {"convs": [conv_params(ch, ch, ks) for _ in ds]}
            params["resblocks"].append(rb)

    params["conv_post"] = conv_params(1, ch, 7)
    return params


# ----------------------------------------------------------------------------
# Pure-JAX (lax) reference of the exact PyTorch forward, for cross-checking.
# ----------------------------------------------------------------------------
def _lrelu(x, s):
    return jnp.where(x >= 0, x, x * s)


def _conv1d_ref(x, w, b, dilation, padding):
    out = jax.lax.conv_general_dilated(
        x, w, window_strides=(1,), padding=[(padding, padding)],
        rhs_dilation=(dilation,), dimension_numbers=("NCH", "OIH", "NCH"),
        precision=jax.lax.Precision.HIGHEST)
    return out + b[None, :, None]


def _convT_ref(x, w_t, b, stride, padding):
    B, Cin, T = x.shape
    _, Cout, K = w_t.shape
    xz = jnp.zeros((B, Cin, (T - 1) * stride + 1), x.dtype)
    xz = xz.at[:, :, ::stride].set(x)
    w_conv = jnp.transpose(w_t[:, :, ::-1], (1, 0, 2))
    return _conv1d_ref(xz, w_conv, b, 1, K - 1 - padding)


def generator_forward_ref(params, x, h):
    nk = len(h.resblock_kernel_sizes)
    x = _conv1d_ref(x, params["conv_pre"]["w"], params["conv_pre"]["b"], 1, 3)
    for i in range(len(h.upsample_rates)):
        u, k = h.upsample_rates[i], h.upsample_kernel_sizes[i]
        x = _lrelu(x, LRELU_SLOPE)
        x = _convT_ref(x, params["ups"][i]["w"], params["ups"][i]["b"],
                       u, (k - u) // 2)
        xs = None
        for j in range(nk):
            rp = params["resblocks"][i * nk + j]
            ks = h.resblock_kernel_sizes[j]
            ds = h.resblock_dilation_sizes[j]
            r = x
            for idx, d in enumerate(ds):
                if h.resblock == '1':
                    xt = _conv1d_ref(_lrelu(r, LRELU_SLOPE),
                                     rp["convs1"][idx]["w"],
                                     rp["convs1"][idx]["b"], d,
                                     get_padding(ks, d))
                    xt = _conv1d_ref(_lrelu(xt, LRELU_SLOPE),
                                     rp["convs2"][idx]["w"],
                                     rp["convs2"][idx]["b"], 1,
                                     get_padding(ks, 1))
                else:
                    xt = _conv1d_ref(_lrelu(r, LRELU_SLOPE),
                                     rp["convs"][idx]["w"],
                                     rp["convs"][idx]["b"], d,
                                     get_padding(ks, d))
                r = xt + r
            xs = r if xs is None else xs + r
        x = xs / nk
    x = _lrelu(x, 0.01)
    x = _conv1d_ref(x, params["conv_post"]["w"], params["conv_post"]["b"], 1, 3)
    return jnp.tanh(x)


# ----------------------------------------------------------------------------
if __name__ == "__main__":
    class H:
        pass

    # ---- config 1: ResBlock1, two resblock kernels, float32 ----------------
    h1 = H()
    h1.resblock = '1'
    h1.resblock_kernel_sizes = [3, 7]
    h1.resblock_dilation_sizes = [[1, 3, 5], [1, 3, 5]]
    h1.upsample_rates = [4, 2]
    h1.upsample_kernel_sizes = [8, 4]
    h1.upsample_initial_channel = 32
    h1.model_in_dim = 32

    key = jax.random.PRNGKey(0)
    pkey1, xkey1, pkey2, xkey2 = jax.random.split(key, 4)
    params1 = init_generator_params(pkey1, h1)

    B, C, T = 2, h1.model_in_dim, 8                      # input: (B, C, T) NCT
    x1 = jax.random.normal(xkey1, (B, C, T), jnp.float32)

    prep1 = prepare_generator_params(params1, h1, dtype=jnp.float32)
    fwd1 = jax.jit(functools.partial(generator_forward, h=h1,
                                     dtype=jnp.float32))
    y1 = jax.block_until_ready(fwd1(prep1, x1))

    T_up = T
    for u in h1.upsample_rates:
        T_up *= u
    assert y1.shape == (B, 1, T_up), y1.shape
    assert bool(jnp.all(jnp.isfinite(y1)))

    y1_ref = jax.block_until_ready(
        jax.jit(functools.partial(generator_forward_ref, h=h1))(params1, x1))
    np.testing.assert_allclose(np.asarray(y1), np.asarray(y1_ref),
                               rtol=2e-2, atol=2e-5)

    # ---- config 2: ResBlock2, odd upsample stride, bfloat16 activations ----
    h2 = H()
    h2.resblock = '2'
    h2.resblock_kernel_sizes = [3, 5]
    h2.resblock_dilation_sizes = [[1, 3], [1, 3]]
    h2.upsample_rates = [3]
    h2.upsample_kernel_sizes = [9]
    h2.upsample_initial_channel = 16
    h2.model_in_dim = 16

    params2 = init_generator_params(pkey2, h2)
    x2 = jax.random.normal(xkey2, (2, h2.model_in_dim, 16), jnp.float32)

    prep2 = prepare_generator_params(params2, h2, dtype=jnp.bfloat16)
    fwd2 = jax.jit(functools.partial(generator_forward, h=h2,
                                     dtype=jnp.bfloat16))
    y2 = jax.block_until_ready(fwd2(prep2, x2)).astype(jnp.float32)
    assert y2.shape == (2, 1, 16 * 3), y2.shape
    assert bool(jnp.all(jnp.isfinite(y2)))

    y2_ref = jax.block_until_ready(
        jax.jit(functools.partial(generator_forward_ref, h=h2))(params2, x2))
    np.testing.assert_allclose(np.asarray(y2), np.asarray(y2_ref),
                               rtol=1.5e-1, atol=3e-3)

    print("KERNEL_OK")
</pallas_src>

<mosaic_0001>
module attributes {stable_mosaic.version = 11 : i64} {
  func.func @_conv1d_kernel(%arg0: i32, %arg1: i32, %arg2: memref<1x32x128xf32, #tpu.memory_space<vmem>>, %arg3: memref<1x32x128xf32, #tpu.memory_space<vmem>>, %arg4: memref<32x224xf32, #tpu.memory_space<vmem>>, %arg5: memref<32x1xf32, #tpu.memory_space<vmem>>, %arg6: memref<1x32x128xf32, #tpu.memory_space<vmem>>) attributes {dimension_semantics = [#tpu.dimension_semantics<parallel>, #tpu.dimension_semantics<parallel>], iteration_bounds = array<i64: 2, 1>, scalar_prefetch = 0 : i64, scratch_operands = 0 : i64, tpu.core_type = #tpu.core_type<tc>, window_params = [{transform_indices = @transform_0, window_bounds = array<i64: 1, 32, 128>}, {transform_indices = @transform_1, window_bounds = array<i64: 1, 32, 128>}, {pipeline_mode = #tpu.pipeline_mode<synchronous>, transform_indices = @transform_2, window_bounds = array<i64: 32, 224>}, {pipeline_mode = #tpu.pipeline_mode<synchronous>, transform_indices = @transform_3, window_bounds = array<i64: 32, 1>}, {transform_indices = @transform_4, window_bounds = array<i64: 1, 32, 128>}]} {
    %c0 = arith.constant 0 : index
    %c0_0 = arith.constant 0 : index
    %c0_1 = arith.constant 0 : index
    %0 = vector.load %arg2[%c0, %c0_0, %c0_1] : memref<1x32x128xf32, #tpu.memory_space<vmem>>, vector<1x32x128xf32>
    %1 = vector.shape_cast %0 : vector<1x32x128xf32> to vector<32x128xf32>
    %c0_2 = arith.constant 0 : index
    %c0_3 = arith.constant 0 : index
    %c0_4 = arith.constant 0 : index
    %2 = vector.load %arg3[%c0_2, %c0_3, %c0_4] : memref<1x32x128xf32, #tpu.memory_space<vmem>>, vector<1x32x128xf32>
    %3 = vector.shape_cast %2 : vector<1x32x128xf32> to vector<32x128xf32>
    %4 = tpu.concatenate %1, %3 in 1 : vector<32x128xf32>, vector<32x128xf32> -> vector<32x256xf32>
    %c0_5 = arith.constant 0 : index
    %c0_6 = arith.constant 0 : index
    %5 = vector.load %arg4[%c0_5, %c0_6] : memref<32x224xf32, #tpu.memory_space<vmem>>, vector<32x32xf32>
    %6 = vector.extract_strided_slice %4 {offsets = [0, 0], sizes = [32, 128], strides = [1, 1]} : vector<32x256xf32> to vector<32x128xf32>
    %cst = arith.constant dense<0.000000e+00> : vector<32x128xf32>
    %7 = tpu.matmul %5, %6, %cst {dimension_numbers = #tpu.dot_dimension_numbers<[1], [0], [0], [1], [0, 0, 1, 1], [], []>} : vector<32x32xf32>, vector<32x128xf32>, vector<32x128xf32> -> vector<32x128xf32>
    %c0_7 = arith.constant 0 : index
    %c32 = arith.constant 32 : index
    %8 = vector.load %arg4[%c0_7, %c32] : memref<32x224xf32, #tpu.memory_space<vmem>>, vector<32x32xf32>
    %9 = vector.extract_strided_slice %4 {offsets = [0, 1], sizes = [32, 128], strides = [1, 1]} : vector<32x256xf32> to vector<32x128xf32>
    %cst_8 = arith.constant dense<0.000000e+00> : vector<32x128xf32>
    %10 = tpu.matmul %8, %9, %cst_8 {dimension_numbers = #tpu.dot_dimension_numbers<[1], [0], [0], [1], [0, 0, 1, 1], [], []>} : vector<32x32xf32>, vector<32x128xf32>, vector<32x128xf32> -> vector<32x128xf32>
    %11 = arith.addf %7, %10 : vector<32x128xf32>
    %c0_9 = arith.constant 0 : index
    %c64 = arith.constant 64 : index
    %12 = vector.load %arg4[%c0_9, %c64] : memref<32x224xf32, #tpu.memory_space<vmem>>, vector<32x32xf32>
    %13 = vector.extract_strided_slice %4 {offsets = [0, 2], sizes = [32, 128], strides = [1, 1]} : vector<32x256xf32> to vector<32x128xf32>
    %cst_10 = arith.constant dense<0.000000e+00> : vector<32x128xf32>
    %14 = tpu.matmul %12, %13, %cst_10 {dimension_numbers = #tpu.dot_dimension_numbers<[1], [0], [0], [1], [0, 0, 1, 1], [], []>} : vector<32x32xf32>, vector<32x128xf32>, vector<32x128xf32> -> vector<32x128xf32>
    %15 = arith.addf %11, %14 : vector<32x128xf32>
    %c0_11 = arith.constant 0 : index
    %c96 = arith.constant 96 : index
    %16 = vector.load %arg4[%c0_11, %c96] : memref<32x224xf32, #tpu.memory_space<vmem>>, vector<32x32xf32>
    %17 = vector.extract_strided_slice %4 {offsets = [0, 3], sizes = [32, 128], strides = [1, 1]} : vector<32x256xf32> to vector<32x128xf32>
    %cst_12 = arith.constant dense<0.000000e+00> : vector<32x128xf32>
    %18 = tpu.matmul %16, %17, %cst_12 {dimension_numbers = #tpu.dot_dimension_numbers<[1], [0], [0], [1], [0, 0, 1, 1], [], []>} : vector<32x32xf32>, vector<32x128xf32>, vector<32x128xf32> -> vector<32x128xf32>
    %19 = arith.addf %15, %18 : vector<32x128xf32>
    %c0_13 = arith.constant 0 : index
    %c128 = arith.constant 128 : index
    %20 = vector.load %arg4[%c0_13, %c128] : memref<32x224xf32, #tpu.memory_space<vmem>>, vector<32x32xf32>
    %21 = vector.extract_strided_slice %4 {offsets = [0, 4], sizes = [32, 128], strides = [1, 1]} : vector<32x256xf32> to vector<32x128xf32>
    %cst_14 = arith.constant dense<0.000000e+00> : vector<32x128xf32>
    %22 = tpu.matmul %20, %21, %cst_14 {dimension_numbers = #tpu.dot_dimension_numbers<[1], [0], [0], [1], [0, 0, 1, 1], [], []>} : vector<32x32xf32>, vector<32x128xf32>, vector<32x128xf32> -> vector<32x128xf32>
    %23 = arith.addf %19, %22 : vector<32x128xf32>
    %c0_15 = arith.constant 0 : index
    %c160 = arith.constant 160 : index
    %24 = vector.load %arg4[%c0_15, %c160] : memref<32x224xf32, #tpu.memory_space<vmem>>, vector<32x32xf32>
    %25 = vector.extract_strided_slice %4 {offsets = [0, 5], sizes = [32, 128], strides = [1, 1]} : vector<32x256xf32> to vector<32x128xf32>
    %cst_16 = arith.constant dense<0.000000e+00> : vector<32x128xf32>
    %26 = tpu.matmul %24, %25, %cst_16 {dimension_numbers = #tpu.dot_dimension_numbers<[1], [0], [0], [1], [0, 0, 1, 1], [], []>} : vector<32x32xf32>, vector<32x128xf32>, vector<32x128xf32> -> vector<32x128xf32>
    %27 = arith.addf %23, %26 : vector<32x128xf32>
    %c0_17 = arith.constant 0 : index
    %c192 = arith.constant 192 : index
    %28 = vector.load %arg4[%c0_17, %c192] : memref<32x224xf32, #tpu.memory_space<vmem>>, vector<32x32xf32>
    %29 = vector.extract_strided_slice %4 {offsets = [0, 6], sizes = [32, 128], strides = [1, 1]} : vector<32x256xf32> to vector<32x128xf32>
    %cst_18 = arith.constant dense<0.000000e+00> : vector<32x128xf32>
    %30 = tpu.matmul %28, %29, %cst_18 {dimension_numbers = #tpu.dot_dimension_numbers<[1], [0], [0], [1], [0, 0, 1, 1], [], []>} : vector<32x32xf32>, vector<32x128xf32>, vector<32x128xf32> -> vector<32x128xf32>
    %31 = arith.addf %27, %30 : vector<32x128xf32>
    %c0_19 = arith.constant 0 : index
    %c0_20 = arith.constant 0 : index
    %32 = vector.load %arg5[%c0_19, %c0_20] : memref<32x1xf32, #tpu.memory_space<vmem>>, vector<32x1xf32>
    %33 = vector.broadcast %32 : vector<32x1xf32> to vector<32x128xf32>
    %34 = arith.addf %31, %33 : vector<32x128xf32>
    %c0_21 = arith.constant 0 : index
    %c0_22 = arith.constant 0 : index
    %c0_23 = arith.constant 0 : index
    %35 = vector.load %arg6[%c0_21, %c0_22, %c0_23] : memref<1x32x128xf32, #tpu.memory_space<vmem>>, vector<1x32x128xf32>
    %36 = vector.shape_cast %35 : vector<1x32x128xf32> to vector<32x128xf32>
    %37 = vector.shape_cast %34 : vector<32x128xf32> to vector<1x32x128xf32>
    tpu.vector_store %arg6[%c0_21, %c0_22, %c0_23], %37 {strides = array<i32>} : memref<1x32x128xf32, #tpu.memory_space<vmem>>, vector<1x32x128xf32>,
    return
  }
  func.func @transform_0(%arg0: i32, %arg1: i32) -> (i32, i32, i32) {
    %c0_i32 = arith.constant 0 : i32
    %c0_i32_0 = arith.constant 0 : i32
    return %arg0, %c0_i32, %arg1 : i32, i32, i32
  }
  func.func @transform_1(%arg0: i32, %arg1: i32) -> (i32, i32, i32) {
    %c1_i32 = arith.constant 1 : i32
    %0 = arith.addi %arg1, %c1_i32 : i32
    %c1_i32_0 = arith.constant 1 : i32
    %1 = arith.muli %0, %c1_i32_0 : i32
    %c0_i32 = arith.constant 0 : i32
    %c0_i32_1 = arith.constant 0 : i32
    return %arg0, %c0_i32, %1 : i32, i32, i32
  }
  func.func @transform_2(%arg0: i32, %arg1: i32) -> (i32, i32) {
    %c0_i32 = arith.constant 0 : i32
    %c0_i32_0 = arith.constant 0 : i32
    %c0_i32_1 = arith.constant 0 : i32
    return %c0_i32, %c0_i32_0 : i32, i32
  }
  func.func @transform_3(%arg0: i32, %arg1: i32) -> (i32, i32) {
    %c0_i32 = arith.constant 0 : i32
    %c0_i32_0 = arith.constant 0 : i32
    %c0_i32_1 = arith.constant 0 : i32
    return %c0_i32, %c0_i32_0 : i32, i32
  }
  func.func @transform_4(%arg0: i32, %arg1: i32) -> (i32, i32, i32) {
    %c0_i32 = arith.constant 0 : i32
    %c0_i32_0 = arith.constant 0 : i32
    return %arg0, %c0_i32, %arg1 : i32, i32, i32
  }
}

module attributes {stable_mosaic.version = 11 : i64} {
  func.func @_resblock1_step_kernel(%arg0: i32, %arg1: i32, %arg2: memref<1x16x128xf32, #tpu.memory_space<vmem>>, %arg3: memref<1x16x128xf32, #tpu.memory_space<vmem>>, %arg4: memref<16x48xf32, #tpu.memory_space<vmem>>, %arg5: memref<16x1xf32, #tpu.memory_space<vmem>>, %arg6: memref<16x48xf32, #tpu.memory_space<vmem>>, %arg7: memref<16x1xf32, #tpu.memory_space<vmem>>, %arg8: memref<1x16x128xf32, #tpu.memory_space<vmem>>) attributes {dimension_semantics = [#tpu.dimension_semantics<parallel>, #tpu.dimension_semantics<parallel>], iteration_bounds = array<i64: 2, 1>, scalar_prefetch = 0 : i64, scratch_operands = 0 : i64, tpu.core_type = #tpu.core_type<tc>, window_params = [{transform_indices = @transform_0, window_bounds = array<i64: 1, 16, 128>}, {transform_indices = @transform_1, window_bounds = array<i64: 1, 16, 128>}, {pipeline_mode = #tpu.pipeline_mode<synchronous>, transform_indices = @transform_2, window_bounds = array<i64: 16, 48>}, {pipeline_mode = #tpu.pipeline_mode<synchronous>, transform_indices = @transform_3, window_bounds = array<i64: 16, 1>}, {pipeline_mode = #tpu.pipeline_mode<synchronous>, transform_indices = @transform_4, window_bounds = array<i64: 16, 48>}, {pipeline_mode = #tpu.pipeline_mode<synchronous>, transform_indices = @transform_5, window_bounds = array<i64: 16, 1>}, {transform_indices = @transform_6, window_bounds = array<i64: 1, 16, 128>}]} {
    %c0 = arith.constant 0 : index
    %c0_0 = arith.constant 0 : index
    %c0_1 = arith.constant 0 : index
    %0 = vector.load %arg2[%c0, %c0_0, %c0_1] : memref<1x16x128xf32, #tpu.memory_space<vmem>>, vector<1x16x128xf32>
    %1 = vector.shape_cast %0 : vector<1x16x128xf32> to vector<16x128xf32>
    %c0_2 = arith.constant 0 : index
    %c0_3 = arith.constant 0 : index
    %c0_4 = arith.constant 0 : index
    %2 = vector.load %arg3[%c0_2, %c0_3, %c0_4] : memref<1x16x128xf32, #tpu.memory_space<vmem>>, vector<1x16x128xf32>
    %3 = vector.shape_cast %2 : vector<1x16x128xf32> to vector<16x128xf32>
    %4 = tpu.concatenate %1, %3 in 1 : vector<16x128xf32>, vector<16x128xf32> -> vector<16x256xf32>
    %cst = arith.constant 0.000000e+00 : f32
    %5 = vector.broadcast %cst : f32 to vector<16x256xf32>
    %6 = arith.cmpf oge, %4, %5 : vector<16x256xf32>
    %cst_5 = arith.constant 1.000000e-01 : f32
    %7 = vector.broadcast %cst_5 : f32 to vector<16x256xf32>
    %8 = arith.mulf %4, %7 : vector<16x256xf32>
    %9 = arith.select %6, %4, %8 : vector<16x256xi1>, vector<16x256xf32>
    %10 = vector.extract_strided_slice %9 {offsets = [0, 0], sizes = [16, 130], strides = [1, 1]} : vector<16x256xf32> to vector<16x130xf32>
    %11 = vector.extract_strided_slice %9 {offsets = [0, 1], sizes = [16, 130], strides = [1, 1]} : vector<16x256xf32> to vector<16x130xf32>
    %12 = vector.extract_strided_slice %9 {offsets = [0, 2], sizes = [16, 130], strides = [1, 1]} : vector<16x256xf32> to vector<16x130xf32>
    %13 = tpu.concatenate %10, %11, %12 in 0 : vector<16x130xf32>, vector<16x130xf32>, vector<16x130xf32> -> vector<48x130xf32>
    %c0_6 = arith.constant 0 : index
    %c0_7 = arith.constant 0 : index
    %14 = vector.load %arg4[%c0_6, %c0_7] : memref<16x48xf32, #tpu.memory_space<vmem>>, vector<16x48xf32>
    %cst_8 = arith.constant dense<0.000000e+00> : vector<16x130xf32>
    %15 = tpu.matmul %14, %13, %cst_8 {dimension_numbers = #tpu.dot_dimension_numbers<[1], [0], [0], [1], [0, 0, 1, 1], [], []>} : vector<16x48xf32>, vector<48x130xf32>, vector<16x130xf32> -> vector<16x130xf32>
    %c0_9 = arith.constant 0 : index
    %c0_10 = arith.constant 0 : index
    %16 = vector.load %arg5[%c0_9, %c0_10] : memref<16x1xf32, #tpu.memory_space<vmem>>, vector<16x1xf32>
    %17 = vector.broadcast %16 : vector<16x1xf32> to vector<16x130xf32>
    %18 = arith.addf %15, %17 : vector<16x130xf32>
    %c128_i32 = arith.constant 128 : i32
    %19 = arith.muli %arg1, %c128_i32 : i32
    %c1_i32 = arith.constant 1 : i32
    %20 = arith.subi %19, %c1_i32 : i32
    %21 = tpu.iota {dimensions = array<i32: 1>} : vector<1x130xi32>
    %22 = vector.broadcast %20 : i32 to vector<1x130xi32>
    %23 = arith.addi %22, %21 : vector<1x130xi32>
    %c0_i32 = arith.constant 0 : i32
    %24 = vector.broadcast %c0_i32 : i32 to vector<1x130xi32>
    %25 = arith.cmpi sge, %23, %24 : vector<1x130xi32>
    %c32_i32 = arith.constant 32 : i32
    %26 = vector.broadcast %c32_i32 : i32 to vector<1x130xi32>
    %27 = arith.cmpi slt, %23, %26 : vector<1x130xi32>
    %28 = arith.andi %25, %27 : vector<1x130xi1>
    %cst_11 = arith.constant 0.000000e+00 : f32
    %29 = vector.shape_cast %28 : vector<1x130xi1> to vector<1x130xi1>
    %30 = vector.broadcast %29 : vector<1x130xi1> to vector<16x130xi1>
    %31 = vector.broadcast %cst_11 : f32 to vector<16x130xf32>
    %32 = arith.select %30, %18, %31 : vector<16x130xi1>, vector<16x130xf32>
    %cst_12 = arith.constant 0.000000e+00 : f32
    %33 = vector.broadcast %cst_12 : f32 to vector<16x130xf32>
    %34 = arith.cmpf oge, %32, %33 : vector<16x130xf32>
    %cst_13 = arith.constant 1.000000e-01 : f32
    %35 = vector.broadcast %cst_13 : f32 to vector<16x130xf32>
    %36 = arith.mulf %32, %35 : vector<16x130xf32>
    %37 = arith.select %34, %32, %36 : vector<16x130xi1>, vector<16x130xf32>
    %38 = vector.extract_strided_slice %37 {offsets = [0, 0], sizes = [16, 128], strides = [1, 1]} : vector<16x130xf32> to vector<16x128xf32>
    %39 = vector.extract_strided_slice %37 {offsets = [0, 1], sizes = [16, 128], strides = [1, 1]} : vector<16x130xf32> to vector<16x128xf32>
    %40 = vector.extract_strided_slice %37 {offsets = [0, 2], sizes = [16, 128], strides = [1, 1]} : vector<16x130xf32> to vector<16x128xf32>
    %41 = tpu.concatenate %38, %39, %40 in 0 : vector<16x128xf32>, vector<16x128xf32>, vector<16x128xf32> -> vector<48x128xf32>
    %c0_14 = arith.constant 0 : index
    %c0_15 = arith.constant 0 : index
    %42 = vector.load %arg6[%c0_14, %c0_15] : memref<16x48xf32, #tpu.memory_space<vmem>>, vector<16x48xf32>
    %cst_16 = arith.constant dense<0.000000e+00> : vector<16x128xf32>
    %43 = tpu.matmul %42, %41, %cst_16 {dimension_numbers = #tpu.dot_dimension_numbers<[1], [0], [0], [1], [0, 0, 1, 1], [], []>} : vector<16x48xf32>, vector<48x128xf32>, vector<16x128xf32> -> vector<16x128xf32>
    %c0_17 = arith.constant 0 : index
    %c0_18 = arith.constant 0 : index
    %44 = vector.load %arg7[%c0_17, %c0_18] : memref<16x1xf32, #tpu.memory_space<vmem>>, vector<16x1xf32>
    %45 = vector.broadcast %44 : vector<16x1xf32> to vector<16x128xf32>
    %46 = arith.addf %43, %45 : vector<16x128xf32>
    %47 = vector.extract_strided_slice %4 {offsets = [0, 2], sizes = [16, 128], strides = [1, 1]} : vector<16x256xf32> to vector<16x128xf32>
    %48 = arith.addf %46, %47 : vector<16x128xf32>
    %c0_19 = arith.constant 0 : index
    %c0_20 = arith.constant 0 : index
    %c0_21 = arith.constant 0 : index
    %49 = vector.load %arg8[%c0_19, %c0_20, %c0_21] : memref<1x16x128xf32, #tpu.memory_space<vmem>>, vector<1x16x128xf32>
    %50 = vector.shape_cast %49 : vector<1x16x128xf32> to vector<16x128xf32>
    %51 = vector.shape_cast %48 : vector<16x128xf32> to vector<1x16x128xf32>
    tpu.vector_store %arg8[%c0_19, %c0_20, %c0_21], %51 {strides = array<i32>} : memref<1x16x128xf32, #tpu.memory_space<vmem>>, vector<1x16x128xf32>,
    return
  }
  func.func @transform_0(%arg0: i32, %arg1: i32) -> (i32, i32, i32) {
    %c0_i32 = arith.constant 0 : i32
    %c0_i32_0 = arith.constant 0 : i32
    return %arg0, %c0_i32, %arg1 : i32, i32, i32
  }
  func.func @transform_1(%arg0: i32, %arg1: i32) -> (i32, i32, i32) {
    %c1_i32 = arith.constant 1 : i32
    %0 = arith.addi %arg1, %c1_i32 : i32
    %c1_i32_0 = arith.constant 1 : i32
    %1 = arith.muli %0, %c1_i32_0 : i32
    %c0_i32 = arith.constant 0 : i32
    %c0_i32_1 = arith.constant 0 : i32
    return %arg0, %c0_i32, %1 : i32, i32, i32
  }
  func.func @transform_2(%arg0: i32, %arg1: i32) -> (i32, i32) {
    %c0_i32 = arith.constant 0 : i32
    %c0_i32_0 = arith.constant 0 : i32
    %c0_i32_1 = arith.constant 0 : i32
    return %c0_i32, %c0_i32_0 : i32, i32
  }
  func.func @transform_3(%arg0: i32, %arg1: i32) -> (i32, i32) {
    %c0_i32 = arith.constant 0 : i32
    %c0_i32_0 = arith.constant 0 : i32
    %c0_i32_1 = arith.constant 0 : i32
    return %c0_i32, %c0_i32_0 : i32, i32
  }
  func.func @transform_4(%arg0: i32, %arg1: i32) -> (i32, i32) {
    %c0_i32 = arith.constant 0 : i32
    %c0_i32_0 = arith.constant 0 : i32
    %c0_i32_1 = arith.constant 0 : i32
    return %c0_i32, %c0_i32_0 : i32, i32
  }
  func.func @transform_5(%arg0: i32, %arg1: i32) -> (i32, i32) {
    %c0_i32 = arith.constant 0 : i32
    %c0_i32_0 = arith.constant 0 : i32
    %c0_i32_1 = arith.constant 0 : i32
    return %c0_i32, %c0_i32_0 : i32, i32
  }
  func.func @transform_6(%arg0: i32, %arg1: i32) -> (i32, i32, i32) {
    %c0_i32 = arith.constant 0 : i32
    %c0_i32_0 = arith.constant 0 : i32
    return %arg0, %c0_i32, %arg1 : i32, i32, i32
  }
}

module attributes {stable_mosaic.version = 11 : i64} {
  func.func @_conv1d_kernel(%arg0: i32, %arg1: i32, %arg2: memref<1x32x128xf32, #tpu.memory_space<vmem>>, %arg3: memref<1x32x128xf32, #tpu.memory_space<vmem>>, %arg4: memref<64x96xf32, #tpu.memory_space<vmem>>, %arg5: memref<64x1xf32, #tpu.memory_space<vmem>>, %arg6: memref<1x64x128xf32, #tpu.memory_space<vmem>>) attributes {dimension_semantics = [#tpu.dimension_semantics<parallel>, #tpu.dimension_semantics<parallel>], iteration_bounds = array<i64: 2, 1>, scalar_prefetch = 0 : i64, scratch_operands = 0 : i64, tpu.core_type = #tpu.core_type<tc>, window_params = [{transform_indices = @transform_0, window_bounds = array<i64: 1, 32, 128>}, {transform_indices = @transform_1, window_bounds = array<i64: 1, 32, 128>}, {pipeline_mode = #tpu.pipeline_mode<synchronous>, transform_indices = @transform_2, window_bounds = array<i64: 64, 96>}, {pipeline_mode = #tpu.pipeline_mode<synchronous>, transform_indices = @transform_3, window_bounds = array<i64: 64, 1>}, {transform_indices = @transform_4, window_bounds = array<i64: 1, 64, 128>}]} {
    %c0 = arith.constant 0 : index
    %c0_0 = arith.constant 0 : index
    %c0_1 = arith.constant 0 : index
    %0 = vector.load %arg2[%c0, %c0_0, %c0_1] : memref<1x32x128xf32, #tpu.memory_space<vmem>>, vector<1x32x128xf32>
    %1 = vector.shape_cast %0 : vector<1x32x128xf32> to vector<32x128xf32>
    %c0_2 = arith.constant 0 : index
    %c0_3 = arith.constant 0 : index
    %c0_4 = arith.constant 0 : index
    %2 = vector.load %arg3[%c0_2, %c0_3, %c0_4] : memref<1x32x128xf32, #tpu.memory_space<vmem>>, vector<1x32x128xf32>
    %3 = vector.shape_cast %2 : vector<1x32x128xf32> to vector<32x128xf32>
    %4 = tpu.concatenate %1, %3 in 1 : vector<32x128xf32>, vector<32x128xf32> -> vector<32x256xf32>
    %cst = arith.constant 0.000000e+00 : f32
    %5 = vector.broadcast %cst : f32 to vector<32x256xf32>
    %6 = arith.cmpf oge, %4, %5 : vector<32x256xf32>
    %cst_5 = arith.constant 1.000000e-01 : f32
    %7 = vector.broadcast %cst_5 : f32 to vector<32x256xf32>
    %8 = arith.mulf %4, %7 : vector<32x256xf32>
    %9 = arith.select %6, %4, %8 : vector<32x256xi1>, vector<32x256xf32>
    %10 = vector.extract_strided_slice %9 {offsets = [0, 0], sizes = [32, 128], strides = [1, 1]} : vector<32x256xf32> to vector<32x128xf32>
    %11 = vector.extract_strided_slice %9 {offsets = [0, 1], sizes = [32, 128], strides = [1, 1]} : vector<32x256xf32> to vector<32x128xf32>
    %12 = vector.extract_strided_slice %9 {offsets = [0, 2], sizes = [32, 128], strides = [1, 1]} : vector<32x256xf32> to vector<32x128xf32>
    %13 = tpu.concatenate %10, %11, %12 in 0 : vector<32x128xf32>, vector<32x128xf32>, vector<32x128xf32> -> vector<96x128xf32>
    %c0_6 = arith.constant 0 : index
    %c0_7 = arith.constant 0 : index
    %14 = vector.load %arg4[%c0_6, %c0_7] : memref<64x96xf32, #tpu.memory_space<vmem>>, vector<64x96xf32>
    %cst_8 = arith.constant dense<0.000000e+00> : vector<64x128xf32>
    %15 = tpu.matmul %14, %13, %cst_8 {dimension_numbers = #tpu.dot_dimension_numbers<[1], [0], [0], [1], [0, 0, 1, 1], [], []>} : vector<64x96xf32>, vector<96x128xf32>, vector<64x128xf32> -> vector<64x128xf32>
    %c0_9 = arith.constant 0 : index
    %c0_10 = arith.constant 0 : index
    %16 = vector.load %arg5[%c0_9, %c0_10] : memref<64x1xf32, #tpu.memory_space<vmem>>, vector<64x1xf32>
    %17 = vector.broadcast %16 : vector<64x1xf32> to vector<64x128xf32>
    %18 = arith.addf %15, %17 : vector<64x128xf32>
    %c0_11 = arith.constant 0 : index
    %c0_12 = arith.constant 0 : index
    %c0_13 = arith.constant 0 : index
    %19 = vector.load %arg6[%c0_11, %c0_12, %c0_13] : memref<1x64x128xf32, #tpu.memory_space<vmem>>, vector<1x64x128xf32>
    %20 = vector.shape_cast %19 : vector<1x64x128xf32> to vector<64x128xf32>
    %21 = vector.shape_cast %18 : vector<64x128xf32> to vector<1x64x128xf32>
    tpu.vector_store %arg6[%c0_11, %c0_12, %c0_13], %21 {strides = array<i32>} : memref<1x64x128xf32, #tpu.memory_space<vmem>>, vector<1x64x128xf32>,
    return
  }
  func.func @transform_0(%arg0: i32, %arg1: i32) -> (i32, i32, i32) {
    %c0_i32 = arith.constant 0 : i32
    %c0_i32_0 = arith.constant 0 : i32
    return %arg0, %c0_i32, %arg1 : i32, i32, i32
  }
  func.func @transform_1(%arg0: i32, %arg1: i32) -> (i32, i32, i32) {
    %c1_i32 = arith.constant 1 : i32
    %0 = arith.addi %arg1, %c1_i32 : i32
    %c1_i32_0 = arith.constant 1 : i32
    %1 = arith.muli %0, %c1_i32_0 : i32
    %c0_i32 = arith.constant 0 : i32
    %c0_i32_1 = arith.constant 0 : i32
    return %arg0, %c0_i32, %1 : i32, i32, i32
  }
  func.func @transform_2(%arg0: i32, %arg1: i32) -> (i32, i32) {
    %c0_i32 = arith.constant 0 : i32
    %c0_i32_0 = arith.constant 0 : i32
    %c0_i32_1 = arith.constant 0 : i32
    return %c0_i32, %c0_i32_0 : i32, i32
  }
  func.func @transform_3(%arg0: i32, %arg1: i32) -> (i32, i32) {
    %c0_i32 = arith.constant 0 : i32
    %c0_i32_0 = arith.constant 0 : i32
    %c0_i32_1 = arith.constant 0 : i32
    return %c0_i32, %c0_i32_0 : i32, i32
  }
  func.func @transform_4(%arg0: i32, %arg1: i32) -> (i32, i32, i32) {
    %c0_i32 = arith.constant 0 : i32
    %c0_i32_0 = arith.constant 0 : i32
    return %arg0, %c0_i32, %arg1 : i32, i32, i32
  }
}

module attributes {stable_mosaic.version = 11 : i64} {
  func.func @_resblock1_step_kernel(%arg0: i32, %arg1: i32, %arg2: memref<1x16x128xf32, #tpu.memory_space<vmem>>, %arg3: memref<1x16x128xf32, #tpu.memory_space<vmem>>, %arg4: memref<16x48xf32, #tpu.memory_space<vmem>>, %arg5: memref<16x1xf32, #tpu.memory_space<vmem>>, %arg6: memref<16x48xf32, #tpu.memory_space<vmem>>, %arg7: memref<16x1xf32, #tpu.memory_space<vmem>>, %arg8: memref<1x16x128xf32, #tpu.memory_space<vmem>>) attributes {dimension_semantics = [#tpu.dimension_semantics<parallel>, #tpu.dimension_semantics<parallel>], iteration_bounds = array<i64: 2, 1>, scalar_prefetch = 0 : i64, scratch_operands = 0 : i64, tpu.core_type = #tpu.core_type<tc>, window_params = [{transform_indices = @transform_0, window_bounds = array<i64: 1, 16, 128>}, {transform_indices = @transform_1, window_bounds = array<i64: 1, 16, 128>}, {pipeline_mode = #tpu.pipeline_mode<synchronous>, transform_indices = @transform_2, window_bounds = array<i64: 16, 48>}, {pipeline_mode = #tpu.pipeline_mode<synchronous>, transform_indices = @transform_3, window_bounds = array<i64: 16, 1>}, {pipeline_mode = #tpu.pipeline_mode<synchronous>, transform_indices = @transform_4, window_bounds = array<i64: 16, 48>}, {pipeline_mode = #tpu.pipeline_mode<synchronous>, transform_indices = @transform_5, window_bounds = array<i64: 16, 1>}, {transform_indices = @transform_6, window_bounds = array<i64: 1, 16, 128>}]} {
    %c0 = arith.constant 0 : index
    %c0_0 = arith.constant 0 : index
    %c0_1 = arith.constant 0 : index
    %0 = vector.load %arg2[%c0, %c0_0, %c0_1] : memref<1x16x128xf32, #tpu.memory_space<vmem>>, vector<1x16x128xf32>
    %1 = vector.shape_cast %0 : vector<1x16x128xf32> to vector<16x128xf32>
    %c0_2 = arith.constant 0 : index
    %c0_3 = arith.constant 0 : index
    %c0_4 = arith.constant 0 : index
    %2 = vector.load %arg3[%c0_2, %c0_3, %c0_4] : memref<1x16x128xf32, #tpu.memory_space<vmem>>, vector<1x16x128xf32>
    %3 = vector.shape_cast %2 : vector<1x16x128xf32> to vector<16x128xf32>
    %4 = tpu.concatenate %1, %3 in 1 : vector<16x128xf32>, vector<16x128xf32> -> vector<16x256xf32>
    %cst = arith.constant 0.000000e+00 : f32
    %5 = vector.broadcast %cst : f32 to vector<16x256xf32>
    %6 = arith.cmpf oge, %4, %5 : vector<16x256xf32>
    %cst_5 = arith.constant 1.000000e-01 : f32
    %7 = vector.broadcast %cst_5 : f32 to vector<16x256xf32>
    %8 = arith.mulf %4, %7 : vector<16x256xf32>
    %9 = arith.select %6, %4, %8 : vector<16x256xi1>, vector<16x256xf32>
    %10 = vector.extract_strided_slice %9 {offsets = [0, 0], sizes = [16, 130], strides = [1, 1]} : vector<16x256xf32> to vector<16x130xf32>
    %11 = vector.extract_strided_slice %9 {offsets = [0, 3], sizes = [16, 130], strides = [1, 1]} : vector<16x256xf32> to vector<16x130xf32>
    %12 = vector.extract_strided_slice %9 {offsets = [0, 6], sizes = [16, 130], strides = [1, 1]} : vector<16x256xf32> to vector<16x130xf32>
    %13 = tpu.concatenate %10, %11, %12 in 0 : vector<16x130xf32>, vector<16x130xf32>, vector<16x130xf32> -> vector<48x130xf32>
    %c0_6 = arith.constant 0 : index
    %c0_7 = arith.constant 0 : index
    %14 = vector.load %arg4[%c0_6, %c0_7] : memref<16x48xf32, #tpu.memory_space<vmem>>, vector<16x48xf32>
    %cst_8 = arith.constant dense<0.000000e+00> : vector<16x130xf32>
    %15 = tpu.matmul %14, %13, %cst_8 {dimension_numbers = #tpu.dot_dimension_numbers<[1], [0], [0], [1], [0, 0, 1, 1], [], []>} : vector<16x48xf32>, vector<48x130xf32>, vector<16x130xf32> -> vector<16x130xf32>
    %c0_9 = arith.constant 0 : index
    %c0_10 = arith.constant 0 : index
    %16 = vector.load %arg5[%c0_9, %c0_10] : memref<16x1xf32, #tpu.memory_space<vmem>>, vector<16x1xf32>
    %17 = vector.broadcast %16 : vector<16x1xf32> to vector<16x130xf32>
    %18 = arith.addf %15, %17 : vector<16x130xf32>
    %c128_i32 = arith.constant 128 : i32
    %19 = arith.muli %arg1, %c128_i32 : i32
    %c1_i32 = arith.constant 1 : i32
    %20 = arith.subi %19, %c1_i32 : i32
    %21 = tpu.iota {dimensions = array<i32: 1>} : vector<1x130xi32>
    %22 = vector.broadcast %20 : i32 to vector<1x130xi32>
    %23 = arith.addi %22, %21 : vector<1x130xi32>
    %c0_i32 = arith.constant 0 : i32
    %24 = vector.broadcast %c0_i32 : i32 to vector<1x130xi32>
    %25 = arith.cmpi sge, %23, %24 : vector<1x130xi32>
    %c32_i32 = arith.constant 32 : i32
    %26 = vector.broadcast %c32_i32 : i32 to vector<1x130xi32>
    %27 = arith.cmpi slt, %23, %26 : vector<1x130xi32>
    %28 = arith.andi %25, %27 : vector<1x130xi1>
    %cst_11 = arith.constant 0.000000e+00 : f32
    %29 = vector.shape_cast %28 : vector<1x130xi1> to vector<1x130xi1>
    %30 = vector.broadcast %29 : vector<1x130xi1> to vector<16x130xi1>
    %31 = vector.broadcast %cst_11 : f32 to vector<16x130xf32>
    %32 = arith.select %30, %18, %31 : vector<16x130xi1>, vector<16x130xf32>
    %cst_12 = arith.constant 0.000000e+00 : f32
    %33 = vector.broadcast %cst_12 : f32 to vector<16x130xf32>
    %34 = arith.cmpf oge, %32, %33 : vector<16x130xf32>
    %cst_13 = arith.constant 1.000000e-01 : f32
    %35 = vector.broadcast %cst_13 : f32 to vector<16x130xf32>
    %36 = arith.mulf %32, %35 : vector<16x130xf32>
    %37 = arith.select %34, %32, %36 : vector<16x130xi1>, vector<16x130xf32>
    %38 = vector.extract_strided_slice %37 {offsets = [0, 0], sizes = [16, 128], strides = [1, 1]} : vector<16x130xf32> to vector<16x128xf32>
    %39 = vector.extract_strided_slice %37 {offsets = [0, 1], sizes = [16, 128], strides = [1, 1]} : vector<16x130xf32> to vector<16x128xf32>
    %40 = vector.extract_strided_slice %37 {offsets = [0, 2], sizes = [16, 128], strides = [1, 1]} : vector<16x130xf32> to vector<16x128xf32>
    %41 = tpu.concatenate %38, %39, %40 in 0 : vector<16x128xf32>, vector<16x128xf32>, vector<16x128xf32> -> vector<48x128xf32>
    %c0_14 = arith.constant 0 : index
    %c0_15 = arith.constant 0 : index
    %42 = vector.load %arg6[%c0_14, %c0_15] : memref<16x48xf32, #tpu.memory_space<vmem>>, vector<16x48xf32>
    %cst_16 = arith.constant dense<0.000000e+00> : vector<16x128xf32>
    %43 = tpu.matmul %42, %41, %cst_16 {dimension_numbers = #tpu.dot_dimension_numbers<[1], [0], [0], [1], [0, 0, 1, 1], [], []>} : vector<16x48xf32>, vector<48x128xf32>, vector<16x128xf32> -> vector<16x128xf32>
    %c0_17 = arith.constant 0 : index
    %c0_18 = arith.constant 0 : index
    %44 = vector.load %arg7[%c0_17, %c0_18] : memref<16x1xf32, #tpu.memory_space<vmem>>, vector<16x1xf32>
    %45 = vector.broadcast %44 : vector<16x1xf32> to vector<16x128xf32>
    %46 = arith.addf %43, %45 : vector<16x128xf32>
    %47 = vector.extract_strided_slice %4 {offsets = [0, 4], sizes = [16, 128], strides = [1, 1]} : vector<16x256xf32> to vector<16x128xf32>
    %48 = arith.addf %46, %47 : vector<16x128xf32>
    %c0_19 = arith.constant 0 : index
    %c0_20 = arith.constant 0 : index
    %c0_21 = arith.constant 0 : index
    %49 = vector.load %arg8[%c0_19, %c0_20, %c0_21] : memref<1x16x128xf32, #tpu.memory_space<vmem>>, vector<1x16x128xf32>
    %50 = vector.shape_cast %49 : vector<1x16x128xf32> to vector<16x128xf32>
    %51 = vector.shape_cast %48 : vector<16x128xf32> to vector<1x16x128xf32>
    tpu.vector_store %arg8[%c0_19, %c0_20, %c0_21], %51 {strides = array<i32>} : memref<1x16x128xf32, #tpu.memory_space<vmem>>, vector<1x16x128xf32>,
    return
  }
  func.func @transform_0(%arg0: i32, %arg1: i32) -> (i32, i32, i32) {
    %c0_i32 = arith.constant 0 : i32
    %c0_i32_0 = arith.constant 0 : i32
    return %arg0, %c0_i32, %arg1 : i32, i32, i32
  }
  func.func @transform_1(%arg0: i32, %arg1: i32) -> (i32, i32, i32) {
    %c1_i32 = arith.constant 1 : i32
    %0 = arith.addi %arg1, %c1_i32 : i32
    %c1_i32_0 = arith.constant 1 : i32
    %1 = arith.muli %0, %c1_i32_0 : i32
    %c0_i32 = arith.constant 0 : i32
    %c0_i32_1 = arith.constant 0 : i32
    return %arg0, %c0_i32, %1 : i32, i32, i32
  }
  func.func @transform_2(%arg0: i32, %arg1: i32) -> (i32, i32) {
    %c0_i32 = arith.constant 0 : i32
    %c0_i32_0 = arith.constant 0 : i32
    %c0_i32_1 = arith.constant 0 : i32
    return %c0_i32, %c0_i32_0 : i32, i32
  }
  func.func @transform_3(%arg0: i32, %arg1: i32) -> (i32, i32) {
    %c0_i32 = arith.constant 0 : i32
    %c0_i32_0 = arith.constant 0 : i32
    %c0_i32_1 = arith.constant 0 : i32
    return %c0_i32, %c0_i32_0 : i32, i32
  }
  func.func @transform_4(%arg0: i32, %arg1: i32) -> (i32, i32) {
    %c0_i32 = arith.constant 0 : i32
    %c0_i32_0 = arith.constant 0 : i32
    %c0_i32_1 = arith.constant 0 : i32
    return %c0_i32, %c0_i32_0 : i32, i32
  }
  func.func @transform_5(%arg0: i32, %arg1: i32) -> (i32, i32) {
    %c0_i32 = arith.constant 0 : i32
    %c0_i32_0 = arith.constant 0 : i32
    %c0_i32_1 = arith.constant 0 : i32
    return %c0_i32, %c0_i32_0 : i32, i32
  }
  func.func @transform_6(%arg0: i32, %arg1: i32) -> (i32, i32, i32) {
    %c0_i32 = arith.constant 0 : i32
    %c0_i32_0 = arith.constant 0 : i32
    return %arg0, %c0_i32, %arg1 : i32, i32, i32
  }
}

module attributes {stable_mosaic.version = 11 : i64} {
  func.func @_resblock1_step_kernel(%arg0: i32, %arg1: i32, %arg2: memref<1x16x128xf32, #tpu.memory_space<vmem>>, %arg3: memref<1x16x128xf32, #tpu.memory_space<vmem>>, %arg4: memref<16x112xf32, #tpu.memory_space<vmem>>, %arg5: memref<16x1xf32, #tpu.memory_space<vmem>>, %arg6: memref<16x112xf32, #tpu.memory_space<vmem>>, %arg7: memref<16x1xf32, #tpu.memory_space<vmem>>, %arg8: memref<1x16x128xf32, #tpu.memory_space<vmem>>) attributes {dimension_semantics = [#tpu.dimension_semantics<parallel>, #tpu.dimension_semantics<parallel>], iteration_bounds = array<i64: 2, 1>, scalar_prefetch = 0 : i64, scratch_operands = 0 : i64, tpu.core_type = #tpu.core_type<tc>, window_params = [{transform_indices = @transform_0, window_bounds = array<i64: 1, 16, 128>}, {transform_indices = @transform_1, window_bounds = array<i64: 1, 16, 128>}, {pipeline_mode = #tpu.pipeline_mode<synchronous>, transform_indices = @transform_2, window_bounds = array<i64: 16, 112>}, {pipeline_mode = #tpu.pipeline_mode<synchronous>, transform_indices = @transform_3, window_bounds = array<i64: 16, 1>}, {pipeline_mode = #tpu.pipeline_mode<synchronous>, transform_indices = @transform_4, window_bounds = array<i64: 16, 112>}, {pipeline_mode = #tpu.pipeline_mode<synchronous>, transform_indices = @transform_5, window_bounds = array<i64: 16, 1>}, {transform_indices = @transform_6, window_bounds = array<i64: 1, 16, 128>}]} {
    %c0 = arith.constant 0 : index
    %c0_0 = arith.constant 0 : index
    %c0_1 = arith.constant 0 : index
    %0 = vector.load %arg2[%c0, %c0_0, %c0_1] : memref<1x16x128xf32, #tpu.memory_space<vmem>>, vector<1x16x128xf32>
    %1 = vector.shape_cast %0 : vector<1x16x128xf32> to vector<16x128xf32>
    %c0_2 = arith.constant 0 : index
    %c0_3 = arith.constant 0 : index
    %c0_4 = arith.constant 0 : index
    %2 = vector.load %arg3[%c0_2, %c0_3, %c0_4] : memref<1x16x128xf32, #tpu.memory_space<vmem>>, vector<1x16x128xf32>
    %3 = vector.shape_cast %2 : vector<1x16x128xf32> to vector<16x128xf32>
    %4 = tpu.concatenate %1, %3 in 1 : vector<16x128xf32>, vector<16x128xf32> -> vector<16x256xf32>
    %cst = arith.constant 0.000000e+00 : f32
    %5 = vector.broadcast %cst : f32 to vector<16x256xf32>
    %6 = arith.cmpf oge, %4, %5 : vector<16x256xf32>
    %cst_5 = arith.constant 1.000000e-01 : f32
    %7 = vector.broadcast %cst_5 : f32 to vector<16x256xf32>
    %8 = arith.mulf %4, %7 : vector<16x256xf32>
    %9 = arith.select %6, %4, %8 : vector<16x256xi1>, vector<16x256xf32>
    %c0_6 = arith.constant 0 : index
    %c0_7 = arith.constant 0 : index
    %10 = vector.load %arg4[%c0_6, %c0_7] : memref<16x112xf32, #tpu.memory_space<vmem>>, vector<16x16xf32>
    %11 = vector.extract_strided_slice %9 {offsets = [0, 0], sizes = [16, 134], strides = [1, 1]} : vector<16x256xf32> to vector<16x134xf32>
    %cst_8 = arith.constant dense<0.000000e+00> : vector<16x134xf32>
    %12 = tpu.matmul %10, %11, %cst_8 {dimension_numbers = #tpu.dot_dimension_numbers<[1], [0], [0], [1], [0, 0, 1, 1], [], []>} : vector<16x16xf32>, vector<16x134xf32>, vector<16x134xf32> -> vector<16x134xf32>
    %c0_9 = arith.constant 0 : index
    %c16 = arith.constant 16 : index
    %13 = vector.load %arg4[%c0_9, %c16] : memref<16x112xf32, #tpu.memory_space<vmem>>, vector<16x16xf32>
    %14 = vector.extract_strided_slice %9 {offsets = [0, 1], sizes = [16, 134], strides = [1, 1]} : vector<16x256xf32> to vector<16x134xf32>
    %cst_10 = arith.constant dense<0.000000e+00> : vector<16x134xf32>
    %15 = tpu.matmul %13, %14, %cst_10 {dimension_numbers = #tpu.dot_dimension_numbers<[1], [0], [0], [1], [0, 0, 1, 1], [], []>} : vector<16x16xf32>, vector<16x134xf32>, vector<16x134xf32> -> vector<16x134xf32>
    %16 = arith.addf %12, %15 : vector<16x134xf32>
    %c0_11 = arith.constant 0 : index
    %c32 = arith.constant 32 : index
    %17 = vector.load %arg4[%c0_11, %c32] : memref<16x112xf32, #tpu.memory_space<vmem>>, vector<16x16xf32>
    %18 = vector.extract_strided_slice %9 {offsets = [0, 2], sizes = [16, 134], strides = [1, 1]} : vector<16x256xf32> to vector<16x134xf32>
    %cst_12 = arith.constant dense<0.000000e+00> : vector<16x134xf32>
    %19 = tpu.matmul %17, %18, %cst_12 {dimension_numbers = #tpu.dot_dimension_numbers<[1], [0], [0], [1], [0, 0, 1, 1], [], []>} : vector<16x16xf32>, vector<16x134xf32>, vector<16x134xf32> -> vector<16x134xf32>
    %20 = arith.addf %16, %19 : vector<16x134xf32>
    %c0_13 = arith.constant 0 : index
    %c48 = arith.constant 48 : index
    %21 = vector.load %arg4[%c0_13, %c48] : memref<16x112xf32, #tpu.memory_space<vmem>>, vector<16x16xf32>
    %22 = vector.extract_strided_slice %9 {offsets = [0, 3], sizes = [16, 134], strides = [1, 1]} : vector<16x256xf32> to vector<16x134xf32>
    %cst_14 = arith.constant dense<0.000000e+00> : vector<16x134xf32>
    %23 = tpu.matmul %21, %22, %cst_14 {dimension_numbers = #tpu.dot_dimension_numbers<[1], [0], [0], [1], [0, 0, 1, 1], [], []>} : vector<16x16xf32>, vector<16x134xf32>, vector<16x134xf32> -> vector<16x134xf32>
    %24 = arith.addf %20, %23 : vector<16x134xf32>
    %c0_15 = arith.constant 0 : index
    %c64 = arith.constant 64 : index
    %25 = vector.load %arg4[%c0_15, %c64] : memref<16x112xf32, #tpu.memory_space<vmem>>, vector<16x16xf32>
    %26 = vector.extract_strided_slice %9 {offsets = [0, 4], sizes = [16, 134], strides = [1, 1]} : vector<16x256xf32> to vector<16x134xf32>
    %cst_16 = arith.constant dense<0.000000e+00> : vector<16x134xf32>
    %27 = tpu.matmul %25, %26, %cst_16 {dimension_numbers = #tpu.dot_dimension_numbers<[1], [0], [0], [1], [0, 0, 1, 1], [], []>} : vector<16x16xf32>, vector<16x134xf32>, vector<16x134xf32> -> vector<16x134xf32>
    %28 = arith.addf %24, %27 : vector<16x134xf32>
    %c0_17 = arith.constant 0 : index
    %c80 = arith.constant 80 : index
    %29 = vector.load %arg4[%c0_17, %c80] : memref<16x112xf32, #tpu.memory_space<vmem>>, vector<16x16xf32>
    %30 = vector.extract_strided_slice %9 {offsets = [0, 5], sizes = [16, 134], strides = [1, 1]} : vector<16x256xf32> to vector<16x134xf32>
    %cst_18 = arith.constant dense<0.000000e+00> : vector<16x134xf32>
    %31 = tpu.matmul %29, %30, %cst_18 {dimension_numbers = #tpu.dot_dimension_numbers<[1], [0], [0], [1], [0, 0, 1, 1], [], []>} : vector<16x16xf32>, vector<16x134xf32>, vector<16x134xf32> -> vector<16x134xf32>
    %32 = arith.addf %28, %31 : vector<16x134xf32>
    %c0_19 = arith.constant 0 : index
    %c96 = arith.constant 96 : index
    %33 = vector.load %arg4[%c0_19, %c96] : memref<16x112xf32, #tpu.memory_space<vmem>>, vector<16x16xf32>
    %34 = vector.extract_strided_slice %9 {offsets = [0, 6], sizes = [16, 134], strides = [1, 1]} : vector<16x256xf32> to vector<16x134xf32>
    %cst_20 = arith.constant dense<0.000000e+00> : vector<16x134xf32>
    %35 = tpu.matmul %33, %34, %cst_20 {dimension_numbers = #tpu.dot_dimension_numbers<[1], [0], [0], [1], [0, 0, 1, 1], [], []>} : vector<16x16xf32>, vector<16x134xf32>, vector<16x134xf32> -> vector<16x134xf32>
    %36 = arith.addf %32, %35 : vector<16x134xf32>
    %c0_21 = arith.constant 0 : index
    %c0_22 = arith.constant 0 : index
    %37 = vector.load %arg5[%c0_21, %c0_22] : memref<16x1xf32, #tpu.memory_space<vmem>>, vector<16x1xf32>
    %38 = vector.broadcast %37 : vector<16x1xf32> to vector<16x134xf32>
    %39 = arith.addf %36, %38 : vector<16x134xf32>
    %c128_i32 = arith.constant 128 : i32
    %40 = arith.muli %arg1, %c128_i32 : i32
    %c3_i32 = arith.constant 3 : i32
    %41 = arith.subi %40, %c3_i32 : i32
    %42 = tpu.iota {dimensions = array<i32: 1>} : vector<1x134xi32>
    %43 = vector.broadcast %41 : i32 to vector<1x134xi32>
    %44 = arith.addi %43, %42 : vector<1x134xi32>
    %c0_i32 = arith.constant 0 : i32
    %45 = vector.broadcast %c0_i32 : i32 to vector<1x134xi32>
    %46 = arith.cmpi sge, %44, %45 : vector<1x134xi32>
    %c32_i32 = arith.constant 32 : i32
    %47 = vector.broadcast %c32_i32 : i32 to vector<1x134xi32>
    %48 = arith.cmpi slt, %44, %47 : vector<1x134xi32>
    %49 = arith.andi %46, %48 : vector<1x134xi1>
    %cst_23 = arith.constant 0.000000e+00 : f32
    %50 = vector.shape_cast %49 : vector<1x134xi1> to vector<1x134xi1>
    %51 = vector.broadcast %50 : vector<1x134xi1> to vector<16x134xi1>
    %52 = vector.broadcast %cst_23 : f32 to vector<16x134xf32>
    %53 = arith.select %51, %39, %52 : vector<16x134xi1>, vector<16x134xf32>
    %cst_24 = arith.constant 0.000000e+00 : f32
    %54 = vector.broadcast %cst_24 : f32 to vector<16x134xf32>
    %55 = arith.cmpf oge, %53, %54 : vector<16x134xf32>
    %cst_25 = arith.constant 1.000000e-01 : f32
    %56 = vector.broadcast %cst_25 : f32 to vector<16x134xf32>
    %57 = arith.mulf %53, %56 : vector<16x134xf32>
    %58 = arith.select %55, %53, %57 : vector<16x134xi1>, vector<16x134xf32>
    %c0_26 = arith.constant 0 : index
    %c0_27 = arith.constant 0 : index
    %59 = vector.load %arg6[%c0_26, %c0_27] : memref<16x112xf32, #tpu.memory_space<vmem>>, vector<16x16xf32>
    %60 = vector.extract_strided_slice %58 {offsets = [0, 0], sizes = [16, 128], strides = [1, 1]} : vector<16x134xf32> to vector<16x128xf32>
    %cst_28 = arith.constant dense<0.000000e+00> : vector<16x128xf32>
    %61 = tpu.matmul %59, %60, %cst_28 {dimension_numbers = #tpu.dot_dimension_numbers<[1], [0], [0], [1], [0, 0, 1, 1], [], []>} : vector<16x16xf32>, vector<16x128xf32>, vector<16x128xf32> -> vector<16x128xf32>
    %c0_29 = arith.constant 0 : index
    %c16_30 = arith.constant 16 : index
    %62 = vector.load %arg6[%c0_29, %c16_30] : memref<16x112xf32, #tpu.memory_space<vmem>>, vector<16x16xf32>
    %63 = vector.extract_strided_slice %58 {offsets = [0, 1], sizes = [16, 128], strides = [1, 1]} : vector<16x134xf32> to vector<16x128xf32>
    %cst_31 = arith.constant dense<0.000000e+00> : vector<16x128xf32>
    %64 = tpu.matmul %62, %63, %cst_31 {dimension_numbers = #tpu.dot_dimension_numbers<[1], [0], [0], [1], [0, 0, 1, 1], [], []>} : vector<16x16xf32>, vector<16x128xf32>, vector<16x128xf32> -> vector<16x128xf32>
    %65 = arith.addf %61, %64 : vector<16x128xf32>
    %c0_32 = arith.constant 0 : index
    %c32_33 = arith.constant 32 : index
    %66 = vector.load %arg6[%c0_32, %c32_33] : memref<16x112xf32, #tpu.memory_space<vmem>>, vector<16x16xf32>
    %67 = vector.extract_strided_slice %58 {offsets = [0, 2], sizes = [16, 128], strides = [1, 1]} : vector<16x134xf32> to vector<16x128xf32>
    %cst_34 = arith.constant dense<0.000000e+00> : vector<16x128xf32>
    %68 = tpu.matmul %66, %67, %cst_34 {dimension_numbers = #tpu.dot_dimension_numbers<[1], [0], [0], [1], [0, 0, 1, 1], [], []>} : vector<16x16xf32>, vector<16x128xf32>, vector<16x128xf32> -> vector<16x128xf32>
    %69 = arith.addf %65, %68 : vector<16x128xf32>
    %c0_35 = arith.constant 0 : index
    %c48_36 = arith.constant 48 : index
    %70 = vector.load %arg6[%c0_35, %c48_36] : memref<16x112xf32, #tpu.memory_space<vmem>>, vector<16x16xf32>
    %71 = vector.extract_strided_slice %58 {offsets = [0, 3], sizes = [16, 128], strides = [1, 1]} : vector<16x134xf32> to vector<16x128xf32>
    %cst_37 = arith.constant dense<0.000000e+00> : vector<16x128xf32>
    %72 = tpu.matmul %70, %71, %cst_37 {dimension_numbers = #tpu.dot_dimension_numbers<[1], [0], [0], [1], [0, 0, 1, 1], [], []>} : vector<16x16xf32>, vector<16x128xf32>, vector<16x128xf32> -> vector<16x128xf32>
    %73 = arith.addf %69, %72 : vector<16x128xf32>
    %c0_38 = arith.constant 0 : index
    %c64_39 = arith.constant 64 : index
    %74 = vector.load %arg6[%c0_38, %c64_39] : memref<16x112xf32, #tpu.memory_space<vmem>>, vector<16x16xf32>
    %75 = vector.extract_strided_slice %58 {offsets = [0, 4], sizes = [16, 128], strides = [1, 1]} : vector<16x134xf32> to vector<16x128xf32>
    %cst_40 = arith.constant dense<0.000000e+00> : vector<16x128xf32>
    %76 = tpu.matmul %74, %75, %cst_40 {dimension_numbers = #tpu.dot_dimension_numbers<[1], [0], [0], [1], [0, 0, 1, 1], [], []>} : vector<16x16xf32>, vector<16x128xf32>, vector<16x128xf32> -> vector<16x128xf32>
    %77 = arith.addf %73, %76 : vector<16x128xf32>
    %c0_41 = arith.constant 0 : index
    %c80_42 = arith.constant 80 : index
    %78 = vector.load %arg6[%c0_41, %c80_42] : memref<16x112xf32, #tpu.memory_space<vmem>>, vector<16x16xf32>
    %79 = vector.extract_strided_slice %58 {offsets = [0, 5], sizes = [16, 128], strides = [1, 1]} : vector<16x134xf32> to vector<16x128xf32>
    %cst_43 = arith.constant dense<0.000000e+00> : vector<16x128xf32>
    %80 = tpu.matmul %78, %79, %cst_43 {dimension_numbers = #tpu.dot_dimension_numbers<[1], [0], [0], [1], [0, 0, 1, 1], [], []>} : vector<16x16xf32>, vector<16x128xf32>, vector<16x128xf32> -> vector<16x128xf32>
    %81 = arith.addf %77, %80 : vector<16x128xf32>
    %c0_44 = arith.constant 0 : index
    %c96_45 = arith.constant 96 : index
    %82 = vector.load %arg6[%c0_44, %c96_45] : memref<16x112xf32, #tpu.memory_space<vmem>>, vector<16x16xf32>
    %83 = vector.extract_strided_slice %58 {offsets = [0, 6], sizes = [16, 128], strides = [1, 1]} : vector<16x134xf32> to vector<16x128xf32>
    %cst_46 = arith.constant dense<0.000000e+00> : vector<16x128xf32>
    %84 = tpu.matmul %82, %83, %cst_46 {dimension_numbers = #tpu.dot_dimension_numbers<[1], [0], [0], [1], [0, 0, 1, 1], [], []>} : vector<16x16xf32>, vector<16x128xf32>, vector<16x128xf32> -> vector<16x128xf32>
    %85 = arith.addf %81, %84 : vector<16x128xf32>
    %c0_47 = arith.constant 0 : index
    %c0_48 = arith.constant 0 : index
    %86 = vector.load %arg7[%c0_47, %c0_48] : memref<16x1xf32, #tpu.memory_space<vmem>>, vector<16x1xf32>
    %87 = vector.broadcast %86 : vector<16x1xf32> to vector<16x128xf32>
    %88 = arith.addf %85, %87 : vector<16x128xf32>
    %89 = vector.extract_strided_slice %4 {offsets = [0, 6], sizes = [16, 128], strides = [1, 1]} : vector<16x256xf32> to vector<16x128xf32>
    %90 = arith.addf %88, %89 : vector<16x128xf32>
    %c0_49 = arith.constant 0 : index
    %c0_50 = arith.constant 0 : index
    %c0_51 = arith.constant 0 : index
    %91 = vector.load %arg8[%c0_49, %c0_50, %c0_51] : memref<1x16x128xf32, #tpu.memory_space<vmem>>, vector<1x16x128xf32>
    %92 = vector.shape_cast %91 : vector<1x16x128xf32> to vector<16x128xf32>
    %93 = vector.shape_cast %90 : vector<16x128xf32> to vector<1x16x128xf32>
    tpu.vector_store %arg8[%c0_49, %c0_50, %c0_51], %93 {strides = array<i32>} : memref<1x16x128xf32, #tpu.memory_space<vmem>>, vector<1x16x128xf32>,
    return
  }
  func.func @transform_0(%arg0: i32, %arg1: i32) -> (i32, i32, i32) {
    %c0_i32 = arith.constant 0 : i32
    %c0_i32_0 = arith.constant 0 : i32
    return %arg0, %c0_i32, %arg1 : i32, i32, i32
  }
  func.func @transform_1(%arg0: i32, %arg1: i32) -> (i32, i32, i32) {
    %c1_i32 = arith.constant 1 : i32
    %0 = arith.addi %arg1, %c1_i32 : i32
    %c1_i32_0 = arith.constant 1 : i32
    %1 = arith.muli %0, %c1_i32_0 : i32
    %c0_i32 = arith.constant 0 : i32
    %c0_i32_1 = arith.constant 0 : i32
    return %arg0, %c0_i32, %1 : i32, i32, i32
  }
  func.func @transform_2(%arg0: i32, %arg1: i32) -> (i32, i32) {
    %c0_i32 = arith.constant 0 : i32
    %c0_i32_0 = arith.constant 0 : i32
    %c0_i32_1 = arith.constant 0 : i32
    return %c0_i32, %c0_i32_0 : i32, i32
  }
  func.func @transform_3(%arg0: i32, %arg1: i32) -> (i32, i32) {
    %c0_i32 = arith.constant 0 : i32
    %c0_i32_0 = arith.constant 0 : i32
    %c0_i32_1 = arith.constant 0 : i32
    return %c0_i32, %c0_i32_0 : i32, i32
  }
  func.func @transform_4(%arg0: i32, %arg1: i32) -> (i32, i32) {
    %c0_i32 = arith.constant 0 : i32
    %c0_i32_0 = arith.constant 0 : i32
    %c0_i32_1 = arith.constant 0 : i32
    return %c0_i32, %c0_i32_0 : i32, i32
  }
  func.func @transform_5(%arg0: i32, %arg1: i32) -> (i32, i32) {
    %c0_i32 = arith.constant 0 : i32
    %c0_i32_0 = arith.constant 0 : i32
    %c0_i32_1 = arith.constant 0 : i32
    return %c0_i32, %c0_i32_0 : i32, i32
  }
  func.func @transform_6(%arg0: i32, %arg1: i32) -> (i32, i32, i32) {
    %c0_i32 = arith.constant 0 : i32
    %c0_i32_0 = arith.constant 0 : i32
    return %arg0, %c0_i32, %arg1 : i32, i32, i32
  }
}

module attributes {stable_mosaic.version = 11 : i64} {
  func.func @_resblock1_step_kernel(%arg0: i32, %arg1: i32, %arg2: memref<1x16x128xf32, #tpu.memory_space<vmem>>, %arg3: memref<1x16x128xf32, #tpu.memory_space<vmem>>, %arg4: memref<16x112xf32, #tpu.memory_space<vmem>>, %arg5: memref<16x1xf32, #tpu.memory_space<vmem>>, %arg6: memref<16x112xf32, #tpu.memory_space<vmem>>, %arg7: memref<16x1xf32, #tpu.memory_space<vmem>>, %arg8: memref<1x16x128xf32, #tpu.memory_space<vmem>>) attributes {dimension_semantics = [#tpu.dimension_semantics<parallel>, #tpu.dimension_semantics<parallel>], iteration_bounds = array<i64: 2, 1>, scalar_prefetch = 0 : i64, scratch_operands = 0 : i64, tpu.core_type = #tpu.core_type<tc>, window_params = [{transform_indices = @transform_0, window_bounds = array<i64: 1, 16, 128>}, {transform_indices = @transform_1, window_bounds = array<i64: 1, 16, 128>}, {pipeline_mode = #tpu.pipeline_mode<synchronous>, transform_indices = @transform_2, window_bounds = array<i64: 16, 112>}, {pipeline_mode = #tpu.pipeline_mode<synchronous>, transform_indices = @transform_3, window_bounds = array<i64: 16, 1>}, {pipeline_mode = #tpu.pipeline_mode<synchronous>, transform_indices = @transform_4, window_bounds = array<i64: 16, 112>}, {pipeline_mode = #tpu.pipeline_mode<synchronous>, transform_indices = @transform_5, window_bounds = array<i64: 16, 1>}, {transform_indices = @transform_6, window_bounds = array<i64: 1, 16, 128>}]} {
    %c0 = arith.constant 0 : index
    %c0_0 = arith.constant 0 : index
    %c0_1 = arith.constant 0 : index
    %0 = vector.load %arg2[%c0, %c0_0, %c0_1] : memref<1x16x128xf32, #tpu.memory_space<vmem>>, vector<1x16x128xf32>
    %1 = vector.shape_cast %0 : vector<1x16x128xf32> to vector<16x128xf32>
    %c0_2 = arith.constant 0 : index
    %c0_3 = arith.constant 0 : index
    %c0_4 = arith.constant 0 : index
    %2 = vector.load %arg3[%c0_2, %c0_3, %c0_4] : memref<1x16x128xf32, #tpu.memory_space<vmem>>, vector<1x16x128xf32>
    %3 = vector.shape_cast %2 : vector<1x16x128xf32> to vector<16x128xf32>
    %4 = tpu.concatenate %1, %3 in 1 : vector<16x128xf32>, vector<16x128xf32> -> vector<16x256xf32>
    %cst = arith.constant 0.000000e+00 : f32
    %5 = vector.broadcast %cst : f32 to vector<16x256xf32>
    %6 = arith.cmpf oge, %4, %5 : vector<16x256xf32>
    %cst_5 = arith.constant 1.000000e-01 : f32
    %7 = vector.broadcast %cst_5 : f32 to vector<16x256xf32>
    %8 = arith.mulf %4, %7 : vector<16x256xf32>
    %9 = arith.select %6, %4, %8 : vector<16x256xi1>, vector<16x256xf32>
    %c0_6 = arith.constant 0 : index
    %c0_7 = arith.constant 0 : index
    %10 = vector.load %arg4[%c0_6, %c0_7] : memref<16x112xf32, #tpu.memory_space<vmem>>, vector<16x16xf32>
    %11 = vector.extract_strided_slice %9 {offsets = [0, 0], sizes = [16, 134], strides = [1, 1]} : vector<16x256xf32> to vector<16x134xf32>
    %cst_8 = arith.constant dense<0.000000e+00> : vector<16x134xf32>
    %12 = tpu.matmul %10, %11, %cst_8 {dimension_numbers = #tpu.dot_dimension_numbers<[1], [0], [0], [1], [0, 0, 1, 1], [], []>} : vector<16x16xf32>, vector<16x134xf32>, vector<16x134xf32> -> vector<16x134xf32>
    %c0_9 = arith.constant 0 : index
    %c16 = arith.constant 16 : index
    %13 = vector.load %arg4[%c0_9, %c16] : memref<16x112xf32, #tpu.memory_space<vmem>>, vector<16x16xf32>
    %14 = vector.extract_strided_slice %9 {offsets = [0, 3], sizes = [16, 134], strides = [1, 1]} : vector<16x256xf32> to vector<16x134xf32>
    %cst_10 = arith.constant dense<0.000000e+00> : vector<16x134xf32>
    %15 = tpu.matmul %13, %14, %cst_10 {dimension_numbers = #tpu.dot_dimension_numbers<[1], [0], [0], [1], [0, 0, 1, 1], [], []>} : vector<16x16xf32>, vector<16x134xf32>, vector<16x134xf32> -> vector<16x134xf32>
    %16 = arith.addf %12, %15 : vector<16x134xf32>
    %c0_11 = arith.constant 0 : index
    %c32 = arith.constant 32 : index
    %17 = vector.load %arg4[%c0_11, %c32] : memref<16x112xf32, #tpu.memory_space<vmem>>, vector<16x16xf32>
    %18 = vector.extract_strided_slice %9 {offsets = [0, 6], sizes = [16, 134], strides = [1, 1]} : vector<16x256xf32> to vector<16x134xf32>
    %cst_12 = arith.constant dense<0.000000e+00> : vector<16x134xf32>
    %19 = tpu.matmul %17, %18, %cst_12 {dimension_numbers = #tpu.dot_dimension_numbers<[1], [0], [0], [1], [0, 0, 1, 1], [], []>} : vector<16x16xf32>, vector<16x134xf32>, vector<16x134xf32> -> vector<16x134xf32>
    %20 = arith.addf %16, %19 : vector<16x134xf32>
    %c0_13 = arith.constant 0 : index
    %c48 = arith.constant 48 : index
    %21 = vector.load %arg4[%c0_13, %c48] : memref<16x112xf32, #tpu.memory_space<vmem>>, vector<16x16xf32>
    %22 = vector.extract_strided_slice %9 {offsets = [0, 9], sizes = [16, 134], strides = [1, 1]} : vector<16x256xf32> to vector<16x134xf32>
    %cst_14 = arith.constant dense<0.000000e+00> : vector<16x134xf32>
    %23 = tpu.matmul %21, %22, %cst_14 {dimension_numbers = #tpu.dot_dimension_numbers<[1], [0], [0], [1], [0, 0, 1, 1], [], []>} : vector<16x16xf32>, vector<16x134xf32>, vector<16x134xf32> -> vector<16x134xf32>
    %24 = arith.addf %20, %23 : vector<16x134xf32>
    %c0_15 = arith.constant 0 : index
    %c64 = arith.constant 64 : index
    %25 = vector.load %arg4[%c0_15, %c64] : memref<16x112xf32, #tpu.memory_space<vmem>>, vector<16x16xf32>
    %26 = vector.extract_strided_slice %9 {offsets = [0, 12], sizes = [16, 134], strides = [1, 1]} : vector<16x256xf32> to vector<16x134xf32>
    %cst_16 = arith.constant dense<0.000000e+00> : vector<16x134xf32>
    %27 = tpu.matmul %25, %26, %cst_16 {dimension_numbers = #tpu.dot_dimension_numbers<[1], [0], [0], [1], [0, 0, 1, 1], [], []>} : vector<16x16xf32>, vector<16x134xf32>, vector<16x134xf32> -> vector<16x134xf32>
    %28 = arith.addf %24, %27 : vector<16x134xf32>
    %c0_17 = arith.constant 0 : index
    %c80 = arith.constant 80 : index
    %29 = vector.load %arg4[%c0_17, %c80] : memref<16x112xf32, #tpu.memory_space<vmem>>, vector<16x16xf32>
    %30 = vector.extract_strided_slice %9 {offsets = [0, 15], sizes = [16, 134], strides = [1, 1]} : vector<16x256xf32> to vector<16x134xf32>
    %cst_18 = arith.constant dense<0.000000e+00> : vector<16x134xf32>
    %31 = tpu.matmul %29, %30, %cst_18 {dimension_numbers = #tpu.dot_dimension_numbers<[1], [0], [0], [1], [0, 0, 1, 1], [], []>} : vector<16x16xf32>, vector<16x134xf32>, vector<16x134xf32> -> vector<16x134xf32>
    %32 = arith.addf %28, %31 : vector<16x134xf32>
    %c0_19 = arith.constant 0 : index
    %c96 = arith.constant 96 : index
    %33 = vector.load %arg4[%c0_19, %c96] : memref<16x112xf32, #tpu.memory_space<vmem>>, vector<16x16xf32>
    %34 = vector.extract_strided_slice %9 {offsets = [0, 18], sizes = [16, 134], strides = [1, 1]} : vector<16x256xf32> to vector<16x134xf32>
    %cst_20 = arith.constant dense<0.000000e+00> : vector<16x134xf32>
    %35 = tpu.matmul %33, %34, %cst_20 {dimension_numbers = #tpu.dot_dimension_numbers<[1], [0], [0], [1], [0, 0, 1, 1], [], []>} : vector<16x16xf32>, vector<16x134xf32>, vector<16x134xf32> -> vector<16x134xf32>
    %36 = arith.addf %32, %35 : vector<16x134xf32>
    %c0_21 = arith.constant 0 : index
    %c0_22 = arith.constant 0 : index
    %37 = vector.load %arg5[%c0_21, %c0_22] : memref<16x1xf32, #tpu.memory_space<vmem>>, vector<16x1xf32>
    %38 = vector.broadcast %37 : vector<16x1xf32> to vector<16x134xf32>
    %39 = arith.addf %36, %38 : vector<16x134xf32>
    %c128_i32 = arith.constant 128 : i32
    %40 = arith.muli %arg1, %c128_i32 : i32
    %c3_i32 = arith.constant 3 : i32
    %41 = arith.subi %40, %c3_i32 : i32
    %42 = tpu.iota {dimensions = array<i32: 1>} : vector<1x134xi32>
    %43 = vector.broadcast %41 : i32 to vector<1x134xi32>
    %44 = arith.addi %43, %42 : vector<1x134xi32>
    %c0_i32 = arith.constant 0 : i32
    %45 = vector.broadcast %c0_i32 : i32 to vector<1x134xi32>
    %46 = arith.cmpi sge, %44, %45 : vector<1x134xi32>
    %c32_i32 = arith.constant 32 : i32
    %47 = vector.broadcast %c32_i32 : i32 to vector<1x134xi32>
    %48 = arith.cmpi slt, %44, %47 : vector<1x134xi32>
    %49 = arith.andi %46, %48 : vector<1x134xi1>
    %cst_23 = arith.constant 0.000000e+00 : f32
    %50 = vector.shape_cast %49 : vector<1x134xi1> to vector<1x134xi1>
    %51 = vector.broadcast %50 : vector<1x134xi1> to vector<16x134xi1>
    %52 = vector.broadcast %cst_23 : f32 to vector<16x134xf32>
    %53 = arith.select %51, %39, %52 : vector<16x134xi1>, vector<16x134xf32>
    %cst_24 = arith.constant 0.000000e+00 : f32
    %54 = vector.broadcast %cst_24 : f32 to vector<16x134xf32>
    %55 = arith.cmpf oge, %53, %54 : vector<16x134xf32>
    %cst_25 = arith.constant 1.000000e-01 : f32
    %56 = vector.broadcast %cst_25 : f32 to vector<16x134xf32>
    %57 = arith.mulf %53, %56 : vector<16x134xf32>
    %58 = arith.select %55, %53, %57 : vector<16x134xi1>, vector<16x134xf32>
    %c0_26 = arith.constant 0 : index
    %c0_27 = arith.constant 0 : index
    %59 = vector.load %arg6[%c0_26, %c0_27] : memref<16x112xf32, #tpu.memory_space<vmem>>, vector<16x16xf32>
    %60 = vector.extract_strided_slice %58 {offsets = [0, 0], sizes = [16, 128], strides = [1, 1]} : vector<16x134xf32> to vector<16x128xf32>
    %cst_28 = arith.constant dense<0.000000e+00> : vector<16x128xf32>
    %61 = tpu.matmul %59, %60, %cst_28 {dimension_numbers = #tpu.dot_dimension_numbers<[1], [0], [0], [1], [0, 0, 1, 1], [], []>} : vector<16x16xf32>, vector<16x128xf32>, vector<16x128xf32> -> vector<16x128xf32>
    %c0_29 = arith.constant 0 : index
    %c16_30 = arith.constant 16 : index
    %62 = vector.load %arg6[%c0_29, %c16_30] : memref<16x112xf32, #tpu.memory_space<vmem>>, vector<16x16xf32>
    %63 = vector.extract_strided_slice %58 {offsets = [0, 1], sizes = [16, 128], strides = [1, 1]} : vector<16x134xf32> to vector<16x128xf32>
    %cst_31 = arith.constant dense<0.000000e+00> : vector<16x128xf32>
    %64 = tpu.matmul %62, %63, %cst_31 {dimension_numbers = #tpu.dot_dimension_numbers<[1], [0], [0], [1], [0, 0, 1, 1], [], []>} : vector<16x16xf32>, vector<16x128xf32>, vector<16x128xf32> -> vector<16x128xf32>
    %65 = arith.addf %61, %64 : vector<16x128xf32>
    %c0_32 = arith.constant 0 : index
    %c32_33 = arith.constant 32 : index
    %66 = vector.load %arg6[%c0_32, %c32_33] : memref<16x112xf32, #tpu.memory_space<vmem>>, vector<16x16xf32>
    %67 = vector.extract_strided_slice %58 {offsets = [0, 2], sizes = [16, 128], strides = [1, 1]} : vector<16x134xf32> to vector<16x128xf32>
    %cst_34 = arith.constant dense<0.000000e+00> : vector<16x128xf32>
    %68 = tpu.matmul %66, %67, %cst_34 {dimension_numbers = #tpu.dot_dimension_numbers<[1], [0], [0], [1], [0, 0, 1, 1], [], []>} : vector<16x16xf32>, vector<16x128xf32>, vector<16x128xf32> -> vector<16x128xf32>
    %69 = arith.addf %65, %68 : vector<16x128xf32>
    %c0_35 = arith.constant 0 : index
    %c48_36 = arith.constant 48 : index
    %70 = vector.load %arg6[%c0_35, %c48_36] : memref<16x112xf32, #tpu.memory_space<vmem>>, vector<16x16xf32>
    %71 = vector.extract_strided_slice %58 {offsets = [0, 3], sizes = [16, 128], strides = [1, 1]} : vector<16x134xf32> to vector<16x128xf32>
    %cst_37 = arith.constant dense<0.000000e+00> : vector<16x128xf32>
    %72 = tpu.matmul %70, %71, %cst_37 {dimension_numbers = #tpu.dot_dimension_numbers<[1], [0], [0], [1], [0, 0, 1, 1], [], []>} : vector<16x16xf32>, vector<16x128xf32>, vector<16x128xf32> -> vector<16x128xf32>
    %73 = arith.addf %69, %72 : vector<16x128xf32>
    %c0_38 = arith.constant 0 : index
    %c64_39 = arith.constant 64 : index
    %74 = vector.load %arg6[%c0_38, %c64_39] : memref<16x112xf32, #tpu.memory_space<vmem>>, vector<16x16xf32>
    %75 = vector.extract_strided_slice %58 {offsets = [0, 4], sizes = [16, 128], strides = [1, 1]} : vector<16x134xf32> to vector<16x128xf32>
    %cst_40 = arith.constant dense<0.000000e+00> : vector<16x128xf32>
    %76 = tpu.matmul %74, %75, %cst_40 {dimension_numbers = #tpu.dot_dimension_numbers<[1], [0], [0], [1], [0, 0, 1, 1], [], []>} : vector<16x16xf32>, vector<16x128xf32>, vector<16x128xf32> -> vector<16x128xf32>
    %77 = arith.addf %73, %76 : vector<16x128xf32>
    %c0_41 = arith.constant 0 : index
    %c80_42 = arith.constant 80 : index
    %78 = vector.load %arg6[%c0_41, %c80_42] : memref<16x112xf32, #tpu.memory_space<vmem>>, vector<16x16xf32>
    %79 = vector.extract_strided_slice %58 {offsets = [0, 5], sizes = [16, 128], strides = [1, 1]} : vector<16x134xf32> to vector<16x128xf32>
    %cst_43 = arith.constant dense<0.000000e+00> : vector<16x128xf32>
    %80 = tpu.matmul %78, %79, %cst_43 {dimension_numbers = #tpu.dot_dimension_numbers<[1], [0], [0], [1], [0, 0, 1, 1], [], []>} : vector<16x16xf32>, vector<16x128xf32>, vector<16x128xf32> -> vector<16x128xf32>
    %81 = arith.addf %77, %80 : vector<16x128xf32>
    %c0_44 = arith.constant 0 : index
    %c96_45 = arith.constant 96 : index
    %82 = vector.load %arg6[%c0_44, %c96_45] : memref<16x112xf32, #tpu.memory_space<vmem>>, vector<16x16xf32>
    %83 = vector.extract_strided_slice %58 {offsets = [0, 6], sizes = [16, 128], strides = [1, 1]} : vector<16x134xf32> to vector<16x128xf32>
    %cst_46 = arith.constant dense<0.000000e+00> : vector<16x128xf32>
    %84 = tpu.matmul %82, %83, %cst_46 {dimension_numbers = #tpu.dot_dimension_numbers<[1], [0], [0], [1], [0, 0, 1, 1], [], []>} : vector<16x16xf32>, vector<16x128xf32>, vector<16x128xf32> -> vector<16x128xf32>
    %85 = arith.addf %81, %84 : vector<16x128xf32>
    %c0_47 = arith.constant 0 : index
    %c0_48 = arith.constant 0 : index
    %86 = vector.load %arg7[%c0_47, %c0_48] : memref<16x1xf32, #tpu.memory_space<vmem>>, vector<16x1xf32>
    %87 = vector.broadcast %86 : vector<16x1xf32> to vector<16x128xf32>
    %88 = arith.addf %85, %87 : vector<16x128xf32>
    %89 = vector.extract_strided_slice %4 {offsets = [0, 12], sizes = [16, 128], strides = [1, 1]} : vector<16x256xf32> to vector<16x128xf32>
    %90 = arith.addf %88, %89 : vector<16x128xf32>
    %c0_49 = arith.constant 0 : index
    %c0_50 = arith.constant 0 : index
    %c0_51 = arith.constant 0 : index
    %91 = vector.load %arg8[%c0_49, %c0_50, %c0_51] : memref<1x16x128xf32, #tpu.memory_space<vmem>>, vector<1x16x128xf32>
    %92 = vector.shape_cast %91 : vector<1x16x128xf32> to vector<16x128xf32>
    %93 = vector.shape_cast %90 : vector<16x128xf32> to vector<1x16x128xf32>
    tpu.vector_store %arg8[%c0_49, %c0_50, %c0_51], %93 {strides = array<i32>} : memref<1x16x128xf32, #tpu.memory_space<vmem>>, vector<1x16x128xf32>,
    return
  }
  func.func @transform_0(%arg0: i32, %arg1: i32) -> (i32, i32, i32) {
    %c0_i32 = arith.constant 0 : i32
    %c0_i32_0 = arith.constant 0 : i32
    return %arg0, %c0_i32, %arg1 : i32, i32, i32
  }
  func.func @transform_1(%arg0: i32, %arg1: i32) -> (i32, i32, i32) {
    %c1_i32 = arith.constant 1 : i32
    %0 = arith.addi %arg1, %c1_i32 : i32
    %c1_i32_0 = arith.constant 1 : i32
    %1 = arith.muli %0, %c1_i32_0 : i32
    %c0_i32 = arith.constant 0 : i32
    %c0_i32_1 = arith.constant 0 : i32
    return %arg0, %c0_i32, %1 : i32, i32, i32
  }
  func.func @transform_2(%arg0: i32, %arg1: i32) -> (i32, i32) {
    %c0_i32 = arith.constant 0 : i32
    %c0_i32_0 = arith.constant 0 : i32
    %c0_i32_1 = arith.constant 0 : i32
    return %c0_i32, %c0_i32_0 : i32, i32
  }
  func.func @transform_3(%arg0: i32, %arg1: i32) -> (i32, i32) {
    %c0_i32 = arith.constant 0 : i32
    %c0_i32_0 = arith.constant 0 : i32
    %c0_i32_1 = arith.constant 0 : i32
    return %c0_i32, %c0_i32_0 : i32, i32
  }
  func.func @transform_4(%arg0: i32, %arg1: i32) -> (i32, i32) {
    %c0_i32 = arith.constant 0 : i32
    %c0_i32_0 = arith.constant 0 : i32
    %c0_i32_1 = arith.constant 0 : i32
    return %c0_i32, %c0_i32_0 : i32, i32
  }
  func.func @transform_5(%arg0: i32, %arg1: i32) -> (i32, i32) {
    %c0_i32 = arith.constant 0 : i32
    %c0_i32_0 = arith.constant 0 : i32
    %c0_i32_1 = arith.constant 0 : i32
    return %c0_i32, %c0_i32_0 : i32, i32
  }
  func.func @transform_6(%arg0: i32, %arg1: i32) -> (i32, i32, i32) {
    %c0_i32 = arith.constant 0 : i32
    %c0_i32_0 = arith.constant 0 : i32
    return %arg0, %c0_i32, %arg1 : i32, i32, i32
  }
}

module attributes {stable_mosaic.version = 11 : i64} {
  func.func @_resblock1_step_kernel(%arg0: i32, %arg1: i32, %arg2: memref<1x16x128xf32, #tpu.memory_space<vmem>>, %arg3: memref<1x16x128xf32, #tpu.memory_space<vmem>>, %arg4: memref<16x48xf32, #tpu.memory_space<vmem>>, %arg5: memref<16x1xf32, #tpu.memory_space<vmem>>, %arg6: memref<16x48xf32, #tpu.memory_space<vmem>>, %arg7: memref<16x1xf32, #tpu.memory_space<vmem>>, %arg8: memref<1x16x128xf32, #tpu.memory_space<vmem>>) attributes {dimension_semantics = [#tpu.dimension_semantics<parallel>, #tpu.dimension_semantics<parallel>], iteration_bounds = array<i64: 2, 1>, scalar_prefetch = 0 : i64, scratch_operands = 0 : i64, tpu.core_type = #tpu.core_type<tc>, window_params = [{transform_indices = @transform_0, window_bounds = array<i64: 1, 16, 128>}, {transform_indices = @transform_1, window_bounds = array<i64: 1, 16, 128>}, {pipeline_mode = #tpu.pipeline_mode<synchronous>, transform_indices = @transform_2, window_bounds = array<i64: 16, 48>}, {pipeline_mode = #tpu.pipeline_mode<synchronous>, transform_indices = @transform_3, window_bounds = array<i64: 16, 1>}, {pipeline_mode = #tpu.pipeline_mode<synchronous>, transform_indices = @transform_4, window_bounds = array<i64: 16, 48>}, {pipeline_mode = #tpu.pipeline_mode<synchronous>, transform_indices = @transform_5, window_bounds = array<i64: 16, 1>}, {transform_indices = @transform_6, window_bounds = array<i64: 1, 16, 128>}]} {
    %c0 = arith.constant 0 : index
    %c0_0 = arith.constant 0 : index
    %c0_1 = arith.constant 0 : index
    %0 = vector.load %arg2[%c0, %c0_0, %c0_1] : memref<1x16x128xf32, #tpu.memory_space<vmem>>, vector<1x16x128xf32>
    %1 = vector.shape_cast %0 : vector<1x16x128xf32> to vector<16x128xf32>
    %c0_2 = arith.constant 0 : index
    %c0_3 = arith.constant 0 : index
    %c0_4 = arith.constant 0 : index
    %2 = vector.load %arg3[%c0_2, %c0_3, %c0_4] : memref<1x16x128xf32, #tpu.memory_space<vmem>>, vector<1x16x128xf32>
    %3 = vector.shape_cast %2 : vector<1x16x128xf32> to vector<16x128xf32>
    %4 = tpu.concatenate %1, %3 in 1 : vector<16x128xf32>, vector<16x128xf32> -> vector<16x256xf32>
    %cst = arith.constant 0.000000e+00 : f32
    %5 = vector.broadcast %cst : f32 to vector<16x256xf32>
    %6 = arith.cmpf oge, %4, %5 : vector<16x256xf32>
    %cst_5 = arith.constant 1.000000e-01 : f32
    %7 = vector.broadcast %cst_5 : f32 to vector<16x256xf32>
    %8 = arith.mulf %4, %7 : vector<16x256xf32>
    %9 = arith.select %6, %4, %8 : vector<16x256xi1>, vector<16x256xf32>
    %10 = vector.extract_strided_slice %9 {offsets = [0, 0], sizes = [16, 130], strides = [1, 1]} : vector<16x256xf32> to vector<16x130xf32>
    %11 = vector.extract_strided_slice %9 {offsets = [0, 5], sizes = [16, 130], strides = [1, 1]} : vector<16x256xf32> to vector<16x130xf32>
    %12 = vector.extract_strided_slice %9 {offsets = [0, 10], sizes = [16, 130], strides = [1, 1]} : vector<16x256xf32> to vector<16x130xf32>
    %13 = tpu.concatenate %10, %11, %12 in 0 : vector<16x130xf32>, vector<16x130xf32>, vector<16x130xf32> -> vector<48x130xf32>
    %c0_6 = arith.constant 0 : index
    %c0_7 = arith.constant 0 : index
    %14 = vector.load %arg4[%c0_6, %c0_7] : memref<16x48xf32, #tpu.memory_space<vmem>>, vector<16x48xf32>
    %cst_8 = arith.constant dense<0.000000e+00> : vector<16x130xf32>
    %15 = tpu.matmul %14, %13, %cst_8 {dimension_numbers = #tpu.dot_dimension_numbers<[1], [0], [0], [1], [0, 0, 1, 1], [], []>} : vector<16x48xf32>, vector<48x130xf32>, vector<16x130xf32> -> vector<16x130xf32>
    %c0_9 = arith.constant 0 : index
    %c0_10 = arith.constant 0 : index
    %16 = vector.load %arg5[%c0_9, %c0_10] : memref<16x1xf32, #tpu.memory_space<vmem>>, vector<16x1xf32>
    %17 = vector.broadcast %16 : vector<16x1xf32> to vector<16x130xf32>
    %18 = arith.addf %15, %17 : vector<16x130xf32>
    %c128_i32 = arith.constant 128 : i32
    %19 = arith.muli %arg1, %c128_i32 : i32
    %c1_i32 = arith.constant 1 : i32
    %20 = arith.subi %19, %c1_i32 : i32
    %21 = tpu.iota {dimensions = array<i32: 1>} : vector<1x130xi32>
    %22 = vector.broadcast %20 : i32 to vector<1x130xi32>
    %23 = arith.addi %22, %21 : vector<1x130xi32>
    %c0_i32 = arith.constant 0 : i32
    %24 = vector.broadcast %c0_i32 : i32 to vector<1x130xi32>
    %25 = arith.cmpi sge, %23, %24 : vector<1x130xi32>
    %c32_i32 = arith.constant 32 : i32
    %26 = vector.broadcast %c32_i32 : i32 to vector<1x130xi32>
    %27 = arith.cmpi slt, %23, %26 : vector<1x130xi32>
    %28 = arith.andi %25, %27 : vector<1x130xi1>
    %cst_11 = arith.constant 0.000000e+00 : f32
    %29 = vector.shape_cast %28 : vector<1x130xi1> to vector<1x130xi1>
    %30 = vector.broadcast %29 : vector<1x130xi1> to vector<16x130xi1>
    %31 = vector.broadcast %cst_11 : f32 to vector<16x130xf32>
    %32 = arith.select %30, %18, %31 : vector<16x130xi1>, vector<16x130xf32>
    %cst_12 = arith.constant 0.000000e+00 : f32
    %33 = vector.broadcast %cst_12 : f32 to vector<16x130xf32>
    %34 = arith.cmpf oge, %32, %33 : vector<16x130xf32>
    %cst_13 = arith.constant 1.000000e-01 : f32
    %35 = vector.broadcast %cst_13 : f32 to vector<16x130xf32>
    %36 = arith.mulf %32, %35 : vector<16x130xf32>
    %37 = arith.select %34, %32, %36 : vector<16x130xi1>, vector<16x130xf32>
    %38 = vector.extract_strided_slice %37 {offsets = [0, 0], sizes = [16, 128], strides = [1, 1]} : vector<16x130xf32> to vector<16x128xf32>
    %39 = vector.extract_strided_slice %37 {offsets = [0, 1], sizes = [16, 128], strides = [1, 1]} : vector<16x130xf32> to vector<16x128xf32>
    %40 = vector.extract_strided_slice %37 {offsets = [0, 2], sizes = [16, 128], strides = [1, 1]} : vector<16x130xf32> to vector<16x128xf32>
    %41 = tpu.concatenate %38, %39, %40 in 0 : vector<16x128xf32>, vector<16x128xf32>, vector<16x128xf32> -> vector<48x128xf32>
    %c0_14 = arith.constant 0 : index
    %c0_15 = arith.constant 0 : index
    %42 = vector.load %arg6[%c0_14, %c0_15] : memref<16x48xf32, #tpu.memory_space<vmem>>, vector<16x48xf32>
    %cst_16 = arith.constant dense<0.000000e+00> : vector<16x128xf32>
    %43 = tpu.matmul %42, %41, %cst_16 {dimension_numbers = #tpu.dot_dimension_numbers<[1], [0], [0], [1], [0, 0, 1, 1], [], []>} : vector<16x48xf32>, vector<48x128xf32>, vector<16x128xf32> -> vector<16x128xf32>
    %c0_17 = arith.constant 0 : index
    %c0_18 = arith.constant 0 : index
    %44 = vector.load %arg7[%c0_17, %c0_18] : memref<16x1xf32, #tpu.memory_space<vmem>>, vector<16x1xf32>
    %45 = vector.broadcast %44 : vector<16x1xf32> to vector<16x128xf32>
    %46 = arith.addf %43, %45 : vector<16x128xf32>
    %47 = vector.extract_strided_slice %4 {offsets = [0, 6], sizes = [16, 128], strides = [1, 1]} : vector<16x256xf32> to vector<16x128xf32>
    %48 = arith.addf %46, %47 : vector<16x128xf32>
    %c0_19 = arith.constant 0 : index
    %c0_20 = arith.constant 0 : index
    %c0_21 = arith.constant 0 : index
    %49 = vector.load %arg8[%c0_19, %c0_20, %c0_21] : memref<1x16x128xf32, #tpu.memory_space<vmem>>, vector<1x16x128xf32>
    %50 = vector.shape_cast %49 : vector<1x16x128xf32> to vector<16x128xf32>
    %51 = vector.shape_cast %48 : vector<16x128xf32> to vector<1x16x128xf32>
    tpu.vector_store %arg8[%c0_19, %c0_20, %c0_21], %51 {strides = array<i32>} : memref<1x16x128xf32, #tpu.memory_space<vmem>>, vector<1x16x128xf32>,
    return
  }
  func.func @transform_0(%arg0: i32, %arg1: i32) -> (i32, i32, i32) {
    %c0_i32 = arith.constant 0 : i32
    %c0_i32_0 = arith.constant 0 : i32
    return %arg0, %c0_i32, %arg1 : i32, i32, i32
  }
  func.func @transform_1(%arg0: i32, %arg1: i32) -> (i32, i32, i32) {
    %c1_i32 = arith.constant 1 : i32
    %0 = arith.addi %arg1, %c1_i32 : i32
    %c1_i32_0 = arith.constant 1 : i32
    %1 = arith.muli %0, %c1_i32_0 : i32
    %c0_i32 = arith.constant 0 : i32
    %c0_i32_1 = arith.constant 0 : i32
    return %arg0, %c0_i32, %1 : i32, i32, i32
  }
  func.func @transform_2(%arg0: i32, %arg1: i32) -> (i32, i32) {
    %c0_i32 = arith.constant 0 : i32
    %c0_i32_0 = arith.constant 0 : i32
    %c0_i32_1 = arith.constant 0 : i32
    return %c0_i32, %c0_i32_0 : i32, i32
  }
  func.func @transform_3(%arg0: i32, %arg1: i32) -> (i32, i32) {
    %c0_i32 = arith.constant 0 : i32
    %c0_i32_0 = arith.constant 0 : i32
    %c0_i32_1 = arith.constant 0 : i32
    return %c0_i32, %c0_i32_0 : i32, i32
  }
  func.func @transform_4(%arg0: i32, %arg1: i32) -> (i32, i32) {
    %c0_i32 = arith.constant 0 : i32
    %c0_i32_0 = arith.constant 0 : i32
    %c0_i32_1 = arith.constant 0 : i32
    return %c0_i32, %c0_i32_0 : i32, i32
  }
  func.func @transform_5(%arg0: i32, %arg1: i32) -> (i32, i32) {
    %c0_i32 = arith.constant 0 : i32
    %c0_i32_0 = arith.constant 0 : i32
    %c0_i32_1 = arith.constant 0 : i32
    return %c0_i32, %c0_i32_0 : i32, i32
  }
  func.func @transform_6(%arg0: i32, %arg1: i32) -> (i32, i32, i32) {
    %c0_i32 = arith.constant 0 : i32
    %c0_i32_0 = arith.constant 0 : i32
    return %arg0, %c0_i32, %arg1 : i32, i32, i32
  }
}

module attributes {stable_mosaic.version = 11 : i64} {
  func.func @_resblock1_step_kernel(%arg0: i32, %arg1: i32, %arg2: memref<1x16x128xf32, #tpu.memory_space<vmem>>, %arg3: memref<1x16x128xf32, #tpu.memory_space<vmem>>, %arg4: memref<16x112xf32, #tpu.memory_space<vmem>>, %arg5: memref<16x1xf32, #tpu.memory_space<vmem>>, %arg6: memref<16x112xf32, #tpu.memory_space<vmem>>, %arg7: memref<16x1xf32, #tpu.memory_space<vmem>>, %arg8: memref<1x16x128xf32, #tpu.memory_space<vmem>>, %arg9: memref<1x16x128xf32, #tpu.memory_space<vmem>>) attributes {dimension_semantics = [#tpu.dimension_semantics<parallel>, #tpu.dimension_semantics<parallel>], iteration_bounds = array<i64: 2, 1>, scalar_prefetch = 0 : i64, scratch_operands = 0 : i64, tpu.core_type = #tpu.core_type<tc>, window_params = [{transform_indices = @transform_0, window_bounds = array<i64: 1, 16, 128>}, {transform_indices = @transform_1, window_bounds = array<i64: 1, 16, 128>}, {pipeline_mode = #tpu.pipeline_mode<synchronous>, transform_indices = @transform_2, window_bounds = array<i64: 16, 112>}, {pipeline_mode = #tpu.pipeline_mode<synchronous>, transform_indices = @transform_3, window_bounds = array<i64: 16, 1>}, {pipeline_mode = #tpu.pipeline_mode<synchronous>, transform_indices = @transform_4, window_bounds = array<i64: 16, 112>}, {pipeline_mode = #tpu.pipeline_mode<synchronous>, transform_indices = @transform_5, window_bounds = array<i64: 16, 1>}, {transform_indices = @transform_6, window_bounds = array<i64: 1, 16, 128>}, {transform_indices = @transform_7, window_bounds = array<i64: 1, 16, 128>}]} {
    %c0 = arith.constant 0 : index
    %c0_0 = arith.constant 0 : index
    %c0_1 = arith.constant 0 : index
    %0 = vector.load %arg2[%c0, %c0_0, %c0_1] : memref<1x16x128xf32, #tpu.memory_space<vmem>>, vector<1x16x128xf32>
    %1 = vector.shape_cast %0 : vector<1x16x128xf32> to vector<16x128xf32>
    %c0_2 = arith.constant 0 : index
    %c0_3 = arith.constant 0 : index
    %c0_4 = arith.constant 0 : index
    %2 = vector.load %arg3[%c0_2, %c0_3, %c0_4] : memref<1x16x128xf32, #tpu.memory_space<vmem>>, vector<1x16x128xf32>
    %3 = vector.shape_cast %2 : vector<1x16x128xf32> to vector<16x128xf32>
    %4 = tpu.concatenate %1, %3 in 1 : vector<16x128xf32>, vector<16x128xf32> -> vector<16x256xf32>
    %cst = arith.constant 0.000000e+00 : f32
    %5 = vector.broadcast %cst : f32 to vector<16x256xf32>
    %6 = arith.cmpf oge, %4, %5 : vector<16x256xf32>
    %cst_5 = arith.constant 1.000000e-01 : f32
    %7 = vector.broadcast %cst_5 : f32 to vector<16x256xf32>
    %8 = arith.mulf %4, %7 : vector<16x256xf32>
    %9 = arith.select %6, %4, %8 : vector<16x256xi1>, vector<16x256xf32>
    %c0_6 = arith.constant 0 : index
    %c0_7 = arith.constant 0 : index
    %10 = vector.load %arg4[%c0_6, %c0_7] : memref<16x112xf32, #tpu.memory_space<vmem>>, vector<16x16xf32>
    %11 = vector.extract_strided_slice %9 {offsets = [0, 0], sizes = [16, 134], strides = [1, 1]} : vector<16x256xf32> to vector<16x134xf32>
    %cst_8 = arith.constant dense<0.000000e+00> : vector<16x134xf32>
    %12 = tpu.matmul %10, %11, %cst_8 {dimension_numbers = #tpu.dot_dimension_numbers<[1], [0], [0], [1], [0, 0, 1, 1], [], []>} : vector<16x16xf32>, vector<16x134xf32>, vector<16x134xf32> -> vector<16x134xf32>
    %c0_9 = arith.constant 0 : index
    %c16 = arith.constant 16 : index
    %13 = vector.load %arg4[%c0_9, %c16] : memref<16x112xf32, #tpu.memory_space<vmem>>, vector<16x16xf32>
    %14 = vector.extract_strided_slice %9 {offsets = [0, 5], sizes = [16, 134], strides = [1, 1]} : vector<16x256xf32> to vector<16x134xf32>
    %cst_10 = arith.constant dense<0.000000e+00> : vector<16x134xf32>
    %15 = tpu.matmul %13, %14, %cst_10 {dimension_numbers = #tpu.dot_dimension_numbers<[1], [0], [0], [1], [0, 0, 1, 1], [], []>} : vector<16x16xf32>, vector<16x134xf32>, vector<16x134xf32> -> vector<16x134xf32>
    %16 = arith.addf %12, %15 : vector<16x134xf32>
    %c0_11 = arith.constant 0 : index
    %c32 = arith.constant 32 : index
    %17 = vector.load %arg4[%c0_11, %c32] : memref<16x112xf32, #tpu.memory_space<vmem>>, vector<16x16xf32>
    %18 = vector.extract_strided_slice %9 {offsets = [0, 10], sizes = [16, 134], strides = [1, 1]} : vector<16x256xf32> to vector<16x134xf32>
    %cst_12 = arith.constant dense<0.000000e+00> : vector<16x134xf32>
    %19 = tpu.matmul %17, %18, %cst_12 {dimension_numbers = #tpu.dot_dimension_numbers<[1], [0], [0], [1], [0, 0, 1, 1], [], []>} : vector<16x16xf32>, vector<16x134xf32>, vector<16x134xf32> -> vector<16x134xf32>
    %20 = arith.addf %16, %19 : vector<16x134xf32>
    %c0_13 = arith.constant 0 : index
    %c48 = arith.constant 48 : index
    %21 = vector.load %arg4[%c0_13, %c48] : memref<16x112xf32, #tpu.memory_space<vmem>>, vector<16x16xf32>
    %22 = vector.extract_strided_slice %9 {offsets = [0, 15], sizes = [16, 134], strides = [1, 1]} : vector<16x256xf32> to vector<16x134xf32>
    %cst_14 = arith.constant dense<0.000000e+00> : vector<16x134xf32>
    %23 = tpu.matmul %21, %22, %cst_14 {dimension_numbers = #tpu.dot_dimension_numbers<[1], [0], [0], [1], [0, 0, 1, 1], [], []>} : vector<16x16xf32>, vector<16x134xf32>, vector<16x134xf32> -> vector<16x134xf32>
    %24 = arith.addf %20, %23 : vector<16x134xf32>
    %c0_15 = arith.constant 0 : index
    %c64 = arith.constant 64 : index
    %25 = vector.load %arg4[%c0_15, %c64] : memref<16x112xf32, #tpu.memory_space<vmem>>, vector<16x16xf32>
    %26 = vector.extract_strided_slice %9 {offsets = [0, 20], sizes = [16, 134], strides = [1, 1]} : vector<16x256xf32> to vector<16x134xf32>
    %cst_16 = arith.constant dense<0.000000e+00> : vector<16x134xf32>
    %27 = tpu.matmul %25, %26, %cst_16 {dimension_numbers = #tpu.dot_dimension_numbers<[1], [0], [0], [1], [0, 0, 1, 1], [], []>} : vector<16x16xf32>, vector<16x134xf32>, vector<16x134xf32> -> vector<16x134xf32>
    %28 = arith.addf %24, %27 : vector<16x134xf32>
    %c0_17 = arith.constant 0 : index
    %c80 = arith.constant 80 : index
    %29 = vector.load %arg4[%c0_17, %c80] : memref<16x112xf32, #tpu.memory_space<vmem>>, vector<16x16xf32>
    %30 = vector.extract_strided_slice %9 {offsets = [0, 25], sizes = [16, 134], strides = [1, 1]} : vector<16x256xf32> to vector<16x134xf32>
    %cst_18 = arith.constant dense<0.000000e+00> : vector<16x134xf32>
    %31 = tpu.matmul %29, %30, %cst_18 {dimension_numbers = #tpu.dot_dimension_numbers<[1], [0], [0], [1], [0, 0, 1, 1], [], []>} : vector<16x16xf32>, vector<16x134xf32>, vector<16x134xf32> -> vector<16x134xf32>
    %32 = arith.addf %28, %31 : vector<16x134xf32>
    %c0_19 = arith.constant 0 : index
    %c96 = arith.constant 96 : index
    %33 = vector.load %arg4[%c0_19, %c96] : memref<16x112xf32, #tpu.memory_space<vmem>>, vector<16x16xf32>
    %34 = vector.extract_strided_slice %9 {offsets = [0, 30], sizes = [16, 134], strides = [1, 1]} : vector<16x256xf32> to vector<16x134xf32>
    %cst_20 = arith.constant dense<0.000000e+00> : vector<16x134xf32>
    %35 = tpu.matmul %33, %34, %cst_20 {dimension_numbers = #tpu.dot_dimension_numbers<[1], [0], [0], [1], [0, 0, 1, 1], [], []>} : vector<16x16xf32>, vector<16x134xf32>, vector<16x134xf32> -> vector<16x134xf32>
    %36 = arith.addf %32, %35 : vector<16x134xf32>
    %c0_21 = arith.constant 0 : index
    %c0_22 = arith.constant 0 : index
    %37 = vector.load %arg5[%c0_21, %c0_22] : memref<16x1xf32, #tpu.memory_space<vmem>>, vector<16x1xf32>
    %38 = vector.broadcast %37 : vector<16x1xf32> to vector<16x134xf32>
    %39 = arith.addf %36, %38 : vector<16x134xf32>
    %c128_i32 = arith.constant 128 : i32
    %40 = arith.muli %arg1, %c128_i32 : i32
    %c3_i32 = arith.constant 3 : i32
    %41 = arith.subi %40, %c3_i32 : i32
    %42 = tpu.iota {dimensions = array<i32: 1>} : vector<1x134xi32>
    %43 = vector.broadcast %41 : i32 to vector<1x134xi32>
    %44 = arith.addi %43, %42 : vector<1x134xi32>
    %c0_i32 = arith.constant 0 : i32
    %45 = vector.broadcast %c0_i32 : i32 to vector<1x134xi32>
    %46 = arith.cmpi sge, %44, %45 : vector<1x134xi32>
    %c32_i32 = arith.constant 32 : i32
    %47 = vector.broadcast %c32_i32 : i32 to vector<1x134xi32>
    %48 = arith.cmpi slt, %44, %47 : vector<1x134xi32>
    %49 = arith.andi %46, %48 : vector<1x134xi1>
    %cst_23 = arith.constant 0.000000e+00 : f32
    %50 = vector.shape_cast %49 : vector<1x134xi1> to vector<1x134xi1>
    %51 = vector.broadcast %50 : vector<1x134xi1> to vector<16x134xi1>
    %52 = vector.broadcast %cst_23 : f32 to vector<16x134xf32>
    %53 = arith.select %51, %39, %52 : vector<16x134xi1>, vector<16x134xf32>
    %cst_24 = arith.constant 0.000000e+00 : f32
    %54 = vector.broadcast %cst_24 : f32 to vector<16x134xf32>
    %55 = arith.cmpf oge, %53, %54 : vector<16x134xf32>
    %cst_25 = arith.constant 1.000000e-01 : f32
    %56 = vector.broadcast %cst_25 : f32 to vector<16x134xf32>
    %57 = arith.mulf %53, %56 : vector<16x134xf32>
    %58 = arith.select %55, %53, %57 : vector<16x134xi1>, vector<16x134xf32>
    %c0_26 = arith.constant 0 : index
    %c0_27 = arith.constant 0 : index
    %59 = vector.load %arg6[%c0_26, %c0_27] : memref<16x112xf32, #tpu.memory_space<vmem>>, vector<16x16xf32>
    %60 = vector.extract_strided_slice %58 {offsets = [0, 0], sizes = [16, 128], strides = [1, 1]} : vector<16x134xf32> to vector<16x128xf32>
    %cst_28 = arith.constant dense<0.000000e+00> : vector<16x128xf32>
    %61 = tpu.matmul %59, %60, %cst_28 {dimension_numbers = #tpu.dot_dimension_numbers<[1], [0], [0], [1], [0, 0, 1, 1], [], []>} : vector<16x16xf32>, vector<16x128xf32>, vector<16x128xf32> -> vector<16x128xf32>
    %c0_29 = arith.constant 0 : index
    %c16_30 = arith.constant 16 : index
    %62 = vector.load %arg6[%c0_29, %c16_30] : memref<16x112xf32, #tpu.memory_space<vmem>>, vector<16x16xf32>
    %63 = vector.extract_strided_slice %58 {offsets = [0, 1], sizes = [16, 128], strides = [1, 1]} : vector<16x134xf32> to vector<16x128xf32>
    %cst_31 = arith.constant dense<0.000000e+00> : vector<16x128xf32>
    %64 = tpu.matmul %62, %63, %cst_31 {dimension_numbers = #tpu.dot_dimension_numbers<[1], [0], [0], [1], [0, 0, 1, 1], [], []>} : vector<16x16xf32>, vector<16x128xf32>, vector<16x128xf32> -> vector<16x128xf32>
    %65 = arith.addf %61, %64 : vector<16x128xf32>
    %c0_32 = arith.constant 0 : index
    %c32_33 = arith.constant 32 : index
    %66 = vector.load %arg6[%c0_32, %c32_33] : memref<16x112xf32, #tpu.memory_space<vmem>>, vector<16x16xf32>
    %67 = vector.extract_strided_slice %58 {offsets = [0, 2], sizes = [16, 128], strides = [1, 1]} : vector<16x134xf32> to vector<16x128xf32>
    %cst_34 = arith.constant dense<0.000000e+00> : vector<16x128xf32>
    %68 = tpu.matmul %66, %67, %cst_34 {dimension_numbers = #tpu.dot_dimension_numbers<[1], [0], [0], [1], [0, 0, 1, 1], [], []>} : vector<16x16xf32>, vector<16x128xf32>, vector<16x128xf32> -> vector<16x128xf32>
    %69 = arith.addf %65, %68 : vector<16x128xf32>
    %c0_35 = arith.constant 0 : index
    %c48_36 = arith.constant 48 : index
    %70 = vector.load %arg6[%c0_35, %c48_36] : memref<16x112xf32, #tpu.memory_space<vmem>>, vector<16x16xf32>
    %71 = vector.extract_strided_slice %58 {offsets = [0, 3], sizes = [16, 128], strides = [1, 1]} : vector<16x134xf32> to vector<16x128xf32>
    %cst_37 = arith.constant dense<0.000000e+00> : vector<16x128xf32>
    %72 = tpu.matmul %70, %71, %cst_37 {dimension_numbers = #tpu.dot_dimension_numbers<[1], [0], [0], [1], [0, 0, 1, 1], [], []>} : vector<16x16xf32>, vector<16x128xf32>, vector<16x128xf32> -> vector<16x128xf32>
    %73 = arith.addf %69, %72 : vector<16x128xf32>
    %c0_38 = arith.constant 0 : index
    %c64_39 = arith.constant 64 : index
    %74 = vector.load %arg6[%c0_38, %c64_39] : memref<16x112xf32, #tpu.memory_space<vmem>>, vector<16x16xf32>
    %75 = vector.extract_strided_slice %58 {offsets = [0, 4], sizes = [16, 128], strides = [1, 1]} : vector<16x134xf32> to vector<16x128xf32>
    %cst_40 = arith.constant dense<0.000000e+00> : vector<16x128xf32>
    %76 = tpu.matmul %74, %75, %cst_40 {dimension_numbers = #tpu.dot_dimension_numbers<[1], [0], [0], [1], [0, 0, 1, 1], [], []>} : vector<16x16xf32>, vector<16x128xf32>, vector<16x128xf32> -> vector<16x128xf32>
    %77 = arith.addf %73, %76 : vector<16x128xf32>
    %c0_41 = arith.constant 0 : index
    %c80_42 = arith.constant 80 : index
    %78 = vector.load %arg6[%c0_41, %c80_42] : memref<16x112xf32, #tpu.memory_space<vmem>>, vector<16x16xf32>
    %79 = vector.extract_strided_slice %58 {offsets = [0, 5], sizes = [16, 128], strides = [1, 1]} : vector<16x134xf32> to vector<16x128xf32>
    %cst_43 = arith.constant dense<0.000000e+00> : vector<16x128xf32>
    %80 = tpu.matmul %78, %79, %cst_43 {dimension_numbers = #tpu.dot_dimension_numbers<[1], [0], [0], [1], [0, 0, 1, 1], [], []>} : vector<16x16xf32>, vector<16x128xf32>, vector<16x128xf32> -> vector<16x128xf32>
    %81 = arith.addf %77, %80 : vector<16x128xf32>
    %c0_44 = arith.constant 0 : index
    %c96_45 = arith.constant 96 : index
    %82 = vector.load %arg6[%c0_44, %c96_45] : memref<16x112xf32, #tpu.memory_space<vmem>>, vector<16x16xf32>
    %83 = vector.extract_strided_slice %58 {offsets = [0, 6], sizes = [16, 128], strides = [1, 1]} : vector<16x134xf32> to vector<16x128xf32>
    %cst_46 = arith.constant dense<0.000000e+00> : vector<16x128xf32>
    %84 = tpu.matmul %82, %83, %cst_46 {dimension_numbers = #tpu.dot_dimension_numbers<[1], [0], [0], [1], [0, 0, 1, 1], [], []>} : vector<16x16xf32>, vector<16x128xf32>, vector<16x128xf32> -> vector<16x128xf32>
    %85 = arith.addf %81, %84 : vector<16x128xf32>
    %c0_47 = arith.constant 0 : index
    %c0_48 = arith.constant 0 : index
    %86 = vector.load %arg7[%c0_47, %c0_48] : memref<16x1xf32, #tpu.memory_space<vmem>>, vector<16x1xf32>
    %87 = vector.broadcast %86 : vector<16x1xf32> to vector<16x128xf32>
    %88 = arith.addf %85, %87 : vector<16x128xf32>
    %89 = vector.extract_strided_slice %4 {offsets = [0, 18], sizes = [16, 128], strides = [1, 1]} : vector<16x256xf32> to vector<16x128xf32>
    %90 = arith.addf %88, %89 : vector<16x128xf32>
    %c0_49 = arith.constant 0 : index
    %c0_50 = arith.constant 0 : index
    %c0_51 = arith.constant 0 : index
    %91 = vector.load %arg8[%c0_49, %c0_50, %c0_51] : memref<1x16x128xf32, #tpu.memory_space<vmem>>, vector<1x16x128xf32>
    %92 = vector.shape_cast %91 : vector<1x16x128xf32> to vector<16x128xf32>
    %93 = arith.addf %90, %92 : vector<16x128xf32>
    %c0_52 = arith.constant 0 : index
    %c0_53 = arith.constant 0 : index
    %c0_54 = arith.constant 0 : index
    %94 = vector.load %arg9[%c0_52, %c0_53, %c0_54] : memref<1x16x128xf32, #tpu.memory_space<vmem>>, vector<1x16x128xf32>
    %95 = vector.shape_cast %94 : vector<1x16x128xf32> to vector<16x128xf32>
    %96 = vector.shape_cast %93 : vector<16x128xf32> to vector<1x16x128xf32>
    tpu.vector_store %arg9[%c0_52, %c0_53, %c0_54], %96 {strides = array<i32>} : memref<1x16x128xf32, #tpu.memory_space<vmem>>, vector<1x16x128xf32>,
    return
  }
  func.func @transform_0(%arg0: i32, %arg1: i32) -> (i32, i32, i32) {
    %c0_i32 = arith.constant 0 : i32
    %c0_i32_0 = arith.constant 0 : i32
    return %arg0, %c0_i32, %arg1 : i32, i32, i32
  }
  func.func @transform_1(%arg0: i32, %arg1: i32) -> (i32, i32, i32) {
    %c1_i32 = arith.constant 1 : i32
    %0 = arith.addi %arg1, %c1_i32 : i32
    %c1_i32_0 = arith.constant 1 : i32
    %1 = arith.muli %0, %c1_i32_0 : i32
    %c0_i32 = arith.constant 0 : i32
    %c0_i32_1 = arith.constant 0 : i32
    return %arg0, %c0_i32, %1 : i32, i32, i32
  }
  func.func @transform_2(%arg0: i32, %arg1: i32) -> (i32, i32) {
    %c0_i32 = arith.constant 0 : i32
    %c0_i32_0 = arith.constant 0 : i32
    %c0_i32_1 = arith.constant 0 : i32
    return %c0_i32, %c0_i32_0 : i32, i32
  }
  func.func @transform_3(%arg0: i32, %arg1: i32) -> (i32, i32) {
    %c0_i32 = arith.constant 0 : i32
    %c0_i32_0 = arith.constant 0 : i32
    %c0_i32_1 = arith.constant 0 : i32
    return %c0_i32, %c0_i32_0 : i32, i32
  }
  func.func @transform_4(%arg0: i32, %arg1: i32) -> (i32, i32) {
    %c0_i32 = arith.constant 0 : i32
    %c0_i32_0 = arith.constant 0 : i32
    %c0_i32_1 = arith.constant 0 : i32
    return %c0_i32, %c0_i32_0 : i32, i32
  }
  func.func @transform_5(%arg0: i32, %arg1: i32) -> (i32, i32) {
    %c0_i32 = arith.constant 0 : i32
    %c0_i32_0 = arith.constant 0 : i32
    %c0_i32_1 = arith.constant 0 : i32
    return %c0_i32, %c0_i32_0 : i32, i32
  }
  func.func @transform_6(%arg0: i32, %arg1: i32) -> (i32, i32, i32) {
    %c0_i32 = arith.constant 0 : i32
    %c0_i32_0 = arith.constant 0 : i32
    return %arg0, %c0_i32, %arg1 : i32, i32, i32
  }
  func.func @transform_7(%arg0: i32, %arg1: i32) -> (i32, i32, i32) {
    %c0_i32 = arith.constant 0 : i32
    %c0_i32_0 = arith.constant 0 : i32
    return %arg0, %c0_i32, %arg1 : i32, i32, i32
  }
}

module attributes {stable_mosaic.version = 11 : i64} {
  func.func @_conv1d_kernel(%arg0: i32, %arg1: i32, %arg2: memref<1x16x128xf32, #tpu.memory_space<vmem>>, %arg3: memref<1x16x128xf32, #tpu.memory_space<vmem>>, %arg4: memref<16x48xf32, #tpu.memory_space<vmem>>, %arg5: memref<16x1xf32, #tpu.memory_space<vmem>>, %arg6: memref<1x16x128xf32, #tpu.memory_space<vmem>>) attributes {dimension_semantics = [#tpu.dimension_semantics<parallel>, #tpu.dimension_semantics<parallel>], iteration_bounds = array<i64: 2, 1>, scalar_prefetch = 0 : i64, scratch_operands = 0 : i64, tpu.core_type = #tpu.core_type<tc>, window_params = [{transform_indices = @transform_0, window_bounds = array<i64: 1, 16, 128>}, {transform_indices = @transform_1, window_bounds = array<i64: 1, 16, 128>}, {pipeline_mode = #tpu.pipeline_mode<synchronous>, transform_indices = @transform_2, window_bounds = array<i64: 16, 48>}, {pipeline_mode = #tpu.pipeline_mode<synchronous>, transform_indices = @transform_3, window_bounds = array<i64: 16, 1>}, {transform_indices = @transform_4, window_bounds = array<i64: 1, 16, 128>}]} {
    %c0 = arith.constant 0 : index
    %c0_0 = arith.constant 0 : index
    %c0_1 = arith.constant 0 : index
    %0 = vector.load %arg2[%c0, %c0_0, %c0_1] : memref<1x16x128xf32, #tpu.memory_space<vmem>>, vector<1x16x128xf32>
    %1 = vector.shape_cast %0 : vector<1x16x128xf32> to vector<16x128xf32>
    %c0_2 = arith.constant 0 : index
    %c0_3 = arith.constant 0 : index
    %c0_4 = arith.constant 0 : index
    %2 = vector.load %arg3[%c0_2, %c0_3, %c0_4] : memref<1x16x128xf32, #tpu.memory_space<vmem>>, vector<1x16x128xf32>
    %3 = vector.shape_cast %2 : vector<1x16x128xf32> to vector<16x128xf32>
    %4 = tpu.concatenate %1, %3 in 1 : vector<16x128xf32>, vector<16x128xf32> -> vector<16x256xf32>
    %cst = arith.constant 0.000000e+00 : f32
    %5 = vector.broadcast %cst : f32 to vector<16x256xf32>
    %6 = arith.cmpf oge, %4, %5 : vector<16x256xf32>
    %cst_5 = arith.constant 1.000000e-01 : f32
    %7 = vector.broadcast %cst_5 : f32 to vector<16x256xf32>
    %8 = arith.mulf %4, %7 : vector<16x256xf32>
    %9 = arith.select %6, %4, %8 : vector<16x256xi1>, vector<16x256xf32>
    %10 = vector.extract_strided_slice %9 {offsets = [0, 0], sizes = [16, 128], strides = [1, 1]} : vector<16x256xf32> to vector<16x128xf32>
    %11 = vector.extract_strided_slice %9 {offsets = [0, 1], sizes = [16, 128], strides = [1, 1]} : vector<16x256xf32> to vector<16x128xf32>
    %12 = vector.extract_strided_slice %9 {offsets = [0, 2], sizes = [16, 128], strides = [1, 1]} : vector<16x256xf32> to vector<16x128xf32>
    %13 = tpu.concatenate %10, %11, %12 in 0 : vector<16x128xf32>, vector<16x128xf32>, vector<16x128xf32> -> vector<48x128xf32>
    %c0_6 = arith.constant 0 : index
    %c0_7 = arith.constant 0 : index
    %14 = vector.load %arg4[%c0_6, %c0_7] : memref<16x48xf32, #tpu.memory_space<vmem>>, vector<16x48xf32>
    %cst_8 = arith.constant dense<0.000000e+00> : vector<16x128xf32>
    %15 = tpu.matmul %14, %13, %cst_8 {dimension_numbers = #tpu.dot_dimension_numbers<[1], [0], [0], [1], [0, 0, 1, 1], [], []>} : vector<16x48xf32>, vector<48x128xf32>, vector<16x128xf32> -> vector<16x128xf32>
    %c0_9 = arith.constant 0 : index
    %c0_10 = arith.constant 0 : index
    %16 = vector.load %arg5[%c0_9, %c0_10] : memref<16x1xf32, #tpu.memory_space<vmem>>, vector<16x1xf32>
    %17 = vector.broadcast %16 : vector<16x1xf32> to vector<16x128xf32>
    %18 = arith.addf %15, %17 : vector<16x128xf32>
    %c0_11 = arith.constant 0 : index
    %c0_12 = arith.constant 0 : index
    %c0_13 = arith.constant 0 : index
    %19 = vector.load %arg6[%c0_11, %c0_12, %c0_13] : memref<1x16x128xf32, #tpu.memory_space<vmem>>, vector<1x16x128xf32>
    %20 = vector.shape_cast %19 : vector<1x16x128xf32> to vector<16x128xf32>
    %21 = vector.shape_cast %18 : vector<16x128xf32> to vector<1x16x128xf32>
    tpu.vector_store %arg6[%c0_11, %c0_12, %c0_13], %21 {strides = array<i32>} : memref<1x16x128xf32, #tpu.memory_space<vmem>>, vector<1x16x128xf32>,
    return
  }
  func.func @transform_0(%arg0: i32, %arg1: i32) -> (i32, i32, i32) {
    %c0_i32 = arith.constant 0 : i32
    %c0_i32_0 = arith.constant 0 : i32
    return %arg0, %c0_i32, %arg1 : i32, i32, i32
  }
  func.func @transform_1(%arg0: i32, %arg1: i32) -> (i32, i32, i32) {
    %c1_i32 = arith.constant 1 : i32
    %0 = arith.addi %arg1, %c1_i32 : i32
    %c1_i32_0 = arith.constant 1 : i32
    %1 = arith.muli %0, %c1_i32_0 : i32
    %c0_i32 = arith.constant 0 : i32
    %c0_i32_1 = arith.constant 0 : i32
    return %arg0, %c0_i32, %1 : i32, i32, i32
  }
  func.func @transform_2(%arg0: i32, %arg1: i32) -> (i32, i32) {
    %c0_i32 = arith.constant 0 : i32
    %c0_i32_0 = arith.constant 0 : i32
    %c0_i32_1 = arith.constant 0 : i32
    return %c0_i32, %c0_i32_0 : i32, i32
  }
  func.func @transform_3(%arg0: i32, %arg1: i32) -> (i32, i32) {
    %c0_i32 = arith.constant 0 : i32
    %c0_i32_0 = arith.constant 0 : i32
    %c0_i32_1 = arith.constant 0 : i32
    return %c0_i32, %c0_i32_0 : i32, i32
  }
  func.func @transform_4(%arg0: i32, %arg1: i32) -> (i32, i32, i32) {
    %c0_i32 = arith.constant 0 : i32
    %c0_i32_0 = arith.constant 0 : i32
    return %arg0, %c0_i32, %arg1 : i32, i32, i32
  }
}

module attributes {stable_mosaic.version = 11 : i64} {
  func.func @_resblock1_step_kernel(%arg0: i32, %arg1: i32, %arg2: memref<1x8x128xf32, #tpu.memory_space<vmem>>, %arg3: memref<1x8x128xf32, #tpu.memory_space<vmem>>, %arg4: memref<8x24xf32, #tpu.memory_space<vmem>>, %arg5: memref<8x1xf32, #tpu.memory_space<vmem>>, %arg6: memref<8x24xf32, #tpu.memory_space<vmem>>, %arg7: memref<8x1xf32, #tpu.memory_space<vmem>>, %arg8: memref<1x8x128xf32, #tpu.memory_space<vmem>>) attributes {dimension_semantics = [#tpu.dimension_semantics<parallel>, #tpu.dimension_semantics<parallel>], iteration_bounds = array<i64: 2, 1>, scalar_prefetch = 0 : i64, scratch_operands = 0 : i64, tpu.core_type = #tpu.core_type<tc>, window_params = [{transform_indices = @transform_0, window_bounds = array<i64: 1, 8, 128>}, {transform_indices = @transform_1, window_bounds = array<i64: 1, 8, 128>}, {pipeline_mode = #tpu.pipeline_mode<synchronous>, transform_indices = @transform_2, window_bounds = array<i64: 8, 24>}, {pipeline_mode = #tpu.pipeline_mode<synchronous>, transform_indices = @transform_3, window_bounds = array<i64: 8, 1>}, {pipeline_mode = #tpu.pipeline_mode<synchronous>, transform_indices = @transform_4, window_bounds = array<i64: 8, 24>}, {pipeline_mode = #tpu.pipeline_mode<synchronous>, transform_indices = @transform_5, window_bounds = array<i64: 8, 1>}, {transform_indices = @transform_6, window_bounds = array<i64: 1, 8, 128>}]} {
    %c0 = arith.constant 0 : index
    %c0_0 = arith.constant 0 : index
    %c0_1 = arith.constant 0 : index
    %0 = vector.load %arg2[%c0, %c0_0, %c0_1] : memref<1x8x128xf32, #tpu.memory_space<vmem>>, vector<1x8x128xf32>
    %1 = vector.shape_cast %0 : vector<1x8x128xf32> to vector<8x128xf32>
    %c0_2 = arith.constant 0 : index
    %c0_3 = arith.constant 0 : index
    %c0_4 = arith.constant 0 : index
    %2 = vector.load %arg3[%c0_2, %c0_3, %c0_4] : memref<1x8x128xf32, #tpu.memory_space<vmem>>, vector<1x8x128xf32>
    %3 = vector.shape_cast %2 : vector<1x8x128xf32> to vector<8x128xf32>
    %4 = tpu.concatenate %1, %3 in 1 : vector<8x128xf32>, vector<8x128xf32> -> vector<8x256xf32>
    %cst = arith.constant 0.000000e+00 : f32
    %5 = vector.broadcast %cst : f32 to vector<8x256xf32>
    %6 = arith.cmpf oge, %4, %5 : vector<8x256xf32>
    %cst_5 = arith.constant 1.000000e-01 : f32
    %7 = vector.broadcast %cst_5 : f32 to vector<8x256xf32>
    %8 = arith.mulf %4, %7 : vector<8x256xf32>
    %9 = arith.select %6, %4, %8 : vector<8x256xi1>, vector<8x256xf32>
    %10 = vector.extract_strided_slice %9 {offsets = [0, 0], sizes = [8, 130], strides = [1, 1]} : vector<8x256xf32> to vector<8x130xf32>
    %11 = vector.extract_strided_slice %9 {offsets = [0, 3], sizes = [8, 130], strides = [1, 1]} : vector<8x256xf32> to vector<8x130xf32>
    %12 = vector.extract_strided_slice %9 {offsets = [0, 6], sizes = [8, 130], strides = [1, 1]} : vector<8x256xf32> to vector<8x130xf32>
    %13 = tpu.concatenate %10, %11, %12 in 0 : vector<8x130xf32>, vector<8x130xf32>, vector<8x130xf32> -> vector<24x130xf32>
    %c0_6 = arith.constant 0 : index
    %c0_7 = arith.constant 0 : index
    %14 = vector.load %arg4[%c0_6, %c0_7] : memref<8x24xf32, #tpu.memory_space<vmem>>, vector<8x24xf32>
    %cst_8 = arith.constant dense<0.000000e+00> : vector<8x130xf32>
    %15 = tpu.matmul %14, %13, %cst_8 {dimension_numbers = #tpu.dot_dimension_numbers<[1], [0], [0], [1], [0, 0, 1, 1], [], []>} : vector<8x24xf32>, vector<24x130xf32>, vector<8x130xf32> -> vector<8x130xf32>
    %c0_9 = arith.constant 0 : index
    %c0_10 = arith.constant 0 : index
    %16 = vector.load %arg5[%c0_9, %c0_10] : memref<8x1xf32, #tpu.memory_space<vmem>>, vector<8x1xf32>
    %17 = vector.broadcast %16 : vector<8x1xf32> to vector<8x130xf32>
    %18 = arith.addf %15, %17 : vector<8x130xf32>
    %c128_i32 = arith.constant 128 : i32
    %19 = arith.muli %arg1, %c128_i32 : i32
    %c1_i32 = arith.constant 1 : i32
    %20 = arith.subi %19, %c1_i32 : i32
    %21 = tpu.iota {dimensions = array<i32: 1>} : vector<1x130xi32>
    %22 = vector.broadcast %20 : i32 to vector<1x130xi32>
    %23 = arith.addi %22, %21 : vector<1x130xi32>
    %c0_i32 = arith.constant 0 : i32
    %24 = vector.broadcast %c0_i32 : i32 to vector<1x130xi32>
    %25 = arith.cmpi sge, %23, %24 : vector<1x130xi32>
    %c64_i32 = arith.constant 64 : i32
    %26 = vector.broadcast %c64_i32 : i32 to vector<1x130xi32>
    %27 = arith.cmpi slt, %23, %26 : vector<1x130xi32>
    %28 = arith.andi %25, %27 : vector<1x130xi1>
    %cst_11 = arith.constant 0.000000e+00 : f32
    %29 = vector.shape_cast %28 : vector<1x130xi1> to vector<1x130xi1>
    %30 = vector.broadcast %29 : vector<1x130xi1> to vector<8x130xi1>
    %31 = vector.broadcast %cst_11 : f32 to vector<8x130xf32>
    %32 = arith.select %30, %18, %31 : vector<8x130xi1>, vector<8x130xf32>
    %cst_12 = arith.constant 0.000000e+00 : f32
    %33 = vector.broadcast %cst_12 : f32 to vector<8x130xf32>
    %34 = arith.cmpf oge, %32, %33 : vector<8x130xf32>
    %cst_13 = arith.constant 1.000000e-01 : f32
    %35 = vector.broadcast %cst_13 : f32 to vector<8x130xf32>
    %36 = arith.mulf %32, %35 : vector<8x130xf32>
    %37 = arith.select %34, %32, %36 : vector<8x130xi1>, vector<8x130xf32>
    %38 = vector.extract_strided_slice %37 {offsets = [0, 0], sizes = [8, 128], strides = [1, 1]} : vector<8x130xf32> to vector<8x128xf32>
    %39 = vector.extract_strided_slice %37 {offsets = [0, 1], sizes = [8, 128], strides = [1, 1]} : vector<8x130xf32> to vector<8x128xf32>
    %40 = vector.extract_strided_slice %37 {offsets = [0, 2], sizes = [8, 128], strides = [1, 1]} : vector<8x130xf32> to vector<8x128xf32>
    %41 = tpu.concatenate %38, %39, %40 in 0 : vector<8x128xf32>, vector<8x128xf32>, vector<8x128xf32> -> vector<24x128xf32>
    %c0_14 = arith.constant 0 : index
    %c0_15 = arith.constant 0 : index
    %42 = vector.load %arg6[%c0_14, %c0_15] : memref<8x24xf32, #tpu.memory_space<vmem>>, vector<8x24xf32>
    %cst_16 = arith.constant dense<0.000000e+00> : vector<8x128xf32>
    %43 = tpu.matmul %42, %41, %cst_16 {dimension_numbers = #tpu.dot_dimension_numbers<[1], [0], [0], [1], [0, 0, 1, 1], [], []>} : vector<8x24xf32>, vector<24x128xf32>, vector<8x128xf32> -> vector<8x128xf32>
    %c0_17 = arith.constant 0 : index
    %c0_18 = arith.constant 0 : index
    %44 = vector.load %arg7[%c0_17, %c0_18] : memref<8x1xf32, #tpu.memory_space<vmem>>, vector<8x1xf32>
    %45 = vector.broadcast %44 : vector<8x1xf32> to vector<8x128xf32>
    %46 = arith.addf %43, %45 : vector<8x128xf32>
    %47 = vector.extract_strided_slice %4 {offsets = [0, 4], sizes = [8, 128], strides = [1, 1]} : vector<8x256xf32> to vector<8x128xf32>
    %48 = arith.addf %46, %47 : vector<8x128xf32>
    %c0_19 = arith.constant 0 : index
    %c0_20 = arith.constant 0 : index
    %c0_21 = arith.constant 0 : index
    %49 = vector.load %arg8[%c0_19, %c0_20, %c0_21] : memref<1x8x128xf32, #tpu.memory_space<vmem>>, vector<1x8x128xf32>
    %50 = vector.shape_cast %49 : vector<1x8x128xf32> to vector<8x128xf32>
    %51 = vector.shape_cast %48 : vector<8x128xf32> to vector<1x8x128xf32>
    tpu.vector_store %arg8[%c0_19, %c0_20, %c0_21], %51 {strides = array<i32>} : memref<1x8x128xf32, #tpu.memory_space<vmem>>, vector<1x8x128xf32>,
    return
  }
  func.func @transform_0(%arg0: i32, %arg1: i32) -> (i32, i32, i32) {
    %c0_i32 = arith.constant 0 : i32
    %c0_i32_0 = arith.constant 0 : i32
    return %arg0, %c0_i32, %arg1 : i32, i32, i32
  }
  func.func @transform_1(%arg0: i32, %arg1: i32) -> (i32, i32, i32) {
    %c1_i32 = arith.constant 1 : i32
    %0 = arith.addi %arg1, %c1_i32 : i32
    %c1_i32_0 = arith.constant 1 : i32
    %1 = arith.muli %0, %c1_i32_0 : i32
    %c0_i32 = arith.constant 0 : i32
    %c0_i32_1 = arith.constant 0 : i32
    return %arg0, %c0_i32, %1 : i32, i32, i32
  }
  func.func @transform_2(%arg0: i32, %arg1: i32) -> (i32, i32) {
    %c0_i32 = arith.constant 0 : i32
    %c0_i32_0 = arith.constant 0 : i32
    %c0_i32_1 = arith.constant 0 : i32
    return %c0_i32, %c0_i32_0 : i32, i32
  }
  func.func @transform_3(%arg0: i32, %arg1: i32) -> (i32, i32) {
    %c0_i32 = arith.constant 0 : i32
    %c0_i32_0 = arith.constant 0 : i32
    %c0_i32_1 = arith.constant 0 : i32
    return %c0_i32, %c0_i32_0 : i32, i32
  }
  func.func @transform_4(%arg0: i32, %arg1: i32) -> (i32, i32) {
    %c0_i32 = arith.constant 0 : i32
    %c0_i32_0 = arith.constant 0 : i32
    %c0_i32_1 = arith.constant 0 : i32
    return %c0_i32, %c0_i32_0 : i32, i32
  }
  func.func @transform_5(%arg0: i32, %arg1: i32) -> (i32, i32) {
    %c0_i32 = arith.constant 0 : i32
    %c0_i32_0 = arith.constant 0 : i32
    %c0_i32_1 = arith.constant 0 : i32
    return %c0_i32, %c0_i32_0 : i32, i32
  }
  func.func @transform_6(%arg0: i32, %arg1: i32) -> (i32, i32, i32) {
    %c0_i32 = arith.constant 0 : i32
    %c0_i32_0 = arith.constant 0 : i32
    return %arg0, %c0_i32, %arg1 : i32, i32, i32
  }
}

module attributes {stable_mosaic.version = 11 : i64} {
  func.func @_resblock1_step_kernel(%arg0: i32, %arg1: i32, %arg2: memref<1x8x128xf32, #tpu.memory_space<vmem>>, %arg3: memref<1x8x128xf32, #tpu.memory_space<vmem>>, %arg4: memref<8x24xf32, #tpu.memory_space<vmem>>, %arg5: memref<8x1xf32, #tpu.memory_space<vmem>>, %arg6: memref<8x24xf32, #tpu.memory_space<vmem>>, %arg7: memref<8x1xf32, #tpu.memory_space<vmem>>, %arg8: memref<1x8x128xf32, #tpu.memory_space<vmem>>) attributes {dimension_semantics = [#tpu.dimension_semantics<parallel>, #tpu.dimension_semantics<parallel>], iteration_bounds = array<i64: 2, 1>, scalar_prefetch = 0 : i64, scratch_operands = 0 : i64, tpu.core_type = #tpu.core_type<tc>, window_params = [{transform_indices = @transform_0, window_bounds = array<i64: 1, 8, 128>}, {transform_indices = @transform_1, window_bounds = array<i64: 1, 8, 128>}, {pipeline_mode = #tpu.pipeline_mode<synchronous>, transform_indices = @transform_2, window_bounds = array<i64: 8, 24>}, {pipeline_mode = #tpu.pipeline_mode<synchronous>, transform_indices = @transform_3, window_bounds = array<i64: 8, 1>}, {pipeline_mode = #tpu.pipeline_mode<synchronous>, transform_indices = @transform_4, window_bounds = array<i64: 8, 24>}, {pipeline_mode = #tpu.pipeline_mode<synchronous>, transform_indices = @transform_5, window_bounds = array<i64: 8, 1>}, {transform_indices = @transform_6, window_bounds = array<i64: 1, 8, 128>}]} {
    %c0 = arith.constant 0 : index
    %c0_0 = arith.constant 0 : index
    %c0_1 = arith.constant 0 : index
    %0 = vector.load %arg2[%c0, %c0_0, %c0_1] : memref<1x8x128xf32, #tpu.memory_space<vmem>>, vector<1x8x128xf32>
    %1 = vector.shape_cast %0 : vector<1x8x128xf32> to vector<8x128xf32>
    %c0_2 = arith.constant 0 : index
    %c0_3 = arith.constant 0 : index
    %c0_4 = arith.constant 0 : index
    %2 = vector.load %arg3[%c0_2, %c0_3, %c0_4] : memref<1x8x128xf32, #tpu.memory_space<vmem>>, vector<1x8x128xf32>
    %3 = vector.shape_cast %2 : vector<1x8x128xf32> to vector<8x128xf32>
    %4 = tpu.concatenate %1, %3 in 1 : vector<8x128xf32>, vector<8x128xf32> -> vector<8x256xf32>
    %cst = arith.constant 0.000000e+00 : f32
    %5 = vector.broadcast %cst : f32 to vector<8x256xf32>
    %6 = arith.cmpf oge, %4, %5 : vector<8x256xf32>
    %cst_5 = arith.constant 1.000000e-01 : f32
    %7 = vector.broadcast %cst_5 : f32 to vector<8x256xf32>
    %8 = arith.mulf %4, %7 : vector<8x256xf32>
    %9 = arith.select %6, %4, %8 : vector<8x256xi1>, vector<8x256xf32>
    %10 = vector.extract_strided_slice %9 {offsets = [0, 0], sizes = [8, 130], strides = [1, 1]} : vector<8x256xf32> to vector<8x130xf32>
    %11 = vector.extract_strided_slice %9 {offsets = [0, 1], sizes = [8, 130], strides = [1, 1]} : vector<8x256xf32> to vector<8x130xf32>
    %12 = vector.extract_strided_slice %9 {offsets = [0, 2], sizes = [8, 130], strides = [1, 1]} : vector<8x256xf32> to vector<8x130xf32>
    %13 = tpu.concatenate %10, %11, %12 in 0 : vector<8x130xf32>, vector<8x130xf32>, vector<8x130xf32> -> vector<24x130xf32>
    %c0_6 = arith.constant 0 : index
    %c0_7 = arith.constant 0 : index
    %14 = vector.load %arg4[%c0_6, %c0_7] : memref<8x24xf32, #tpu.memory_space<vmem>>, vector<8x24xf32>
    %cst_8 = arith.constant dense<0.000000e+00> : vector<8x130xf32>
    %15 = tpu.matmul %14, %13, %cst_8 {dimension_numbers = #tpu.dot_dimension_numbers<[1], [0], [0], [1], [0, 0, 1, 1], [], []>} : vector<8x24xf32>, vector<24x130xf32>, vector<8x130xf32> -> vector<8x130xf32>
    %c0_9 = arith.constant 0 : index
    %c0_10 = arith.constant 0 : index
    %16 = vector.load %arg5[%c0_9, %c0_10] : memref<8x1xf32, #tpu.memory_space<vmem>>, vector<8x1xf32>
    %17 = vector.broadcast %16 : vector<8x1xf32> to vector<8x130xf32>
    %18 = arith.addf %15, %17 : vector<8x130xf32>
    %c128_i32 = arith.constant 128 : i32
    %19 = arith.muli %arg1, %c128_i32 : i32
    %c1_i32 = arith.constant 1 : i32
    %20 = arith.subi %19, %c1_i32 : i32
    %21 = tpu.iota {dimensions = array<i32: 1>} : vector<1x130xi32>
    %22 = vector.broadcast %20 : i32 to vector<1x130xi32>
    %23 = arith.addi %22, %21 : vector<1x130xi32>
    %c0_i32 = arith.constant 0 : i32
    %24 = vector.broadcast %c0_i32 : i32 to vector<1x130xi32>
    %25 = arith.cmpi sge, %23, %24 : vector<1x130xi32>
    %c64_i32 = arith.constant 64 : i32
    %26 = vector.broadcast %c64_i32 : i32 to vector<1x130xi32>
    %27 = arith.cmpi slt, %23, %26 : vector<1x130xi32>
    %28 = arith.andi %25, %27 : vector<1x130xi1>
    %cst_11 = arith.constant 0.000000e+00 : f32
    %29 = vector.shape_cast %28 : vector<1x130xi1> to vector<1x130xi1>
    %30 = vector.broadcast %29 : vector<1x130xi1> to vector<8x130xi1>
    %31 = vector.broadcast %cst_11 : f32 to vector<8x130xf32>
    %32 = arith.select %30, %18, %31 : vector<8x130xi1>, vector<8x130xf32>
    %cst_12 = arith.constant 0.000000e+00 : f32
    %33 = vector.broadcast %cst_12 : f32 to vector<8x130xf32>
    %34 = arith.cmpf oge, %32, %33 : vector<8x130xf32>
    %cst_13 = arith.constant 1.000000e-01 : f32
    %35 = vector.broadcast %cst_13 : f32 to vector<8x130xf32>
    %36 = arith.mulf %32, %35 : vector<8x130xf32>
    %37 = arith.select %34, %32, %36 : vector<8x130xi1>, vector<8x130xf32>
    %38 = vector.extract_strided_slice %37 {offsets = [0, 0], sizes = [8, 128], strides = [1, 1]} : vector<8x130xf32> to vector<8x128xf32>
    %39 = vector.extract_strided_slice %37 {offsets = [0, 1], sizes = [8, 128], strides = [1, 1]} : vector<8x130xf32> to vector<8x128xf32>
    %40 = vector.extract_strided_slice %37 {offsets = [0, 2], sizes = [8, 128], strides = [1, 1]} : vector<8x130xf32> to vector<8x128xf32>
    %41 = tpu.concatenate %38, %39, %40 in 0 : vector<8x128xf32>, vector<8x128xf32>, vector<8x128xf32> -> vector<24x128xf32>
    %c0_14 = arith.constant 0 : index
    %c0_15 = arith.constant 0 : index
    %42 = vector.load %arg6[%c0_14, %c0_15] : memref<8x24xf32, #tpu.memory_space<vmem>>, vector<8x24xf32>
    %cst_16 = arith.constant dense<0.000000e+00> : vector<8x128xf32>
    %43 = tpu.matmul %42, %41, %cst_16 {dimension_numbers = #tpu.dot_dimension_numbers<[1], [0], [0], [1], [0, 0, 1, 1], [], []>} : vector<8x24xf32>, vector<24x128xf32>, vector<8x128xf32> -> vector<8x128xf32>
    %c0_17 = arith.constant 0 : index
    %c0_18 = arith.constant 0 : index
    %44 = vector.load %arg7[%c0_17, %c0_18] : memref<8x1xf32, #tpu.memory_space<vmem>>, vector<8x1xf32>
    %45 = vector.broadcast %44 : vector<8x1xf32> to vector<8x128xf32>
    %46 = arith.addf %43, %45 : vector<8x128xf32>
    %47 = vector.extract_strided_slice %4 {offsets = [0, 2], sizes = [8, 128], strides = [1, 1]} : vector<8x256xf32> to vector<8x128xf32>
    %48 = arith.addf %46, %47 : vector<8x128xf32>
    %c0_19 = arith.constant 0 : index
    %c0_20 = arith.constant 0 : index
    %c0_21 = arith.constant 0 : index
    %49 = vector.load %arg8[%c0_19, %c0_20, %c0_21] : memref<1x8x128xf32, #tpu.memory_space<vmem>>, vector<1x8x128xf32>
    %50 = vector.shape_cast %49 : vector<1x8x128xf32> to vector<8x128xf32>
    %51 = vector.shape_cast %48 : vector<8x128xf32> to vector<1x8x128xf32>
    tpu.vector_store %arg8[%c0_19, %c0_20, %c0_21], %51 {strides = array<i32>} : memref<1x8x128xf32, #tpu.memory_space<vmem>>, vector<1x8x128xf32>,
    return
  }
  func.func @transform_0(%arg0: i32, %arg1: i32) -> (i32, i32, i32) {
    %c0_i32 = arith.constant 0 : i32
    %c0_i32_0 = arith.constant 0 : i32
    return %arg0, %c0_i32, %arg1 : i32, i32, i32
  }
  func.func @transform_1(%arg0: i32, %arg1: i32) -> (i32, i32, i32) {
    %c1_i32 = arith.constant 1 : i32
    %0 = arith.addi %arg1, %c1_i32 : i32
    %c1_i32_0 = arith.constant 1 : i32
    %1 = arith.muli %0, %c1_i32_0 : i32
    %c0_i32 = arith.constant 0 : i32
    %c0_i32_1 = arith.constant 0 : i32
    return %arg0, %c0_i32, %1 : i32, i32, i32
  }
  func.func @transform_2(%arg0: i32, %arg1: i32) -> (i32, i32) {
    %c0_i32 = arith.constant 0 : i32
    %c0_i32_0 = arith.constant 0 : i32
    %c0_i32_1 = arith.constant 0 : i32
    return %c0_i32, %c0_i32_0 : i32, i32
  }
  func.func @transform_3(%arg0: i32, %arg1: i32) -> (i32, i32) {
    %c0_i32 = arith.constant 0 : i32
    %c0_i32_0 = arith.constant 0 : i32
    %c0_i32_1 = arith.constant 0 : i32
    return %c0_i32, %c0_i32_0 : i32, i32
  }
  func.func @transform_4(%arg0: i32, %arg1: i32) -> (i32, i32) {
    %c0_i32 = arith.constant 0 : i32
    %c0_i32_0 = arith.constant 0 : i32
    %c0_i32_1 = arith.constant 0 : i32
    return %c0_i32, %c0_i32_0 : i32, i32
  }
  func.func @transform_5(%arg0: i32, %arg1: i32) -> (i32, i32) {
    %c0_i32 = arith.constant 0 : i32
    %c0_i32_0 = arith.constant 0 : i32
    %c0_i32_1 = arith.constant 0 : i32
    return %c0_i32, %c0_i32_0 : i32, i32
  }
  func.func @transform_6(%arg0: i32, %arg1: i32) -> (i32, i32, i32) {
    %c0_i32 = arith.constant 0 : i32
    %c0_i32_0 = arith.constant 0 : i32
    return %arg0, %c0_i32, %arg1 : i32, i32, i32
  }
}

module attributes {stable_mosaic.version = 11 : i64} {
  func.func @_resblock1_step_kernel(%arg0: i32, %arg1: i32, %arg2: memref<1x8x128xf32, #tpu.memory_space<vmem>>, %arg3: memref<1x8x128xf32, #tpu.memory_space<vmem>>, %arg4: memref<8x24xf32, #tpu.memory_space<vmem>>, %arg5: memref<8x1xf32, #tpu.memory_space<vmem>>, %arg6: memref<8x24xf32, #tpu.memory_space<vmem>>, %arg7: memref<8x1xf32, #tpu.memory_space<vmem>>, %arg8: memref<1x8x128xf32, #tpu.memory_space<vmem>>) attributes {dimension_semantics = [#tpu.dimension_semantics<parallel>, #tpu.dimension_semantics<parallel>], iteration_bounds = array<i64: 2, 1>, scalar_prefetch = 0 : i64, scratch_operands = 0 : i64, tpu.core_type = #tpu.core_type<tc>, window_params = [{transform_indices = @transform_0, window_bounds = array<i64: 1, 8, 128>}, {transform_indices = @transform_1, window_bounds = array<i64: 1, 8, 128>}, {pipeline_mode = #tpu.pipeline_mode<synchronous>, transform_indices = @transform_2, window_bounds = array<i64: 8, 24>}, {pipeline_mode = #tpu.pipeline_mode<synchronous>, transform_indices = @transform_3, window_bounds = array<i64: 8, 1>}, {pipeline_mode = #tpu.pipeline_mode<synchronous>, transform_indices = @transform_4, window_bounds = array<i64: 8, 24>}, {pipeline_mode = #tpu.pipeline_mode<synchronous>, transform_indices = @transform_5, window_bounds = array<i64: 8, 1>}, {transform_indices = @transform_6, window_bounds = array<i64: 1, 8, 128>}]} {
    %c0 = arith.constant 0 : index
    %c0_0 = arith.constant 0 : index
    %c0_1 = arith.constant 0 : index
    %0 = vector.load %arg2[%c0, %c0_0, %c0_1] : memref<1x8x128xf32, #tpu.memory_space<vmem>>, vector<1x8x128xf32>
    %1 = vector.shape_cast %0 : vector<1x8x128xf32> to vector<8x128xf32>
    %c0_2 = arith.constant 0 : index
    %c0_3 = arith.constant 0 : index
    %c0_4 = arith.constant 0 : index
    %2 = vector.load %arg3[%c0_2, %c0_3, %c0_4] : memref<1x8x128xf32, #tpu.memory_space<vmem>>, vector<1x8x128xf32>
    %3 = vector.shape_cast %2 : vector<1x8x128xf32> to vector<8x128xf32>
    %4 = tpu.concatenate %1, %3 in 1 : vector<8x128xf32>, vector<8x128xf32> -> vector<8x256xf32>
    %cst = arith.constant 0.000000e+00 : f32
    %5 = vector.broadcast %cst : f32 to vector<8x256xf32>
    %6 = arith.cmpf oge, %4, %5 : vector<8x256xf32>
    %cst_5 = arith.constant 1.000000e-01 : f32
    %7 = vector.broadcast %cst_5 : f32 to vector<8x256xf32>
    %8 = arith.mulf %4, %7 : vector<8x256xf32>
    %9 = arith.select %6, %4, %8 : vector<8x256xi1>, vector<8x256xf32>
    %10 = vector.extract_strided_slice %9 {offsets = [0, 0], sizes = [8, 130], strides = [1, 1]} : vector<8x256xf32> to vector<8x130xf32>
    %11 = vector.extract_strided_slice %9 {offsets = [0, 5], sizes = [8, 130], strides = [1, 1]} : vector<8x256xf32> to vector<8x130xf32>
    %12 = vector.extract_strided_slice %9 {offsets = [0, 10], sizes = [8, 130], strides = [1, 1]} : vector<8x256xf32> to vector<8x130xf32>
    %13 = tpu.concatenate %10, %11, %12 in 0 : vector<8x130xf32>, vector<8x130xf32>, vector<8x130xf32> -> vector<24x130xf32>
    %c0_6 = arith.constant 0 : index
    %c0_7 = arith.constant 0 : index
    %14 = vector.load %arg4[%c0_6, %c0_7] : memref<8x24xf32, #tpu.memory_space<vmem>>, vector<8x24xf32>
    %cst_8 = arith.constant dense<0.000000e+00> : vector<8x130xf32>
    %15 = tpu.matmul %14, %13, %cst_8 {dimension_numbers = #tpu.dot_dimension_numbers<[1], [0], [0], [1], [0, 0, 1, 1], [], []>} : vector<8x24xf32>, vector<24x130xf32>, vector<8x130xf32> -> vector<8x130xf32>
    %c0_9 = arith.constant 0 : index
    %c0_10 = arith.constant 0 : index
    %16 = vector.load %arg5[%c0_9, %c0_10] : memref<8x1xf32, #tpu.memory_space<vmem>>, vector<8x1xf32>
    %17 = vector.broadcast %16 : vector<8x1xf32> to vector<8x130xf32>
    %18 = arith.addf %15, %17 : vector<8x130xf32>
    %c128_i32 = arith.constant 128 : i32
    %19 = arith.muli %arg1, %c128_i32 : i32
    %c1_i32 = arith.constant 1 : i32
    %20 = arith.subi %19, %c1_i32 : i32
    %21 = tpu.iota {dimensions = array<i32: 1>} : vector<1x130xi32>
    %22 = vector.broadcast %20 : i32 to vector<1x130xi32>
    %23 = arith.addi %22, %21 : vector<1x130xi32>
    %c0_i32 = arith.constant 0 : i32
    %24 = vector.broadcast %c0_i32 : i32 to vector<1x130xi32>
    %25 = arith.cmpi sge, %23, %24 : vector<1x130xi32>
    %c64_i32 = arith.constant 64 : i32
    %26 = vector.broadcast %c64_i32 : i32 to vector<1x130xi32>
    %27 = arith.cmpi slt, %23, %26 : vector<1x130xi32>
    %28 = arith.andi %25, %27 : vector<1x130xi1>
    %cst_11 = arith.constant 0.000000e+00 : f32
    %29 = vector.shape_cast %28 : vector<1x130xi1> to vector<1x130xi1>
    %30 = vector.broadcast %29 : vector<1x130xi1> to vector<8x130xi1>
    %31 = vector.broadcast %cst_11 : f32 to vector<8x130xf32>
    %32 = arith.select %30, %18, %31 : vector<8x130xi1>, vector<8x130xf32>
    %cst_12 = arith.constant 0.000000e+00 : f32
    %33 = vector.broadcast %cst_12 : f32 to vector<8x130xf32>
    %34 = arith.cmpf oge, %32, %33 : vector<8x130xf32>
    %cst_13 = arith.constant 1.000000e-01 : f32
    %35 = vector.broadcast %cst_13 : f32 to vector<8x130xf32>
    %36 = arith.mulf %32, %35 : vector<8x130xf32>
    %37 = arith.select %34, %32, %36 : vector<8x130xi1>, vector<8x130xf32>
    %38 = vector.extract_strided_slice %37 {offsets = [0, 0], sizes = [8, 128], strides = [1, 1]} : vector<8x130xf32> to vector<8x128xf32>
    %39 = vector.extract_strided_slice %37 {offsets = [0, 1], sizes = [8, 128], strides = [1, 1]} : vector<8x130xf32> to vector<8x128xf32>
    %40 = vector.extract_strided_slice %37 {offsets = [0, 2], sizes = [8, 128], strides = [1, 1]} : vector<8x130xf32> to vector<8x128xf32>
    %41 = tpu.concatenate %38, %39, %40 in 0 : vector<8x128xf32>, vector<8x128xf32>, vector<8x128xf32> -> vector<24x128xf32>
    %c0_14 = arith.constant 0 : index
    %c0_15 = arith.constant 0 : index
    %42 = vector.load %arg6[%c0_14, %c0_15] : memref<8x24xf32, #tpu.memory_space<vmem>>, vector<8x24xf32>
    %cst_16 = arith.constant dense<0.000000e+00> : vector<8x128xf32>
    %43 = tpu.matmul %42, %41, %cst_16 {dimension_numbers = #tpu.dot_dimension_numbers<[1], [0], [0], [1], [0, 0, 1, 1], [], []>} : vector<8x24xf32>, vector<24x128xf32>, vector<8x128xf32> -> vector<8x128xf32>
    %c0_17 = arith.constant 0 : index
    %c0_18 = arith.constant 0 : index
    %44 = vector.load %arg7[%c0_17, %c0_18] : memref<8x1xf32, #tpu.memory_space<vmem>>, vector<8x1xf32>
    %45 = vector.broadcast %44 : vector<8x1xf32> to vector<8x128xf32>
    %46 = arith.addf %43, %45 : vector<8x128xf32>
    %47 = vector.extract_strided_slice %4 {offsets = [0, 6], sizes = [8, 128], strides = [1, 1]} : vector<8x256xf32> to vector<8x128xf32>
    %48 = arith.addf %46, %47 : vector<8x128xf32>
    %c0_19 = arith.constant 0 : index
    %c0_20 = arith.constant 0 : index
    %c0_21 = arith.constant 0 : index
    %49 = vector.load %arg8[%c0_19, %c0_20, %c0_21] : memref<1x8x128xf32, #tpu.memory_space<vmem>>, vector<1x8x128xf32>
    %50 = vector.shape_cast %49 : vector<1x8x128xf32> to vector<8x128xf32>
    %51 = vector.shape_cast %48 : vector<8x128xf32> to vector<1x8x128xf32>
    tpu.vector_store %arg8[%c0_19, %c0_20, %c0_21], %51 {strides = array<i32>} : memref<1x8x128xf32, #tpu.memory_space<vmem>>, vector<1x8x128xf32>,
    return
  }
  func.func @transform_0(%arg0: i32, %arg1: i32) -> (i32, i32, i32) {
    %c0_i32 = arith.constant 0 : i32
    %c0_i32_0 = arith.constant 0 : i32
    return %arg0, %c0_i32, %arg1 : i32, i32, i32
  }
  func.func @transform_1(%arg0: i32, %arg1: i32) -> (i32, i32, i32) {
    %c1_i32 = arith.constant 1 : i32
    %0 = arith.addi %arg1, %c1_i32 : i32
    %c1_i32_0 = arith.constant 1 : i32
    %1 = arith.muli %0, %c1_i32_0 : i32
    %c0_i32 = arith.constant 0 : i32
    %c0_i32_1 = arith.constant 0 : i32
    return %arg0, %c0_i32, %1 : i32, i32, i32
  }
  func.func @transform_2(%arg0: i32, %arg1: i32) -> (i32, i32) {
    %c0_i32 = arith.constant 0 : i32
    %c0_i32_0 = arith.constant 0 : i32
    %c0_i32_1 = arith.constant 0 : i32
    return %c0_i32, %c0_i32_0 : i32, i32
  }
  func.func @transform_3(%arg0: i32, %arg1: i32) -> (i32, i32) {
    %c0_i32 = arith.constant 0 : i32
    %c0_i32_0 = arith.constant 0 : i32
    %c0_i32_1 = arith.constant 0 : i32
    return %c0_i32, %c0_i32_0 : i32, i32
  }
  func.func @transform_4(%arg0: i32, %arg1: i32) -> (i32, i32) {
    %c0_i32 = arith.constant 0 : i32
    %c0_i32_0 = arith.constant 0 : i32
    %c0_i32_1 = arith.constant 0 : i32
    return %c0_i32, %c0_i32_0 : i32, i32
  }
  func.func @transform_5(%arg0: i32, %arg1: i32) -> (i32, i32) {
    %c0_i32 = arith.constant 0 : i32
    %c0_i32_0 = arith.constant 0 : i32
    %c0_i32_1 = arith.constant 0 : i32
    return %c0_i32, %c0_i32_0 : i32, i32
  }
  func.func @transform_6(%arg0: i32, %arg1: i32) -> (i32, i32, i32) {
    %c0_i32 = arith.constant 0 : i32
    %c0_i32_0 = arith.constant 0 : i32
    return %arg0, %c0_i32, %arg1 : i32, i32, i32
  }
}

module attributes {stable_mosaic.version = 11 : i64} {
  func.func @_resblock1_step_kernel(%arg0: i32, %arg1: i32, %arg2: memref<1x8x128xf32, #tpu.memory_space<vmem>>, %arg3: memref<1x8x128xf32, #tpu.memory_space<vmem>>, %arg4: memref<8x56xf32, #tpu.memory_space<vmem>>, %arg5: memref<8x1xf32, #tpu.memory_space<vmem>>, %arg6: memref<8x56xf32, #tpu.memory_space<vmem>>, %arg7: memref<8x1xf32, #tpu.memory_space<vmem>>, %arg8: memref<1x8x128xf32, #tpu.memory_space<vmem>>) attributes {dimension_semantics = [#tpu.dimension_semantics<parallel>, #tpu.dimension_semantics<parallel>], iteration_bounds = array<i64: 2, 1>, scalar_prefetch = 0 : i64, scratch_operands = 0 : i64, tpu.core_type = #tpu.core_type<tc>, window_params = [{transform_indices = @transform_0, window_bounds = array<i64: 1, 8, 128>}, {transform_indices = @transform_1, window_bounds = array<i64: 1, 8, 128>}, {pipeline_mode = #tpu.pipeline_mode<synchronous>, transform_indices = @transform_2, window_bounds = array<i64: 8, 56>}, {pipeline_mode = #tpu.pipeline_mode<synchronous>, transform_indices = @transform_3, window_bounds = array<i64: 8, 1>}, {pipeline_mode = #tpu.pipeline_mode<synchronous>, transform_indices = @transform_4, window_bounds = array<i64: 8, 56>}, {pipeline_mode = #tpu.pipeline_mode<synchronous>, transform_indices = @transform_5, window_bounds = array<i64: 8, 1>}, {transform_indices = @transform_6, window_bounds = array<i64: 1, 8, 128>}]} {
    %c0 = arith.constant 0 : index
    %c0_0 = arith.constant 0 : index
    %c0_1 = arith.constant 0 : index
    %0 = vector.load %arg2[%c0, %c0_0, %c0_1] : memref<1x8x128xf32, #tpu.memory_space<vmem>>, vector<1x8x128xf32>
    %1 = vector.shape_cast %0 : vector<1x8x128xf32> to vector<8x128xf32>
    %c0_2 = arith.constant 0 : index
    %c0_3 = arith.constant 0 : index
    %c0_4 = arith.constant 0 : index
    %2 = vector.load %arg3[%c0_2, %c0_3, %c0_4] : memref<1x8x128xf32, #tpu.memory_space<vmem>>, vector<1x8x128xf32>
    %3 = vector.shape_cast %2 : vector<1x8x128xf32> to vector<8x128xf32>
    %4 = tpu.concatenate %1, %3 in 1 : vector<8x128xf32>, vector<8x128xf32> -> vector<8x256xf32>
    %cst = arith.constant 0.000000e+00 : f32
    %5 = vector.broadcast %cst : f32 to vector<8x256xf32>
    %6 = arith.cmpf oge, %4, %5 : vector<8x256xf32>
    %cst_5 = arith.constant 1.000000e-01 : f32
    %7 = vector.broadcast %cst_5 : f32 to vector<8x256xf32>
    %8 = arith.mulf %4, %7 : vector<8x256xf32>
    %9 = arith.select %6, %4, %8 : vector<8x256xi1>, vector<8x256xf32>
    %10 = vector.extract_strided_slice %9 {offsets = [0, 0], sizes = [8, 134], strides = [1, 1]} : vector<8x256xf32> to vector<8x134xf32>
    %11 = vector.extract_strided_slice %9 {offsets = [0, 1], sizes = [8, 134], strides = [1, 1]} : vector<8x256xf32> to vector<8x134xf32>
    %12 = vector.extract_strided_slice %9 {offsets = [0, 2], sizes = [8, 134], strides = [1, 1]} : vector<8x256xf32> to vector<8x134xf32>
    %13 = vector.extract_strided_slice %9 {offsets = [0, 3], sizes = [8, 134], strides = [1, 1]} : vector<8x256xf32> to vector<8x134xf32>
    %14 = vector.extract_strided_slice %9 {offsets = [0, 4], sizes = [8, 134], strides = [1, 1]} : vector<8x256xf32> to vector<8x134xf32>
    %15 = vector.extract_strided_slice %9 {offsets = [0, 5], sizes = [8, 134], strides = [1, 1]} : vector<8x256xf32> to vector<8x134xf32>
    %16 = vector.extract_strided_slice %9 {offsets = [0, 6], sizes = [8, 134], strides = [1, 1]} : vector<8x256xf32> to vector<8x134xf32>
    %17 = tpu.concatenate %10, %11, %12, %13, %14, %15, %16 in 0 : vector<8x134xf32>, vector<8x134xf32>, vector<8x134xf32>, vector<8x134xf32>, vector<8x134xf32>, vector<8x134xf32>, vector<8x134xf32> -> vector<56x134xf32>
    %c0_6 = arith.constant 0 : index
    %c0_7 = arith.constant 0 : index
    %18 = vector.load %arg4[%c0_6, %c0_7] : memref<8x56xf32, #tpu.memory_space<vmem>>, vector<8x56xf32>
    %cst_8 = arith.constant dense<0.000000e+00> : vector<8x134xf32>
    %19 = tpu.matmul %18, %17, %cst_8 {dimension_numbers = #tpu.dot_dimension_numbers<[1], [0], [0], [1], [0, 0, 1, 1], [], []>} : vector<8x56xf32>, vector<56x134xf32>, vector<8x134xf32> -> vector<8x134xf32>
    %c0_9 = arith.constant 0 : index
    %c0_10 = arith.constant 0 : index
    %20 = vector.load %arg5[%c0_9, %c0_10] : memref<8x1xf32, #tpu.memory_space<vmem>>, vector<8x1xf32>
    %21 = vector.broadcast %20 : vector<8x1xf32> to vector<8x134xf32>
    %22 = arith.addf %19, %21 : vector<8x134xf32>
    %c128_i32 = arith.constant 128 : i32
    %23 = arith.muli %arg1, %c128_i32 : i32
    %c3_i32 = arith.constant 3 : i32
    %24 = arith.subi %23, %c3_i32 : i32
    %25 = tpu.iota {dimensions = array<i32: 1>} : vector<1x134xi32>
    %26 = vector.broadcast %24 : i32 to vector<1x134xi32>
    %27 = arith.addi %26, %25 : vector<1x134xi32>
    %c0_i32 = arith.constant 0 : i32
    %28 = vector.broadcast %c0_i32 : i32 to vector<1x134xi32>
    %29 = arith.cmpi sge, %27, %28 : vector<1x134xi32>
    %c64_i32 = arith.constant 64 : i32
    %30 = vector.broadcast %c64_i32 : i32 to vector<1x134xi32>
    %31 = arith.cmpi slt, %27, %30 : vector<1x134xi32>
    %32 = arith.andi %29, %31 : vector<1x134xi1>
    %cst_11 = arith.constant 0.000000e+00 : f32
    %33 = vector.shape_cast %32 : vector<1x134xi1> to vector<1x134xi1>
    %34 = vector.broadcast %33 : vector<1x134xi1> to vector<8x134xi1>
    %35 = vector.broadcast %cst_11 : f32 to vector<8x134xf32>
    %36 = arith.select %34, %22, %35 : vector<8x134xi1>, vector<8x134xf32>
    %cst_12 = arith.constant 0.000000e+00 : f32
    %37 = vector.broadcast %cst_12 : f32 to vector<8x134xf32>
    %38 = arith.cmpf oge, %36, %37 : vector<8x134xf32>
    %cst_13 = arith.constant 1.000000e-01 : f32
    %39 = vector.broadcast %cst_13 : f32 to vector<8x134xf32>
    %40 = arith.mulf %36, %39 : vector<8x134xf32>
    %41 = arith.select %38, %36, %40 : vector<8x134xi1>, vector<8x134xf32>
    %42 = vector.extract_strided_slice %41 {offsets = [0, 0], sizes = [8, 128], strides = [1, 1]} : vector<8x134xf32> to vector<8x128xf32>
    %43 = vector.extract_strided_slice %41 {offsets = [0, 1], sizes = [8, 128], strides = [1, 1]} : vector<8x134xf32> to vector<8x128xf32>
    %44 = vector.extract_strided_slice %41 {offsets = [0, 2], sizes = [8, 128], strides = [1, 1]} : vector<8x134xf32> to vector<8x128xf32>
    %45 = vector.extract_strided_slice %41 {offsets = [0, 3], sizes = [8, 128], strides = [1, 1]} : vector<8x134xf32> to vector<8x128xf32>
    %46 = vector.extract_strided_slice %41 {offsets = [0, 4], sizes = [8, 128], strides = [1, 1]} : vector<8x134xf32> to vector<8x128xf32>
    %47 = vector.extract_strided_slice %41 {offsets = [0, 5], sizes = [8, 128], strides = [1, 1]} : vector<8x134xf32> to vector<8x128xf32>
    %48 = vector.extract_strided_slice %41 {offsets = [0, 6], sizes = [8, 128], strides = [1, 1]} : vector<8x134xf32> to vector<8x128xf32>
    %49 = tpu.concatenate %42, %43, %44, %45, %46, %47, %48 in 0 : vector<8x128xf32>, vector<8x128xf32>, vector<8x128xf32>, vector<8x128xf32>, vector<8x128xf32>, vector<8x128xf32>, vector<8x128xf32> -> vector<56x128xf32>
    %c0_14 = arith.constant 0 : index
    %c0_15 = arith.constant 0 : index
    %50 = vector.load %arg6[%c0_14, %c0_15] : memref<8x56xf32, #tpu.memory_space<vmem>>, vector<8x56xf32>
    %cst_16 = arith.constant dense<0.000000e+00> : vector<8x128xf32>
    %51 = tpu.matmul %50, %49, %cst_16 {dimension_numbers = #tpu.dot_dimension_numbers<[1], [0], [0], [1], [0, 0, 1, 1], [], []>} : vector<8x56xf32>, vector<56x128xf32>, vector<8x128xf32> -> vector<8x128xf32>
    %c0_17 = arith.constant 0 : index
    %c0_18 = arith.constant 0 : index
    %52 = vector.load %arg7[%c0_17, %c0_18] : memref<8x1xf32, #tpu.memory_space<vmem>>, vector<8x1xf32>
    %53 = vector.broadcast %52 : vector<8x1xf32> to vector<8x128xf32>
    %54 = arith.addf %51, %53 : vector<8x128xf32>
    %55 = vector.extract_strided_slice %4 {offsets = [0, 6], sizes = [8, 128], strides = [1, 1]} : vector<8x256xf32> to vector<8x128xf32>
    %56 = arith.addf %54, %55 : vector<8x128xf32>
    %c0_19 = arith.constant 0 : index
    %c0_20 = arith.constant 0 : index
    %c0_21 = arith.constant 0 : index
    %57 = vector.load %arg8[%c0_19, %c0_20, %c0_21] : memref<1x8x128xf32, #tpu.memory_space<vmem>>, vector<1x8x128xf32>
    %58 = vector.shape_cast %57 : vector<1x8x128xf32> to vector<8x128xf32>
    %59 = vector.shape_cast %56 : vector<8x128xf32> to vector<1x8x128xf32>
    tpu.vector_store %arg8[%c0_19, %c0_20, %c0_21], %59 {strides = array<i32>} : memref<1x8x128xf32, #tpu.memory_space<vmem>>, vector<1x8x128xf32>,
    return
  }
  func.func @transform_0(%arg0: i32, %arg1: i32) -> (i32, i32, i32) {
    %c0_i32 = arith.constant 0 : i32
    %c0_i32_0 = arith.constant 0 : i32
    return %arg0, %c0_i32, %arg1 : i32, i32, i32
  }
  func.func @transform_1(%arg0: i32, %arg1: i32) -> (i32, i32, i32) {
    %c1_i32 = arith.constant 1 : i32
    %0 = arith.addi %arg1, %c1_i32 : i32
    %c1_i32_0 = arith.constant 1 : i32
    %1 = arith.muli %0, %c1_i32_0 : i32
    %c0_i32 = arith.constant 0 : i32
    %c0_i32_1 = arith.constant 0 : i32
    return %arg0, %c0_i32, %1 : i32, i32, i32
  }
  func.func @transform_2(%arg0: i32, %arg1: i32) -> (i32, i32) {
    %c0_i32 = arith.constant 0 : i32
    %c0_i32_0 = arith.constant 0 : i32
    %c0_i32_1 = arith.constant 0 : i32
    return %c0_i32, %c0_i32_0 : i32, i32
  }
  func.func @transform_3(%arg0: i32, %arg1: i32) -> (i32, i32) {
    %c0_i32 = arith.constant 0 : i32
    %c0_i32_0 = arith.constant 0 : i32
    %c0_i32_1 = arith.constant 0 : i32
    return %c0_i32, %c0_i32_0 : i32, i32
  }
  func.func @transform_4(%arg0: i32, %arg1: i32) -> (i32, i32) {
    %c0_i32 = arith.constant 0 : i32
    %c0_i32_0 = arith.constant 0 : i32
    %c0_i32_1 = arith.constant 0 : i32
    return %c0_i32, %c0_i32_0 : i32, i32
  }
  func.func @transform_5(%arg0: i32, %arg1: i32) -> (i32, i32) {
    %c0_i32 = arith.constant 0 : i32
    %c0_i32_0 = arith.constant 0 : i32
    %c0_i32_1 = arith.constant 0 : i32
    return %c0_i32, %c0_i32_0 : i32, i32
  }
  func.func @transform_6(%arg0: i32, %arg1: i32) -> (i32, i32, i32) {
    %c0_i32 = arith.constant 0 : i32
    %c0_i32_0 = arith.constant 0 : i32
    return %arg0, %c0_i32, %arg1 : i32, i32, i32
  }
}

module attributes {stable_mosaic.version = 11 : i64} {
  func.func @_resblock1_step_kernel(%arg0: i32, %arg1: i32, %arg2: memref<1x8x128xf32, #tpu.memory_space<vmem>>, %arg3: memref<1x8x128xf32, #tpu.memory_space<vmem>>, %arg4: memref<8x56xf32, #tpu.memory_space<vmem>>, %arg5: memref<8x1xf32, #tpu.memory_space<vmem>>, %arg6: memref<8x56xf32, #tpu.memory_space<vmem>>, %arg7: memref<8x1xf32, #tpu.memory_space<vmem>>, %arg8: memref<1x8x128xf32, #tpu.memory_space<vmem>>) attributes {dimension_semantics = [#tpu.dimension_semantics<parallel>, #tpu.dimension_semantics<parallel>], iteration_bounds = array<i64: 2, 1>, scalar_prefetch = 0 : i64, scratch_operands = 0 : i64, tpu.core_type = #tpu.core_type<tc>, window_params = [{transform_indices = @transform_0, window_bounds = array<i64: 1, 8, 128>}, {transform_indices = @transform_1, window_bounds = array<i64: 1, 8, 128>}, {pipeline_mode = #tpu.pipeline_mode<synchronous>, transform_indices = @transform_2, window_bounds = array<i64: 8, 56>}, {pipeline_mode = #tpu.pipeline_mode<synchronous>, transform_indices = @transform_3, window_bounds = array<i64: 8, 1>}, {pipeline_mode = #tpu.pipeline_mode<synchronous>, transform_indices = @transform_4, window_bounds = array<i64: 8, 56>}, {pipeline_mode = #tpu.pipeline_mode<synchronous>, transform_indices = @transform_5, window_bounds = array<i64: 8, 1>}, {transform_indices = @transform_6, window_bounds = array<i64: 1, 8, 128>}]} {
    %c0 = arith.constant 0 : index
    %c0_0 = arith.constant 0 : index
    %c0_1 = arith.constant 0 : index
    %0 = vector.load %arg2[%c0, %c0_0, %c0_1] : memref<1x8x128xf32, #tpu.memory_space<vmem>>, vector<1x8x128xf32>
    %1 = vector.shape_cast %0 : vector<1x8x128xf32> to vector<8x128xf32>
    %c0_2 = arith.constant 0 : index
    %c0_3 = arith.constant 0 : index
    %c0_4 = arith.constant 0 : index
    %2 = vector.load %arg3[%c0_2, %c0_3, %c0_4] : memref<1x8x128xf32, #tpu.memory_space<vmem>>, vector<1x8x128xf32>
    %3 = vector.shape_cast %2 : vector<1x8x128xf32> to vector<8x128xf32>
    %4 = tpu.concatenate %1, %3 in 1 : vector<8x128xf32>, vector<8x128xf32> -> vector<8x256xf32>
    %cst = arith.constant 0.000000e+00 : f32
    %5 = vector.broadcast %cst : f32 to vector<8x256xf32>
    %6 = arith.cmpf oge, %4, %5 : vector<8x256xf32>
    %cst_5 = arith.constant 1.000000e-01 : f32
    %7 = vector.broadcast %cst_5 : f32 to vector<8x256xf32>
    %8 = arith.mulf %4, %7 : vector<8x256xf32>
    %9 = arith.select %6, %4, %8 : vector<8x256xi1>, vector<8x256xf32>
    %10 = vector.extract_strided_slice %9 {offsets = [0, 0], sizes = [8, 134], strides = [1, 1]} : vector<8x256xf32> to vector<8x134xf32>
    %11 = vector.extract_strided_slice %9 {offsets = [0, 3], sizes = [8, 134], strides = [1, 1]} : vector<8x256xf32> to vector<8x134xf32>
    %12 = vector.extract_strided_slice %9 {offsets = [0, 6], sizes = [8, 134], strides = [1, 1]} : vector<8x256xf32> to vector<8x134xf32>
    %13 = vector.extract_strided_slice %9 {offsets = [0, 9], sizes = [8, 134], strides = [1, 1]} : vector<8x256xf32> to vector<8x134xf32>
    %14 = vector.extract_strided_slice %9 {offsets = [0, 12], sizes = [8, 134], strides = [1, 1]} : vector<8x256xf32> to vector<8x134xf32>
    %15 = vector.extract_strided_slice %9 {offsets = [0, 15], sizes = [8, 134], strides = [1, 1]} : vector<8x256xf32> to vector<8x134xf32>
    %16 = vector.extract_strided_slice %9 {offsets = [0, 18], sizes = [8, 134], strides = [1, 1]} : vector<8x256xf32> to vector<8x134xf32>
    %17 = tpu.concatenate %10, %11, %12, %13, %14, %15, %16 in 0 : vector<8x134xf32>, vector<8x134xf32>, vector<8x134xf32>, vector<8x134xf32>, vector<8x134xf32>, vector<8x134xf32>, vector<8x134xf32> -> vector<56x134xf32>
    %c0_6 = arith.constant 0 : index
    %c0_7 = arith.constant 0 : index
    %18 = vector.load %arg4[%c0_6, %c0_7] : memref<8x56xf32, #tpu.memory_space<vmem>>, vector<8x56xf32>
    %cst_8 = arith.constant dense<0.000000e+00> : vector<8x134xf32>
    %19 = tpu.matmul %18, %17, %cst_8 {dimension_numbers = #tpu.dot_dimension_numbers<[1], [0], [0], [1], [0, 0, 1, 1], [], []>} : vector<8x56xf32>, vector<56x134xf32>, vector<8x134xf32> -> vector<8x134xf32>
    %c0_9 = arith.constant 0 : index
    %c0_10 = arith.constant 0 : index
    %20 = vector.load %arg5[%c0_9, %c0_10] : memref<8x1xf32, #tpu.memory_space<vmem>>, vector<8x1xf32>
    %21 = vector.broadcast %20 : vector<8x1xf32> to vector<8x134xf32>
    %22 = arith.addf %19, %21 : vector<8x134xf32>
    %c128_i32 = arith.constant 128 : i32
    %23 = arith.muli %arg1, %c128_i32 : i32
    %c3_i32 = arith.constant 3 : i32
    %24 = arith.subi %23, %c3_i32 : i32
    %25 = tpu.iota {dimensions = array<i32: 1>} : vector<1x134xi32>
    %26 = vector.broadcast %24 : i32 to vector<1x134xi32>
    %27 = arith.addi %26, %25 : vector<1x134xi32>
    %c0_i32 = arith.constant 0 : i32
    %28 = vector.broadcast %c0_i32 : i32 to vector<1x134xi32>
    %29 = arith.cmpi sge, %27, %28 : vector<1x134xi32>
    %c64_i32 = arith.constant 64 : i32
    %30 = vector.broadcast %c64_i32 : i32 to vector<1x134xi32>
    %31 = arith.cmpi slt, %27, %30 : vector<1x134xi32>
    %32 = arith.andi %29, %31 : vector<1x134xi1>
    %cst_11 = arith.constant 0.000000e+00 : f32
    %33 = vector.shape_cast %32 : vector<1x134xi1> to vector<1x134xi1>
    %34 = vector.broadcast %33 : vector<1x134xi1> to vector<8x134xi1>
    %35 = vector.broadcast %cst_11 : f32 to vector<8x134xf32>
    %36 = arith.select %34, %22, %35 : vector<8x134xi1>, vector<8x134xf32>
    %cst_12 = arith.constant 0.000000e+00 : f32
    %37 = vector.broadcast %cst_12 : f32 to vector<8x134xf32>
    %38 = arith.cmpf oge, %36, %37 : vector<8x134xf32>
    %cst_13 = arith.constant 1.000000e-01 : f32
    %39 = vector.broadcast %cst_13 : f32 to vector<8x134xf32>
    %40 = arith.mulf %36, %39 : vector<8x134xf32>
    %41 = arith.select %38, %36, %40 : vector<8x134xi1>, vector<8x134xf32>
    %42 = vector.extract_strided_slice %41 {offsets = [0, 0], sizes = [8, 128], strides = [1, 1]} : vector<8x134xf32> to vector<8x128xf32>
    %43 = vector.extract_strided_slice %41 {offsets = [0, 1], sizes = [8, 128], strides = [1, 1]} : vector<8x134xf32> to vector<8x128xf32>
    %44 = vector.extract_strided_slice %41 {offsets = [0, 2], sizes = [8, 128], strides = [1, 1]} : vector<8x134xf32> to vector<8x128xf32>
    %45 = vector.extract_strided_slice %41 {offsets = [0, 3], sizes = [8, 128], strides = [1, 1]} : vector<8x134xf32> to vector<8x128xf32>
    %46 = vector.extract_strided_slice %41 {offsets = [0, 4], sizes = [8, 128], strides = [1, 1]} : vector<8x134xf32> to vector<8x128xf32>
    %47 = vector.extract_strided_slice %41 {offsets = [0, 5], sizes = [8, 128], strides = [1, 1]} : vector<8x134xf32> to vector<8x128xf32>
    %48 = vector.extract_strided_slice %41 {offsets = [0, 6], sizes = [8, 128], strides = [1, 1]} : vector<8x134xf32> to vector<8x128xf32>
    %49 = tpu.concatenate %42, %43, %44, %45, %46, %47, %48 in 0 : vector<8x128xf32>, vector<8x128xf32>, vector<8x128xf32>, vector<8x128xf32>, vector<8x128xf32>, vector<8x128xf32>, vector<8x128xf32> -> vector<56x128xf32>
    %c0_14 = arith.constant 0 : index
    %c0_15 = arith.constant 0 : index
    %50 = vector.load %arg6[%c0_14, %c0_15] : memref<8x56xf32, #tpu.memory_space<vmem>>, vector<8x56xf32>
    %cst_16 = arith.constant dense<0.000000e+00> : vector<8x128xf32>
    %51 = tpu.matmul %50, %49, %cst_16 {dimension_numbers = #tpu.dot_dimension_numbers<[1], [0], [0], [1], [0, 0, 1, 1], [], []>} : vector<8x56xf32>, vector<56x128xf32>, vector<8x128xf32> -> vector<8x128xf32>
    %c0_17 = arith.constant 0 : index
    %c0_18 = arith.constant 0 : index
    %52 = vector.load %arg7[%c0_17, %c0_18] : memref<8x1xf32, #tpu.memory_space<vmem>>, vector<8x1xf32>
    %53 = vector.broadcast %52 : vector<8x1xf32> to vector<8x128xf32>
    %54 = arith.addf %51, %53 : vector<8x128xf32>
    %55 = vector.extract_strided_slice %4 {offsets = [0, 12], sizes = [8, 128], strides = [1, 1]} : vector<8x256xf32> to vector<8x128xf32>
    %56 = arith.addf %54, %55 : vector<8x128xf32>
    %c0_19 = arith.constant 0 : index
    %c0_20 = arith.constant 0 : index
    %c0_21 = arith.constant 0 : index
    %57 = vector.load %arg8[%c0_19, %c0_20, %c0_21] : memref<1x8x128xf32, #tpu.memory_space<vmem>>, vector<1x8x128xf32>
    %58 = vector.shape_cast %57 : vector<1x8x128xf32> to vector<8x128xf32>
    %59 = vector.shape_cast %56 : vector<8x128xf32> to vector<1x8x128xf32>
    tpu.vector_store %arg8[%c0_19, %c0_20, %c0_21], %59 {strides = array<i32>} : memref<1x8x128xf32, #tpu.memory_space<vmem>>, vector<1x8x128xf32>,
    return
  }
  func.func @transform_0(%arg0: i32, %arg1: i32) -> (i32, i32, i32) {
    %c0_i32 = arith.constant 0 : i32
    %c0_i32_0 = arith.constant 0 : i32
    return %arg0, %c0_i32, %arg1 : i32, i32, i32
  }
  func.func @transform_1(%arg0: i32, %arg1: i32) -> (i32, i32, i32) {
    %c1_i32 = arith.constant 1 : i32
    %0 = arith.addi %arg1, %c1_i32 : i32
    %c1_i32_0 = arith.constant 1 : i32
    %1 = arith.muli %0, %c1_i32_0 : i32
    %c0_i32 = arith.constant 0 : i32
    %c0_i32_1 = arith.constant 0 : i32
    return %arg0, %c0_i32, %1 : i32, i32, i32
  }
  func.func @transform_2(%arg0: i32, %arg1: i32) -> (i32, i32) {
    %c0_i32 = arith.constant 0 : i32
    %c0_i32_0 = arith.constant 0 : i32
    %c0_i32_1 = arith.constant 0 : i32
    return %c0_i32, %c0_i32_0 : i32, i32
  }
  func.func @transform_3(%arg0: i32, %arg1: i32) -> (i32, i32) {
    %c0_i32 = arith.constant 0 : i32
    %c0_i32_0 = arith.constant 0 : i32
    %c0_i32_1 = arith.constant 0 : i32
    return %c0_i32, %c0_i32_0 : i32, i32
  }
  func.func @transform_4(%arg0: i32, %arg1: i32) -> (i32, i32) {
    %c0_i32 = arith.constant 0 : i32
    %c0_i32_0 = arith.constant 0 : i32
    %c0_i32_1 = arith.constant 0 : i32
    return %c0_i32, %c0_i32_0 : i32, i32
  }
  func.func @transform_5(%arg0: i32, %arg1: i32) -> (i32, i32) {
    %c0_i32 = arith.constant 0 : i32
    %c0_i32_0 = arith.constant 0 : i32
    %c0_i32_1 = arith.constant 0 : i32
    return %c0_i32, %c0_i32_0 : i32, i32
  }
  func.func @transform_6(%arg0: i32, %arg1: i32) -> (i32, i32, i32) {
    %c0_i32 = arith.constant 0 : i32
    %c0_i32_0 = arith.constant 0 : i32
    return %arg0, %c0_i32, %arg1 : i32, i32, i32
  }
}

module attributes {stable_mosaic.version = 11 : i64} {
  func.func @_resblock1_step_kernel(%arg0: i32, %arg1: i32, %arg2: memref<1x8x128xf32, #tpu.memory_space<vmem>>, %arg3: memref<1x8x128xf32, #tpu.memory_space<vmem>>, %arg4: memref<8x56xf32, #tpu.memory_space<vmem>>, %arg5: memref<8x1xf32, #tpu.memory_space<vmem>>, %arg6: memref<8x56xf32, #tpu.memory_space<vmem>>, %arg7: memref<8x1xf32, #tpu.memory_space<vmem>>, %arg8: memref<1x8x128xf32, #tpu.memory_space<vmem>>, %arg9: memref<1x8x128xf32, #tpu.memory_space<vmem>>) attributes {dimension_semantics = [#tpu.dimension_semantics<parallel>, #tpu.dimension_semantics<parallel>], iteration_bounds = array<i64: 2, 1>, scalar_prefetch = 0 : i64, scratch_operands = 0 : i64, tpu.core_type = #tpu.core_type<tc>, window_params = [{transform_indices = @transform_0, window_bounds = array<i64: 1, 8, 128>}, {transform_indices = @transform_1, window_bounds = array<i64: 1, 8, 128>}, {pipeline_mode = #tpu.pipeline_mode<synchronous>, transform_indices = @transform_2, window_bounds = array<i64: 8, 56>}, {pipeline_mode = #tpu.pipeline_mode<synchronous>, transform_indices = @transform_3, window_bounds = array<i64: 8, 1>}, {pipeline_mode = #tpu.pipeline_mode<synchronous>, transform_indices = @transform_4, window_bounds = array<i64: 8, 56>}, {pipeline_mode = #tpu.pipeline_mode<synchronous>, transform_indices = @transform_5, window_bounds = array<i64: 8, 1>}, {transform_indices = @transform_6, window_bounds = array<i64: 1, 8, 128>}, {transform_indices = @transform_7, window_bounds = array<i64: 1, 8, 128>}]} {
    %c0 = arith.constant 0 : index
    %c0_0 = arith.constant 0 : index
    %c0_1 = arith.constant 0 : index
    %0 = vector.load %arg2[%c0, %c0_0, %c0_1] : memref<1x8x128xf32, #tpu.memory_space<vmem>>, vector<1x8x128xf32>
    %1 = vector.shape_cast %0 : vector<1x8x128xf32> to vector<8x128xf32>
    %c0_2 = arith.constant 0 : index
    %c0_3 = arith.constant 0 : index
    %c0_4 = arith.constant 0 : index
    %2 = vector.load %arg3[%c0_2, %c0_3, %c0_4] : memref<1x8x128xf32, #tpu.memory_space<vmem>>, vector<1x8x128xf32>
    %3 = vector.shape_cast %2 : vector<1x8x128xf32> to vector<8x128xf32>
    %4 = tpu.concatenate %1, %3 in 1 : vector<8x128xf32>, vector<8x128xf32> -> vector<8x256xf32>
    %cst = arith.constant 0.000000e+00 : f32
    %5 = vector.broadcast %cst : f32 to vector<8x256xf32>
    %6 = arith.cmpf oge, %4, %5 : vector<8x256xf32>
    %cst_5 = arith.constant 1.000000e-01 : f32
    %7 = vector.broadcast %cst_5 : f32 to vector<8x256xf32>
    %8 = arith.mulf %4, %7 : vector<8x256xf32>
    %9 = arith.select %6, %4, %8 : vector<8x256xi1>, vector<8x256xf32>
    %10 = vector.extract_strided_slice %9 {offsets = [0, 0], sizes = [8, 134], strides = [1, 1]} : vector<8x256xf32> to vector<8x134xf32>
    %11 = vector.extract_strided_slice %9 {offsets = [0, 5], sizes = [8, 134], strides = [1, 1]} : vector<8x256xf32> to vector<8x134xf32>
    %12 = vector.extract_strided_slice %9 {offsets = [0, 10], sizes = [8, 134], strides = [1, 1]} : vector<8x256xf32> to vector<8x134xf32>
    %13 = vector.extract_strided_slice %9 {offsets = [0, 15], sizes = [8, 134], strides = [1, 1]} : vector<8x256xf32> to vector<8x134xf32>
    %14 = vector.extract_strided_slice %9 {offsets = [0, 20], sizes = [8, 134], strides = [1, 1]} : vector<8x256xf32> to vector<8x134xf32>
    %15 = vector.extract_strided_slice %9 {offsets = [0, 25], sizes = [8, 134], strides = [1, 1]} : vector<8x256xf32> to vector<8x134xf32>
    %16 = vector.extract_strided_slice %9 {offsets = [0, 30], sizes = [8, 134], strides = [1, 1]} : vector<8x256xf32> to vector<8x134xf32>
    %17 = tpu.concatenate %10, %11, %12, %13, %14, %15, %16 in 0 : vector<8x134xf32>, vector<8x134xf32>, vector<8x134xf32>, vector<8x134xf32>, vector<8x134xf32>, vector<8x134xf32>, vector<8x134xf32> -> vector<56x134xf32>
    %c0_6 = arith.constant 0 : index
    %c0_7 = arith.constant 0 : index
    %18 = vector.load %arg4[%c0_6, %c0_7] : memref<8x56xf32, #tpu.memory_space<vmem>>, vector<8x56xf32>
    %cst_8 = arith.constant dense<0.000000e+00> : vector<8x134xf32>
    %19 = tpu.matmul %18, %17, %cst_8 {dimension_numbers = #tpu.dot_dimension_numbers<[1], [0], [0], [1], [0, 0, 1, 1], [], []>} : vector<8x56xf32>, vector<56x134xf32>, vector<8x134xf32> -> vector<8x134xf32>
    %c0_9 = arith.constant 0 : index
    %c0_10 = arith.constant 0 : index
    %20 = vector.load %arg5[%c0_9, %c0_10] : memref<8x1xf32, #tpu.memory_space<vmem>>, vector<8x1xf32>
    %21 = vector.broadcast %20 : vector<8x1xf32> to vector<8x134xf32>
    %22 = arith.addf %19, %21 : vector<8x134xf32>
    %c128_i32 = arith.constant 128 : i32
    %23 = arith.muli %arg1, %c128_i32 : i32
    %c3_i32 = arith.constant 3 : i32
    %24 = arith.subi %23, %c3_i32 : i32
    %25 = tpu.iota {dimensions = array<i32: 1>} : vector<1x134xi32>
    %26 = vector.broadcast %24 : i32 to vector<1x134xi32>
    %27 = arith.addi %26, %25 : vector<1x134xi32>
    %c0_i32 = arith.constant 0 : i32
    %28 = vector.broadcast %c0_i32 : i32 to vector<1x134xi32>
    %29 = arith.cmpi sge, %27, %28 : vector<1x134xi32>
    %c64_i32 = arith.constant 64 : i32
    %30 = vector.broadcast %c64_i32 : i32 to vector<1x134xi32>
    %31 = arith.cmpi slt, %27, %30 : vector<1x134xi32>
    %32 = arith.andi %29, %31 : vector<1x134xi1>
    %cst_11 = arith.constant 0.000000e+00 : f32
    %33 = vector.shape_cast %32 : vector<1x134xi1> to vector<1x134xi1>
    %34 = vector.broadcast %33 : vector<1x134xi1> to vector<8x134xi1>
    %35 = vector.broadcast %cst_11 : f32 to vector<8x134xf32>
    %36 = arith.select %34, %22, %35 : vector<8x134xi1>, vector<8x134xf32>
    %cst_12 = arith.constant 0.000000e+00 : f32
    %37 = vector.broadcast %cst_12 : f32 to vector<8x134xf32>
    %38 = arith.cmpf oge, %36, %37 : vector<8x134xf32>
    %cst_13 = arith.constant 1.000000e-01 : f32
    %39 = vector.broadcast %cst_13 : f32 to vector<8x134xf32>
    %40 = arith.mulf %36, %39 : vector<8x134xf32>
    %41 = arith.select %38, %36, %40 : vector<8x134xi1>, vector<8x134xf32>
    %42 = vector.extract_strided_slice %41 {offsets = [0, 0], sizes = [8, 128], strides = [1, 1]} : vector<8x134xf32> to vector<8x128xf32>
    %43 = vector.extract_strided_slice %41 {offsets = [0, 1], sizes = [8, 128], strides = [1, 1]} : vector<8x134xf32> to vector<8x128xf32>
    %44 = vector.extract_strided_slice %41 {offsets = [0, 2], sizes = [8, 128], strides = [1, 1]} : vector<8x134xf32> to vector<8x128xf32>
    %45 = vector.extract_strided_slice %41 {offsets = [0, 3], sizes = [8, 128], strides = [1, 1]} : vector<8x134xf32> to vector<8x128xf32>
    %46 = vector.extract_strided_slice %41 {offsets = [0, 4], sizes = [8, 128], strides = [1, 1]} : vector<8x134xf32> to vector<8x128xf32>
    %47 = vector.extract_strided_slice %41 {offsets = [0, 5], sizes = [8, 128], strides = [1, 1]} : vector<8x134xf32> to vector<8x128xf32>
    %48 = vector.extract_strided_slice %41 {offsets = [0, 6], sizes = [8, 128], strides = [1, 1]} : vector<8x134xf32> to vector<8x128xf32>
    %49 = tpu.concatenate %42, %43, %44, %45, %46, %47, %48 in 0 : vector<8x128xf32>, vector<8x128xf32>, vector<8x128xf32>, vector<8x128xf32>, vector<8x128xf32>, vector<8x128xf32>, vector<8x128xf32> -> vector<56x128xf32>
    %c0_14 = arith.constant 0 : index
    %c0_15 = arith.constant 0 : index
    %50 = vector.load %arg6[%c0_14, %c0_15] : memref<8x56xf32, #tpu.memory_space<vmem>>, vector<8x56xf32>
    %cst_16 = arith.constant dense<0.000000e+00> : vector<8x128xf32>
    %51 = tpu.matmul %50, %49, %cst_16 {dimension_numbers = #tpu.dot_dimension_numbers<[1], [0], [0], [1], [0, 0, 1, 1], [], []>} : vector<8x56xf32>, vector<56x128xf32>, vector<8x128xf32> -> vector<8x128xf32>
    %c0_17 = arith.constant 0 : index
    %c0_18 = arith.constant 0 : index
    %52 = vector.load %arg7[%c0_17, %c0_18] : memref<8x1xf32, #tpu.memory_space<vmem>>, vector<8x1xf32>
    %53 = vector.broadcast %52 : vector<8x1xf32> to vector<8x128xf32>
    %54 = arith.addf %51, %53 : vector<8x128xf32>
    %55 = vector.extract_strided_slice %4 {offsets = [0, 18], sizes = [8, 128], strides = [1, 1]} : vector<8x256xf32> to vector<8x128xf32>
    %56 = arith.addf %54, %55 : vector<8x128xf32>
    %c0_19 = arith.constant 0 : index
    %c0_20 = arith.constant 0 : index
    %c0_21 = arith.constant 0 : index
    %57 = vector.load %arg8[%c0_19, %c0_20, %c0_21] : memref<1x8x128xf32, #tpu.memory_space<vmem>>, vector<1x8x128xf32>
    %58 = vector.shape_cast %57 : vector<1x8x128xf32> to vector<8x128xf32>
    %59 = arith.addf %56, %58 : vector<8x128xf32>
    %c0_22 = arith.constant 0 : index
    %c0_23 = arith.constant 0 : index
    %c0_24 = arith.constant 0 : index
    %60 = vector.load %arg9[%c0_22, %c0_23, %c0_24] : memref<1x8x128xf32, #tpu.memory_space<vmem>>, vector<1x8x128xf32>
    %61 = vector.shape_cast %60 : vector<1x8x128xf32> to vector<8x128xf32>
    %62 = vector.shape_cast %59 : vector<8x128xf32> to vector<1x8x128xf32>
    tpu.vector_store %arg9[%c0_22, %c0_23, %c0_24], %62 {strides = array<i32>} : memref<1x8x128xf32, #tpu.memory_space<vmem>>, vector<1x8x128xf32>,
    return
  }
  func.func @transform_0(%arg0: i32, %arg1: i32) -> (i32, i32, i32) {
    %c0_i32 = arith.constant 0 : i32
    %c0_i32_0 = arith.constant 0 : i32
    return %arg0, %c0_i32, %arg1 : i32, i32, i32
  }
  func.func @transform_1(%arg0: i32, %arg1: i32) -> (i32, i32, i32) {
    %c1_i32 = arith.constant 1 : i32
    %0 = arith.addi %arg1, %c1_i32 : i32
    %c1_i32_0 = arith.constant 1 : i32
    %1 = arith.muli %0, %c1_i32_0 : i32
    %c0_i32 = arith.constant 0 : i32
    %c0_i32_1 = arith.constant 0 : i32
    return %arg0, %c0_i32, %1 : i32, i32, i32
  }
  func.func @transform_2(%arg0: i32, %arg1: i32) -> (i32, i32) {
    %c0_i32 = arith.constant 0 : i32
    %c0_i32_0 = arith.constant 0 : i32
    %c0_i32_1 = arith.constant 0 : i32
    return %c0_i32, %c0_i32_0 : i32, i32
  }
  func.func @transform_3(%arg0: i32, %arg1: i32) -> (i32, i32) {
    %c0_i32 = arith.constant 0 : i32
    %c0_i32_0 = arith.constant 0 : i32
    %c0_i32_1 = arith.constant 0 : i32
    return %c0_i32, %c0_i32_0 : i32, i32
  }
  func.func @transform_4(%arg0: i32, %arg1: i32) -> (i32, i32) {
    %c0_i32 = arith.constant 0 : i32
    %c0_i32_0 = arith.constant 0 : i32
    %c0_i32_1 = arith.constant 0 : i32
    return %c0_i32, %c0_i32_0 : i32, i32
  }
  func.func @transform_5(%arg0: i32, %arg1: i32) -> (i32, i32) {
    %c0_i32 = arith.constant 0 : i32
    %c0_i32_0 = arith.constant 0 : i32
    %c0_i32_1 = arith.constant 0 : i32
    return %c0_i32, %c0_i32_0 : i32, i32
  }
  func.func @transform_6(%arg0: i32, %arg1: i32) -> (i32, i32, i32) {
    %c0_i32 = arith.constant 0 : i32
    %c0_i32_0 = arith.constant 0 : i32
    return %arg0, %c0_i32, %arg1 : i32, i32, i32
  }
  func.func @transform_7(%arg0: i32, %arg1: i32) -> (i32, i32, i32) {
    %c0_i32 = arith.constant 0 : i32
    %c0_i32_0 = arith.constant 0 : i32
    return %arg0, %c0_i32, %arg1 : i32, i32, i32
  }
}

module attributes {stable_mosaic.version = 11 : i64} {
  func.func @_conv1d_kernel(%arg0: i32, %arg1: i32, %arg2: memref<1x8x128xf32, #tpu.memory_space<vmem>>, %arg3: memref<1x8x128xf32, #tpu.memory_space<vmem>>, %arg4: memref<1x56xf32, #tpu.memory_space<vmem>>, %arg5: memref<1x1xf32, #tpu.memory_space<vmem>>, %arg6: memref<1x1x128xf32, #tpu.memory_space<vmem>>) attributes {dimension_semantics = [#tpu.dimension_semantics<parallel>, #tpu.dimension_semantics<parallel>], iteration_bounds = array<i64: 2, 1>, scalar_prefetch = 0 : i64, scratch_operands = 0 : i64, tpu.core_type = #tpu.core_type<tc>, window_params = [{transform_indices = @transform_0, window_bounds = array<i64: 1, 8, 128>}, {transform_indices = @transform_1, window_bounds = array<i64: 1, 8, 128>}, {pipeline_mode = #tpu.pipeline_mode<synchronous>, transform_indices = @transform_2, window_bounds = array<i64: 1, 56>}, {pipeline_mode = #tpu.pipeline_mode<synchronous>, transform_indices = @transform_3, window_bounds = array<i64: 1, 1>}, {transform_indices = @transform_4, window_bounds = array<i64: 1, 1, 128>}]} {
    %c0 = arith.constant 0 : index
    %c0_0 = arith.constant 0 : index
    %c0_1 = arith.constant 0 : index
    %0 = vector.load %arg2[%c0, %c0_0, %c0_1] : memref<1x8x128xf32, #tpu.memory_space<vmem>>, vector<1x8x128xf32>
    %1 = vector.shape_cast %0 : vector<1x8x128xf32> to vector<8x128xf32>
    %c0_2 = arith.constant 0 : index
    %c0_3 = arith.constant 0 : index
    %c0_4 = arith.constant 0 : index
    %2 = vector.load %arg3[%c0_2, %c0_3, %c0_4] : memref<1x8x128xf32, #tpu.memory_space<vmem>>, vector<1x8x128xf32>
    %3 = vector.shape_cast %2 : vector<1x8x128xf32> to vector<8x128xf32>
    %4 = tpu.concatenate %1, %3 in 1 : vector<8x128xf32>, vector<8x128xf32> -> vector<8x256xf32>
    %cst = arith.constant 0.000000e+00 : f32
    %5 = vector.broadcast %cst : f32 to vector<8x256xf32>
    %6 = arith.cmpf oge, %4, %5 : vector<8x256xf32>
    %cst_5 = arith.constant 0.00999999977 : f32
    %7 = vector.broadcast %cst_5 : f32 to vector<8x256xf32>
    %8 = arith.mulf %4, %7 : vector<8x256xf32>
    %9 = arith.select %6, %4, %8 : vector<8x256xi1>, vector<8x256xf32>
    %10 = vector.extract_strided_slice %9 {offsets = [0, 0], sizes = [8, 128], strides = [1, 1]} : vector<8x256xf32> to vector<8x128xf32>
    %11 = vector.extract_strided_slice %9 {offsets = [0, 1], sizes = [8, 128], strides = [1, 1]} : vector<8x256xf32> to vector<8x128xf32>
    %12 = vector.extract_strided_slice %9 {offsets = [0, 2], sizes = [8, 128], strides = [1, 1]} : vector<8x256xf32> to vector<8x128xf32>
    %13 = vector.extract_strided_slice %9 {offsets = [0, 3], sizes = [8, 128], strides = [1, 1]} : vector<8x256xf32> to vector<8x128xf32>
    %14 = vector.extract_strided_slice %9 {offsets = [0, 4], sizes = [8, 128], strides = [1, 1]} : vector<8x256xf32> to vector<8x128xf32>
    %15 = vector.extract_strided_slice %9 {offsets = [0, 5], sizes = [8, 128], strides = [1, 1]} : vector<8x256xf32> to vector<8x128xf32>
    %16 = vector.extract_strided_slice %9 {offsets = [0, 6], sizes = [8, 128], strides = [1, 1]} : vector<8x256xf32> to vector<8x128xf32>
    %17 = tpu.concatenate %10, %11, %12, %13, %14, %15, %16 in 0 : vector<8x128xf32>, vector<8x128xf32>, vector<8x128xf32>, vector<8x128xf32>, vector<8x128xf32>, vector<8x128xf32>, vector<8x128xf32> -> vector<56x128xf32>
    %c0_6 = arith.constant 0 : index
    %c0_7 = arith.constant 0 : index
    %18 = vector.load %arg4[%c0_6, %c0_7] : memref<1x56xf32, #tpu.memory_space<vmem>>, vector<1x56xf32>
    %cst_8 = arith.constant dense<0.000000e+00> : vector<1x128xf32>
    %19 = tpu.matmul %18, %17, %cst_8 {dimension_numbers = #tpu.dot_dimension_numbers<[1], [0], [0], [1], [0, 0, 1, 1], [], []>} : vector<1x56xf32>, vector<56x128xf32>, vector<1x128xf32> -> vector<1x128xf32>
    %c0_9 = arith.constant 0 : index
    %c0_10 = arith.constant 0 : index
    %20 = vector.load %arg5[%c0_9, %c0_10] : memref<1x1xf32, #tpu.memory_space<vmem>>, vector<1x1xf32>
    %21 = vector.broadcast %20 : vector<1x1xf32> to vector<1x128xf32>
    %22 = arith.addf %19, %21 : vector<1x128xf32>
    %23 = math.tanh %22 : vector<1x128xf32>
    %c0_11 = arith.constant 0 : index
    %c0_12 = arith.constant 0 : index
    %c0_13 = arith.constant 0 : index
    %24 = vector.load %arg6[%c0_11, %c0_12, %c0_13] : memref<1x1x128xf32, #tpu.memory_space<vmem>>, vector<1x1x128xf32>
    %25 = vector.shape_cast %24 : vector<1x1x128xf32> to vector<1x128xf32>
    %26 = vector.shape_cast %23 : vector<1x128xf32> to vector<1x1x128xf32>
    tpu.vector_store %arg6[%c0_11, %c0_12, %c0_13], %26 {strides = array<i32>} : memref<1x1x128xf32, #tpu.memory_space<vmem>>, vector<1x1x128xf32>,
    return
  }
  func.func @transform_0(%arg0: i32, %arg1: i32) -> (i32, i32, i32) {
    %c0_i32 = arith.constant 0 : i32
    %c0_i32_0 = arith.constant 0 : i32
    return %arg0, %c0_i32, %arg1 : i32, i32, i32
  }
  func.func @transform_1(%arg0: i32, %arg1: i32) -> (i32, i32, i32) {
    %c1_i32 = arith.constant 1 : i32
    %0 = arith.addi %arg1, %c1_i32 : i32
    %c1_i32_0 = arith.constant 1 : i32
    %1 = arith.muli %0, %c1_i32_0 : i32
    %c0_i32 = arith.constant 0 : i32
    %c0_i32_1 = arith.constant 0 : i32
    return %arg0, %c0_i32, %1 : i32, i32, i32
  }
  func.func @transform_2(%arg0: i32, %arg1: i32) -> (i32, i32) {
    %c0_i32 = arith.constant 0 : i32
    %c0_i32_0 = arith.constant 0 : i32
    %c0_i32_1 = arith.constant 0 : i32
    return %c0_i32, %c0_i32_0 : i32, i32
  }
  func.func @transform_3(%arg0: i32, %arg1: i32) -> (i32, i32) {
    %c0_i32 = arith.constant 0 : i32
    %c0_i32_0 = arith.constant 0 : i32
    %c0_i32_1 = arith.constant 0 : i32
    return %c0_i32, %c0_i32_0 : i32, i32
  }
  func.func @transform_4(%arg0: i32, %arg1: i32) -> (i32, i32, i32) {
    %c0_i32 = arith.constant 0 : i32
    %c0_i32_0 = arith.constant 0 : i32
    return %arg0, %c0_i32, %arg1 : i32, i32, i32
  }
}

</mosaic_0001>

<bundles_post_ra>
// kernel: generator_forward.16
= control target key start
LH: loop header
LB: loop body
LE: loop exit
PB: predicated region body
PF: predicated region fallthrough
CT: control target
= control target key end

     0   :  { %s1911_s15 = smov 0   ;;  %s1913_s16 = smov 0   ;;  %s2138_s0 = inlined_call_operand.vmem [shape: f32[2,32,256], index: 0, kind: input, shape index: {}, may-alias: {0,1}]   ;;  %s2139_s1 = inlined_call_operand.vmem [shape: f32[2,32,256], index: 1, kind: input, shape index: {}, may-alias: {0,1}]   ;;  %s2140_s2 = inlined_call_operand.vmem [shape: f32[32,224], index: 2, kind: input, shape index: {}]   ;;  %s2141_s3 = inlined_call_operand.vmem [shape: f32[32,1], index: 3, kind: input, shape index: {}]   ;;  %s2142_s4 = inlined_call_operand.vmem [shape: f32[2,32,8], index: 4, kind: output, shape index: {}]  }
   0x1   :  { %s1915_s17 = smov 0   ;;  %s1917_s18 = smov 0  }
   0x2   :  { %s1919_s19 = smov 0  }
   0x3 LB: > { %s26_s20 = sadd.s32 1, %s1870_s18  ;;  %p42_p1 = scmp.ne.s32.totalorder %s1862_s16, %s1858_s15  ;;  %s1874_s19 = sphi %s1919_s19, %s14_s19   ;;  %s1870_s18 = sphi %s1917_s18, %s2147_s18   ;;  %s1866_s17 = sphi %s1915_s17, %s2146_s17   ;;  %s1862_s16 = sphi %s1913_s16, %s2145_s16   ;;  %s1858_s15 = sphi %s1911_s15, %s2144_s15  }
   0x4   : > { %p28_p0 = scmp.ge.s32.totalorder %s26_s20, 2  ;;  %p43_p2 = scmp.eq.s32.totalorder %s1874_s19, 0 }
   0x5   : > { %s35_s23 = sadd.s32 1, %s1862_s16  ;;  %p1377_p5 = scmp.ge.s32.totalorder %s1874_s19, 2 }
   0x6   : > { %s2149_s20 = smov (%p28_p0, %s26_s20), 0  ;;  %p1942_p3 = por %p43_p2, %p42_p1 }
   0x7   : > { %s30_s22 = ssub.s32 %s1870_s18, %s2149_s20  ;;  %174 = sbr.rel (%p1377_p5) target bundleno = 28 (0x1c), region = 24 }
   0x8   : > { %p33_p4 = scmp.eq.s32.totalorder %s30_s22, 0 }
   0xa   : > { %s1950_s24 = scalar_select %p33_p4, %s1862_s16, %s35_s23  }
   0xe   : > { %177 = sbr.rel (!%p1942_p3) target bundleno = 21 (0x15), region = 28  ;;  %s179_s25 = sand.u32 (%p1942_p3), 1, %s1862_s16  }
   0xf   : > { %s1423_s26 = sshll.u32 (%p1942_p3), %s1870_s18, 6  ;;  %s1378_s27 = sshll.u32 (%p1942_p3), %s179_s25, 5 }
  0x10   : > { %s185_s30 = scalar_lea.vmem (%p1942_p3), %s2138_s0, %s1423_s26  ;;  %s181_s5 = scalar_lea.vmem (%p1942_p3), [#allocation2], %s1378_s27 }
  0x11   : > { %v219_v0 = vld [vmem:[%s185_s30] sm:$0xff] (%p1942_p3)  ;;  %v221_v1 = vld [vmem:[%s185_s30 + $0x10] sm:$0xff] (%p1942_p3) }
  0x12   : > { %v223_v2 = vld [vmem:[%s185_s30 + $0x20] sm:$0xff] (%p1942_p3)  ;;  %220 = vst [vmem:[%s181_s5] sm:$0xff] (%p1942_p3), %v219_v0  ;;  %222 = vst [vmem:[%s181_s5 + $0x8] sm:$0xff] (%p1942_p3), %v221_v1  ;;  %v225_v3 = vld [vmem:[%s185_s30 + $0x30] sm:$0xff] (%p1942_p3) }
  0x13   : > { %224 = vst [vmem:[%s181_s5 + $0x10] sm:$0xff] (%p1942_p3), %v223_v2  ;;  %226 = vst [vmem:[%s181_s5 + $0x18] sm:$0xff] (%p1942_p3), %v225_v3 }
  0x15 PF: > { %232 = sbr.rel (!%p1942_p3) target bundleno = 28 (0x1c), region = 66  ;;  %s234_s6 = sand.u32 (%p1942_p3), 1, %s1862_s16  }
  0x16   : > { %s1424_s7 = sshll.u32 (%p1942_p3), %s1870_s18, 6  ;;  %s1381_s8 = sshll.u32 (%p1942_p3), %s234_s6, 5 }
  0x17   : > { %s1306_s11 = scalar_lea.vmem (%p1942_p3), %s2139_s1, %s1424_s7  ;;  %s236_s12 = scalar_lea.vmem (%p1942_p3), [#allocation3], %s1381_s8 }
  0x18   : > { %v1384_v4 = vld [vmem:[%s1306_s11 + $0x8] sm:$0xff] (%p1942_p3)  ;;  %v1385_v5 = vld [vmem:[%s1306_s11 + $0x18] sm:$0xff] (%p1942_p3) }
  0x19   : > { %v1386_v6 = vld [vmem:[%s1306_s11 + $0x28] sm:$0xff] (%p1942_p3)  ;;  %276 = vst [vmem:[%s236_s12] sm:$0xff] (%p1942_p3), %v1384_v4  ;;  %278 = vst [vmem:[%s236_s12 + $0x8] sm:$0xff] (%p1942_p3), %v1385_v5  ;;  %v1387_v7 = vld [vmem:[%s1306_s11 + $0x38] sm:$0xff] (%p1942_p3) }
  0x1a   : > { %280 = vst [vmem:[%s236_s12 + $0x10] sm:$0xff] (%p1942_p3), %v1386_v6  ;;  %282 = vst [vmem:[%s236_s12 + $0x18] sm:$0xff] (%p1942_p3), %v1387_v7 }
  0x1c PF: > { %p1388_p6 = scmp.ge.s32.totalorder %s1874_s19, 1  ;;  %p287_p7 = scmp.lt.s32.totalorder %s1874_s19, 3 }
  0x1e   : > { %p288_p8 = pnand %p1388_p6, %p287_p7 }
  0x1f   : > { %s294_s13 = sand.u32 (!%p288_p8), 1, %s1858_s15   ;;  %s1876_s23 = smov (!%p288_p8), 125   ;;  %v1973_v20 = vld [vmem:[%s2140_s2] sm:$0xff] (!%p288_p8)  ;;  %v1981_v21 = vld [vmem:[%s2140_s2 + $0x10] sm:$0xff] (!%p288_p8)  ;;  %v2009_v26 = vld [vmem:[%s2140_s2 + $0x8] sm:$0xff] (!%p288_p8)  ;;  %v1885_v30 = vmov (!%p288_p8), 0  }
  0x20   : > { %291 = sbr.rel (%p288_p8) target bundleno = 455 (0x1c7), region = 104  ;;  %s1389_s14 = sshll.u32 (!%p288_p8), %s294_s13, 5  ;;  %v1993_v24 = vld [vmem:[%s2140_s2 + $0x20] sm:$0xff] (!%p288_p8)  ;;  %v2001_v25 = vld [vmem:[%s2140_s2 + $0x30] sm:$0xff] (!%p288_p8)  ;;  %v2017_v27 = vld [vmem:[%s2140_s2 + $0x18] sm:$0xff] (!%p288_p8)  ;;  %1835 = vset.pattern.permute.xlu1 (!%p288_p8), %v1885_v30  ;;  %1834 = vset.pattern.permute.xlu0 (!%p288_p8), %v1885_v30  ;;  %vm390_vm0 = vcmask (!%p288_p8), 1039360  }
  0x21   : > { %s296_s21 = scalar_lea.vmem (!%p288_p8), [#allocation2], %s1389_s14  ;;  %s303_s22 = scalar_lea.vmem (!%p288_p8), [#allocation3], %s1389_s14  ;;  %v2025_v28 = vld [vmem:[%s2140_s2 + $0x28] sm:$0xff] (!%p288_p8)  ;;  %v2033_v29 = vld [vmem:[%s2140_s2 + $0x38] sm:$0xff] (!%p288_p8)  ;;  %v1236_v32 = vld [vmem:[%s2141_s3] sm:$0xff] (!%p288_p8)  ;;  %vm740_vm1 = vcmask (!%p288_p8), 1022976  }
  0x22   : > { %v342_v8 = vld [vmem:[%s296_s21] sm:$0xff] (!%p288_p8)  ;;  %v343_v10 = vld [vmem:[%s296_s21 + $0x8] sm:$0xff] (!%p288_p8)  ;;  %s1877_s25 = smov (!%p288_p8), 127   ;;  %v345_v14 = vld [vmem:[%s296_s21 + $0x18] sm:$0xff] (!%p288_p8)  ;;  %s1878_s15 = smov (!%p288_p8), 124   ;;  %vm866_vm2 = vcmask (!%p288_p8), 1014784  }
  0x23   : > { %v346_v9 = vld [vmem:[%s303_s22] sm:$0xff] (!%p288_p8)  ;;  %v347_v12 = vld [vmem:[%s303_s22 + $0x8] sm:$0xff] (!%p288_p8)  ;;  %v349_v15 = vld [vmem:[%s303_s22 + $0x18] sm:$0xff] (!%p288_p8)  ;;  %s1879_s28 = smov (!%p288_p8), 32   ;;  %s1880_s29 = smov (!%p288_p8), 96   ;;  %v1983_v22 = vpack.c.bf16 (!%p288_p8), %v343_v10, %v342_v8  ;;  %vm399_vm3 = vcmask (!%p288_p8), 261120  }
  0x24   : > { %v1724_v11 = vpack.i.bf16 (!%p288_p8), %v346_v9, %v342_v8  ;;  %v1729_v13 = vpack.i.bf16 (!%p288_p8), %v347_v12, %v343_v10  ;;  %v344_v16 = vld [vmem:[%s296_s21 + $0x10] sm:$0xff] (!%p288_p8)  ;;  %v1739_v18 = vpack.i.bf16 (!%p288_p8), %v349_v15, %v345_v14  ;;  %s1881_s10 = smov (!%p288_p8), 126   ;;  %s1882_s11 = smov (!%p288_p8), 123   ;;  %v1237_v31 = vld [vmem:[%s2141_s3 + $0x8] sm:$0xff] (!%p288_p8)  ;;  %v1239_v34 = vld [vmem:[%s2141_s3 + $0x18] sm:$0xff] (!%p288_p8)  ;;  %vm610_vm4 = vcmask (!%p288_p8), 1031168  }
  0x25   : > { %v348_v17 = vld [vmem:[%s303_s22 + $0x10] sm:$0xff] (!%p288_p8)  ;;  %v1988_v23 = vpack.c.bf16 (!%p288_p8), %v345_v14, %v344_v16  ;;  %s1883_s12 = smov (!%p288_p8), 122   ;;  %s1884_s21 = smov (!%p288_p8), 64   ;;  %vm1000_vm5 = vcmask (!%p288_p8), 1006592   ;;  %vm1130_vm6 = vcmask (!%p288_p8), 998400  }
  0x26   : > { %1725 = vrot.lane.b32.xlu1 (!%p288_p8), %v1724_v11, %s1876_s23  ;;  %1715 = vrot.lane.b32.xlu0 (!%p288_p8), %v1724_v11, %s1877_s25  ;;  %v1734_v19 = vpack.i.bf16 (!%p288_p8), %v348_v17, %v344_v16  ;;  %v1238_v33 = vld [vmem:[%s2141_s3 + $0x10] sm:$0xff] (!%p288_p8)  ;;  %p334_p9 = scmp.lt.s32.totalorder (!%p288_p8), %s1866_s17, 1 }
  0x28   : > { %s2151_s17 = smov (!%p334_p9, %s1866_s17), 1 }
  0x2a   : > { %1730 = vrot.lane.b32.xlu1 %v1729_v13, %s1876_s23  ;;  %1720 = vrot.lane.b32.xlu0 %v1729_v13, %s1877_s25 }
  0x2e   : > { %1740 = vrot.lane.b32.xlu1 %v1739_v18, %s1877_s25  ;;  %1735 = vrot.lane.b32.xlu0 %v1734_v19, %s1877_s25 }
  0x32   : > { %1750 = vrot.lane.b32.xlu1 %v1739_v18, %s1876_s23  ;;  %1745 = vrot.lane.b32.xlu0 %v1734_v19, %s1876_s23 }
  0x36   : > { %1760 = vrot.lane.b32.xlu1 %v1729_v13, %s1878_s15  ;;  %1755 = vrot.lane.b32.xlu0 %v1724_v11, %s1878_s15 }
  0x3a   : > { %716 = vrot.lane.b32.xlu1 %v1973_v20, %s1879_s28  ;;  %358 = vrot.lane.b32.xlu0 %v1973_v20, %s1880_s29 }
  0x3e   : > { %718 = vrot.lane.b32.xlu1 %v1981_v21, %s1879_s28  ;;  %360 = vrot.lane.b32.xlu0 %v1981_v21, %s1880_s29 }
  0x42   : > { %1770 = vrot.lane.b32.xlu1 %v1739_v18, %s1878_s15  ;;  %1765 = vrot.lane.b32.xlu0 %v1734_v19, %s1878_s15 }
  0x46   : > { %720 = vrot.lane.b32.xlu1 %v1993_v24, %s1879_s28  ;;  %362 = vrot.lane.b32.xlu0 %v1993_v24, %s1880_s29 }
  0x4a   : > { %722 = vrot.lane.b32.xlu1 %v2001_v25, %s1879_s28  ;;  %364 = vrot.lane.b32.xlu0 %v2001_v25, %s1880_s29 }
  0x4e   : > { %1780 = vrot.lane.b32.xlu1 %v1729_v13, %s1881_s10  ;;  %1775 = vrot.lane.b32.xlu0 %v1724_v11, %s1881_s10 }
  0x52   : > { %1790 = vrot.lane.b32.xlu1 %v1729_v13, %s1882_s11  ;;  %1785 = vrot.lane.b32.xlu0 %v1724_v11, %s1882_s11 }
  0x56   : > { %1800 = vrot.lane.b32.xlu1 %v1739_v18, %s1881_s10  ;;  %1795 = vrot.lane.b32.xlu0 %v1734_v19, %s1881_s10  ;;  %s1425_s10 = sshll.u32 %s2151_s17, 5 }
  0x57   : > { %s341_s13 = scalar_lea.vmem %s2142_s4, %s1425_s10 }
  0x5a   : > { %1810 = vrot.lane.b32.xlu1 %v1739_v18, %s1882_s11  ;;  %1805 = vrot.lane.b32.xlu0 %v1734_v19, %s1882_s11 }
  0x5e   : > { %1820 = vrot.lane.b32.xlu1 %v1729_v13, %s1883_s12  ;;  %1815 = vrot.lane.b32.xlu0 %v1724_v11, %s1883_s12 }
  0x62   : > { %976 = vrot.lane.b32.xlu1 %v2009_v26, %s1880_s29  ;;  %586 = vrot.lane.b32.xlu0 %v1973_v20, %s1884_s21 }
  0x66   : > { %978 = vrot.lane.b32.xlu1 %v2017_v27, %s1880_s29  ;;  %588 = vrot.lane.b32.xlu0 %v1981_v21, %s1884_s21 }
  0x6a   : > { %1830 = vrot.lane.b32.xlu1 %v1739_v18, %s1883_s12  ;;  %1825 = vrot.lane.b32.xlu0 %v1734_v19, %s1883_s12 }
  0x6e   : > { %980 = vrot.lane.b32.xlu1 %v2025_v28, %s1880_s29  ;;  %590 = vrot.lane.b32.xlu0 %v1993_v24, %s1884_s21 }
  0x72   : > { %982 = vrot.lane.b32.xlu1 %v2033_v29, %s1880_s29  ;;  %592 = vrot.lane.b32.xlu0 %v2001_v25, %s1884_s21 }
  0x76   : > { %1110 = vrot.lane.b32.xlu1 %v2025_v28, %s1884_s21  ;;  %1106 = vrot.lane.b32.xlu0 %v2009_v26, %s1884_s21 }
  0x7a   : > { %1112 = vrot.lane.b32.xlu1 %v2033_v29, %s1884_s21  ;;  %1108 = vrot.lane.b32.xlu0 %v2017_v27, %s1884_s21 }
  0x7e   : > { %1247 = vperm.xlu1 %1835, %v1237_v31   ;;  %1242 = vperm.xlu0 %1834, %v1236_v32  }
  0x82   : > { %1252 = vperm.xlu1 %1835, %v1238_v33   ;;  %1257 = vperm.xlu0 %1834, %v1239_v34  }
  0x98   : > { %v1726_v35 = vpop.permute.xlu1 %1725  ;;  %v1716_v36 = vpop.permute.xlu0 %1715 }
  0x99   : > { %v1728_v37 = vunpack.i.h.bf16 %v1726_v35  ;;  %v1727_v38 = vunpack.i.l.bf16 %v1726_v35  ;;  %v1718_v39 = vunpack.i.h.bf16 %v1716_v36  ;;  %v1717_v40 = vunpack.i.l.bf16 %v1716_v36 }
  0x9b   : > { %v391_v47 = vsel %vm390_vm0, %v1717_v40, %v1718_v39  ;;  %v741_v49 = vsel %vm740_vm1, %v1727_v38, %v1728_v37 }
  0x9c   : > { %v1731_v41 = vpop.permute.xlu1 %1730  ;;  %v1721_v42 = vpop.permute.xlu0 %1720 }
  0x9d   : > { %v1733_v43 = vunpack.i.h.bf16 %v1731_v41  ;;  %v1732_v44 = vunpack.i.l.bf16 %v1731_v41  ;;  %v1723_v45 = vunpack.i.h.bf16 %v1721_v42  ;;  %v1722_v46 = vunpack.i.l.bf16 %v1721_v42 }
  0x9f   : > { %v392_v48 = vsel %vm390_vm0, %v1722_v46, %v1723_v45  ;;  %v742_v50 = vsel %vm740_vm1, %v1732_v44, %v1733_v43 }
  0xa0   : > { %v1741_v51 = vpop.permute.xlu1 %1740  ;;  %v1736_v52 = vpop.permute.xlu0 %1735  ;;  %v1580_v53 = vpack.c.bf16 %v392_v48, %v391_v47  ;;  %v1604_v54 = vpack.c.bf16 %v742_v50, %v741_v49 }
  0xa1   : > { %v1743_v55 = vunpack.i.h.bf16 %v1741_v51  ;;  %v1742_v56 = vunpack.i.l.bf16 %v1741_v51  ;;  %v1738_v57 = vunpack.i.h.bf16 %v1736_v52  ;;  %v1737_v58 = vunpack.i.l.bf16 %v1736_v52 }
  0xa2   : > { %1581 = vmatprep.subr.bf16.mxu1 %v1580_v53  ;;  %1605 = vmatprep.subr.bf16.mxu0 %v1604_v54 }
  0xa3   : > { %1583 = vmatpush3.bf16.msra.mxu1 %v1580_v53  ;;  %1607 = vmatpush3.bf16.msra.mxu0 %v1604_v54  ;;  %v393_v59 = vsel %vm390_vm0, %v1737_v58, %v1738_v57  ;;  %v394_v60 = vsel %vm390_vm0, %v1742_v56, %v1743_v55 }
  0xa4   : > { %v1751_v61 = vpop.permute.xlu1 %1750  ;;  %v1746_v62 = vpop.permute.xlu0 %1745  ;;  %v1584_v63 = vpack.c.bf16 %v394_v60, %v393_v59 }
  0xa5   : > { %v1753_v0 = vunpack.i.h.bf16 %v1751_v61  ;;  %v1752_v1 = vunpack.i.l.bf16 %v1751_v61  ;;  %v1748_v2 = vunpack.i.h.bf16 %v1746_v62  ;;  %v1747_v3 = vunpack.i.l.bf16 %v1746_v62 }
  0xa6   : > { %1585 = vmatprep.subr.bf16.mxu1 %v1584_v63 }
  0xa7   : > { %1587 = vmatpush3.bf16.msra.mxu1 %v1584_v63  ;;  %v743_v4 = vsel %vm740_vm1, %v1747_v3, %v1748_v2  ;;  %v744_v5 = vsel %vm740_vm1, %v1752_v1, %v1753_v0 }
  0xa8   : > { %v1761_v6 = vpop.permute.xlu1 %1760  ;;  %v1756_v7 = vpop.permute.xlu0 %1755  ;;  %v1608_v8 = vpack.c.bf16 %v744_v5, %v743_v4  ;;  %1589 = vmatprep.subr.bf16.mxu1 %v1983_v22 }
  0xa9   : > { %v1763_v9 = vunpack.i.h.bf16 %v1761_v6  ;;  %v1762_v10 = vunpack.i.l.bf16 %v1761_v6  ;;  %v1758_v11 = vunpack.i.h.bf16 %v1756_v7  ;;  %v1757_v12 = vunpack.i.l.bf16 %v1756_v7 }
  0xaa   : > { %1609 = vmatprep.subr.bf16.mxu0 %v1608_v8 }
  0xab   : > { %1611 = vmatpush3.bf16.msra.mxu0 %v1608_v8  ;;  %v867_v13 = vsel %vm866_vm2, %v1757_v12, %v1758_v11  ;;  %v868_v14 = vsel %vm866_vm2, %v1762_v10, %v1763_v9 }
  0xac   : > { %v717_v15 = vpop.permute.xlu1 %716  ;;  %v359_v16 = vpop.permute.xlu0 %358  ;;  %v1612_v17 = vpack.c.bf16 %v868_v14, %v867_v13 }
  0xad   : > { %1490 = vmatprep.mubr.msk.f32.mxu1 %vm399_vm3, %v359_v16  ;;  %1532 = vmatprep.mubr.msk.f32.mxu0 %vm399_vm3, %v717_v15 }
  0xae   : > { %1613 = vmatprep.subr.bf16.mxu0 %v1612_v17 }
  0xb0   : > { %v719_v18 = vpop.permute.xlu1 %718  ;;  %v361_v19 = vpop.permute.xlu0 %360 }
  0xb1   : > { %1491 = vmatmul.mubr.msk.f32.vlgmr.msra.gmra.mrb[0].mxu1 %vm399_vm3, %v361_v19  ;;  %1533 = vmatmul.mubr.msk.f32.vlgmr.msra.gmra.mrb[0].mxu0 %vm399_vm3, %v719_v18 }
  0xb2   : > { %1615 = vmatpush3.bf16.msra.mxu0 %v1612_v17  ;;  %1591 = vmatpush3.bf16.msra.mxu1 %v1983_v22 }
  0xb3   : > { %1593 = vmatprep.subr.bf16.mxu1 %v1988_v23 }
  0xb4   : > { %v1771_v30 = vpop.permute.xlu1 %1770  ;;  %v1766_v31 = vpop.permute.xlu0 %1765 }
  0xb5   : > { %v1773_v32 = vunpack.i.h.bf16 %v1771_v30  ;;  %v1772_v33 = vunpack.i.l.bf16 %v1771_v30  ;;  %v1768_v34 = vunpack.i.h.bf16 %v1766_v31  ;;  %v1767_v35 = vunpack.i.l.bf16 %v1766_v31 }
  0xb6   : > { %1595 = vmatpush3.bf16.msra.mxu1 %v1988_v23 }
  0xb7   : > { %v869_v36 = vsel %vm866_vm2, %v1767_v35, %v1768_v34  ;;  %v870_v37 = vsel %vm866_vm2, %v1772_v33, %v1773_v32 }
  0xb8   : > { %v721_v38 = vpop.permute.xlu1 %720  ;;  %v363_v39 = vpop.permute.xlu0 %362  ;;  %v1616_v40 = vpack.c.bf16 %v870_v37, %v869_v36 }
  0xb9   : > { %1493 = vmatprep.mubr.msk.f32.mxu1 %vm399_vm3, %v363_v39  ;;  %1535 = vmatprep.mubr.msk.f32.mxu0 %vm399_vm3, %v721_v38 }
  0xba   : > { %1617 = vmatprep.subr.bf16.mxu0 %v1616_v40 }
  0xbb   : > { %1619 = vmatpush3.bf16.msra.mxu0 %v1616_v40 }
  0xbc   : > { %v723_v22 = vpop.permute.xlu1 %722  ;;  %v365_v41 = vpop.permute.xlu0 %364 }
  0xbd   : > { %1494 = vmatmul.mubr.msk.f32.gmra.mrb[2].mxu1 %vm399_vm3, %v365_v41  ;;  %1536 = vmatmul.mubr.msk.f32.gmra.mrb[2].mxu0 %vm399_vm3, %v723_v22 }
  0xbe   : > { %1504 = vmatprep.mubr.msk.f32.mxu1 %vm399_vm3, %v1973_v20  ;;  %1546 = vmatprep.mubr.msk.f32.mxu0 %vm399_vm3, %v2009_v26 }
  0xc0   : > { %v1781_v23 = vpop.permute.xlu1 %1780  ;;  %v1776_v42 = vpop.permute.xlu0 %1775 }
  0xc1   : > { %v1783_v43 = vunpack.i.h.bf16 %v1781_v23  ;;  %v1782_v44 = vunpack.i.l.bf16 %v1781_v23  ;;  %v1778_v45 = vunpack.i.h.bf16 %v1776_v42  ;;  %v1777_v46 = vunpack.i.l.bf16 %v1776_v42  ;;  %1505 = vmatmul.mubr.msk.f32.vlgmr.msra.gmra.mrb[0].mxu1 %vm399_vm3, %v1981_v21  ;;  %1547 = vmatmul.mubr.msk.f32.vlgmr.msra.gmra.mrb[0].mxu0 %vm399_vm3, %v2017_v27 }
  0xc2   : > { %1507 = vmatprep.mubr.msk.f32.mxu1 %vm399_vm3, %v1993_v24  ;;  %1549 = vmatprep.mubr.msk.f32.mxu0 %vm399_vm3, %v2025_v28 }
  0xc3   : > { %v611_v20 = vsel %vm610_vm4, %v1777_v46, %v1778_v45  ;;  %v612_v26 = vsel %vm610_vm4, %v1782_v44, %v1783_v43 }
  0xc4   : > { %v1791_v47 = vpop.permute.xlu1 %1790  ;;  %v1786_v48 = vpop.permute.xlu0 %1785  ;;  %v1596_v49 = vpack.c.bf16 %v612_v26, %v611_v20 }
  0xc5   : > { %v1793_v50 = vunpack.i.h.bf16 %v1791_v47  ;;  %v1792_v51 = vunpack.i.l.bf16 %v1791_v47  ;;  %v1788_v21 = vunpack.i.h.bf16 %v1786_v48  ;;  %v1787_v52 = vunpack.i.l.bf16 %v1786_v48  ;;  %1508 = vmatmul.mubr.msk.f32.gmra.mrb[2].mxu1 %vm399_vm3, %v2001_v25  ;;  %1550 = vmatmul.mubr.msk.f32.gmra.mrb[2].mxu0 %vm399_vm3, %v2033_v29 }
  0xc6   : > { %1597 = vmatprep.subr.bf16.mxu1 %v1596_v49 }
  0xc7   : > { %1599 = vmatpush3.bf16.msra.mxu1 %v1596_v49  ;;  %v1001_v24 = vsel %vm1000_vm5, %v1787_v52, %v1788_v21  ;;  %v1002_v27 = vsel %vm1000_vm5, %v1792_v51, %v1793_v50 }
  0xc8   : > { %v1801_v28 = vpop.permute.xlu1 %1800  ;;  %v1796_v53 = vpop.permute.xlu0 %1795  ;;  %v1620_v54 = vpack.c.bf16 %v1002_v27, %v1001_v24 }
  0xc9   : > { %v1803_v55 = vunpack.i.h.bf16 %v1801_v28  ;;  %v1802_v56 = vunpack.i.l.bf16 %v1801_v28  ;;  %v1798_v57 = vunpack.i.h.bf16 %v1796_v53  ;;  %v1797_v58 = vunpack.i.l.bf16 %v1796_v53 }
  0xca   : > { %1621 = vmatprep.subr.bf16.mxu0 %v1620_v54 }
  0xcb   : > { %1623 = vmatpush3.bf16.msra.mxu0 %v1620_v54  ;;  %v613_v25 = vsel %vm610_vm4, %v1797_v58, %v1798_v57  ;;  %v614_v59 = vsel %vm610_vm4, %v1802_v56, %v1803_v55 }
  0xcc   : > { %v1811_v29 = vpop.permute.xlu1 %1810  ;;  %v1806_v60 = vpop.permute.xlu0 %1805  ;;  %v1600_v61 = vpack.c.bf16 %v614_v59, %v613_v25 }
  0xcd   : > { %v1813_v62 = vunpack.i.h.bf16 %v1811_v29  ;;  %v1812_v63 = vunpack.i.l.bf16 %v1811_v29  ;;  %v1808_v0 = vunpack.i.h.bf16 %v1806_v60  ;;  %v1807_v1 = vunpack.i.l.bf16 %v1806_v60 }
  0xce   : > { %1601 = vmatprep.subr.bf16.mxu1 %v1600_v61 }
  0xcf   : > { %1603 = vmatpush3.bf16.msra.mxu1 %v1600_v61  ;;  %v1003_v2 = vsel %vm1000_vm5, %v1807_v1, %v1808_v0  ;;  %v1004_v3 = vsel %vm1000_vm5, %v1812_v63, %v1813_v62 }
  0xd0   : > { %v1821_v4 = vpop.permute.xlu1 %1820  ;;  %v1816_v5 = vpop.permute.xlu0 %1815  ;;  %v1624_v6 = vpack.c.bf16 %v1004_v3, %v1003_v2 }
  0xd1   : > { %v1823_v7 = vunpack.i.h.bf16 %v1821_v4  ;;  %v1822_v8 = vunpack.i.l.bf16 %v1821_v4  ;;  %v1818_v9 = vunpack.i.h.bf16 %v1816_v5  ;;  %v1817_v10 = vunpack.i.l.bf16 %v1816_v5 }
  0xd2   : > { %1625 = vmatprep.subr.bf16.mxu0 %v1624_v6 }
  0xd3   : > { %v1132_v11 = vsel %vm1130_vm6, %v1822_v8, %v1823_v7  ;;  %v1131_v12 = vsel %vm1130_vm6, %v1817_v10, %v1818_v9  ;;  %1627 = vmatpush3.bf16.msra.mxu0 %v1624_v6 }
  0xd4   : > { %v1628_v13 = vpack.c.bf16 %v1132_v11, %v1131_v12  ;;  %v977_v14 = vpop.permute.xlu1 %976  ;;  %v587_v15 = vpop.permute.xlu0 %586 }
  0xd5   : > { %1518 = vmatprep.mubr.msk.f32.mxu1 %vm399_vm3, %v587_v15  ;;  %1560 = vmatprep.mubr.msk.f32.mxu0 %vm399_vm3, %v977_v14 }
  0xd6   : > { %1629 = vmatprep.subr.bf16.mxu0 %v1628_v13  ;;  %1636 = vmatprep.subr.bf16.mxu1 %v1628_v13 }
  0xd8   : > { %v979_v16 = vpop.permute.xlu1 %978  ;;  %v589_v17 = vpop.permute.xlu0 %588 }
  0xd9   : > { %1519 = vmatmul.mubr.msk.f32.vlgmr.msra.gmra.mrb[0].mxu1 %vm399_vm3, %v589_v17  ;;  %1561 = vmatmul.mubr.msk.f32.vlgmr.msra.gmra.mrb[0].mxu0 %vm399_vm3, %v979_v16 }
  0xda   : > { %1631 = vmatpush3.bf16.msra.mxu0 %v1628_v13  ;;  %1638 = vmatpush3.bf16.msra.mxu1 %v1628_v13 }
  0xdc   : > { %v1831_v18 = vpop.permute.xlu1 %1830  ;;  %v1826_v19 = vpop.permute.xlu0 %1825 }
  0xdd   : > { %v1833_v30 = vunpack.i.h.bf16 %v1831_v18  ;;  %v1832_v31 = vunpack.i.l.bf16 %v1831_v18  ;;  %v1828_v32 = vunpack.i.h.bf16 %v1826_v19  ;;  %v1827_v33 = vunpack.i.l.bf16 %v1826_v19 }
  0xdf   : > { %v1134_v34 = vsel %vm1130_vm6, %v1832_v31, %v1833_v30  ;;  %v1133_v35 = vsel %vm1130_vm6, %v1827_v33, %v1828_v32 }
  0xe0   : > { %v1632_v36 = vpack.c.bf16 %v1134_v34, %v1133_v35  ;;  %v981_v37 = vpop.permute.xlu1 %980  ;;  %v591_v38 = vpop.permute.xlu0 %590 }
  0xe1   : > { %1521 = vmatprep.mubr.msk.f32.mxu1 %vm399_vm3, %v591_v38  ;;  %1563 = vmatprep.mubr.msk.f32.mxu0 %vm399_vm3, %v981_v37 }
  0xe2   : > { %1633 = vmatprep.subr.bf16.mxu0 %v1632_v36  ;;  %1637 = vmatprep.subr.bf16.mxu1 %v1632_v36 }
  0xe3   : > { %1635 = vmatpush3.bf16.msra.mxu0 %v1632_v36  ;;  %1639 = vmatpush3.bf16.msra.mxu1 %v1632_v36 }
  0xe4   : > { %v983_v39 = vpop.permute.xlu1 %982  ;;  %v593_v40 = vpop.permute.xlu0 %592 }
  0xe5   : > { %1522 = vmatmul.mubr.msk.f32.gmra.mrb[2].mxu1 %vm399_vm3, %v593_v40  ;;  %1564 = vmatmul.mubr.msk.f32.gmra.mrb[2].mxu0 %vm399_vm3, %v983_v39 }
  0xe8   : > { %v1111_v22 = vpop.permute.xlu1 %1110  ;;  %v1107_v41 = vpop.permute.xlu0 %1106 }
  0xe9   : > { %1574 = vmatprep.mubr.msk.f32.mxu0 %vm399_vm3, %v1107_v41  ;;  %1577 = vmatprep.mubr.msk.f32.mxu1 %vm399_vm3, %v1111_v22 }
  0xec   : > { %v1113_v23 = vpop.permute.xlu1 %1112  ;;  %v1109_v42 = vpop.permute.xlu0 %1108 }
  0xed   : > { %1575 = vmatmul.mubr.msk.f32.vlgmr.msra.gmra.mrb[0].mxu0 %vm399_vm3, %v1109_v42  ;;  %1578 = vmatmul.mubr.msk.f32.vlgmr.msra.gmra.mrb[4].mxu1 %vm399_vm3, %v1113_v23 }
  0xfd   : > { %v1243_v49 = vpop.permute.xlu0 %1242  ;;  %v1248_v50 = vpop.permute.xlu1 %1247 }
 0x101   : > { %v1258_v53 = vpop.permute.xlu0 %1257  ;;  %v1253_v56 = vpop.permute.xlu1 %1252 }
 0x1ac   : > { %v1520_v43 = vpop.f32.mrb[0].mxu1 }
 0x1ad   : > { %v693_v44 = vpop.f32.mrb[1].mxu1 }
 0x1b8   : > { %v1523_v45 = vpop.f32.mrb[2].mxu1  ;;  %v1565_v46 = vpop.f32.mrb[2].mxu0 }
 0x1b9   : > { %v1642_v20 = vadd.f32 %v1565_v46, %v1523_v45  ;;  %v703_v26 = vpop.f32.mrb[3].mxu1  ;;  %v1093_v47 = vpop.f32.mrb[3].mxu0 }
 0x1ba   : > { %v1644_v48 = vadd.f32 %v1093_v47, %v703_v26 }
 0x1c0   : > { %v1576_v51 = vpop.f32.mrb[0].mxu0  ;;  %v1579_v21 = vpop.f32.mrb[4].mxu1 }
 0x1c1   : > { %v1640_v52 = vadd.f32 %v1576_v51, %v1520_v43  ;;  %v1643_v24 = vadd.f32 %v1642_v20, %v1579_v21  ;;  %v1213_v27 = vpop.f32.mrb[1].mxu0  ;;  %v1223_v28 = vpop.f32.mrb[5].mxu1 }
 0x1c2   : > { %v1641_v54 = vadd.f32 %v1213_v27, %v693_v44  ;;  %v1645_v55 = vadd.f32 %v1644_v48, %v1223_v28 }
 0x1c3   : > { %v1261_v57 = vadd.f32 %v1640_v52, %v1248_v50  ;;  %v1263_v58 = vadd.f32 %v1643_v24, %v1258_v53 }
 0x1c4   : > { %v1260_v25 = vadd.f32 %v1641_v54, %v1243_v49  ;;  %v1262_v59 = vadd.f32 %v1645_v55, %v1253_v56 }
 0x1c5   : > { %1265 = vst [vmem:[%s341_s13 + $0x8] sm:$0xff] %v1261_v57  ;;  %1267 = vst [vmem:[%s341_s13 + $0x18] sm:$0xff] %v1263_v58 }
 0x1c6   : > { %1264 = vst [vmem:[%s341_s13] sm:$0xff] %v1260_v25  ;;  %1266 = vst [vmem:[%s341_s13 + $0x10] sm:$0xff] %v1262_v59 }
 0x1c7 PF: > { %s14_s19 = sadd.s32 1, %s1874_s19   ;;  %s2144_s15 = smov %s1862_s16 }
 0x1c8   : > { %p11_p10 = scmp.ge.s32.totalorder %s14_s19, 4   ;;  %s2145_s16 = smov %s1950_s24 }
 0x1c9   : > { %s2146_s17 = smov %s1870_s18  ;;  %s2147_s18 = smov %s2149_s20 }
 0x1ca   :  { %13 = sbr.rel (!%p11_p10) target bundleno = 3 (0x3), region = 155 }

// kernel: generator_forward.17
= control target key start
LH: loop header
LB: loop body
LE: loop exit
PB: predicated region body
PF: predicated region fallthrough
CT: control target
= control target key end

     0   :  { %s1009_s15 = smov 0   ;;  %s1011_s16 = smov 0   ;;  %s1149_s0 = inlined_call_operand.vmem [shape: f32[2,32,256], index: 0, kind: input, shape index: {}, may-alias: {0,1}]   ;;  %s1150_s1 = inlined_call_operand.vmem [shape: f32[2,32,256], index: 1, kind: input, shape index: {}, may-alias: {0,1}]   ;;  %s1151_s2 = inlined_call_operand.vmem [shape: f32[64,96], index: 2, kind: input, shape index: {}]   ;;  %s1152_s3 = inlined_call_operand.vmem [shape: f32[64,1], index: 3, kind: input, shape index: {}]   ;;  %s1153_s4 = inlined_call_operand.vmem [shape: f32[2,64,8], index: 4, kind: output, shape index: {}]  }
   0x1   :  { %s1013_s17 = smov 0   ;;  %s1015_s18 = smov 0  }
   0x2   :  { %s1017_s19 = smov 0  }
   0x3 LB: > { %s26_s20 = sadd.s32 1, %s975_s18  ;;  %p42_p1 = scmp.ne.s32.totalorder %s967_s16, %s963_s15  ;;  %s979_s19 = sphi %s1017_s19, %s14_s19   ;;  %s975_s18 = sphi %s1015_s18, %s1158_s18   ;;  %s971_s17 = sphi %s1013_s17, %s1157_s17   ;;  %s967_s16 = sphi %s1011_s16, %s1156_s16   ;;  %s963_s15 = sphi %s1009_s15, %s1155_s15  }
   0x4   : > { %p28_p0 = scmp.ge.s32.totalorder %s26_s20, 2  ;;  %p43_p2 = scmp.eq.s32.totalorder %s979_s19, 0 }
   0x5   : > { %s35_s23 = sadd.s32 1, %s967_s16  ;;  %p735_p5 = scmp.ge.s32.totalorder %s979_s19, 2 }
   0x6   : > { %s1160_s20 = smov (%p28_p0, %s26_s20), 0  ;;  %p1040_p3 = por %p43_p2, %p42_p1 }
   0x7   : > { %s30_s22 = ssub.s32 %s975_s18, %s1160_s20  ;;  %174 = sbr.rel (%p735_p5) target bundleno = 28 (0x1c), region = 24 }
   0x8   : > { %p33_p4 = scmp.eq.s32.totalorder %s30_s22, 0 }
   0xa   : > { %s1048_s24 = scalar_select %p33_p4, %s967_s16, %s35_s23  }
   0xe   : > { %177 = sbr.rel (!%p1040_p3) target bundleno = 21 (0x15), region = 28  ;;  %s179_s25 = sand.u32 (%p1040_p3), 1, %s967_s16  }
   0xf   : > { %s761_s26 = sshll.u32 (%p1040_p3), %s975_s18, 6  ;;  %s736_s27 = sshll.u32 (%p1040_p3), %s179_s25, 5 }
  0x10   : > { %s185_s30 = scalar_lea.vmem (%p1040_p3), %s1149_s0, %s761_s26  ;;  %s181_s5 = scalar_lea.vmem (%p1040_p3), [#allocation2], %s736_s27 }
  0x11   : > { %v219_v0 = vld [vmem:[%s185_s30] sm:$0xff] (%p1040_p3)  ;;  %v221_v1 = vld [vmem:[%s185_s30 + $0x10] sm:$0xff] (%p1040_p3) }
  0x12   : > { %v223_v2 = vld [vmem:[%s185_s30 + $0x20] sm:$0xff] (%p1040_p3)  ;;  %220 = vst [vmem:[%s181_s5] sm:$0xff] (%p1040_p3), %v219_v0  ;;  %222 = vst [vmem:[%s181_s5 + $0x8] sm:$0xff] (%p1040_p3), %v221_v1  ;;  %v225_v3 = vld [vmem:[%s185_s30 + $0x30] sm:$0xff] (%p1040_p3) }
  0x13   : > { %224 = vst [vmem:[%s181_s5 + $0x10] sm:$0xff] (%p1040_p3), %v223_v2  ;;  %226 = vst [vmem:[%s181_s5 + $0x18] sm:$0xff] (%p1040_p3), %v225_v3 }
  0x15 PF: > { %232 = sbr.rel (!%p1040_p3) target bundleno = 28 (0x1c), region = 66  ;;  %s234_s6 = sand.u32 (%p1040_p3), 1, %s967_s16  }
  0x16   : > { %s762_s7 = sshll.u32 (%p1040_p3), %s975_s18, 6  ;;  %s739_s8 = sshll.u32 (%p1040_p3), %s234_s6, 5 }
  0x17   : > { %s664_s11 = scalar_lea.vmem (%p1040_p3), %s1150_s1, %s762_s7  ;;  %s236_s12 = scalar_lea.vmem (%p1040_p3), [#allocation3], %s739_s8 }
  0x18   : > { %v742_v4 = vld [vmem:[%s664_s11 + $0x8] sm:$0xff] (%p1040_p3)  ;;  %v743_v5 = vld [vmem:[%s664_s11 + $0x18] sm:$0xff] (%p1040_p3) }
  0x19   : > { %v744_v6 = vld [vmem:[%s664_s11 + $0x28] sm:$0xff] (%p1040_p3)  ;;  %276 = vst [vmem:[%s236_s12] sm:$0xff] (%p1040_p3), %v742_v4  ;;  %278 = vst [vmem:[%s236_s12 + $0x8] sm:$0xff] (%p1040_p3), %v743_v5  ;;  %v745_v7 = vld [vmem:[%s664_s11 + $0x38] sm:$0xff] (%p1040_p3) }
  0x1a   : > { %280 = vst [vmem:[%s236_s12 + $0x10] sm:$0xff] (%p1040_p3), %v744_v6  ;;  %282 = vst [vmem:[%s236_s12 + $0x18] sm:$0xff] (%p1040_p3), %v745_v7 }
  0x1c PF: > { %p746_p6 = scmp.ge.s32.totalorder %s979_s19, 1  ;;  %p287_p7 = scmp.lt.s32.totalorder %s979_s19, 3 }
  0x1e   : > { %p288_p8 = pnand %p746_p6, %p287_p7 }
  0x1f   : > { %s294_s13 = sand.u32 (!%p288_p8), 1, %s963_s15   ;;  %s981_s15 = smov (!%p288_p8), 127   ;;  %v432_v38 = vld [vmem:[%s1151_s2] sm:$0xff] (!%p288_p8)  ;;  %vm488_vm8 = vcmask (!%p288_p8), 785408   ;;  %v441_v40 = vld [vmem:[%s1152_s3 + $0x8] sm:$0xff] (!%p288_p8)  ;;  %v983_v42 = vmov (!%p288_p8), 0  }
  0x20   : > { %291 = sbr.rel (%p288_p8) target bundleno = 403 (0x193), region = 104  ;;  %s747_s14 = sshll.u32 (!%p288_p8), %s294_s13, 5  ;;  %v436_v39 = vld [vmem:[%s1151_s2 + $0x20] sm:$0xff] (!%p288_p8)  ;;  %808 = vmatprep.mubr.msk.f32.mxu0 (!%p288_p8), %vm488_vm8, %v432_v38  ;;  %940 = vset.pattern.permute.xlu1 (!%p288_p8), %v983_v42  ;;  %v442_v43 = vld [vmem:[%s1152_s3 + $0x10] sm:$0xff] (!%p288_p8)  ;;  %v443_v44 = vld [vmem:[%s1152_s3 + $0x18] sm:$0xff] (!%p288_p8)  ;;  %vm398_vm9 = vcmask (!%p288_p8), 1039360  }
  0x21   : > { %s296_s21 = scalar_lea.vmem (!%p288_p8), [#allocation2], %s747_s14  ;;  %s303_s22 = scalar_lea.vmem (!%p288_p8), [#allocation3], %s747_s14  ;;  %814 = vmatprep.mubr.msk.f32.mxu1 (!%p288_p8), %vm488_vm8, %v436_v39  ;;  %v440_v41 = vld [vmem:[%s1152_s3] sm:$0xff] (!%p288_p8)  ;;  %939 = vset.pattern.permute.xlu0 (!%p288_p8), %v983_v42  ;;  %v445_v46 = vld [vmem:[%s1152_s3 + $0x28] sm:$0xff] (!%p288_p8)  ;;  %v446_v47 = vld [vmem:[%s1152_s3 + $0x30] sm:$0xff] (!%p288_p8)  ;;  %vm423_vm10 = vcmask (!%p288_p8), 1031168  }
  0x22   : > { %v344_v8 = vld [vmem:[%s296_s21 + $0x10] sm:$0xff] (!%p288_p8)  ;;  %v345_v9 = vld [vmem:[%s296_s21 + $0x18] sm:$0xff] (!%p288_p8)  ;;  %v342_v12 = vld [vmem:[%s296_s21] sm:$0xff] (!%p288_p8)  ;;  %s982_s23 = smov (!%p288_p8), 126   ;;  %p334_p9 = scmp.lt.s32.totalorder (!%p288_p8), %s971_s17, 1 }
  0x23   : > { %v348_v10 = vld [vmem:[%s303_s22 + $0x10] sm:$0xff] (!%p288_p8)  ;;  %vm354_vm0 = vcmp.ge.f32.partialorder (!%p288_p8), %v344_v8, 0.0  ;;  %vm356_vm2 = vcmp.ge.f32.partialorder (!%p288_p8), %v345_v9, 0.0  ;;  %v362_v11 = vmul.f32 (!%p288_p8), 0.1, %v344_v8  ;;  %v343_v15 = vld [vmem:[%s296_s21 + $0x8] sm:$0xff] (!%p288_p8) }
  0x24   : > { %vm355_vm1 = vcmp.ge.f32.partialorder (!%p288_p8), %v348_v10, 0.0  ;;  %v363_v13 = vmul.f32 (!%p288_p8), 0.1, %v348_v10  ;;  %v364_v14 = vmul.f32 (!%p288_p8), 0.1, %v345_v9  ;;  %v346_v16 = vld [vmem:[%s303_s22] sm:$0xff] (!%p288_p8) }
  0x25   : > { %v370_v17 = vsel (!%p288_p8), %vm354_vm0, %v344_v8, %v362_v11  ;;  %vm350_vm3 = vcmp.ge.f32.partialorder (!%p288_p8), %v342_v12, 0.0  ;;  %vm351_vm4 = vcmp.ge.f32.partialorder (!%p288_p8), %v346_v16, 0.0  ;;  %v349_v18 = vld [vmem:[%s303_s22 + $0x18] sm:$0xff] (!%p288_p8)  ;;  %vm352_vm5 = vcmp.ge.f32.partialorder (!%p288_p8), %v343_v15, 0.0  ;;  %v347_v22 = vld [vmem:[%s303_s22 + $0x8] sm:$0xff] (!%p288_p8)  ;;  %v444_v45 = vld [vmem:[%s1152_s3 + $0x20] sm:$0xff] (!%p288_p8) }
  0x26   : > { %v371_v19 = vsel (!%p288_p8), %vm355_vm1, %v348_v10, %v363_v13  ;;  %v358_v20 = vmul.f32 (!%p288_p8), 0.1, %v342_v12  ;;  %v359_v21 = vmul.f32 (!%p288_p8), 0.1, %v346_v16  ;;  %v372_v23 = vsel (!%p288_p8), %vm356_vm2, %v345_v9, %v364_v14  ;;  %v447_v48 = vld [vmem:[%s1152_s3 + $0x38] sm:$0xff] (!%p288_p8) }
  0x27   : > { %v909_v24 = vpack.i.bf16 %v371_v19, %v370_v17  ;;  %v360_v25 = vmul.f32 0.1, %v343_v15  ;;  %vm357_vm6 = vcmp.ge.f32.partialorder %v349_v18, 0.0  ;;  %v365_v28 = vmul.f32 0.1, %v349_v18  ;;  %s1162_s17 = smov (!%p334_p9, %s971_s17), 1 }
  0x28   : > { %v366_v26 = vsel %vm350_vm3, %v342_v12, %v358_v20  ;;  %v367_v27 = vsel %vm351_vm4, %v346_v16, %v359_v21  ;;  %vm353_vm7 = vcmp.ge.f32.partialorder %v347_v22, 0.0  ;;  %v824_v31 = vpack.c.bf16 %v372_v23, %v370_v17  ;;  %v433_v21 = vld [vmem:[%s1151_s2 + $0x8] sm:$0xff]  ;;  %s763_s11 = sshll.u32 %s1162_s17, 6 }
  0x29   : > { %910 = vrot.lane.b32.xlu1 %v909_v24, %s981_s15  ;;  %v368_v29 = vsel %vm352_vm5, %v343_v15, %v360_v25  ;;  %v899_v30 = vpack.i.bf16 %v367_v27, %v366_v26  ;;  %v373_v33 = vsel %vm357_vm6, %v349_v18, %v365_v28  ;;  %v361_v34 = vmul.f32 0.1, %v347_v22  ;;  %v435_v25 = vld [vmem:[%s1151_s2 + $0x18] sm:$0xff]  ;;  %s341_s14 = scalar_lea.vmem %s1153_s4, %s763_s11 }
  0x2a   : > { %v820_v32 = vpack.c.bf16 %v368_v29, %v366_v26  ;;  %v914_v35 = vpack.i.bf16 %v373_v33, %v372_v23  ;;  %v434_v23 = vld [vmem:[%s1151_s2 + $0x10] sm:$0xff]  ;;  %v439_v26 = vld [vmem:[%s1151_s2 + $0x38] sm:$0xff] }
  0x2b   : > { %900 = vrot.lane.b32.xlu0 %v899_v30, %s981_s15  ;;  %v369_v36 = vsel %vm353_vm7, %v347_v22, %v361_v34  ;;  %v437_v22 = vld [vmem:[%s1151_s2 + $0x28] sm:$0xff] }
  0x2c   : > { %821 = vmatprep.subr.bf16.mxu0 %v820_v32  ;;  %844 = vmatprep.subr.bf16.mxu1 %v820_v32  ;;  %v904_v37 = vpack.i.bf16 %v369_v36, %v368_v29 }
  0x2d   : > { %915 = vrot.lane.b32.xlu1 %v914_v35, %s981_s15  ;;  %823 = vmatpush3.bf16.msra.mxu0 %v820_v32 }
  0x2e   : > { %850 = vmatpush3.bf16.msra.mxu1 %v820_v32  ;;  %825 = vmatprep.subr.bf16.mxu0 %v824_v31 }
  0x2f   : > { %905 = vrot.lane.b32.xlu0 %v904_v37, %s981_s15  ;;  %845 = vmatprep.subr.bf16.mxu1 %v824_v31 }
  0x31   : > { %925 = vrot.lane.b32.xlu1 %v904_v37, %s982_s23  ;;  %827 = vmatpush3.bf16.msra.mxu0 %v824_v31 }
  0x32   : > { %851 = vmatpush3.bf16.msra.mxu1 %v824_v31 }
  0x33   : > { %920 = vrot.lane.b32.xlu0 %v899_v30, %s982_s23 }
  0x35   : > { %935 = vrot.lane.b32.xlu1 %v914_v35, %s982_s23 }
  0x37   : > { %930 = vrot.lane.b32.xlu0 %v909_v24, %s982_s23  ;;  %v438_v24 = vld [vmem:[%s1151_s2 + $0x30] sm:$0xff] }
  0x39   : > { %455 = vperm.xlu1 %940, %v441_v40  }
  0x3b   : > { %450 = vperm.xlu0 %939, %v440_v41  }
  0x3d   : > { %460 = vperm.xlu1 %940, %v442_v43  }
  0x3f   : > { %465 = vperm.xlu0 %939, %v443_v44  }
  0x41   : > { %470 = vperm.xlu1 %940, %v444_v45  }
  0x43   : > { %475 = vperm.xlu0 %939, %v445_v46  }
  0x45   : > { %480 = vperm.xlu1 %940, %v446_v47  }
  0x47   : > { %485 = vperm.xlu0 %939, %v447_v48  }
  0x9b   : > { %v911_v49 = vpop.permute.xlu1 %910 }
  0x9c   : > { %v913_v51 = vunpack.i.h.bf16 %v911_v49  ;;  %v912_v52 = vunpack.i.l.bf16 %v911_v49 }
  0x9d   : > { %v901_v50 = vpop.permute.xlu0 %900 }
  0x9e   : > { %v903_v53 = vunpack.i.h.bf16 %v901_v50  ;;  %v902_v54 = vunpack.i.l.bf16 %v901_v50  ;;  %v401_v61 = vsel %vm398_vm9, %v912_v52, %v913_v51 }
  0x9f   : > { %v916_v55 = vpop.permute.xlu1 %915 }
  0xa0   : > { %v918_v56 = vunpack.i.h.bf16 %v916_v55  ;;  %v917_v57 = vunpack.i.l.bf16 %v916_v55  ;;  %v399_v62 = vsel %vm398_vm9, %v902_v54, %v903_v53 }
  0xa1   : > { %v906_v58 = vpop.permute.xlu0 %905 }
  0xa2   : > { %v908_v59 = vunpack.i.h.bf16 %v906_v58  ;;  %v907_v60 = vunpack.i.l.bf16 %v906_v58  ;;  %v402_v0 = vsel %vm398_vm9, %v917_v57, %v918_v56 }
  0xa3   : > { %v926_v63 = vpop.permute.xlu1 %925  ;;  %v832_v9 = vpack.c.bf16 %v402_v0, %v401_v61 }
  0xa4   : > { %v400_v1 = vsel %vm398_vm9, %v907_v60, %v908_v59  ;;  %v928_v2 = vunpack.i.h.bf16 %v926_v63  ;;  %v927_v3 = vunpack.i.l.bf16 %v926_v63 }
  0xa5   : > { %v828_v4 = vpack.c.bf16 %v400_v1, %v399_v62  ;;  %v921_v5 = vpop.permute.xlu0 %920 }
  0xa6   : > { %v425_v6 = vsel %vm423_vm10, %v927_v3, %v928_v2  ;;  %v923_v7 = vunpack.i.h.bf16 %v921_v5  ;;  %v922_v8 = vunpack.i.l.bf16 %v921_v5 }
  0xa7   : > { %829 = vmatprep.subr.bf16.mxu0 %v828_v4  ;;  %846 = vmatprep.subr.bf16.mxu1 %v828_v4  ;;  %v936_v10 = vpop.permute.xlu1 %935 }
  0xa8   : > { %831 = vmatpush3.bf16.msra.mxu0 %v828_v4  ;;  %852 = vmatpush3.bf16.msra.mxu1 %v828_v4  ;;  %v424_v11 = vsel %vm423_vm10, %v922_v8, %v923_v7  ;;  %v938_v12 = vunpack.i.h.bf16 %v936_v10  ;;  %v937_v13 = vunpack.i.l.bf16 %v936_v10 }
  0xa9   : > { %v836_v14 = vpack.c.bf16 %v425_v6, %v424_v11  ;;  %833 = vmatprep.subr.bf16.mxu0 %v832_v9  ;;  %847 = vmatprep.subr.bf16.mxu1 %v832_v9  ;;  %v931_v15 = vpop.permute.xlu0 %930 }
  0xaa   : > { %v427_v16 = vsel %vm423_vm10, %v937_v13, %v938_v12  ;;  %v933_v17 = vunpack.i.h.bf16 %v931_v15  ;;  %v932_v18 = vunpack.i.l.bf16 %v931_v15 }
  0xac   : > { %835 = vmatpush3.bf16.msra.mxu0 %v832_v9  ;;  %853 = vmatpush3.bf16.msra.mxu1 %v832_v9  ;;  %v426_v19 = vsel %vm423_vm10, %v932_v18, %v933_v17 }
  0xad   : > { %v840_v20 = vpack.c.bf16 %v427_v16, %v426_v19  ;;  %837 = vmatprep.subr.bf16.mxu0 %v836_v14  ;;  %848 = vmatprep.subr.bf16.mxu1 %v836_v14 }
  0xb0   : > { %839 = vmatpush3.bf16.msra.mxu0 %v836_v14  ;;  %854 = vmatpush3.bf16.msra.mxu1 %v836_v14 }
  0xb1   : > { %841 = vmatprep.subr.bf16.mxu0 %v840_v20  ;;  %849 = vmatprep.subr.bf16.mxu1 %v840_v20 }
  0xb4   : > { %843 = vmatpush3.bf16.msra.mxu0 %v840_v20  ;;  %855 = vmatpush3.bf16.msra.mxu1 %v840_v20 }
  0xb7   : > { %809 = vmatmul.mubr.msk.f32.vlgmr.msra.gmra.mrb[0].mxu0 %vm488_vm8, %v433_v21  ;;  %815 = vmatmul.mubr.msk.f32.vlgmr.msra.gmra.mrb[0].mxu1 %vm488_vm8, %v437_v22 }
  0xb8   : > { %811 = vmatprep.mubr.msk.f32.mxu0 %vm488_vm8, %v434_v23  ;;  %817 = vmatprep.mubr.msk.f32.mxu1 %vm488_vm8, %v438_v24  ;;  %v456_v27 = vpop.permute.xlu1 %455 }
  0xba   : > { %v451_v28 = vpop.permute.xlu0 %450 }
  0xbb   : > { %812 = vmatmul.mubr.msk.f32.gmra.mrb[2].mxu0 %vm488_vm8, %v435_v25  ;;  %818 = vmatmul.mubr.msk.f32.gmra.mrb[2].mxu1 %vm488_vm8, %v439_v26 }
  0xbc   : > { %v461_v29 = vpop.permute.xlu1 %460 }
  0xbe   : > { %v466_v30 = vpop.permute.xlu0 %465 }
  0xc0   : > { %v471_v31 = vpop.permute.xlu1 %470 }
  0xc2   : > { %v476_v32 = vpop.permute.xlu0 %475 }
  0xc4   : > { %v481_v41 = vpop.permute.xlu1 %480 }
  0xc6   : > { %v486_v42 = vpop.permute.xlu0 %485 }
 0x18a   : > { %v810_v33 = vpop.f32.mrb[0].mxu0  ;;  %v816_v34 = vpop.f32.mrb[0].mxu1 }
 0x18b   : > { %v585_v35 = vadd.f32 %v810_v33, %v456_v27  ;;  %v605_v36 = vadd.f32 %v816_v34, %v476_v32  ;;  %v579_v37 = vpop.f32.mrb[1].mxu0  ;;  %v599_v38 = vpop.f32.mrb[1].mxu1 }
 0x18c   : > { %v580_v39 = vadd.f32 %v579_v37, %v451_v28  ;;  %v600_v40 = vadd.f32 %v599_v38, %v471_v31 }
 0x18d   : > { %619 = vst [vmem:[%s341_s14 + $0x8] sm:$0xff] %v585_v35  ;;  %623 = vst [vmem:[%s341_s14 + $0x28] sm:$0xff] %v605_v36 }
 0x18e   : > { %618 = vst [vmem:[%s341_s14] sm:$0xff] %v580_v39  ;;  %622 = vst [vmem:[%s341_s14 + $0x20] sm:$0xff] %v600_v40  ;;  %v813_v43 = vpop.f32.mrb[2].mxu0  ;;  %v819_v44 = vpop.f32.mrb[2].mxu1 }
 0x18f   : > { %v595_v45 = vadd.f32 %v813_v43, %v466_v30  ;;  %v615_v46 = vadd.f32 %v819_v44, %v486_v42  ;;  %v589_v47 = vpop.f32.mrb[3].mxu0  ;;  %v609_v48 = vpop.f32.mrb[3].mxu1 }
 0x190   : > { %v590_v49 = vadd.f32 %v589_v47, %v461_v29  ;;  %v610_v50 = vadd.f32 %v609_v48, %v481_v41 }
 0x191   : > { %621 = vst [vmem:[%s341_s14 + $0x18] sm:$0xff] %v595_v45  ;;  %625 = vst [vmem:[%s341_s14 + $0x38] sm:$0xff] %v615_v46 }
 0x192   : > { %620 = vst [vmem:[%s341_s14 + $0x10] sm:$0xff] %v590_v49  ;;  %624 = vst [vmem:[%s341_s14 + $0x30] sm:$0xff] %v610_v50 }
 0x193 PF: > { %s14_s19 = sadd.s32 1, %s979_s19   ;;  %s1155_s15 = smov %s967_s16 }
 0x194   : > { %p11_p10 = scmp.ge.s32.totalorder %s14_s19, 4   ;;  %s1156_s16 = smov %s1048_s24 }
 0x195   : > { %s1157_s17 = smov %s975_s18  ;;  %s1158_s18 = smov %s1160_s20 }
 0x196   :  { %13 = sbr.rel (!%p11_p10) target bundleno = 3 (0x3), region = 155 }

// kernel: generator_forward.18
= control target key start
LH: loop header
LB: loop body
LE: loop exit
PB: predicated region body
PF: predicated region fallthrough
CT: control target
= control target key end

     0   :  { %s1049_s21 = smov 0   ;;  %s1051_s22 = smov 0   ;;  %s1206_s0 = inlined_call_operand.vmem [shape: f32[2,16,256], index: 0, kind: input, shape index: {}, may-alias: {0,1}]   ;;  %s1207_s1 = inlined_call_operand.vmem [shape: f32[2,16,256], index: 1, kind: input, shape index: {}, may-alias: {0,1}]   ;;  %s1208_s2 = inlined_call_operand.vmem [shape: f32[16,48], index: 2, kind: input, shape index: {}]   ;;  %s1209_s3 = inlined_call_operand.vmem [shape: f32[16,1], index: 3, kind: input, shape index: {}]   ;;  %s1210_s4 = inlined_call_operand.vmem [shape: f32[16,48], index: 4, kind: input, shape index: {}]   ;;  %s1211_s5 = inlined_call_operand.vmem [shape: f32[16,1], index: 5, kind: input, shape index: {}]   ;;  %s1212_s6 = inlined_call_operand.vmem [shape: f32[2,16,32], index: 6, kind: output, shape index: {}]  }
   0x1   :  { %s1053_s23 = smov 0   ;;  %s1055_s24 = smov 0  }
   0x2   :  { %s1057_s25 = smov 0  }
   0x3 LB: > { %s28_s26 = sadd.s32 1, %s1004_s24  ;;  %p44_p1 = scmp.ne.s32.totalorder %s996_s22, %s992_s21  ;;  %s1008_s25 = sphi %s1057_s25, %s16_s25   ;;  %s1004_s24 = sphi %s1055_s24, %s1217_s24   ;;  %s1000_s23 = sphi %s1053_s23, %s1216_s23   ;;  %s996_s22 = sphi %s1051_s22, %s1215_s22   ;;  %s992_s21 = sphi %s1049_s21, %s1214_s21  }
   0x4   : > { %p30_p0 = scmp.ge.s32.totalorder %s28_s26, 2  ;;  %p45_p2 = scmp.eq.s32.totalorder %s1008_s25, 0 }
   0x5   : > { %s37_s29 = sadd.s32 1, %s996_s22  ;;  %p814_p5 = scmp.ge.s32.totalorder %s1008_s25, 2 }
   0x6   : > { %s1219_s26 = smov (%p30_p0, %s28_s26), 0  ;;  %p1080_p3 = por %p45_p2, %p44_p1 }
   0x7   : > { %s32_s28 = ssub.s32 %s1004_s24, %s1219_s26  ;;  %224 = sbr.rel (%p814_p5) target bundleno = 28 (0x1c), region = 32 }
   0x8   : > { %p35_p4 = scmp.eq.s32.totalorder %s32_s28, 0 }
   0xa   : > { %s1088_s30 = scalar_select %p35_p4, %s996_s22, %s37_s29  }
   0xe   : > { %227 = sbr.rel (!%p1080_p3) target bundleno = 21 (0x15), region = 36  ;;  %s229_s7 = sand.u32 (%p1080_p3), 1, %s996_s22  }
   0xf   : > { %s834_s8 = sshll.u32 (%p1080_p3), %s1004_s24, 5  ;;  %s815_s9 = sshll.u32 (%p1080_p3), %s229_s7, 4 }
  0x10   : > { %s235_s12 = scalar_lea.vmem (%p1080_p3), %s1206_s0, %s834_s8  ;;  %s231_s13 = scalar_lea.vmem (%p1080_p3), [#allocation2], %s815_s9 }
  0x11   : > { %v265_v0 = vld [vmem:[%s235_s12] sm:$0xff] (%p1080_p3)  ;;  %v267_v1 = vld [vmem:[%s235_s12 + $0x10] sm:$0xff] (%p1080_p3) }
  0x12   : > { %266 = vst [vmem:[%s231_s13] sm:$0xff] (%p1080_p3), %v265_v0  ;;  %268 = vst [vmem:[%s231_s13 + $0x8] sm:$0xff] (%p1080_p3), %v267_v1 }
  0x15 PF: > { %274 = sbr.rel (!%p1080_p3) target bundleno = 28 (0x1c), region = 74  ;;  %s276_s14 = sand.u32 (%p1080_p3), 1, %s996_s22  }
  0x16   : > { %s835_s15 = sshll.u32 (%p1080_p3), %s1004_s24, 5  ;;  %s818_s16 = sshll.u32 (%p1080_p3), %s276_s14, 4 }
  0x17   : > { %s743_s19 = scalar_lea.vmem (%p1080_p3), %s1207_s1, %s835_s15  ;;  %s278_s20 = scalar_lea.vmem (%p1080_p3), [#allocation3], %s818_s16 }
  0x18   : > { %v821_v2 = vld [vmem:[%s743_s19 + $0x8] sm:$0xff] (%p1080_p3)  ;;  %v822_v3 = vld [vmem:[%s743_s19 + $0x18] sm:$0xff] (%p1080_p3) }
  0x19   : > { %314 = vst [vmem:[%s278_s20] sm:$0xff] (%p1080_p3), %v821_v2  ;;  %316 = vst [vmem:[%s278_s20 + $0x8] sm:$0xff] (%p1080_p3), %v822_v3 }
  0x1c PF: > { %p823_p6 = scmp.ge.s32.totalorder %s1008_s25, 1  ;;  %p321_p7 = scmp.lt.s32.totalorder %s1008_s25, 3 }
  0x1e   : > { %p322_p8 = pnand %p823_p6, %p321_p7 }
  0x1f   : > { %s328_s27 = sand.u32 (!%p322_p8), 1, %s992_s21   ;;  %s1010_s21 = smov (!%p322_p8), 126   ;;  %v1012_v20 = vmov (!%p322_p8), 0.0   ;;  %v432_v21 = vld [vmem:[%s1209_s3] sm:$0xff] (!%p322_p8)  ;;  %v433_v22 = vld [vmem:[%s1209_s3 + $0x8] sm:$0xff] (!%p322_p8)  ;;  %v1013_v23 = vmov (!%p322_p8), 0   ;;  %v530_v46 = vlaneseq (!%p322_p8) }
  0x20   : > { %325 = sbr.rel (%p322_p8) target bundleno = 742 (0x2e6), region = 112  ;;  %s824_s28 = sshll.u32 (!%p322_p8), %s328_s27, 4  ;;  %515 = vmatprep.mubr.f32.mxu0 (!%p322_p8), %v1012_v20  ;;  %948 = vset.pattern.permute.xlu0 (!%p322_p8), %v1013_v23  ;;  %vm408_vm4 = vcmask (!%p322_p8), 1039360   ;;  %vm423_vm5 = vcmask (!%p322_p8), 1031168   ;;  %v430_v44 = vld [vmem:[%s1208_s2] sm:$0xff] (!%p322_p8)  ;;  %vm444_vm6 = vcmask (!%p322_p8), 392192  }
  0x21   : > { %s330_s29 = scalar_lea.vmem (!%p322_p8), [#allocation2], %s824_s28  ;;  %s337_s7 = scalar_lea.vmem (!%p322_p8), [#allocation3], %s824_s28  ;;  %949 = vset.pattern.permute.xlu1 (!%p322_p8), %v1013_v23  ;;  %v431_v45 = vld [vmem:[%s1208_s2 + $0x8] sm:$0xff] (!%p322_p8)  ;;  %v531_v47 = vand.u32 (!%p322_p8), 127, %v530_v46  ;;  %v590_v0 = vld [vmem:[%s1210_s4] sm:$0xff] (!%p322_p8) }
  0x22   : > { %v1108_v4 = vld [vmem:[%s330_s29] sm:$0xff] (!%p322_p8)  ;;  %v1110_v5 = vld [vmem:[%s330_s29 + $0x8] sm:$0xff] (!%p322_p8)  ;;  %s1011_s8 = smov (!%p322_p8), 127   ;;  %857 = vmatprep.mubr.msk.f32.mxu1 (!%p322_p8), %vm444_vm6, %v590_v0  ;;  %p372_p9 = scmp.lt.s32.totalorder (!%p322_p8), %s1000_s23, 1 }
  0x23   : > { %v1112_v6 = vld [vmem:[%s337_s7] sm:$0xff] (!%p322_p8)  ;;  %v1114_v7 = vld [vmem:[%s337_s7 + $0x8] sm:$0xff] (!%p322_p8)  ;;  %vm384_vm0 = vcmp.ge.f32.partialorder (!%p322_p8), %v1108_v4, 0.0  ;;  %v388_v8 = vmul.f32 (!%p322_p8), 0.1, %v1108_v4  ;;  %vm386_vm2 = vcmp.ge.f32.partialorder (!%p322_p8), %v1110_v5, 0.0 }
  0x24   : > { %vm385_vm1 = vcmp.ge.f32.partialorder (!%p322_p8), %v1112_v6, 0.0  ;;  %v389_v9 = vmul.f32 (!%p322_p8), 0.1, %v1112_v6  ;;  %vm387_vm3 = vcmp.ge.f32.partialorder (!%p322_p8), %v1114_v7, 0.0  ;;  %v390_v10 = vmul.f32 (!%p322_p8), 0.1, %v1110_v5 }
  0x25   : > { %v392_v11 = vsel (!%p322_p8), %vm384_vm0, %v1108_v4, %v388_v8  ;;  %v391_v12 = vmul.f32 (!%p322_p8), 0.1, %v1114_v7  ;;  %v534_v48 = vadd.s32 (!%p322_p8), 4294967295, %v531_v47  ;;  %v592_v3 = vld [vmem:[%s1211_s5] sm:$0xff] (!%p322_p8)  ;;  %v593_v8 = vld [vmem:[%s1211_s5 + $0x8] sm:$0xff] (!%p322_p8) }
  0x26   : > { %v393_v13 = vsel (!%p322_p8), %vm385_vm1, %v1112_v6, %v389_v9  ;;  %v394_v14 = vsel (!%p322_p8), %vm386_vm2, %v1110_v5, %v390_v10  ;;  %v591_v23 = vld [vmem:[%s1210_s4 + $0x8] sm:$0xff] (!%p322_p8) }
  0x27   : > { %v938_v15 = vpack.i.bf16 %v393_v13, %v392_v11  ;;  %v395_v16 = vsel %vm387_vm3, %v1114_v7, %v391_v12  ;;  %v862_v17 = vpack.c.bf16 %v394_v14, %v392_v11  ;;  %vm536_vm7 = vcmp.ge.s32.totalorder %v534_v48, 0  ;;  %s1221_s23 = smov (!%p372_p9, %s1000_s23), 1 }
  0x28   : > { %v860_v18 = vpack.c.bf16 %v395_v16, %v393_v13  ;;  %v943_v19 = vpack.i.bf16 %v395_v16, %v394_v14  ;;  %vm538_vm8 = vcmp.lt.s32.totalorder %v534_v48, 32 }
  0x29   : > { %939 = vrot.lane.b32.xlu1 %v938_v15, %s1010_s21  ;;  %929 = vrot.lane.b32.xlu0 %v938_v15, %s1011_s8  ;;  %vm540_vm9 = vmand %vm536_vm7, %vm538_vm8 }
  0x2a   : > { %861 = vmatprep.subr.bf16.mxu0 %v860_v18 }
  0x2b   : > { %863 = vmatpush1.bf16.msra.mxu0 %v862_v17 }
  0x2d   : > { %944 = vrot.lane.b32.xlu1 %v943_v19, %s1010_s21  ;;  %934 = vrot.lane.b32.xlu0 %v943_v19, %s1011_s8 }
  0x31   : > { %436 = vperm.xlu0 %948, %v432_v21   ;;  %441 = vperm.xlu1 %949, %v433_v22  }
  0x9b   : > { %v940_v24 = vpop.permute.xlu1 %939  ;;  %v930_v25 = vpop.permute.xlu0 %929 }
  0x9c   : > { %v932_v26 = vunpack.i.h.bf16 %v930_v25  ;;  %v931_v27 = vunpack.i.l.bf16 %v930_v25  ;;  %v942_v28 = vunpack.i.h.bf16 %v940_v24  ;;  %v941_v29 = vunpack.i.l.bf16 %v940_v24 }
  0x9e   : > { %v409_v37 = vsel %vm408_vm4, %v931_v27, %v932_v26  ;;  %v424_v41 = vsel %vm423_vm5, %v941_v29, %v942_v28 }
  0x9f   : > { %v945_v30 = vpop.permute.xlu1 %944  ;;  %v935_v31 = vpop.permute.xlu0 %934 }
  0xa0   : > { %v947_v32 = vunpack.i.h.bf16 %v945_v30  ;;  %v946_v33 = vunpack.i.l.bf16 %v945_v30  ;;  %v937_v34 = vunpack.i.h.bf16 %v935_v31  ;;  %v936_v35 = vunpack.i.l.bf16 %v935_v31 }
  0xa2   : > { %v864_v36 = vpack.c.bf16 %v937_v34, %v932_v26  ;;  %v410_v38 = vsel %vm408_vm4, %v936_v35, %v937_v34  ;;  %v868_v40 = vpack.c.bf16 %v947_v32, %v942_v28  ;;  %v425_v42 = vsel %vm423_vm5, %v946_v33, %v947_v32 }
  0xa3   : > { %v866_v39 = vpack.c.bf16 %v410_v38, %v409_v37  ;;  %v870_v43 = vpack.c.bf16 %v425_v42, %v424_v41 }
  0xa4   : > { %865 = vmatprep.subr.bf16.mxu0 %v864_v36 }
  0xa5   : > { %867 = vmatpush1.bf16.msra.mxu0 %v866_v39 }
  0xa6   : > { %869 = vmatprep.subr.bf16.mxu0 %v868_v40 }
  0xa9   : > { %871 = vmatpush1.bf16.msra.mxu0 %v870_v43 }
  0xac   : > { %828 = vmatmul.mubr.msk.f32.vlgmr.msra.gmra.mrb[0].mxu0 %vm444_vm6, %v430_v44 }
  0xad   : > { %521 = vmatprep.mubr.f32.mxu0 %v1012_v20 }
  0xb0   : > { %829 = vmatmul.mubr.msk.f32.gmra.mrb[2].mxu0 %vm444_vm6, %v431_v45  ;;  %v437_v49 = vpop.permute.xlu0 %436  ;;  %v442_v53 = vpop.permute.xlu1 %441 }
 0x17f   : > { %v517_v50 = vpop.f32.mrb[0].mxu0 }
 0x180   : > { %v518_v51 = vadd.f32 %v517_v50, %v437_v49  ;;  %v519_v52 = vpop.f32.mrb[1].mxu0 }
 0x182   : > { %v546_v54 = vsel %vm540_vm9, %v518_v51, 0.0 }
 0x183   : > { %vm550_vm10 = vcmp.ge.f32.partialorder %v546_v54, 0.0  ;;  %v554_v55 = vmul.f32 0.1, %v546_v54  ;;  %v523_v56 = vpop.f32.mrb[2].mxu0 }
 0x184   : > { %v524_v57 = vadd.f32 %v523_v56, %v442_v53  ;;  %v525_v58 = vpop.f32.mrb[3].mxu0 }
 0x185   : > { %v558_v59 = vsel %vm550_vm10, %v546_v54, %v554_v55 }
 0x186   : > { %v548_v60 = vsel %vm540_vm9, %v524_v57, 0.0  ;;  %v950_v61 = vpack.i.bf16 %v1012_v20, %v558_v59 }
 0x187   : > { %vm552_vm11 = vcmp.ge.f32.partialorder %v548_v60, 0.0  ;;  %v556_v62 = vmul.f32 0.1, %v548_v60 }
 0x188   : > { %951 = vrot.lane.b32.xlu1 %v950_v61, %s1011_s8 }
 0x189   : > { %v560_v63 = vsel %vm552_vm11, %v548_v60, %v556_v62 }
 0x18a   : > { %v960_v1 = vpack.i.bf16 %v1012_v20, %v560_v63  ;;  %v872_v2 = vpack.c.bf16 %v560_v63, %v558_v59 }
 0x18c   : > { %961 = vrot.lane.b32.xlu0 %v960_v1, %s1011_s8  ;;  %956 = vrot.lane.b32.xlu1 %v950_v61, %s1010_s21 }
 0x18d   : > { %873 = vmatprep.subr.bf16.mxu1 %v872_v2 }
 0x18e   : > { %875 = vmatpush3.bf16.msra.mxu1 %v872_v2 }
 0x190   : > { %966 = vrot.lane.b32.xlu0 %v960_v1, %s1010_s21  ;;  %596 = vperm.xlu1 %949, %v592_v3  }
 0x194   : > { %601 = vperm.xlu0 %948, %v593_v8   ;;  %689 = vrot.lane.b32.xlu1 %v1108_v4, %s1010_s21 }
 0x198   : > { %691 = vrot.lane.b32.xlu0 %v1112_v6, %s1010_s21  ;;  %693 = vrot.lane.b32.xlu1 %v1110_v5, %s1010_s21 }
 0x19c   : > { %695 = vrot.lane.b32.xlu0 %v1114_v7, %s1010_s21  ;;  %s836_s21 = sshll.u32 %s1221_s23, 4 }
 0x19d   : > { %s379_s10 = scalar_lea.vmem %s1212_s6, %s836_s21 }
 0x1fa   : > { %v952_v9 = vpop.permute.xlu1 %951 }
 0x1fb   : > { %v954_v10 = vunpack.i.h.bf16 %v952_v9  ;;  %v953_v11 = vunpack.i.l.bf16 %v952_v9 }
 0x1fd   : > { %v574_v4 = vsel %vm408_vm4, %v953_v11, %v954_v10 }
 0x1fe   : > { %v962_v12 = vpop.permute.xlu0 %961  ;;  %v957_v13 = vpop.permute.xlu1 %956 }
 0x1ff   : > { %v964_v14 = vunpack.i.h.bf16 %v962_v12  ;;  %v963_v15 = vunpack.i.l.bf16 %v962_v12  ;;  %v959_v16 = vunpack.i.h.bf16 %v957_v13  ;;  %v958_v17 = vunpack.i.l.bf16 %v957_v13 }
 0x201   : > { %v575_v18 = vsel %vm408_vm4, %v963_v15, %v964_v14  ;;  %v586_v7 = vsel %vm423_vm5, %v958_v17, %v959_v16 }
 0x202   : > { %v967_v6 = vpop.permute.xlu0 %966  ;;  %v876_v19 = vpack.c.bf16 %v575_v18, %v574_v4 }
 0x203   : > { %v969_v5 = vunpack.i.h.bf16 %v967_v6  ;;  %v968_v20 = vunpack.i.l.bf16 %v967_v6 }
 0x204   : > { %877 = vmatprep.subr.bf16.mxu1 %v876_v19 }
 0x205   : > { %879 = vmatpush3.bf16.msra.mxu1 %v876_v19  ;;  %v587_v21 = vsel %vm423_vm5, %v968_v20, %v969_v5 }
 0x206   : > { %v880_v22 = vpack.c.bf16 %v587_v21, %v586_v7 }
 0x208   : > { %881 = vmatprep.subr.bf16.mxu1 %v880_v22 }
 0x209   : > { %883 = vmatpush3.bf16.msra.mxu1 %v880_v22 }
 0x20c   : > { %858 = vmatmul.mubr.msk.f32.vlgmr.msra.gmra.mrb[0].mxu1 %vm444_vm6, %v591_v23 }
 0x20f   : > { %v597_v24 = vpop.permute.xlu1 %596 }
 0x213   : > { %v602_v25 = vpop.permute.xlu0 %601  ;;  %v690_v27 = vpop.permute.xlu1 %689 }
 0x217   : > { %v692_v26 = vpop.permute.xlu0 %691  ;;  %v694_v29 = vpop.permute.xlu1 %693 }
 0x218   : > { %v697_v35 = vsel %vm423_vm5, %v690_v27, %v692_v26 }
 0x21b   : > { %v696_v28 = vpop.permute.xlu0 %695 }
 0x21c   : > { %v698_v31 = vsel %vm423_vm5, %v694_v29, %v696_v28 }
 0x2df   : > { %v859_v30 = vpop.f32.mrb[0].mxu1 }
 0x2e0   : > { %v682_v32 = vadd.f32 %v859_v30, %v602_v25  ;;  %v676_v33 = vpop.f32.mrb[1].mxu1 }
 0x2e1   : > { %v677_v34 = vadd.f32 %v676_v33, %v597_v24 }
 0x2e2   : > { %v702_v36 = vadd.f32 %v698_v31, %v682_v32 }
 0x2e3   : > { %v701_v37 = vadd.f32 %v697_v35, %v677_v34 }
 0x2e4   : > { %704 = vst [vmem:[%s379_s10 + $0x8] sm:$0xff] %v702_v36 }
 0x2e5   : > { %703 = vst [vmem:[%s379_s10] sm:$0xff] %v701_v37 }
 0x2e6 PF: > { %s16_s25 = sadd.s32 1, %s1008_s25   ;;  %s1214_s21 = smov %s996_s22 }
 0x2e7   : > { %p13_p10 = scmp.ge.s32.totalorder %s16_s25, 4   ;;  %s1215_s22 = smov %s1088_s30 }
 0x2e8   : > { %s1216_s23 = smov %s1004_s24  ;;  %s1217_s24 = smov %s1219_s26 }
 0x2e9   :  { %15 = sbr.rel (!%p13_p10) target bundleno = 3 (0x3), region = 163 }

// kernel: generator_forward.19
= control target key start
LH: loop header
LB: loop body
LE: loop exit
PB: predicated region body
PF: predicated region fallthrough
CT: control target
= control target key end

     0   :  { %s1058_s21 = smov 0   ;;  %s1060_s22 = smov 0   ;;  %s1193_s0 = inlined_call_operand.vmem [shape: f32[2,16,256], index: 0, kind: input, shape index: {}, may-alias: {0,1}]   ;;  %s1194_s1 = inlined_call_operand.vmem [shape: f32[2,16,256], index: 1, kind: input, shape index: {}, may-alias: {0,1}]   ;;  %s1195_s2 = inlined_call_operand.vmem [shape: f32[16,48], index: 2, kind: input, shape index: {}]   ;;  %s1196_s3 = inlined_call_operand.vmem [shape: f32[16,1], index: 3, kind: input, shape index: {}]   ;;  %s1197_s4 = inlined_call_operand.vmem [shape: f32[16,48], index: 4, kind: input, shape index: {}]   ;;  %s1198_s5 = inlined_call_operand.vmem [shape: f32[16,1], index: 5, kind: input, shape index: {}]   ;;  %s1199_s6 = inlined_call_operand.vmem [shape: f32[2,16,32], index: 6, kind: output, shape index: {}]  }
   0x1   :  { %s1062_s23 = smov 0   ;;  %s1064_s24 = smov 0  }
   0x2   :  { %s1066_s25 = smov 0  }
   0x3 LB: > { %s28_s26 = sadd.s32 1, %s1010_s24  ;;  %p44_p1 = scmp.ne.s32.totalorder %s1002_s22, %s998_s21  ;;  %s1014_s25 = sphi %s1066_s25, %s16_s25   ;;  %s1010_s24 = sphi %s1064_s24, %s1204_s24   ;;  %s1006_s23 = sphi %s1062_s23, %s1203_s23   ;;  %s1002_s22 = sphi %s1060_s22, %s1202_s22   ;;  %s998_s21 = sphi %s1058_s21, %s1201_s21  }
   0x4   : > { %p30_p0 = scmp.ge.s32.totalorder %s28_s26, 2  ;;  %p45_p2 = scmp.eq.s32.totalorder %s1014_s25, 0 }
   0x5   : > { %s37_s29 = sadd.s32 1, %s1002_s22  ;;  %p817_p5 = scmp.ge.s32.totalorder %s1014_s25, 2 }
   0x6   : > { %s1206_s26 = smov (%p30_p0, %s28_s26), 0  ;;  %p1089_p3 = por %p45_p2, %p44_p1 }
   0x7   : > { %s32_s28 = ssub.s32 %s1010_s24, %s1206_s26  ;;  %224 = sbr.rel (%p817_p5) target bundleno = 28 (0x1c), region = 32 }
   0x8   : > { %p35_p4 = scmp.eq.s32.totalorder %s32_s28, 0 }
   0xa   : > { %s1097_s30 = scalar_select %p35_p4, %s1002_s22, %s37_s29  }
   0xe   : > { %227 = sbr.rel (!%p1089_p3) target bundleno = 21 (0x15), region = 36  ;;  %s229_s7 = sand.u32 (%p1089_p3), 1, %s1002_s22  }
   0xf   : > { %s837_s8 = sshll.u32 (%p1089_p3), %s1010_s24, 5  ;;  %s818_s9 = sshll.u32 (%p1089_p3), %s229_s7, 4 }
  0x10   : > { %s235_s12 = scalar_lea.vmem (%p1089_p3), %s1193_s0, %s837_s8  ;;  %s231_s13 = scalar_lea.vmem (%p1089_p3), [#allocation2], %s818_s9 }
  0x11   : > { %v265_v0 = vld [vmem:[%s235_s12] sm:$0xff] (%p1089_p3)  ;;  %v267_v1 = vld [vmem:[%s235_s12 + $0x10] sm:$0xff] (%p1089_p3) }
  0x12   : > { %266 = vst [vmem:[%s231_s13] sm:$0xff] (%p1089_p3), %v265_v0  ;;  %268 = vst [vmem:[%s231_s13 + $0x8] sm:$0xff] (%p1089_p3), %v267_v1 }
  0x15 PF: > { %274 = sbr.rel (!%p1089_p3) target bundleno = 28 (0x1c), region = 74  ;;  %s276_s14 = sand.u32 (%p1089_p3), 1, %s1002_s22  }
  0x16   : > { %s838_s15 = sshll.u32 (%p1089_p3), %s1010_s24, 5  ;;  %s821_s16 = sshll.u32 (%p1089_p3), %s276_s14, 4 }
  0x17   : > { %s746_s19 = scalar_lea.vmem (%p1089_p3), %s1194_s1, %s838_s15  ;;  %s278_s20 = scalar_lea.vmem (%p1089_p3), [#allocation3], %s821_s16 }
  0x18   : > { %v824_v2 = vld [vmem:[%s746_s19 + $0x8] sm:$0xff] (%p1089_p3)  ;;  %v825_v3 = vld [vmem:[%s746_s19 + $0x18] sm:$0xff] (%p1089_p3) }
  0x19   : > { %314 = vst [vmem:[%s278_s20] sm:$0xff] (%p1089_p3), %v824_v2  ;;  %316 = vst [vmem:[%s278_s20 + $0x8] sm:$0xff] (%p1089_p3), %v825_v3 }
  0x1c PF: > { %p826_p6 = scmp.ge.s32.totalorder %s1014_s25, 1  ;;  %p321_p7 = scmp.lt.s32.totalorder %s1014_s25, 3 }
  0x1e   : > { %p322_p8 = pnand %p826_p6, %p321_p7 }
  0x1f   : > { %s328_s27 = sand.u32 (!%p322_p8), 1, %s998_s21   ;;  %s1016_s21 = smov (!%p322_p8), 122   ;;  %v1018_v20 = vmov (!%p322_p8), 0.0   ;;  %v432_v21 = vld [vmem:[%s1196_s3] sm:$0xff] (!%p322_p8)  ;;  %v433_v22 = vld [vmem:[%s1196_s3 + $0x8] sm:$0xff] (!%p322_p8)  ;;  %v1019_v23 = vmov (!%p322_p8), 0   ;;  %v530_v46 = vlaneseq (!%p322_p8) }
  0x20   : > { %325 = sbr.rel (%p322_p8) target bundleno = 742 (0x2e6), region = 112  ;;  %s827_s28 = sshll.u32 (!%p322_p8), %s328_s27, 4  ;;  %515 = vmatprep.mubr.f32.mxu0 (!%p322_p8), %v1018_v20  ;;  %954 = vset.pattern.permute.xlu0 (!%p322_p8), %v1019_v23  ;;  %vm408_vm4 = vcmask (!%p322_p8), 1022976   ;;  %vm423_vm5 = vcmask (!%p322_p8), 998400   ;;  %v430_v44 = vld [vmem:[%s1195_s2] sm:$0xff] (!%p322_p8)  ;;  %vm444_vm6 = vcmask (!%p322_p8), 392192  }
  0x21   : > { %s330_s29 = scalar_lea.vmem (!%p322_p8), [#allocation2], %s827_s28  ;;  %s337_s7 = scalar_lea.vmem (!%p322_p8), [#allocation3], %s827_s28  ;;  %955 = vset.pattern.permute.xlu1 (!%p322_p8), %v1019_v23  ;;  %v431_v45 = vld [vmem:[%s1195_s2 + $0x8] sm:$0xff] (!%p322_p8)  ;;  %v531_v47 = vand.u32 (!%p322_p8), 127, %v530_v46  ;;  %v592_v0 = vld [vmem:[%s1197_s4] sm:$0xff] (!%p322_p8)  ;;  %vm574_vm12 = vcmask (!%p322_p8), 1039360  }
  0x22   : > { %v1117_v4 = vld [vmem:[%s330_s29] sm:$0xff] (!%p322_p8)  ;;  %v1119_v5 = vld [vmem:[%s330_s29 + $0x8] sm:$0xff] (!%p322_p8)  ;;  %s1017_s8 = smov (!%p322_p8), 125   ;;  %s1020_s17 = smov (!%p322_p8), 127   ;;  %860 = vmatprep.mubr.msk.f32.mxu1 (!%p322_p8), %vm444_vm6, %v592_v0  ;;  %vm587_vm13 = vcmask (!%p322_p8), 1031168   ;;  %vm699_vm14 = vcmask (!%p322_p8), 1014784  }
  0x23   : > { %v1121_v6 = vld [vmem:[%s337_s7] sm:$0xff] (!%p322_p8)  ;;  %v1123_v7 = vld [vmem:[%s337_s7 + $0x8] sm:$0xff] (!%p322_p8)  ;;  %vm384_vm0 = vcmp.ge.f32.partialorder (!%p322_p8), %v1117_v4, 0.0  ;;  %v388_v8 = vmul.f32 (!%p322_p8), 0.1, %v1117_v4  ;;  %vm386_vm2 = vcmp.ge.f32.partialorder (!%p322_p8), %v1119_v5, 0.0 }
  0x24   : > { %vm385_vm1 = vcmp.ge.f32.partialorder (!%p322_p8), %v1121_v6, 0.0  ;;  %v389_v9 = vmul.f32 (!%p322_p8), 0.1, %v1121_v6  ;;  %vm387_vm3 = vcmp.ge.f32.partialorder (!%p322_p8), %v1123_v7, 0.0  ;;  %v390_v10 = vmul.f32 (!%p322_p8), 0.1, %v1119_v5 }
  0x25   : > { %v392_v11 = vsel (!%p322_p8), %vm384_vm0, %v1117_v4, %v388_v8  ;;  %v391_v12 = vmul.f32 (!%p322_p8), 0.1, %v1123_v7  ;;  %v534_v48 = vadd.s32 (!%p322_p8), 4294967295, %v531_v47  ;;  %s1021_s20 = smov (!%p322_p8), 126   ;;  %v594_v3 = vld [vmem:[%s1198_s5] sm:$0xff] (!%p322_p8)  ;;  %v595_v8 = vld [vmem:[%s1198_s5 + $0x8] sm:$0xff] (!%p322_p8) }
  0x26   : > { %v393_v13 = vsel (!%p322_p8), %vm385_vm1, %v1121_v6, %v389_v9  ;;  %v394_v14 = vsel (!%p322_p8), %vm386_vm2, %v1119_v5, %v390_v10  ;;  %v593_v23 = vld [vmem:[%s1197_s4 + $0x8] sm:$0xff] (!%p322_p8)  ;;  %p372_p9 = scmp.lt.s32.totalorder (!%p322_p8), %s1006_s23, 1 }
  0x27   : > { %v944_v15 = vpack.i.bf16 %v393_v13, %v392_v11  ;;  %v395_v16 = vsel %vm387_vm3, %v1123_v7, %v391_v12  ;;  %v865_v17 = vpack.c.bf16 %v394_v14, %v392_v11  ;;  %vm536_vm7 = vcmp.ge.s32.totalorder %v534_v48, 0 }
  0x28   : > { %v863_v18 = vpack.c.bf16 %v395_v16, %v393_v13  ;;  %v949_v19 = vpack.i.bf16 %v395_v16, %v394_v14  ;;  %vm538_vm8 = vcmp.lt.s32.totalorder %v534_v48, 32  ;;  %s1208_s23 = smov (!%p372_p9, %s1006_s23), 1 }
  0x29   : > { %945 = vrot.lane.b32.xlu1 %v944_v15, %s1016_s21  ;;  %935 = vrot.lane.b32.xlu0 %v944_v15, %s1017_s8  ;;  %vm540_vm9 = vmand %vm536_vm7, %vm538_vm8  ;;  %s839_s10 = sshll.u32 %s1208_s23, 4 }
  0x2a   : > { %864 = vmatprep.subr.bf16.mxu0 %v863_v18  ;;  %s379_s13 = scalar_lea.vmem %s1199_s6, %s839_s10 }
  0x2b   : > { %866 = vmatpush1.bf16.msra.mxu0 %v865_v17 }
  0x2d   : > { %950 = vrot.lane.b32.xlu1 %v949_v19, %s1016_s21  ;;  %940 = vrot.lane.b32.xlu0 %v949_v19, %s1017_s8  ;;  %s1022_s21 = smov 124  }
  0x31   : > { %436 = vperm.xlu0 %954, %v432_v21   ;;  %441 = vperm.xlu1 %955, %v433_v22  }
  0x9b   : > { %v946_v24 = vpop.permute.xlu1 %945  ;;  %v936_v25 = vpop.permute.xlu0 %935 }
  0x9c   : > { %v938_v26 = vunpack.i.h.bf16 %v936_v25  ;;  %v937_v27 = vunpack.i.l.bf16 %v936_v25  ;;  %v948_v28 = vunpack.i.h.bf16 %v946_v24  ;;  %v947_v29 = vunpack.i.l.bf16 %v946_v24 }
  0x9e   : > { %v409_v37 = vsel %vm408_vm4, %v937_v27, %v938_v26  ;;  %v424_v41 = vsel %vm423_vm5, %v947_v29, %v948_v28 }
  0x9f   : > { %v951_v30 = vpop.permute.xlu1 %950  ;;  %v941_v31 = vpop.permute.xlu0 %940 }
  0xa0   : > { %v953_v32 = vunpack.i.h.bf16 %v951_v30  ;;  %v952_v33 = vunpack.i.l.bf16 %v951_v30  ;;  %v943_v34 = vunpack.i.h.bf16 %v941_v31  ;;  %v942_v35 = vunpack.i.l.bf16 %v941_v31 }
  0xa2   : > { %v867_v36 = vpack.c.bf16 %v943_v34, %v938_v26  ;;  %v410_v38 = vsel %vm408_vm4, %v942_v35, %v943_v34  ;;  %v871_v40 = vpack.c.bf16 %v953_v32, %v948_v28  ;;  %v425_v42 = vsel %vm423_vm5, %v952_v33, %v953_v32 }
  0xa3   : > { %v869_v39 = vpack.c.bf16 %v410_v38, %v409_v37  ;;  %v873_v43 = vpack.c.bf16 %v425_v42, %v424_v41 }
  0xa4   : > { %868 = vmatprep.subr.bf16.mxu0 %v867_v36 }
  0xa5   : > { %870 = vmatpush1.bf16.msra.mxu0 %v869_v39 }
  0xa6   : > { %872 = vmatprep.subr.bf16.mxu0 %v871_v40 }
  0xa9   : > { %874 = vmatpush1.bf16.msra.mxu0 %v873_v43 }
  0xac   : > { %831 = vmatmul.mubr.msk.f32.vlgmr.msra.gmra.mrb[0].mxu0 %vm444_vm6, %v430_v44 }
  0xad   : > { %521 = vmatprep.mubr.f32.mxu0 %v1018_v20 }
  0xb0   : > { %832 = vmatmul.mubr.msk.f32.gmra.mrb[2].mxu0 %vm444_vm6, %v431_v45  ;;  %v437_v49 = vpop.permute.xlu0 %436  ;;  %v442_v53 = vpop.permute.xlu1 %441 }
 0x17f   : > { %v517_v50 = vpop.f32.mrb[0].mxu0 }
 0x180   : > { %v518_v51 = vadd.f32 %v517_v50, %v437_v49  ;;  %v519_v52 = vpop.f32.mrb[1].mxu0 }
 0x182   : > { %v546_v54 = vsel %vm540_vm9, %v518_v51, 0.0 }
 0x183   : > { %vm550_vm10 = vcmp.ge.f32.partialorder %v546_v54, 0.0  ;;  %v554_v55 = vmul.f32 0.1, %v546_v54  ;;  %v523_v56 = vpop.f32.mrb[2].mxu0 }
 0x184   : > { %v524_v57 = vadd.f32 %v523_v56, %v442_v53  ;;  %v525_v58 = vpop.f32.mrb[3].mxu0 }
 0x185   : > { %v558_v59 = vsel %vm550_vm10, %v546_v54, %v554_v55 }
 0x186   : > { %v548_v60 = vsel %vm540_vm9, %v524_v57, 0.0  ;;  %v956_v61 = vpack.i.bf16 %v1018_v20, %v558_v59 }
 0x187   : > { %vm552_vm11 = vcmp.ge.f32.partialorder %v548_v60, 0.0  ;;  %v556_v62 = vmul.f32 0.1, %v548_v60 }
 0x188   : > { %957 = vrot.lane.b32.xlu1 %v956_v61, %s1020_s17 }
 0x189   : > { %v560_v63 = vsel %vm552_vm11, %v548_v60, %v556_v62 }
 0x18a   : > { %v966_v1 = vpack.i.bf16 %v1018_v20, %v560_v63  ;;  %v875_v2 = vpack.c.bf16 %v560_v63, %v558_v59 }
 0x18c   : > { %967 = vrot.lane.b32.xlu0 %v966_v1, %s1020_s17  ;;  %962 = vrot.lane.b32.xlu1 %v956_v61, %s1021_s20 }
 0x18d   : > { %876 = vmatprep.subr.bf16.mxu1 %v875_v2 }
 0x18e   : > { %878 = vmatpush3.bf16.msra.mxu1 %v875_v2 }
 0x190   : > { %972 = vrot.lane.b32.xlu0 %v966_v1, %s1021_s20  ;;  %598 = vperm.xlu1 %955, %v594_v3  }
 0x194   : > { %603 = vperm.xlu0 %954, %v595_v8   ;;  %691 = vrot.lane.b32.xlu1 %v1117_v4, %s1022_s21 }
 0x198   : > { %693 = vrot.lane.b32.xlu0 %v1121_v6, %s1022_s21  ;;  %695 = vrot.lane.b32.xlu1 %v1119_v5, %s1022_s21 }
 0x19c   : > { %697 = vrot.lane.b32.xlu0 %v1123_v7, %s1022_s21 }
 0x1fa   : > { %v958_v9 = vpop.permute.xlu1 %957 }
 0x1fb   : > { %v960_v10 = vunpack.i.h.bf16 %v958_v9  ;;  %v959_v11 = vunpack.i.l.bf16 %v958_v9 }
 0x1fd   : > { %v575_v18 = vsel %vm574_vm12, %v959_v11, %v960_v10 }
 0x1fe   : > { %v968_v12 = vpop.permute.xlu0 %967  ;;  %v963_v13 = vpop.permute.xlu1 %962 }
 0x1ff   : > { %v970_v14 = vunpack.i.h.bf16 %v968_v12  ;;  %v969_v15 = vunpack.i.l.bf16 %v968_v12  ;;  %v965_v16 = vunpack.i.h.bf16 %v963_v13  ;;  %v964_v17 = vunpack.i.l.bf16 %v963_v13 }
 0x201   : > { %v576_v19 = vsel %vm574_vm12, %v969_v15, %v970_v14  ;;  %v588_v7 = vsel %vm587_vm13, %v964_v17, %v965_v16 }
 0x202   : > { %v973_v20 = vpop.permute.xlu0 %972  ;;  %v879_v4 = vpack.c.bf16 %v576_v19, %v575_v18 }
 0x203   : > { %v975_v6 = vunpack.i.h.bf16 %v973_v20  ;;  %v974_v5 = vunpack.i.l.bf16 %v973_v20 }
 0x204   : > { %880 = vmatprep.subr.bf16.mxu1 %v879_v4 }
 0x205   : > { %882 = vmatpush3.bf16.msra.mxu1 %v879_v4  ;;  %v589_v21 = vsel %vm587_vm13, %v974_v5, %v975_v6 }
 0x206   : > { %v883_v22 = vpack.c.bf16 %v589_v21, %v588_v7 }
 0x208   : > { %884 = vmatprep.subr.bf16.mxu1 %v883_v22 }
 0x209   : > { %886 = vmatpush3.bf16.msra.mxu1 %v883_v22 }
 0x20c   : > { %861 = vmatmul.mubr.msk.f32.vlgmr.msra.gmra.mrb[0].mxu1 %vm444_vm6, %v593_v23 }
 0x20f   : > { %v599_v24 = vpop.permute.xlu1 %598 }
 0x213   : > { %v604_v25 = vpop.permute.xlu0 %603  ;;  %v692_v27 = vpop.permute.xlu1 %691 }
 0x217   : > { %v694_v26 = vpop.permute.xlu0 %693  ;;  %v696_v29 = vpop.permute.xlu1 %695 }
 0x218   : > { %v700_v35 = vsel %vm699_vm14, %v692_v27, %v694_v26 }
 0x21b   : > { %v698_v28 = vpop.permute.xlu0 %697 }
 0x21c   : > { %v701_v31 = vsel %vm699_vm14, %v696_v29, %v698_v28 }
 0x2df   : > { %v862_v30 = vpop.f32.mrb[0].mxu1 }
 0x2e0   : > { %v684_v32 = vadd.f32 %v862_v30, %v604_v25  ;;  %v678_v33 = vpop.f32.mrb[1].mxu1 }
 0x2e1   : > { %v679_v34 = vadd.f32 %v678_v33, %v599_v24 }
 0x2e2   : > { %v705_v36 = vadd.f32 %v701_v31, %v684_v32 }
 0x2e3   : > { %v704_v37 = vadd.f32 %v700_v35, %v679_v34 }
 0x2e4   : > { %707 = vst [vmem:[%s379_s13 + $0x8] sm:$0xff] %v705_v36 }
 0x2e5   : > { %706 = vst [vmem:[%s379_s13] sm:$0xff] %v704_v37 }
 0x2e6 PF: > { %s16_s25 = sadd.s32 1, %s1014_s25   ;;  %s1201_s21 = smov %s1002_s22 }
 0x2e7   : > { %p13_p10 = scmp.ge.s32.totalorder %s16_s25, 4   ;;  %s1202_s22 = smov %s1097_s30 }
 0x2e8   : > { %s1203_s23 = smov %s1010_s24  ;;  %s1204_s24 = smov %s1206_s26 }
 0x2e9   :  { %15 = sbr.rel (!%p13_p10) target bundleno = 3 (0x3), region = 163 }

// kernel: generator_forward.20
= control target key start
LH: loop header
LB: loop body
LE: loop exit
PB: predicated region body
PF: predicated region fallthrough
CT: control target
= control target key end

     0   :  { %s1058_s21 = smov 0   ;;  %s1060_s22 = smov 0   ;;  %s1193_s0 = inlined_call_operand.vmem [shape: f32[2,16,256], index: 0, kind: input, shape index: {}, may-alias: {0,1}]   ;;  %s1194_s1 = inlined_call_operand.vmem [shape: f32[2,16,256], index: 1, kind: input, shape index: {}, may-alias: {0,1}]   ;;  %s1195_s2 = inlined_call_operand.vmem [shape: f32[16,48], index: 2, kind: input, shape index: {}]   ;;  %s1196_s3 = inlined_call_operand.vmem [shape: f32[16,1], index: 3, kind: input, shape index: {}]   ;;  %s1197_s4 = inlined_call_operand.vmem [shape: f32[16,48], index: 4, kind: input, shape index: {}]   ;;  %s1198_s5 = inlined_call_operand.vmem [shape: f32[16,1], index: 5, kind: input, shape index: {}]   ;;  %s1199_s6 = inlined_call_operand.vmem [shape: f32[2,16,32], index: 6, kind: output, shape index: {}]  }
   0x1   :  { %s1062_s23 = smov 0   ;;  %s1064_s24 = smov 0  }
   0x2   :  { %s1066_s25 = smov 0  }
   0x3 LB: > { %s28_s26 = sadd.s32 1, %s1010_s24  ;;  %p44_p1 = scmp.ne.s32.totalorder %s1002_s22, %s998_s21  ;;  %s1014_s25 = sphi %s1066_s25, %s16_s25   ;;  %s1010_s24 = sphi %s1064_s24, %s1204_s24   ;;  %s1006_s23 = sphi %s1062_s23, %s1203_s23   ;;  %s1002_s22 = sphi %s1060_s22, %s1202_s22   ;;  %s998_s21 = sphi %s1058_s21, %s1201_s21  }
   0x4   : > { %p30_p0 = scmp.ge.s32.totalorder %s28_s26, 2  ;;  %p45_p2 = scmp.eq.s32.totalorder %s1014_s25, 0 }
   0x5   : > { %s37_s29 = sadd.s32 1, %s1002_s22  ;;  %p817_p5 = scmp.ge.s32.totalorder %s1014_s25, 2 }
   0x6   : > { %s1206_s26 = smov (%p30_p0, %s28_s26), 0  ;;  %p1089_p3 = por %p45_p2, %p44_p1 }
   0x7   : > { %s32_s28 = ssub.s32 %s1010_s24, %s1206_s26  ;;  %224 = sbr.rel (%p817_p5) target bundleno = 28 (0x1c), region = 32 }
   0x8   : > { %p35_p4 = scmp.eq.s32.totalorder %s32_s28, 0 }
   0xa   : > { %s1097_s30 = scalar_select %p35_p4, %s1002_s22, %s37_s29  }
   0xe   : > { %227 = sbr.rel (!%p1089_p3) target bundleno = 21 (0x15), region = 36  ;;  %s229_s7 = sand.u32 (%p1089_p3), 1, %s1002_s22  }
   0xf   : > { %s837_s8 = sshll.u32 (%p1089_p3), %s1010_s24, 5  ;;  %s818_s9 = sshll.u32 (%p1089_p3), %s229_s7, 4 }
  0x10   : > { %s235_s12 = scalar_lea.vmem (%p1089_p3), %s1193_s0, %s837_s8  ;;  %s231_s13 = scalar_lea.vmem (%p1089_p3), [#allocation2], %s818_s9 }
  0x11   : > { %v265_v0 = vld [vmem:[%s235_s12] sm:$0xff] (%p1089_p3)  ;;  %v267_v1 = vld [vmem:[%s235_s12 + $0x10] sm:$0xff] (%p1089_p3) }
  0x12   : > { %266 = vst [vmem:[%s231_s13] sm:$0xff] (%p1089_p3), %v265_v0  ;;  %268 = vst [vmem:[%s231_s13 + $0x8] sm:$0xff] (%p1089_p3), %v267_v1 }
  0x15 PF: > { %274 = sbr.rel (!%p1089_p3) target bundleno = 28 (0x1c), region = 74  ;;  %s276_s14 = sand.u32 (%p1089_p3), 1, %s1002_s22  }
  0x16   : > { %s838_s15 = sshll.u32 (%p1089_p3), %s1010_s24, 5  ;;  %s821_s16 = sshll.u32 (%p1089_p3), %s276_s14, 4 }
  0x17   : > { %s746_s19 = scalar_lea.vmem (%p1089_p3), %s1194_s1, %s838_s15  ;;  %s278_s20 = scalar_lea.vmem (%p1089_p3), [#allocation3], %s821_s16 }
  0x18   : > { %v824_v2 = vld [vmem:[%s746_s19 + $0x8] sm:$0xff] (%p1089_p3)  ;;  %v825_v3 = vld [vmem:[%s746_s19 + $0x18] sm:$0xff] (%p1089_p3) }
  0x19   : > { %314 = vst [vmem:[%s278_s20] sm:$0xff] (%p1089_p3), %v824_v2  ;;  %316 = vst [vmem:[%s278_s20 + $0x8] sm:$0xff] (%p1089_p3), %v825_v3 }
  0x1c PF: > { %p826_p6 = scmp.ge.s32.totalorder %s1014_s25, 1  ;;  %p321_p7 = scmp.lt.s32.totalorder %s1014_s25, 3 }
  0x1e   : > { %p322_p8 = pnand %p826_p6, %p321_p7 }
  0x1f   : > { %s328_s27 = sand.u32 (!%p322_p8), 1, %s998_s21   ;;  %s1016_s21 = smov (!%p322_p8), 118   ;;  %v1018_v20 = vmov (!%p322_p8), 0.0   ;;  %v432_v21 = vld [vmem:[%s1196_s3] sm:$0xff] (!%p322_p8)  ;;  %v433_v22 = vld [vmem:[%s1196_s3 + $0x8] sm:$0xff] (!%p322_p8)  ;;  %v1019_v23 = vmov (!%p322_p8), 0   ;;  %v530_v46 = vlaneseq (!%p322_p8) }
  0x20   : > { %325 = sbr.rel (%p322_p8) target bundleno = 742 (0x2e6), region = 112  ;;  %s827_s28 = sshll.u32 (!%p322_p8), %s328_s27, 4  ;;  %515 = vmatprep.mubr.f32.mxu0 (!%p322_p8), %v1018_v20  ;;  %954 = vset.pattern.permute.xlu0 (!%p322_p8), %v1019_v23  ;;  %vm408_vm4 = vcmask (!%p322_p8), 1006592   ;;  %vm423_vm5 = vcmask (!%p322_p8), 965632   ;;  %v430_v44 = vld [vmem:[%s1195_s2] sm:$0xff] (!%p322_p8)  ;;  %vm444_vm6 = vcmask (!%p322_p8), 392192  }
  0x21   : > { %s330_s29 = scalar_lea.vmem (!%p322_p8), [#allocation2], %s827_s28  ;;  %s337_s7 = scalar_lea.vmem (!%p322_p8), [#allocation3], %s827_s28  ;;  %955 = vset.pattern.permute.xlu1 (!%p322_p8), %v1019_v23  ;;  %v431_v45 = vld [vmem:[%s1195_s2 + $0x8] sm:$0xff] (!%p322_p8)  ;;  %v531_v47 = vand.u32 (!%p322_p8), 127, %v530_v46  ;;  %v592_v0 = vld [vmem:[%s1197_s4] sm:$0xff] (!%p322_p8)  ;;  %vm574_vm12 = vcmask (!%p322_p8), 1039360  }
  0x22   : > { %v1117_v4 = vld [vmem:[%s330_s29] sm:$0xff] (!%p322_p8)  ;;  %v1119_v5 = vld [vmem:[%s330_s29 + $0x8] sm:$0xff] (!%p322_p8)  ;;  %s1017_s8 = smov (!%p322_p8), 123   ;;  %s1020_s17 = smov (!%p322_p8), 127   ;;  %860 = vmatprep.mubr.msk.f32.mxu1 (!%p322_p8), %vm444_vm6, %v592_v0  ;;  %vm587_vm13 = vcmask (!%p322_p8), 1031168   ;;  %vm699_vm14 = vcmask (!%p322_p8), 998400  }
  0x23   : > { %v1121_v6 = vld [vmem:[%s337_s7] sm:$0xff] (!%p322_p8)  ;;  %v1123_v7 = vld [vmem:[%s337_s7 + $0x8] sm:$0xff] (!%p322_p8)  ;;  %vm384_vm0 = vcmp.ge.f32.partialorder (!%p322_p8), %v1117_v4, 0.0  ;;  %v388_v8 = vmul.f32 (!%p322_p8), 0.1, %v1117_v4  ;;  %vm386_vm2 = vcmp.ge.f32.partialorder (!%p322_p8), %v1119_v5, 0.0 }
  0x24   : > { %vm385_vm1 = vcmp.ge.f32.partialorder (!%p322_p8), %v1121_v6, 0.0  ;;  %v389_v9 = vmul.f32 (!%p322_p8), 0.1, %v1121_v6  ;;  %vm387_vm3 = vcmp.ge.f32.partialorder (!%p322_p8), %v1123_v7, 0.0  ;;  %v390_v10 = vmul.f32 (!%p322_p8), 0.1, %v1119_v5 }
  0x25   : > { %v392_v11 = vsel (!%p322_p8), %vm384_vm0, %v1117_v4, %v388_v8  ;;  %v391_v12 = vmul.f32 (!%p322_p8), 0.1, %v1123_v7  ;;  %v534_v48 = vadd.s32 (!%p322_p8), 4294967295, %v531_v47  ;;  %s1021_s20 = smov (!%p322_p8), 126   ;;  %v594_v3 = vld [vmem:[%s1198_s5] sm:$0xff] (!%p322_p8)  ;;  %v595_v8 = vld [vmem:[%s1198_s5 + $0x8] sm:$0xff] (!%p322_p8) }
  0x26   : > { %v393_v13 = vsel (!%p322_p8), %vm385_vm1, %v1121_v6, %v389_v9  ;;  %v394_v14 = vsel (!%p322_p8), %vm386_vm2, %v1119_v5, %v390_v10  ;;  %v593_v23 = vld [vmem:[%s1197_s4 + $0x8] sm:$0xff] (!%p322_p8)  ;;  %p372_p9 = scmp.lt.s32.totalorder (!%p322_p8), %s1006_s23, 1 }
  0x27   : > { %v944_v15 = vpack.i.bf16 %v393_v13, %v392_v11  ;;  %v395_v16 = vsel %vm387_vm3, %v1123_v7, %v391_v12  ;;  %v865_v17 = vpack.c.bf16 %v394_v14, %v392_v11  ;;  %vm536_vm7 = vcmp.ge.s32.totalorder %v534_v48, 0 }
  0x28   : > { %v863_v18 = vpack.c.bf16 %v395_v16, %v393_v13  ;;  %v949_v19 = vpack.i.bf16 %v395_v16, %v394_v14  ;;  %vm538_vm8 = vcmp.lt.s32.totalorder %v534_v48, 32  ;;  %s1208_s23 = smov (!%p372_p9, %s1006_s23), 1 }
  0x29   : > { %945 = vrot.lane.b32.xlu1 %v944_v15, %s1016_s21  ;;  %935 = vrot.lane.b32.xlu0 %v944_v15, %s1017_s8  ;;  %vm540_vm9 = vmand %vm536_vm7, %vm538_vm8  ;;  %s839_s10 = sshll.u32 %s1208_s23, 4 }
  0x2a   : > { %864 = vmatprep.subr.bf16.mxu0 %v863_v18  ;;  %s379_s13 = scalar_lea.vmem %s1199_s6, %s839_s10 }
  0x2b   : > { %866 = vmatpush1.bf16.msra.mxu0 %v865_v17 }
  0x2d   : > { %950 = vrot.lane.b32.xlu1 %v949_v19, %s1016_s21  ;;  %940 = vrot.lane.b32.xlu0 %v949_v19, %s1017_s8  ;;  %s1022_s21 = smov 122  }
  0x31   : > { %436 = vperm.xlu0 %954, %v432_v21   ;;  %441 = vperm.xlu1 %955, %v433_v22  }
  0x9b   : > { %v946_v24 = vpop.permute.xlu1 %945  ;;  %v936_v25 = vpop.permute.xlu0 %935 }
  0x9c   : > { %v938_v26 = vunpack.i.h.bf16 %v936_v25  ;;  %v937_v27 = vunpack.i.l.bf16 %v936_v25  ;;  %v948_v28 = vunpack.i.h.bf16 %v946_v24  ;;  %v947_v29 = vunpack.i.l.bf16 %v946_v24 }
  0x9e   : > { %v409_v37 = vsel %vm408_vm4, %v937_v27, %v938_v26  ;;  %v424_v41 = vsel %vm423_vm5, %v947_v29, %v948_v28 }
  0x9f   : > { %v951_v30 = vpop.permute.xlu1 %950  ;;  %v941_v31 = vpop.permute.xlu0 %940 }
  0xa0   : > { %v953_v32 = vunpack.i.h.bf16 %v951_v30  ;;  %v952_v33 = vunpack.i.l.bf16 %v951_v30  ;;  %v943_v34 = vunpack.i.h.bf16 %v941_v31  ;;  %v942_v35 = vunpack.i.l.bf16 %v941_v31 }
  0xa2   : > { %v867_v36 = vpack.c.bf16 %v943_v34, %v938_v26  ;;  %v410_v38 = vsel %vm408_vm4, %v942_v35, %v943_v34  ;;  %v871_v40 = vpack.c.bf16 %v953_v32, %v948_v28  ;;  %v425_v42 = vsel %vm423_vm5, %v952_v33, %v953_v32 }
  0xa3   : > { %v869_v39 = vpack.c.bf16 %v410_v38, %v409_v37  ;;  %v873_v43 = vpack.c.bf16 %v425_v42, %v424_v41 }
  0xa4   : > { %868 = vmatprep.subr.bf16.mxu0 %v867_v36 }
  0xa5   : > { %870 = vmatpush1.bf16.msra.mxu0 %v869_v39 }
  0xa6   : > { %872 = vmatprep.subr.bf16.mxu0 %v871_v40 }
  0xa9   : > { %874 = vmatpush1.bf16.msra.mxu0 %v873_v43 }
  0xac   : > { %831 = vmatmul.mubr.msk.f32.vlgmr.msra.gmra.mrb[0].mxu0 %vm444_vm6, %v430_v44 }
  0xad   : > { %521 = vmatprep.mubr.f32.mxu0 %v1018_v20 }
  0xb0   : > { %832 = vmatmul.mubr.msk.f32.gmra.mrb[2].mxu0 %vm444_vm6, %v431_v45  ;;  %v437_v49 = vpop.permute.xlu0 %436  ;;  %v442_v53 = vpop.permute.xlu1 %441 }
 0x17f   : > { %v517_v50 = vpop.f32.mrb[0].mxu0 }
 0x180   : > { %v518_v51 = vadd.f32 %v517_v50, %v437_v49  ;;  %v519_v52 = vpop.f32.mrb[1].mxu0 }
 0x182   : > { %v546_v54 = vsel %vm540_vm9, %v518_v51, 0.0 }
 0x183   : > { %vm550_vm10 = vcmp.ge.f32.partialorder %v546_v54, 0.0  ;;  %v554_v55 = vmul.f32 0.1, %v546_v54  ;;  %v523_v56 = vpop.f32.mrb[2].mxu0 }
 0x184   : > { %v524_v57 = vadd.f32 %v523_v56, %v442_v53  ;;  %v525_v58 = vpop.f32.mrb[3].mxu0 }
 0x185   : > { %v558_v59 = vsel %vm550_vm10, %v546_v54, %v554_v55 }
 0x186   : > { %v548_v60 = vsel %vm540_vm9, %v524_v57, 0.0  ;;  %v956_v61 = vpack.i.bf16 %v1018_v20, %v558_v59 }
 0x187   : > { %vm552_vm11 = vcmp.ge.f32.partialorder %v548_v60, 0.0  ;;  %v556_v62 = vmul.f32 0.1, %v548_v60 }
 0x188   : > { %957 = vrot.lane.b32.xlu1 %v956_v61, %s1020_s17 }
 0x189   : > { %v560_v63 = vsel %vm552_vm11, %v548_v60, %v556_v62 }
 0x18a   : > { %v966_v1 = vpack.i.bf16 %v1018_v20, %v560_v63  ;;  %v875_v2 = vpack.c.bf16 %v560_v63, %v558_v59 }
 0x18c   : > { %967 = vrot.lane.b32.xlu0 %v966_v1, %s1020_s17  ;;  %962 = vrot.lane.b32.xlu1 %v956_v61, %s1021_s20 }
 0x18d   : > { %876 = vmatprep.subr.bf16.mxu1 %v875_v2 }
 0x18e   : > { %878 = vmatpush3.bf16.msra.mxu1 %v875_v2 }
 0x190   : > { %972 = vrot.lane.b32.xlu0 %v966_v1, %s1021_s20  ;;  %598 = vperm.xlu1 %955, %v594_v3  }
 0x194   : > { %603 = vperm.xlu0 %954, %v595_v8   ;;  %691 = vrot.lane.b32.xlu1 %v1117_v4, %s1022_s21 }
 0x198   : > { %693 = vrot.lane.b32.xlu0 %v1121_v6, %s1022_s21  ;;  %695 = vrot.lane.b32.xlu1 %v1119_v5, %s1022_s21 }
 0x19c   : > { %697 = vrot.lane.b32.xlu0 %v1123_v7, %s1022_s21 }
 0x1fa   : > { %v958_v9 = vpop.permute.xlu1 %957 }
 0x1fb   : > { %v960_v10 = vunpack.i.h.bf16 %v958_v9  ;;  %v959_v11 = vunpack.i.l.bf16 %v958_v9 }
 0x1fd   : > { %v575_v18 = vsel %vm574_vm12, %v959_v11, %v960_v10 }
 0x1fe   : > { %v968_v12 = vpop.permute.xlu0 %967  ;;  %v963_v13 = vpop.permute.xlu1 %962 }
 0x1ff   : > { %v970_v14 = vunpack.i.h.bf16 %v968_v12  ;;  %v969_v15 = vunpack.i.l.bf16 %v968_v12  ;;  %v965_v16 = vunpack.i.h.bf16 %v963_v13  ;;  %v964_v17 = vunpack.i.l.bf16 %v963_v13 }
 0x201   : > { %v576_v19 = vsel %vm574_vm12, %v969_v15, %v970_v14  ;;  %v588_v7 = vsel %vm587_vm13, %v964_v17, %v965_v16 }
 0x202   : > { %v973_v20 = vpop.permute.xlu0 %972  ;;  %v879_v4 = vpack.c.bf16 %v576_v19, %v575_v18 }
 0x203   : > { %v975_v6 = vunpack.i.h.bf16 %v973_v20  ;;  %v974_v5 = vunpack.i.l.bf16 %v973_v20 }
 0x204   : > { %880 = vmatprep.subr.bf16.mxu1 %v879_v4 }
 0x205   : > { %882 = vmatpush3.bf16.msra.mxu1 %v879_v4  ;;  %v589_v21 = vsel %vm587_vm13, %v974_v5, %v975_v6 }
 0x206   : > { %v883_v22 = vpack.c.bf16 %v589_v21, %v588_v7 }
 0x208   : > { %884 = vmatprep.subr.bf16.mxu1 %v883_v22 }
 0x209   : > { %886 = vmatpush3.bf16.msra.mxu1 %v883_v22 }
 0x20c   : > { %861 = vmatmul.mubr.msk.f32.vlgmr.msra.gmra.mrb[0].mxu1 %vm444_vm6, %v593_v23 }
 0x20f   : > { %v599_v24 = vpop.permute.xlu1 %598 }
 0x213   : > { %v604_v25 = vpop.permute.xlu0 %603  ;;  %v692_v27 = vpop.permute.xlu1 %691 }
 0x217   : > { %v694_v26 = vpop.permute.xlu0 %693  ;;  %v696_v29 = vpop.permute.xlu1 %695 }
 0x218   : > { %v700_v35 = vsel %vm699_vm14, %v692_v27, %v694_v26 }
 0x21b   : > { %v698_v28 = vpop.permute.xlu0 %697 }
 0x21c   : > { %v701_v31 = vsel %vm699_vm14, %v696_v29, %v698_v28 }
 0x2df   : > { %v862_v30 = vpop.f32.mrb[0].mxu1 }
 0x2e0   : > { %v684_v32 = vadd.f32 %v862_v30, %v604_v25  ;;  %v678_v33 = vpop.f32.mrb[1].mxu1 }
 0x2e1   : > { %v679_v34 = vadd.f32 %v678_v33, %v599_v24 }
 0x2e2   : > { %v705_v36 = vadd.f32 %v701_v31, %v684_v32 }
 0x2e3   : > { %v704_v37 = vadd.f32 %v700_v35, %v679_v34 }
 0x2e4   : > { %707 = vst [vmem:[%s379_s13 + $0x8] sm:$0xff] %v705_v36 }
 0x2e5   : > { %706 = vst [vmem:[%s379_s13] sm:$0xff] %v704_v37 }
 0x2e6 PF: > { %s16_s25 = sadd.s32 1, %s1014_s25   ;;  %s1201_s21 = smov %s1002_s22 }
 0x2e7   : > { %p13_p10 = scmp.ge.s32.totalorder %s16_s25, 4   ;;  %s1202_s22 = smov %s1097_s30 }
 0x2e8   : > { %s1203_s23 = smov %s1010_s24  ;;  %s1204_s24 = smov %s1206_s26 }
 0x2e9   :  { %15 = sbr.rel (!%p13_p10) target bundleno = 3 (0x3), region = 163 }

// kernel: generator_forward.21
= control target key start
LH: loop header
LB: loop body
LE: loop exit
PB: predicated region body
PF: predicated region fallthrough
CT: control target
= control target key end

     0   :  { %s2423_s21 = smov 0   ;;  %s2425_s22 = smov 0   ;;  %s2718_s0 = inlined_call_operand.vmem [shape: f32[2,16,256], index: 0, kind: input, shape index: {}, may-alias: {0,1}]   ;;  %s2719_s1 = inlined_call_operand.vmem [shape: f32[2,16,256], index: 1, kind: input, shape index: {}, may-alias: {0,1}]   ;;  %s2720_s2 = inlined_call_operand.vmem [shape: f32[16,112], index: 2, kind: input, shape index: {}]   ;;  %s2721_s3 = inlined_call_operand.vmem [shape: f32[16,1], index: 3, kind: input, shape index: {}]   ;;  %s2722_s4 = inlined_call_operand.vmem [shape: f32[16,112], index: 4, kind: input, shape index: {}]   ;;  %s2723_s5 = inlined_call_operand.vmem [shape: f32[16,1], index: 5, kind: input, shape index: {}]   ;;  %s2724_s6 = inlined_call_operand.vmem [shape: f32[2,16,32], index: 6, kind: output, shape index: {}]  }
   0x1   :  { %s2427_s23 = smov 0   ;;  %s2429_s24 = smov 0  }
   0x2   :  { %s2431_s25 = smov 0  }
   0x3 LB: > { %s28_s26 = sadd.s32 1, %s2368_s24  ;;  %p44_p1 = scmp.ne.s32.totalorder %s2360_s22, %s2356_s21  ;;  %s2372_s25 = sphi %s2431_s25, %s16_s25   ;;  %s2368_s24 = sphi %s2429_s24, %s2729_s24   ;;  %s2364_s23 = sphi %s2427_s23, %s2728_s23   ;;  %s2360_s22 = sphi %s2425_s22, %s2727_s22   ;;  %s2356_s21 = sphi %s2423_s21, %s2726_s21  }
   0x4   : > { %p30_p0 = scmp.ge.s32.totalorder %s28_s26, 2  ;;  %p45_p2 = scmp.eq.s32.totalorder %s2372_s25, 0 }
   0x5   : > { %s37_s29 = sadd.s32 1, %s2360_s22  ;;  %p1966_p5 = scmp.ge.s32.totalorder %s2372_s25, 2 }
   0x6   : > { %s2731_s26 = smov (%p30_p0, %s28_s26), 0  ;;  %p2454_p3 = por %p45_p2, %p44_p1 }
   0x7   : > { %s32_s28 = ssub.s32 %s2368_s24, %s2731_s26  ;;  %224 = sbr.rel (%p1966_p5) target bundleno = 28 (0x1c), region = 32 }
   0x8   : > { %p35_p4 = scmp.eq.s32.totalorder %s32_s28, 0 }
   0xa   : > { %s2462_s30 = scalar_select %p35_p4, %s2360_s22, %s37_s29  }
   0xe   : > { %227 = sbr.rel (!%p2454_p3) target bundleno = 21 (0x15), region = 36  ;;  %s229_s7 = sand.u32 (%p2454_p3), 1, %s2360_s22  }
   0xf   : > { %s2010_s8 = sshll.u32 (%p2454_p3), %s2368_s24, 5  ;;  %s1967_s9 = sshll.u32 (%p2454_p3), %s229_s7, 4 }
  0x10   : > { %s235_s12 = scalar_lea.vmem (%p2454_p3), %s2718_s0, %s2010_s8  ;;  %s231_s13 = scalar_lea.vmem (%p2454_p3), [#allocation2], %s1967_s9 }
  0x11   : > { %v265_v0 = vld [vmem:[%s235_s12] sm:$0xff] (%p2454_p3)  ;;  %v267_v1 = vld [vmem:[%s235_s12 + $0x10] sm:$0xff] (%p2454_p3) }
  0x12   : > { %266 = vst [vmem:[%s231_s13] sm:$0xff] (%p2454_p3), %v265_v0  ;;  %268 = vst [vmem:[%s231_s13 + $0x8] sm:$0xff] (%p2454_p3), %v267_v1 }
  0x15 PF: > { %274 = sbr.rel (!%p2454_p3) target bundleno = 28 (0x1c), region = 74  ;;  %s276_s14 = sand.u32 (%p2454_p3), 1, %s2360_s22  }
  0x16   : > { %s2011_s15 = sshll.u32 (%p2454_p3), %s2368_s24, 5  ;;  %s1970_s16 = sshll.u32 (%p2454_p3), %s276_s14, 4 }
  0x17   : > { %s1895_s19 = scalar_lea.vmem (%p2454_p3), %s2719_s1, %s2011_s15  ;;  %s278_s20 = scalar_lea.vmem (%p2454_p3), [#allocation3], %s1970_s16 }
  0x18   : > { %v1973_v2 = vld [vmem:[%s1895_s19 + $0x8] sm:$0xff] (%p2454_p3)  ;;  %v1974_v3 = vld [vmem:[%s1895_s19 + $0x18] sm:$0xff] (%p2454_p3) }
  0x19   : > { %314 = vst [vmem:[%s278_s20] sm:$0xff] (%p2454_p3), %v1973_v2  ;;  %316 = vst [vmem:[%s278_s20 + $0x8] sm:$0xff] (%p2454_p3), %v1974_v3 }
  0x1c PF: > { %p1975_p6 = scmp.ge.s32.totalorder %s2372_s25, 1  ;;  %p321_p7 = scmp.lt.s32.totalorder %s2372_s25, 3 }
  0x1e   : > { %p322_p8 = pnand %p1975_p6, %p321_p7 }
  0x1f   : > { %v2484_v4 = vld [vmem:[%s2720_s2] sm:$0xff] (!%p322_p8)  ;;  %s328_s29 = sand.u32 (!%p322_p8), 1, %s2356_s21   ;;  %s2374_s7 = smov (!%p322_p8), 112   ;;  %v2492_v5 = vld [vmem:[%s2720_s2 + $0x8] sm:$0xff] (!%p322_p8)  ;;  %v2375_v19 = vmov (!%p322_p8), 0.0   ;;  %v2386_v23 = vmov (!%p322_p8), 0  }
  0x20   : > { %325 = sbr.rel (%p322_p8) target bundleno = 817 (0x331), region = 112  ;;  %400 = vrot.lane.b32.xlu1 (!%p322_p8), %v2484_v4, %s2374_s7  ;;  %s1976_s8 = sshll.u32 (!%p322_p8), %s328_s29, 4  ;;  %492 = vmatprep.mubr.f32.mxu0 (!%p322_p8), %v2375_v19  ;;  %v1107_v24 = vld [vmem:[%s2721_s3 + $0x8] sm:$0xff] (!%p322_p8)  ;;  %v1106_v25 = vld [vmem:[%s2721_s3] sm:$0xff] (!%p322_p8)  ;;  %vm416_vm4 = vcmask (!%p322_p8), 1039360   ;;  %vm423_vm5 = vcmask (!%p322_p8), 130048  }
  0x21   : > { %s330_s11 = scalar_lea.vmem (!%p322_p8), [#allocation2], %s1976_s8  ;;  %s337_s12 = scalar_lea.vmem (!%p322_p8), [#allocation3], %s1976_s8  ;;  %777 = vmatprep.mubr.f32.mxu1 (!%p322_p8), %v2375_v19  ;;  %2272 = vset.pattern.permute.xlu0 (!%p322_p8), %v2386_v23  ;;  %vm598_vm6 = vcmask (!%p322_p8), 1031168   ;;  %vm702_vm7 = vcmask (!%p322_p8), 1022976   ;;  %vm806_vm8 = vcmask (!%p322_p8), 1014784   ;;  %vm910_vm9 = vcmask (!%p322_p8), 1006592  }
  0x22   : > { %v2494_v6 = vld [vmem:[%s330_s11] sm:$0xff] (!%p322_p8)  ;;  %v2496_v7 = vld [vmem:[%s330_s11 + $0x8] sm:$0xff] (!%p322_p8)  ;;  %s2376_s21 = smov (!%p322_p8), 127   ;;  %s2377_s13 = smov (!%p322_p8), 126   ;;  %2273 = vset.pattern.permute.xlu1 (!%p322_p8), %v2386_v23  ;;  %vm1014_vm10 = vcmask (!%p322_p8), 998400  }
  0x23   : > { %v2498_v8 = vld [vmem:[%s337_s12] sm:$0xff] (!%p322_p8)  ;;  %v2500_v9 = vld [vmem:[%s337_s12 + $0x8] sm:$0xff] (!%p322_p8)  ;;  %vm384_vm0 = vcmp.ge.f32.partialorder (!%p322_p8), %v2494_v6, 0.0  ;;  %v388_v10 = vmul.f32 (!%p322_p8), 0.1, %v2494_v6  ;;  %vm386_vm2 = vcmp.ge.f32.partialorder (!%p322_p8), %v2496_v7, 0.0 }
  0x24   : > { %vm385_vm1 = vcmp.ge.f32.partialorder (!%p322_p8), %v2498_v8, 0.0  ;;  %v389_v11 = vmul.f32 (!%p322_p8), 0.1, %v2498_v8  ;;  %402 = vrot.lane.b32.xlu1 (!%p322_p8), %v2492_v5, %s2374_s7  ;;  %vm387_vm3 = vcmp.ge.f32.partialorder (!%p322_p8), %v2500_v9, 0.0  ;;  %v390_v12 = vmul.f32 (!%p322_p8), 0.1, %v2496_v7 }
  0x25   : > { %v2512_v13 = vsel (!%p322_p8), %vm384_vm0, %v2494_v6, %v388_v10  ;;  %v391_v14 = vmul.f32 (!%p322_p8), 0.1, %v2500_v9  ;;  %s2378_s14 = smov (!%p322_p8), 125   ;;  %s2379_s15 = smov (!%p322_p8), 124  }
  0x26   : > { %v2516_v15 = vsel (!%p322_p8), %vm385_vm1, %v2498_v8, %v389_v11  ;;  %v2519_v16 = vsel (!%p322_p8), %vm386_vm2, %v2496_v7, %v390_v12  ;;  %s2380_s16 = smov (!%p322_p8), 96   ;;  %s2381_s17 = smov (!%p322_p8), 64  }
  0x27   : > { %v2212_v17 = vpack.i.bf16 %v2516_v15, %v2512_v13  ;;  %v2524_v18 = vsel %vm387_vm3, %v2500_v9, %v391_v14  ;;  %v2096_v22 = vpack.c.bf16 %v2519_v16, %v2512_v13  ;;  %s2382_s18 = smov 123   ;;  %s2383_s19 = smov 80  }
  0x28   : > { %v2227_v20 = vpack.i.bf16 %v2524_v18, %v2519_v16  ;;  %v2094_v21 = vpack.c.bf16 %v2524_v18, %v2516_v15  ;;  %s2384_s20 = smov 122   ;;  %s2385_s27 = smov 32  }
  0x29   : > { %2213 = vrot.lane.b32.xlu0 %v2212_v17, %s2376_s21  ;;  %s2387_s8 = smov 48   ;;  %p372_p9 = scmp.lt.s32.totalorder %s2364_s23, 1 }
  0x2a   : > { %2228 = vrot.lane.b32.xlu1 %v2227_v20, %s2377_s13 }
  0x2b   : > { %s2733_s23 = smov (!%p372_p9, %s2364_s23), 1 }
  0x2d   : > { %2218 = vrot.lane.b32.xlu0 %v2227_v20, %s2376_s21 }
  0x2e   : > { %2233 = vrot.lane.b32.xlu1 %v2212_v17, %s2378_s14 }
  0x31   : > { %2223 = vrot.lane.b32.xlu0 %v2212_v17, %s2377_s13 }
  0x32   : > { %2243 = vrot.lane.b32.xlu1 %v2212_v17, %s2379_s15 }
  0x35   : > { %586 = vrot.lane.b32.xlu0 %v2484_v4, %s2380_s16 }
  0x36   : > { %588 = vrot.lane.b32.xlu1 %v2492_v5, %s2380_s16 }
  0x39   : > { %2238 = vrot.lane.b32.xlu0 %v2227_v20, %s2378_s14 }
  0x3a   : > { %794 = vrot.lane.b32.xlu1 %v2484_v4, %s2381_s17 }
  0x3d   : > { %2248 = vrot.lane.b32.xlu0 %v2227_v20, %s2379_s15 }
  0x3e   : > { %2258 = vrot.lane.b32.xlu1 %v2227_v20, %s2382_s18 }
  0x41   : > { %690 = vrot.lane.b32.xlu0 %v2484_v4, %s2383_s19 }
  0x42   : > { %2263 = vrot.lane.b32.xlu1 %v2212_v17, %s2384_s20 }
  0x45   : > { %2253 = vrot.lane.b32.xlu0 %v2212_v17, %s2382_s18 }
  0x46   : > { %796 = vrot.lane.b32.xlu1 %v2492_v5, %s2381_s17 }
  0x49   : > { %692 = vrot.lane.b32.xlu0 %v2492_v5, %s2383_s19 }
  0x4a   : > { %1002 = vrot.lane.b32.xlu1 %v2484_v4, %s2385_s27 }
  0x4d   : > { %2268 = vrot.lane.b32.xlu0 %v2227_v20, %s2384_s20 }
  0x4e   : > { %1004 = vrot.lane.b32.xlu1 %v2492_v5, %s2385_s27 }
  0x51   : > { %898 = vrot.lane.b32.xlu0 %v2484_v4, %s2387_s8 }
  0x52   : > { %1115 = vperm.xlu1 %2273, %v1107_v24  }
  0x55   : > { %900 = vrot.lane.b32.xlu0 %v2492_v5, %s2387_s8 }
  0x59   : > { %1110 = vperm.xlu0 %2272, %v1106_v25  }
  0x92   : > { %v401_v26 = vpop.permute.xlu1 %400 }
  0x96   : > { %v403_v27 = vpop.permute.xlu1 %402 }
  0x9b   : > { %v2214_v28 = vpop.permute.xlu0 %2213 }
  0x9c   : > { %v2229_v29 = vpop.permute.xlu1 %2228  ;;  %v2216_v30 = vunpack.i.h.bf16 %v2214_v28  ;;  %v2215_v31 = vunpack.i.l.bf16 %v2214_v28 }
  0x9d   : > { %v2231_v41 = vunpack.i.h.bf16 %v2229_v29  ;;  %v2230_v44 = vunpack.i.l.bf16 %v2229_v29 }
  0x9e   : > { %v417_v37 = vsel %vm416_vm4, %v2215_v31, %v2216_v30 }
  0x9f   : > { %v2219_v32 = vpop.permute.xlu0 %2218  ;;  %v600_v51 = vsel %vm598_vm6, %v2230_v44, %v2231_v41 }
  0xa0   : > { %v2221_v33 = vunpack.i.h.bf16 %v2219_v32  ;;  %v2220_v34 = vunpack.i.l.bf16 %v2219_v32  ;;  %v2234_v35 = vpop.permute.xlu1 %2233 }
  0xa1   : > { %v2236_v48 = vunpack.i.h.bf16 %v2234_v35  ;;  %v2235_v49 = vunpack.i.l.bf16 %v2234_v35 }
  0xa2   : > { %v2090_v36 = vpack.c.bf16 %v2221_v33, %v2216_v30  ;;  %v418_v38 = vsel %vm416_vm4, %v2220_v34, %v2221_v33 }
  0xa3   : > { %v2224_v39 = vpop.permute.xlu0 %2223  ;;  %v2092_v40 = vpack.c.bf16 %v418_v38, %v417_v37  ;;  %v703_v56 = vsel %vm702_vm7, %v2235_v49, %v2236_v48 }
  0xa4   : > { %v2226_v42 = vunpack.i.h.bf16 %v2224_v39  ;;  %2091 = vmatprep.subr.bf16.mxu0 %v2090_v36  ;;  %v2244_v43 = vpop.permute.xlu1 %2243  ;;  %v2225_v47 = vunpack.i.l.bf16 %v2224_v39 }
  0xa5   : > { %2093 = vmatpush1.bf16.msra.mxu0 %v2092_v40  ;;  %v2246_v58 = vunpack.i.h.bf16 %v2244_v43  ;;  %v2245_v0 = vunpack.i.l.bf16 %v2244_v43 }
  0xa6   : > { %2095 = vmatprep.subr.bf16.mxu0 %v2094_v21  ;;  %v2098_v46 = vpack.c.bf16 %v2231_v41, %v2226_v42  ;;  %v599_v53 = vsel %vm598_vm6, %v2225_v47, %v2226_v42 }
  0xa7   : > { %v587_v45 = vpop.permute.xlu0 %586  ;;  %v2100_v61 = vpack.c.bf16 %v600_v51, %v599_v53  ;;  %v807_v12 = vsel %vm806_vm8, %v2245_v0, %v2246_v58 }
  0xa8   : > { %1980 = vmatmul.mubr.msk.f32.vlgmr.msra.gmra.mrb[0].mxu0 %vm423_vm5, %v401_v26  ;;  %v589_v50 = vpop.permute.xlu1 %588 }
  0xa9   : > { %2097 = vmatpush1.bf16.msra.mxu0 %v2096_v22  ;;  %498 = vmatprep.mubr.f32.mxu0 %v2375_v19 }
  0xaa   : > { %2099 = vmatprep.subr.bf16.mxu0 %v2098_v46 }
  0xab   : > { %v2239_v52 = vpop.permute.xlu0 %2238 }
  0xac   : > { %v2241_v54 = vunpack.i.h.bf16 %v2239_v52  ;;  %v2240_v55 = vunpack.i.l.bf16 %v2239_v52  ;;  %1981 = vmatmul.mubr.msk.f32.gmra.mrb[2].mxu0 %vm423_vm5, %v403_v27  ;;  %v795_v57 = vpop.permute.xlu1 %794 }
  0xad   : > { %573 = vmatprep.mubr.f32.mxu0 %v2375_v19 }
  0xae   : > { %v2102_v59 = vpack.c.bf16 %v2241_v54, %v2236_v48  ;;  %v704_v60 = vsel %vm702_vm7, %v2240_v55, %v2241_v54 }
  0xaf   : > { %v2249_v62 = vpop.permute.xlu0 %2248  ;;  %v2104_v63 = vpack.c.bf16 %v704_v60, %v703_v56 }
  0xb0   : > { %v2251_v1 = vunpack.i.h.bf16 %v2249_v62  ;;  %v2250_v2 = vunpack.i.l.bf16 %v2249_v62  ;;  %1982 = vmatmul.mubr.msk.f32.vlgmr.msra.gmra.mrb[4].mxu0 %vm423_vm5, %v2484_v4  ;;  %2103 = vmatprep.subr.bf16.mxu1 %v2102_v59  ;;  %v2259_v3 = vpop.permute.xlu1 %2258 }
  0xb1   : > { %2101 = vmatpush1.bf16.msra.mxu0 %v2100_v61  ;;  %2105 = vmatpush1.bf16.msra.mxu1 %v2104_v63  ;;  %v2261_v14 = vunpack.i.h.bf16 %v2259_v3  ;;  %v2260_v4 = vunpack.i.l.bf16 %v2259_v3 }
  0xb2   : > { %v2106_v10 = vpack.c.bf16 %v2251_v1, %v2246_v58  ;;  %579 = vmatprep.mubr.f32.mxu0 %v2375_v19  ;;  %v808_v13 = vsel %vm806_vm8, %v2250_v2, %v2251_v1 }
  0xb3   : > { %v691_v11 = vpop.permute.xlu0 %690  ;;  %v2108_v15 = vpack.c.bf16 %v808_v13, %v807_v12  ;;  %v912_v17 = vsel %vm910_vm9, %v2260_v4, %v2261_v14 }
  0xb4   : > { %1983 = vmatmul.mubr.msk.f32.gmra.mrb[6].mxu0 %vm423_vm5, %v2492_v5  ;;  %1986 = vmatmul.mubr.msk.f32.vlgmr.msra.gmra.mrb[0].mxu1 %vm423_vm5, %v691_v11  ;;  %v2264_v21 = vpop.permute.xlu1 %2263 }
  0xb5   : > { %2107 = vmatprep.subr.bf16.mxu0 %v2106_v10  ;;  %673 = vmatprep.mubr.f32.mxu0 %v2375_v19  ;;  %v2266_v25 = vunpack.i.h.bf16 %v2264_v21  ;;  %v2265_v26 = vunpack.i.l.bf16 %v2264_v21 }
  0xb6   : > { %783 = vmatprep.mubr.f32.mxu1 %v2375_v19 }
  0xb7   : > { %v2254_v16 = vpop.permute.xlu0 %2253  ;;  %v1015_v29 = vsel %vm1014_vm10, %v2265_v26, %v2266_v25 }
  0xb8   : > { %v2256_v18 = vunpack.i.h.bf16 %v2254_v16  ;;  %v2255_v20 = vunpack.i.l.bf16 %v2254_v16  ;;  %1984 = vmatmul.mubr.msk.f32.vlgmr.msra.gmra.mrb[8].mxu0 %vm423_vm5, %v587_v45  ;;  %v797_v27 = vpop.permute.xlu1 %796 }
  0xb9   : > { %2109 = vmatpush1.bf16.msra.mxu0 %v2108_v15  ;;  %679 = vmatprep.mubr.f32.mxu0 %v2375_v19 }
  0xba   : > { %v2110_v5 = vpack.c.bf16 %v2261_v14, %v2256_v18  ;;  %v911_v22 = vsel %vm910_vm9, %v2255_v20, %v2256_v18 }
  0xbb   : > { %v2112_v23 = vpack.c.bf16 %v912_v17, %v911_v22  ;;  %v693_v24 = vpop.permute.xlu0 %692 }
  0xbc   : > { %1985 = vmatmul.mubr.msk.f32.gmra.mrb[10].mxu0 %vm423_vm5, %v589_v50  ;;  %1987 = vmatmul.mubr.msk.f32.gmra.mrb[2].mxu1 %vm423_vm5, %v693_v24  ;;  %v1003_v36 = vpop.permute.xlu1 %1002 }
  0xbd   : > { %2111 = vmatprep.subr.bf16.mxu1 %v2110_v5  ;;  %881 = vmatprep.mubr.f32.mxu0 %v2375_v19 }
  0xbe   : > { %2113 = vmatpush1.bf16.msra.mxu1 %v2112_v23  ;;  %985 = vmatprep.mubr.f32.mxu1 %v2375_v19 }
  0xbf   : > { %v2269_v28 = vpop.permute.xlu0 %2268 }
  0xc0   : > { %v2271_v30 = vunpack.i.h.bf16 %v2269_v28  ;;  %v2270_v31 = vunpack.i.l.bf16 %v2269_v28  ;;  %1988 = vmatmul.mubr.msk.f32.vlgmr.msra.gmra.mrb[12].mxu0 %vm423_vm5, %v795_v57  ;;  %v1005_v38 = vpop.permute.xlu1 %1004  ;;  %v1124_v57 = vlaneseq }
  0xc1   : > { %887 = vmatprep.mubr.f32.mxu0 %v2375_v19 }
  0xc2   : > { %v2114_v32 = vpack.c.bf16 %v2271_v30, %v2266_v25  ;;  %v1016_v33 = vsel %vm1014_vm10, %v2270_v31, %v2271_v30  ;;  %v1125_v63 = vand.u32 127, %v1124_v57 }
  0xc3   : > { %v2116_v34 = vpack.c.bf16 %v1016_v33, %v1015_v29  ;;  %v899_v35 = vpop.permute.xlu0 %898 }
  0xc4   : > { %1989 = vmatmul.mubr.msk.f32.gmra.mrb[14].mxu0 %vm423_vm5, %v797_v27  ;;  %1990 = vmatmul.mubr.msk.f32.vlgmr.msra.gmra.mrb[4].mxu1 %vm423_vm5, %v899_v35  ;;  %v1128_v10 = vadd.s32 4294967293, %v1125_v63 }
  0xc5   : > { %2115 = vmatprep.subr.bf16.mxu0 %v2114_v32  ;;  %991 = vmatprep.mubr.f32.mxu1 %v2375_v19 }
  0xc6   : > { %2117 = vmatpush1.bf16.msra.mxu0 %v2116_v34  ;;  %1089 = vmatprep.mubr.f32.mxu0 %v2375_v19  ;;  %vm1130_vm11 = vcmp.ge.s32.totalorder %v1128_v10, 0  ;;  %vm1132_vm12 = vcmp.lt.s32.totalorder %v1128_v10, 32  ;;  %v1156_v34 = vld [vmem:[%s2722_s4] sm:$0xff] }
  0xc7   : > { %v901_v37 = vpop.permute.xlu0 %900  ;;  %vm1134_vm13 = vmand %vm1130_vm11, %vm1132_vm12 }
  0xc8   : > { %1991 = vmatmul.mubr.msk.f32.gmra.mrb[6].mxu1 %vm423_vm5, %v901_v37  ;;  %v2626_v37 = vld [vmem:[%s2722_s4 + $0x8] sm:$0xff] }
  0xc9   : > { %1992 = vmatmul.mubr.msk.f32.vlgmr.msra.gmra.mrb[16].mxu0 %vm423_vm5, %v1003_v36 }
  0xca   : > { %1095 = vmatprep.mubr.f32.mxu0 %v2375_v19 }
  0xcd   : > { %1993 = vmatmul.mubr.msk.f32.gmra.mrb[18].mxu0 %vm423_vm5, %v1005_v38  ;;  %v1824_v38 = vld [vmem:[%s2723_s5 + $0x8] sm:$0xff] }
  0xd1   : > { %v1116_v23 = vpop.permute.xlu1 %1115 }
  0xd8   : > { %v1111_v15 = vpop.permute.xlu0 %1110 }
 0x17b   : > { %v494_v39 = vpop.f32.mrb[0].mxu0 }
 0x17c   : > { %v496_v40 = vpop.f32.mrb[1].mxu0 }
 0x17f   : > { %v500_v41 = vpop.f32.mrb[2].mxu0 }
 0x180   : > { %v502_v42 = vpop.f32.mrb[3].mxu0 }
 0x183   : > { %v575_v43 = vpop.f32.mrb[4].mxu0 }
 0x184   : > { %v576_v44 = vadd.f32 %v575_v43, %v494_v39  ;;  %v577_v45 = vpop.f32.mrb[5].mxu0 }
 0x187   : > { %v581_v46 = vpop.f32.mrb[6].mxu0  ;;  %v779_v47 = vpop.f32.mrb[0].mxu1 }
 0x188   : > { %v582_v48 = vadd.f32 %v581_v46, %v500_v41  ;;  %v583_v49 = vpop.f32.mrb[7].mxu0  ;;  %v781_v50 = vpop.f32.mrb[1].mxu1 }
 0x18b   : > { %v675_v51 = vpop.f32.mrb[8].mxu0 }
 0x18c   : > { %v686_v52 = vadd.f32 %v675_v51, %v576_v44  ;;  %v677_v53 = vpop.f32.mrb[9].mxu0 }
 0x18e   : > { %v790_v54 = vadd.f32 %v779_v47, %v686_v52 }
 0x18f   : > { %v681_v55 = vpop.f32.mrb[10].mxu0  ;;  %v785_v56 = vpop.f32.mrb[2].mxu1 }
 0x190   : > { %v688_v58 = vadd.f32 %v681_v55, %v582_v48  ;;  %v683_v59 = vpop.f32.mrb[11].mxu0  ;;  %v787_v60 = vpop.f32.mrb[3].mxu1 }
 0x192   : > { %v792_v61 = vadd.f32 %v785_v56, %v688_v58 }
 0x193   : > { %v883_v62 = vpop.f32.mrb[12].mxu0 }
 0x194   : > { %v894_v0 = vadd.f32 %v883_v62, %v790_v54  ;;  %v885_v1 = vpop.f32.mrb[13].mxu0 }
 0x197   : > { %v889_v2 = vpop.f32.mrb[14].mxu0  ;;  %v987_v3 = vpop.f32.mrb[4].mxu1 }
 0x198   : > { %v896_v11 = vadd.f32 %v889_v2, %v792_v61  ;;  %v998_v12 = vadd.f32 %v987_v3, %v894_v0  ;;  %v891_v13 = vpop.f32.mrb[15].mxu0  ;;  %v989_v14 = vpop.f32.mrb[5].mxu1 }
 0x19b   : > { %v993_v4 = vpop.f32.mrb[6].mxu1 }
 0x19c   : > { %v1000_v16 = vadd.f32 %v993_v4, %v896_v11  ;;  %v1091_v17 = vpop.f32.mrb[16].mxu0  ;;  %v995_v18 = vpop.f32.mrb[7].mxu1 }
 0x19d   : > { %v1102_v20 = vadd.f32 %v1091_v17, %v998_v12  ;;  %v1093_v21 = vpop.f32.mrb[17].mxu0 }
 0x19f   : > { %v1118_v5 = vadd.f32 %v1111_v15, %v1102_v20 }
 0x1a0   : > { %v1097_v22 = vpop.f32.mrb[18].mxu0 }
 0x1a1   : > { %v1140_v24 = vsel %vm1134_vm13, %v1118_v5, 0.0  ;;  %v1104_v25 = vadd.f32 %v1097_v22, %v1000_v16  ;;  %v1099_v26 = vpop.f32.mrb[19].mxu0 }
 0x1a2   : > { %vm1144_vm14 = vcmp.ge.f32.partialorder %v1140_v24, 0.0  ;;  %v1148_v27 = vmul.f32 0.1, %v1140_v24 }
 0x1a3   : > { %v1120_v28 = vadd.f32 %v1116_v23, %v1104_v25 }
 0x1a4   : > { %v1152_v29 = vsel %vm1144_vm14, %v1140_v24, %v1148_v27 }
 0x1a5   : > { %v1142_v30 = vsel %vm1134_vm13, %v1120_v28, 0.0  ;;  %v2274_v31 = vpack.i.bf16 %v2375_v19, %v1152_v29 }
 0x1a6   : > { %vm1146_vm15 = vcmp.ge.f32.partialorder %v1142_v30, 0.0  ;;  %v1150_v32 = vmul.f32 0.1, %v1142_v30 }
 0x1a7   : > { %2275 = vrot.lane.b32.xlu1 %v2274_v31, %s2376_s21 }
 0x1a8   : > { %v1154_v33 = vsel %vm1146_vm15, %v1142_v30, %v1150_v32 }
 0x1a9   : > { %v2279_v35 = vpack.i.bf16 %v2375_v19, %v1154_v33  ;;  %v2122_v36 = vpack.c.bf16 %v1154_v33, %v1152_v29  ;;  %v1823_v19 = vld [vmem:[%s2723_s5] sm:$0xff] }
 0x1ab   : > { %2280 = vrot.lane.b32.xlu0 %v2279_v35, %s2376_s21  ;;  %1160 = vrot.lane.b32.xlu1 %v1156_v34, %s2374_s7 }
 0x1af   : > { %1162 = vrot.lane.b32.xlu0 %v2626_v37, %s2374_s7  ;;  %2285 = vrot.lane.b32.xlu1 %v2274_v31, %s2377_s13 }
 0x1b3   : > { %2290 = vrot.lane.b32.xlu0 %v2279_v35, %s2377_s13  ;;  %1338 = vrot.lane.b32.xlu1 %v1156_v34, %s2380_s16 }
 0x1b7   : > { %1340 = vrot.lane.b32.xlu0 %v2626_v37, %s2380_s16  ;;  %2295 = vrot.lane.b32.xlu1 %v2274_v31, %s2378_s14 }
 0x1bb   : > { %2300 = vrot.lane.b32.xlu0 %v2279_v35, %s2378_s14  ;;  %1435 = vrot.lane.b32.xlu1 %v1156_v34, %s2383_s19 }
 0x1bf   : > { %1437 = vrot.lane.b32.xlu0 %v2626_v37, %s2383_s19  ;;  %2305 = vrot.lane.b32.xlu1 %v2274_v31, %s2379_s15 }
 0x1c3   : > { %2310 = vrot.lane.b32.xlu0 %v2279_v35, %s2379_s15  ;;  %1532 = vrot.lane.b32.xlu1 %v1156_v34, %s2381_s17  ;;  %s2012_s15 = sshll.u32 %s2733_s23, 4 }
 0x1c7   : > { %1534 = vrot.lane.b32.xlu0 %v2626_v37, %s2381_s17  ;;  %2315 = vrot.lane.b32.xlu1 %v2274_v31, %s2382_s18 }
 0x1cb   : > { %2320 = vrot.lane.b32.xlu0 %v2279_v35, %s2382_s18  ;;  %1629 = vrot.lane.b32.xlu1 %v1156_v34, %s2387_s8  ;;  %s379_s18 = scalar_lea.vmem %s2724_s6, %s2012_s15 }
 0x1cf   : > { %1631 = vrot.lane.b32.xlu0 %v2626_v37, %s2387_s8  ;;  %2325 = vrot.lane.b32.xlu1 %v2274_v31, %s2384_s20 }
 0x1d3   : > { %2330 = vrot.lane.b32.xlu0 %v2279_v35, %s2384_s20  ;;  %1726 = vrot.lane.b32.xlu1 %v1156_v34, %s2385_s27 }
 0x1d7   : > { %1728 = vrot.lane.b32.xlu0 %v2626_v37, %s2385_s27  ;;  %1827 = vperm.xlu1 %2273, %v1823_v19  }
 0x1db   : > { %1832 = vperm.xlu0 %2272, %v1824_v38   ;;  %1841 = vrot.lane.b32.xlu1 %v2494_v6, %s2384_s20 }
 0x1df   : > { %1843 = vrot.lane.b32.xlu0 %v2498_v8, %s2384_s20  ;;  %1845 = vrot.lane.b32.xlu1 %v2496_v7, %s2384_s20 }
 0x1e3   : > { %1847 = vrot.lane.b32.xlu0 %v2500_v9, %s2384_s20 }
 0x219   : > { %v2276_v39 = vpop.permute.xlu1 %2275 }
 0x21a   : > { %v2278_v40 = vunpack.i.h.bf16 %v2276_v39  ;;  %v2277_v41 = vunpack.i.l.bf16 %v2276_v39 }
 0x21c   : > { %v1176_v6 = vsel %vm416_vm4, %v2277_v41, %v2278_v40 }
 0x21d   : > { %v2281_v42 = vpop.permute.xlu0 %2280  ;;  %v1161_v43 = vpop.permute.xlu1 %1160 }
 0x21e   : > { %v2283_v44 = vunpack.i.h.bf16 %v2281_v42  ;;  %v2282_v45 = vunpack.i.l.bf16 %v2281_v42  ;;  %2045 = vmatprep.mubr.msk.f32.mxu1 %vm423_vm5, %v1161_v43 }
 0x220   : > { %v1177_v46 = vsel %vm416_vm4, %v2282_v45, %v2283_v44 }
 0x221   : > { %v1163_v8 = vpop.permute.xlu0 %1162  ;;  %v2286_v47 = vpop.permute.xlu1 %2285  ;;  %v2118_v48 = vpack.c.bf16 %v1177_v46, %v1176_v6 }
 0x222   : > { %v2288_v7 = vunpack.i.h.bf16 %v2286_v47  ;;  %v2287_v49 = vunpack.i.l.bf16 %v2286_v47 }
 0x223   : > { %2119 = vmatprep.subr.bf16.mxu1 %v2118_v48 }
 0x224   : > { %2121 = vmatpush3.bf16.msra.mxu1 %v2118_v48  ;;  %v1350_v53 = vsel %vm598_vm6, %v2287_v49, %v2288_v7 }
 0x225   : > { %v2291_v9 = vpop.permute.xlu0 %2290  ;;  %v1339_v50 = vpop.permute.xlu1 %1338  ;;  %2123 = vmatprep.subr.bf16.mxu1 %v2122_v36 }
 0x226   : > { %v2293_v51 = vunpack.i.h.bf16 %v2291_v9  ;;  %v2292_v52 = vunpack.i.l.bf16 %v2291_v9 }
 0x227   : > { %2046 = vmatmul.mubr.msk.f32.vlgmr.msra.gmra.mrb[8].mxu1 %vm423_vm5, %v1163_v8 }
 0x228   : > { %2125 = vmatpush3.bf16.msra.mxu1 %v2122_v36  ;;  %v1351_v54 = vsel %vm598_vm6, %v2292_v52, %v2293_v51  ;;  %2052 = vmatprep.mubr.msk.f32.mxu1 %vm423_vm5, %v1156_v34 }
 0x229   : > { %v1341_v55 = vpop.permute.xlu0 %1340  ;;  %v2296_v56 = vpop.permute.xlu1 %2295  ;;  %v2126_v57 = vpack.c.bf16 %v1351_v54, %v1350_v53 }
 0x22a   : > { %v2298_v58 = vunpack.i.h.bf16 %v2296_v56  ;;  %v2297_v59 = vunpack.i.l.bf16 %v2296_v56 }
 0x22b   : > { %2127 = vmatprep.subr.bf16.mxu1 %v2126_v57 }
 0x22c   : > { %v1447_v0 = vsel %vm702_vm7, %v2297_v59, %v2298_v58 }
 0x22d   : > { %v2301_v60 = vpop.permute.xlu0 %2300  ;;  %v1436_v61 = vpop.permute.xlu1 %1435 }
 0x22e   : > { %v2303_v62 = vunpack.i.h.bf16 %v2301_v60  ;;  %v2302_v63 = vunpack.i.l.bf16 %v2301_v60 }
 0x22f   : > { %2053 = vmatmul.mubr.msk.f32.vlgmr.msra.gmra.mrb[8].mxu1 %vm423_vm5, %v2626_v37 }
 0x230   : > { %2129 = vmatpush3.bf16.msra.mxu1 %v2126_v57  ;;  %2059 = vmatprep.mubr.msk.f32.mxu1 %vm423_vm5, %v1339_v50  ;;  %v1448_v1 = vsel %vm702_vm7, %v2302_v63, %v2303_v62 }
 0x231   : > { %v1438_v2 = vpop.permute.xlu0 %1437  ;;  %v2306_v3 = vpop.permute.xlu1 %2305  ;;  %v2130_v10 = vpack.c.bf16 %v1448_v1, %v1447_v0 }
 0x232   : > { %v2308_v11 = vunpack.i.h.bf16 %v2306_v3  ;;  %v2307_v12 = vunpack.i.l.bf16 %v2306_v3 }
 0x233   : > { %2131 = vmatprep.subr.bf16.mxu1 %v2130_v10 }
 0x234   : > { %v1544_v16 = vsel %vm806_vm8, %v2307_v12, %v2308_v11 }
 0x235   : > { %v2311_v13 = vpop.permute.xlu0 %2310  ;;  %v1533_v14 = vpop.permute.xlu1 %1532 }
 0x236   : > { %v2313_v4 = vunpack.i.h.bf16 %v2311_v13  ;;  %v2312_v15 = vunpack.i.l.bf16 %v2311_v13 }
 0x237   : > { %2060 = vmatmul.mubr.msk.f32.vlgmr.msra.gmra.mrb[8].mxu1 %vm423_vm5, %v1341_v55 }
 0x238   : > { %2133 = vmatpush3.bf16.msra.mxu1 %v2130_v10  ;;  %2066 = vmatprep.mubr.msk.f32.mxu1 %vm423_vm5, %v1436_v61  ;;  %v1545_v17 = vsel %vm806_vm8, %v2312_v15, %v2313_v4 }
 0x239   : > { %v1535_v18 = vpop.permute.xlu0 %1534  ;;  %v2316_v20 = vpop.permute.xlu1 %2315  ;;  %v2134_v21 = vpack.c.bf16 %v1545_v17, %v1544_v16 }
 0x23a   : > { %v2318_v5 = vunpack.i.h.bf16 %v2316_v20  ;;  %v2317_v22 = vunpack.i.l.bf16 %v2316_v20 }
 0x23b   : > { %2135 = vmatprep.subr.bf16.mxu1 %v2134_v21 }
 0x23c   : > { %v1641_v27 = vsel %vm910_vm9, %v2317_v22, %v2318_v5 }
 0x23d   : > { %v2321_v23 = vpop.permute.xlu0 %2320  ;;  %v1630_v24 = vpop.permute.xlu1 %1629 }
 0x23e   : > { %v2323_v25 = vunpack.i.h.bf16 %v2321_v23  ;;  %v2322_v26 = vunpack.i.l.bf16 %v2321_v23 }
 0x23f   : > { %2067 = vmatmul.mubr.msk.f32.vlgmr.msra.gmra.mrb[8].mxu1 %vm423_vm5, %v1438_v2 }
 0x240   : > { %2137 = vmatpush3.bf16.msra.mxu1 %v2134_v21  ;;  %2073 = vmatprep.mubr.msk.f32.mxu1 %vm423_vm5, %v1533_v14  ;;  %v1642_v28 = vsel %vm910_vm9, %v2322_v26, %v2323_v25 }
 0x241   : > { %v1632_v29 = vpop.permute.xlu0 %1631  ;;  %v2326_v30 = vpop.permute.xlu1 %2325  ;;  %v2138_v31 = vpack.c.bf16 %v1642_v28, %v1641_v27 }
 0x242   : > { %v2328_v32 = vunpack.i.h.bf16 %v2326_v30  ;;  %v2327_v33 = vunpack.i.l.bf16 %v2326_v30 }
 0x243   : > { %2139 = vmatprep.subr.bf16.mxu1 %v2138_v31 }
 0x244   : > { %v1738_v37 = vsel %vm1014_vm10, %v2327_v33, %v2328_v32 }
 0x245   : > { %v2331_v34 = vpop.permute.xlu0 %2330  ;;  %v1727_v39 = vpop.permute.xlu1 %1726 }
 0x246   : > { %v2333_v35 = vunpack.i.h.bf16 %v2331_v34  ;;  %v2332_v36 = vunpack.i.l.bf16 %v2331_v34 }
 0x247   : > { %2074 = vmatmul.mubr.msk.f32.vlgmr.msra.gmra.mrb[8].mxu1 %vm423_vm5, %v1535_v18 }
 0x248   : > { %2141 = vmatpush3.bf16.msra.mxu1 %v2138_v31  ;;  %2080 = vmatprep.mubr.msk.f32.mxu1 %vm423_vm5, %v1630_v24  ;;  %v1739_v19 = vsel %vm1014_vm10, %v2332_v36, %v2333_v35 }
 0x249   : > { %v2142_v38 = vpack.c.bf16 %v1739_v19, %v1738_v37  ;;  %v1729_v40 = vpop.permute.xlu0 %1728 }
 0x24b   : > { %2143 = vmatprep.subr.bf16.mxu1 %v2142_v38 }
 0x24f   : > { %2081 = vmatmul.mubr.msk.f32.vlgmr.msra.gmra.mrb[8].mxu1 %vm423_vm5, %v1632_v29 }
 0x250   : > { %2145 = vmatpush3.bf16.msra.mxu1 %v2142_v38  ;;  %2087 = vmatprep.mubr.msk.f32.mxu1 %vm423_vm5, %v1727_v39 }
 0x256   : > { %v1828_v41 = vpop.permute.xlu1 %1827 }
 0x257   : > { %2088 = vmatmul.mubr.msk.f32.vlgmr.msra.gmra.mrb[8].mxu1 %vm423_vm5, %v1729_v40 }
 0x25a   : > { %v1833_v42 = vpop.permute.xlu0 %1832  ;;  %v1842_v44 = vpop.permute.xlu1 %1841 }
 0x25e   : > { %v1844_v43 = vpop.permute.xlu0 %1843  ;;  %v1846_v6 = vpop.permute.xlu1 %1845 }
 0x25f   : > { %v1849_v49 = vsel %vm1014_vm10, %v1842_v44, %v1844_v43 }
 0x262   : > { %v1848_v45 = vpop.permute.xlu0 %1847 }
 0x263   : > { %v1850_v8 = vsel %vm1014_vm10, %v1846_v6, %v1848_v45 }
 0x32a   : > { %v2089_v46 = vpop.f32.mrb[8].mxu1 }
 0x32b   : > { %v1836_v47 = vadd.f32 %v2089_v46, %v1833_v42  ;;  %v1812_v48 = vpop.f32.mrb[9].mxu1 }
 0x32c   : > { %v1835_v7 = vadd.f32 %v1828_v41, %v1812_v48 }
 0x32d   : > { %v1854_v9 = vadd.f32 %v1850_v8, %v1836_v47 }
 0x32e   : > { %v1853_v50 = vadd.f32 %v1849_v49, %v1835_v7 }
 0x32f   : > { %1856 = vst [vmem:[%s379_s18 + $0x8] sm:$0xff] %v1854_v9 }
 0x330   : > { %1855 = vst [vmem:[%s379_s18] sm:$0xff] %v1853_v50 }
 0x331 PF: > { %s16_s25 = sadd.s32 1, %s2372_s25   ;;  %s2726_s21 = smov %s2360_s22 }
 0x332   : > { %p13_p10 = scmp.ge.s32.totalorder %s16_s25, 4   ;;  %s2727_s22 = smov %s2462_s30 }
 0x333   : > { %s2728_s23 = smov %s2368_s24  ;;  %s2729_s24 = smov %s2731_s26 }
 0x334   :  { %15 = sbr.rel (!%p13_p10) target bundleno = 3 (0x3), region = 163 }

// kernel: generator_forward.22
= control target key start
LH: loop header
LB: loop body
LE: loop exit
PB: predicated region body
PF: predicated region fallthrough
CT: control target
= control target key end

     0   :  { %s2435_s21 = smov 0   ;;  %s2437_s22 = smov 0   ;;  %s2711_s0 = inlined_call_operand.vmem [shape: f32[2,16,256], index: 0, kind: input, shape index: {}, may-alias: {0,1}]   ;;  %s2712_s1 = inlined_call_operand.vmem [shape: f32[2,16,256], index: 1, kind: input, shape index: {}, may-alias: {0,1}]   ;;  %s2713_s2 = inlined_call_operand.vmem [shape: f32[16,112], index: 2, kind: input, shape index: {}]   ;;  %s2714_s3 = inlined_call_operand.vmem [shape: f32[16,1], index: 3, kind: input, shape index: {}]   ;;  %s2715_s4 = inlined_call_operand.vmem [shape: f32[16,112], index: 4, kind: input, shape index: {}]   ;;  %s2716_s5 = inlined_call_operand.vmem [shape: f32[16,1], index: 5, kind: input, shape index: {}]   ;;  %s2717_s6 = inlined_call_operand.vmem [shape: f32[2,16,32], index: 6, kind: output, shape index: {}]  }
   0x1   :  { %s2439_s23 = smov 0   ;;  %s2441_s24 = smov 0  }
   0x2   :  { %s2443_s25 = smov 0  }
   0x3 LB: > { %s28_s26 = sadd.s32 1, %s2376_s24  ;;  %p44_p1 = scmp.ne.s32.totalorder %s2368_s22, %s2364_s21  ;;  %s2380_s25 = sphi %s2443_s25, %s16_s25   ;;  %s2376_s24 = sphi %s2441_s24, %s2722_s24   ;;  %s2372_s23 = sphi %s2439_s23, %s2721_s23   ;;  %s2368_s22 = sphi %s2437_s22, %s2720_s22   ;;  %s2364_s21 = sphi %s2435_s21, %s2719_s21  }
   0x4   : > { %p30_p0 = scmp.ge.s32.totalorder %s28_s26, 2  ;;  %p45_p2 = scmp.eq.s32.totalorder %s2380_s25, 0 }
   0x5   : > { %s37_s29 = sadd.s32 1, %s2368_s22  ;;  %p1970_p5 = scmp.ge.s32.totalorder %s2380_s25, 2 }
   0x6   : > { %s2724_s26 = smov (%p30_p0, %s28_s26), 0  ;;  %p2466_p3 = por %p45_p2, %p44_p1 }
   0x7   : > { %s32_s28 = ssub.s32 %s2376_s24, %s2724_s26  ;;  %224 = sbr.rel (%p1970_p5) target bundleno = 28 (0x1c), region = 32 }
   0x8   : > { %p35_p4 = scmp.eq.s32.totalorder %s32_s28, 0 }
   0xa   : > { %s2474_s30 = scalar_select %p35_p4, %s2368_s22, %s37_s29  }
   0xe   : > { %227 = sbr.rel (!%p2466_p3) target bundleno = 21 (0x15), region = 36  ;;  %s229_s7 = sand.u32 (%p2466_p3), 1, %s2368_s22  }
   0xf   : > { %s2014_s8 = sshll.u32 (%p2466_p3), %s2376_s24, 5  ;;  %s1971_s9 = sshll.u32 (%p2466_p3), %s229_s7, 4 }
  0x10   : > { %s235_s12 = scalar_lea.vmem (%p2466_p3), %s2711_s0, %s2014_s8  ;;  %s231_s13 = scalar_lea.vmem (%p2466_p3), [#allocation2], %s1971_s9 }
  0x11   : > { %v265_v0 = vld [vmem:[%s235_s12] sm:$0xff] (%p2466_p3)  ;;  %v267_v1 = vld [vmem:[%s235_s12 + $0x10] sm:$0xff] (%p2466_p3) }
  0x12   : > { %266 = vst [vmem:[%s231_s13] sm:$0xff] (%p2466_p3), %v265_v0  ;;  %268 = vst [vmem:[%s231_s13 + $0x8] sm:$0xff] (%p2466_p3), %v267_v1 }
  0x15 PF: > { %274 = sbr.rel (!%p2466_p3) target bundleno = 28 (0x1c), region = 74  ;;  %s276_s14 = sand.u32 (%p2466_p3), 1, %s2368_s22  }
  0x16   : > { %s2015_s15 = sshll.u32 (%p2466_p3), %s2376_s24, 5  ;;  %s1974_s16 = sshll.u32 (%p2466_p3), %s276_s14, 4 }
  0x17   : > { %s1899_s19 = scalar_lea.vmem (%p2466_p3), %s2712_s1, %s2015_s15  ;;  %s278_s20 = scalar_lea.vmem (%p2466_p3), [#allocation3], %s1974_s16 }
  0x18   : > { %v1977_v2 = vld [vmem:[%s1899_s19 + $0x8] sm:$0xff] (%p2466_p3)  ;;  %v1978_v3 = vld [vmem:[%s1899_s19 + $0x18] sm:$0xff] (%p2466_p3) }
  0x19   : > { %314 = vst [vmem:[%s278_s20] sm:$0xff] (%p2466_p3), %v1977_v2  ;;  %316 = vst [vmem:[%s278_s20 + $0x8] sm:$0xff] (%p2466_p3), %v1978_v3 }
  0x1c PF: > { %p1979_p6 = scmp.ge.s32.totalorder %s2380_s25, 1  ;;  %p321_p7 = scmp.lt.s32.totalorder %s2380_s25, 3 }
  0x1e   : > { %p322_p8 = pnand %p1979_p6, %p321_p7 }
  0x1f   : > { %v2496_v4 = vld [vmem:[%s2713_s2] sm:$0xff] (!%p322_p8)  ;;  %s328_s29 = sand.u32 (!%p322_p8), 1, %s2364_s21   ;;  %s2382_s7 = smov (!%p322_p8), 112   ;;  %v2504_v5 = vld [vmem:[%s2713_s2 + $0x8] sm:$0xff] (!%p322_p8)  ;;  %v2383_v19 = vmov (!%p322_p8), 0.0   ;;  %v2394_v23 = vmov (!%p322_p8), 0  }
  0x20   : > { %325 = sbr.rel (%p322_p8) target bundleno = 817 (0x331), region = 112  ;;  %400 = vrot.lane.b32.xlu1 (!%p322_p8), %v2496_v4, %s2382_s7  ;;  %s1980_s8 = sshll.u32 (!%p322_p8), %s328_s29, 4  ;;  %492 = vmatprep.mubr.f32.mxu0 (!%p322_p8), %v2383_v19  ;;  %v1107_v24 = vld [vmem:[%s2714_s3 + $0x8] sm:$0xff] (!%p322_p8)  ;;  %v1106_v25 = vld [vmem:[%s2714_s3] sm:$0xff] (!%p322_p8)  ;;  %vm416_vm4 = vcmask (!%p322_p8), 1022976   ;;  %vm423_vm5 = vcmask (!%p322_p8), 130048  }
  0x21   : > { %s330_s11 = scalar_lea.vmem (!%p322_p8), [#allocation2], %s1980_s8  ;;  %s337_s12 = scalar_lea.vmem (!%p322_p8), [#allocation3], %s1980_s8  ;;  %777 = vmatprep.mubr.f32.mxu1 (!%p322_p8), %v2383_v19  ;;  %2280 = vset.pattern.permute.xlu0 (!%p322_p8), %v2394_v23  ;;  %vm598_vm6 = vcmask (!%p322_p8), 998400   ;;  %vm702_vm7 = vcmask (!%p322_p8), 973824   ;;  %vm806_vm8 = vcmask (!%p322_p8), 949248   ;;  %vm910_vm9 = vcmask (!%p322_p8), 924672  }
  0x22   : > { %v2506_v6 = vld [vmem:[%s330_s11] sm:$0xff] (!%p322_p8)  ;;  %v2508_v7 = vld [vmem:[%s330_s11 + $0x8] sm:$0xff] (!%p322_p8)  ;;  %s2384_s21 = smov (!%p322_p8), 125   ;;  %s2385_s13 = smov (!%p322_p8), 122   ;;  %2281 = vset.pattern.permute.xlu1 (!%p322_p8), %v2394_v23  ;;  %vm1014_vm10 = vcmask (!%p322_p8), 900096  }
  0x23   : > { %v2510_v8 = vld [vmem:[%s337_s12] sm:$0xff] (!%p322_p8)  ;;  %v2512_v9 = vld [vmem:[%s337_s12 + $0x8] sm:$0xff] (!%p322_p8)  ;;  %vm384_vm0 = vcmp.ge.f32.partialorder (!%p322_p8), %v2506_v6, 0.0  ;;  %v388_v10 = vmul.f32 (!%p322_p8), 0.1, %v2506_v6  ;;  %vm386_vm2 = vcmp.ge.f32.partialorder (!%p322_p8), %v2508_v7, 0.0 }
  0x24   : > { %vm385_vm1 = vcmp.ge.f32.partialorder (!%p322_p8), %v2510_v8, 0.0  ;;  %v389_v11 = vmul.f32 (!%p322_p8), 0.1, %v2510_v8  ;;  %402 = vrot.lane.b32.xlu1 (!%p322_p8), %v2504_v5, %s2382_s7  ;;  %vm387_vm3 = vcmp.ge.f32.partialorder (!%p322_p8), %v2512_v9, 0.0  ;;  %v390_v12 = vmul.f32 (!%p322_p8), 0.1, %v2508_v7 }
  0x25   : > { %v2524_v13 = vsel (!%p322_p8), %vm384_vm0, %v2506_v6, %v388_v10  ;;  %v391_v14 = vmul.f32 (!%p322_p8), 0.1, %v2512_v9  ;;  %s2386_s14 = smov (!%p322_p8), 119   ;;  %s2387_s15 = smov (!%p322_p8), 116   ;;  %vm1176_vm0 = vcmask (!%p322_p8), 1039360  }
  0x26   : > { %v2528_v15 = vsel (!%p322_p8), %vm385_vm1, %v2510_v8, %v389_v11  ;;  %v2531_v16 = vsel (!%p322_p8), %vm386_vm2, %v2508_v7, %v390_v12  ;;  %s2388_s16 = smov (!%p322_p8), 96   ;;  %s2389_s17 = smov (!%p322_p8), 64   ;;  %vm1351_vm1 = vcmask (!%p322_p8), 1031168   ;;  %vm1546_vm2 = vcmask (!%p322_p8), 1014784  }
  0x27   : > { %v2220_v17 = vpack.i.bf16 %v2528_v15, %v2524_v13  ;;  %v2536_v18 = vsel %vm387_vm3, %v2512_v9, %v391_v14  ;;  %v2100_v22 = vpack.c.bf16 %v2531_v16, %v2524_v13  ;;  %s2390_s18 = smov 113   ;;  %s2391_s19 = smov 80   ;;  %vm1644_vm3 = vcmask 1006592  }
  0x28   : > { %v2235_v20 = vpack.i.bf16 %v2536_v18, %v2531_v16  ;;  %v2098_v21 = vpack.c.bf16 %v2536_v18, %v2528_v15  ;;  %s2392_s20 = smov 110   ;;  %s2393_s27 = smov 32  }
  0x29   : > { %2221 = vrot.lane.b32.xlu0 %v2220_v17, %s2384_s21  ;;  %s2395_s8 = smov 48   ;;  %s2396_s11 = smov 127  }
  0x2a   : > { %2236 = vrot.lane.b32.xlu1 %v2235_v20, %s2385_s13  ;;  %s2397_s28 = smov 126   ;;  %p372_p9 = scmp.lt.s32.totalorder %s2372_s23, 1 }
  0x2c   : > { %s2726_s23 = smov (!%p372_p9, %s2372_s23), 1 }
  0x2d   : > { %2226 = vrot.lane.b32.xlu0 %v2235_v20, %s2384_s21 }
  0x2e   : > { %2241 = vrot.lane.b32.xlu1 %v2220_v17, %s2386_s14 }
  0x31   : > { %2231 = vrot.lane.b32.xlu0 %v2220_v17, %s2385_s13 }
  0x32   : > { %2251 = vrot.lane.b32.xlu1 %v2220_v17, %s2387_s15 }
  0x35   : > { %586 = vrot.lane.b32.xlu0 %v2496_v4, %s2388_s16 }
  0x36   : > { %588 = vrot.lane.b32.xlu1 %v2504_v5, %s2388_s16 }
  0x39   : > { %2246 = vrot.lane.b32.xlu0 %v2235_v20, %s2386_s14 }
  0x3a   : > { %794 = vrot.lane.b32.xlu1 %v2496_v4, %s2389_s17 }
  0x3d   : > { %2256 = vrot.lane.b32.xlu0 %v2235_v20, %s2387_s15 }
  0x3e   : > { %2266 = vrot.lane.b32.xlu1 %v2235_v20, %s2390_s18 }
  0x41   : > { %690 = vrot.lane.b32.xlu0 %v2496_v4, %s2391_s19 }
  0x42   : > { %2271 = vrot.lane.b32.xlu1 %v2220_v17, %s2392_s20 }
  0x45   : > { %2261 = vrot.lane.b32.xlu0 %v2220_v17, %s2390_s18 }
  0x46   : > { %796 = vrot.lane.b32.xlu1 %v2504_v5, %s2389_s17 }
  0x49   : > { %692 = vrot.lane.b32.xlu0 %v2504_v5, %s2391_s19 }
  0x4a   : > { %1002 = vrot.lane.b32.xlu1 %v2496_v4, %s2393_s27 }
  0x4d   : > { %2276 = vrot.lane.b32.xlu0 %v2235_v20, %s2392_s20 }
  0x4e   : > { %1004 = vrot.lane.b32.xlu1 %v2504_v5, %s2393_s27 }
  0x51   : > { %898 = vrot.lane.b32.xlu0 %v2496_v4, %s2395_s8 }
  0x52   : > { %1115 = vperm.xlu1 %2281, %v1107_v24  }
  0x55   : > { %900 = vrot.lane.b32.xlu0 %v2504_v5, %s2395_s8 }
  0x59   : > { %1110 = vperm.xlu0 %2280, %v1106_v25  }
  0x92   : > { %v401_v26 = vpop.permute.xlu1 %400 }
  0x96   : > { %v403_v27 = vpop.permute.xlu1 %402 }
  0x9b   : > { %v2222_v28 = vpop.permute.xlu0 %2221 }
  0x9c   : > { %v2237_v29 = vpop.permute.xlu1 %2236  ;;  %v2224_v30 = vunpack.i.h.bf16 %v2222_v28  ;;  %v2223_v31 = vunpack.i.l.bf16 %v2222_v28 }
  0x9d   : > { %v2239_v41 = vunpack.i.h.bf16 %v2237_v29  ;;  %v2238_v44 = vunpack.i.l.bf16 %v2237_v29 }
  0x9e   : > { %v417_v37 = vsel %vm416_vm4, %v2223_v31, %v2224_v30 }
  0x9f   : > { %v2227_v32 = vpop.permute.xlu0 %2226  ;;  %v600_v51 = vsel %vm598_vm6, %v2238_v44, %v2239_v41 }
  0xa0   : > { %v2229_v33 = vunpack.i.h.bf16 %v2227_v32  ;;  %v2228_v34 = vunpack.i.l.bf16 %v2227_v32  ;;  %v2242_v35 = vpop.permute.xlu1 %2241 }
  0xa1   : > { %v2244_v48 = vunpack.i.h.bf16 %v2242_v35  ;;  %v2243_v49 = vunpack.i.l.bf16 %v2242_v35 }
  0xa2   : > { %v2094_v36 = vpack.c.bf16 %v2229_v33, %v2224_v30  ;;  %v418_v38 = vsel %vm416_vm4, %v2228_v34, %v2229_v33 }
  0xa3   : > { %v2232_v39 = vpop.permute.xlu0 %2231  ;;  %v2096_v40 = vpack.c.bf16 %v418_v38, %v417_v37  ;;  %v703_v56 = vsel %vm702_vm7, %v2243_v49, %v2244_v48 }
  0xa4   : > { %v2234_v42 = vunpack.i.h.bf16 %v2232_v39  ;;  %2095 = vmatprep.subr.bf16.mxu0 %v2094_v36  ;;  %v2252_v43 = vpop.permute.xlu1 %2251  ;;  %v2233_v47 = vunpack.i.l.bf16 %v2232_v39 }
  0xa5   : > { %2097 = vmatpush1.bf16.msra.mxu0 %v2096_v40  ;;  %v2254_v58 = vunpack.i.h.bf16 %v2252_v43  ;;  %v2253_v0 = vunpack.i.l.bf16 %v2252_v43 }
  0xa6   : > { %2099 = vmatprep.subr.bf16.mxu0 %v2098_v21  ;;  %v2102_v46 = vpack.c.bf16 %v2239_v41, %v2234_v42  ;;  %v599_v53 = vsel %vm598_vm6, %v2233_v47, %v2234_v42 }
  0xa7   : > { %v587_v45 = vpop.permute.xlu0 %586  ;;  %v2104_v61 = vpack.c.bf16 %v600_v51, %v599_v53  ;;  %v807_v12 = vsel %vm806_vm8, %v2253_v0, %v2254_v58 }
  0xa8   : > { %1984 = vmatmul.mubr.msk.f32.vlgmr.msra.gmra.mrb[0].mxu0 %vm423_vm5, %v401_v26  ;;  %v589_v50 = vpop.permute.xlu1 %588 }
  0xa9   : > { %2101 = vmatpush1.bf16.msra.mxu0 %v2100_v22  ;;  %498 = vmatprep.mubr.f32.mxu0 %v2383_v19 }
  0xaa   : > { %2103 = vmatprep.subr.bf16.mxu0 %v2102_v46 }
  0xab   : > { %v2247_v52 = vpop.permute.xlu0 %2246 }
  0xac   : > { %v2249_v54 = vunpack.i.h.bf16 %v2247_v52  ;;  %v2248_v55 = vunpack.i.l.bf16 %v2247_v52  ;;  %1985 = vmatmul.mubr.msk.f32.gmra.mrb[2].mxu0 %vm423_vm5, %v403_v27  ;;  %v795_v57 = vpop.permute.xlu1 %794 }
  0xad   : > { %573 = vmatprep.mubr.f32.mxu0 %v2383_v19 }
  0xae   : > { %v2106_v59 = vpack.c.bf16 %v2249_v54, %v2244_v48  ;;  %v704_v60 = vsel %vm702_vm7, %v2248_v55, %v2249_v54 }
  0xaf   : > { %v2257_v62 = vpop.permute.xlu0 %2256  ;;  %v2108_v63 = vpack.c.bf16 %v704_v60, %v703_v56 }
  0xb0   : > { %v2259_v1 = vunpack.i.h.bf16 %v2257_v62  ;;  %v2258_v2 = vunpack.i.l.bf16 %v2257_v62  ;;  %1986 = vmatmul.mubr.msk.f32.vlgmr.msra.gmra.mrb[4].mxu0 %vm423_vm5, %v2496_v4  ;;  %2107 = vmatprep.subr.bf16.mxu1 %v2106_v59  ;;  %v2267_v3 = vpop.permute.xlu1 %2266 }
  0xb1   : > { %2105 = vmatpush1.bf16.msra.mxu0 %v2104_v61  ;;  %2109 = vmatpush1.bf16.msra.mxu1 %v2108_v63  ;;  %v2269_v14 = vunpack.i.h.bf16 %v2267_v3  ;;  %v2268_v4 = vunpack.i.l.bf16 %v2267_v3 }
  0xb2   : > { %v2110_v10 = vpack.c.bf16 %v2259_v1, %v2254_v58  ;;  %579 = vmatprep.mubr.f32.mxu0 %v2383_v19  ;;  %v808_v13 = vsel %vm806_vm8, %v2258_v2, %v2259_v1 }
  0xb3   : > { %v691_v11 = vpop.permute.xlu0 %690  ;;  %v2112_v15 = vpack.c.bf16 %v808_v13, %v807_v12  ;;  %v912_v17 = vsel %vm910_vm9, %v2268_v4, %v2269_v14 }
  0xb4   : > { %1987 = vmatmul.mubr.msk.f32.gmra.mrb[6].mxu0 %vm423_vm5, %v2504_v5  ;;  %1990 = vmatmul.mubr.msk.f32.vlgmr.msra.gmra.mrb[0].mxu1 %vm423_vm5, %v691_v11  ;;  %v2272_v21 = vpop.permute.xlu1 %2271 }
  0xb5   : > { %2111 = vmatprep.subr.bf16.mxu0 %v2110_v10  ;;  %673 = vmatprep.mubr.f32.mxu0 %v2383_v19  ;;  %v2274_v25 = vunpack.i.h.bf16 %v2272_v21  ;;  %v2273_v26 = vunpack.i.l.bf16 %v2272_v21 }
  0xb6   : > { %783 = vmatprep.mubr.f32.mxu1 %v2383_v19 }
  0xb7   : > { %v2262_v16 = vpop.permute.xlu0 %2261  ;;  %v1015_v29 = vsel %vm1014_vm10, %v2273_v26, %v2274_v25 }
  0xb8   : > { %v2264_v18 = vunpack.i.h.bf16 %v2262_v16  ;;  %v2263_v20 = vunpack.i.l.bf16 %v2262_v16  ;;  %1988 = vmatmul.mubr.msk.f32.vlgmr.msra.gmra.mrb[8].mxu0 %vm423_vm5, %v587_v45  ;;  %v797_v27 = vpop.permute.xlu1 %796 }
  0xb9   : > { %2113 = vmatpush1.bf16.msra.mxu0 %v2112_v15  ;;  %679 = vmatprep.mubr.f32.mxu0 %v2383_v19 }
  0xba   : > { %v2114_v5 = vpack.c.bf16 %v2269_v14, %v2264_v18  ;;  %v911_v22 = vsel %vm910_vm9, %v2263_v20, %v2264_v18 }
  0xbb   : > { %v2116_v23 = vpack.c.bf16 %v912_v17, %v911_v22  ;;  %v693_v24 = vpop.permute.xlu0 %692 }
  0xbc   : > { %1989 = vmatmul.mubr.msk.f32.gmra.mrb[10].mxu0 %vm423_vm5, %v589_v50  ;;  %1991 = vmatmul.mubr.msk.f32.gmra.mrb[2].mxu1 %vm423_vm5, %v693_v24  ;;  %v1003_v36 = vpop.permute.xlu1 %1002 }
  0xbd   : > { %2115 = vmatprep.subr.bf16.mxu1 %v2114_v5  ;;  %881 = vmatprep.mubr.f32.mxu0 %v2383_v19 }
  0xbe   : > { %2117 = vmatpush1.bf16.msra.mxu1 %v2116_v23  ;;  %985 = vmatprep.mubr.f32.mxu1 %v2383_v19 }
  0xbf   : > { %v2277_v28 = vpop.permute.xlu0 %2276 }
  0xc0   : > { %v2279_v30 = vunpack.i.h.bf16 %v2277_v28  ;;  %v2278_v31 = vunpack.i.l.bf16 %v2277_v28  ;;  %1992 = vmatmul.mubr.msk.f32.vlgmr.msra.gmra.mrb[12].mxu0 %vm423_vm5, %v795_v57  ;;  %v1005_v38 = vpop.permute.xlu1 %1004  ;;  %v1124_v57 = vlaneseq }
  0xc1   : > { %887 = vmatprep.mubr.f32.mxu0 %v2383_v19 }
  0xc2   : > { %v2118_v32 = vpack.c.bf16 %v2279_v30, %v2274_v25  ;;  %v1016_v33 = vsel %vm1014_vm10, %v2278_v31, %v2279_v30  ;;  %v1125_v63 = vand.u32 127, %v1124_v57 }
  0xc3   : > { %v2120_v34 = vpack.c.bf16 %v1016_v33, %v1015_v29  ;;  %v899_v35 = vpop.permute.xlu0 %898 }
  0xc4   : > { %1993 = vmatmul.mubr.msk.f32.gmra.mrb[14].mxu0 %vm423_vm5, %v797_v27  ;;  %1994 = vmatmul.mubr.msk.f32.vlgmr.msra.gmra.mrb[4].mxu1 %vm423_vm5, %v899_v35  ;;  %v1128_v10 = vadd.s32 4294967293, %v1125_v63 }
  0xc5   : > { %2119 = vmatprep.subr.bf16.mxu0 %v2118_v32  ;;  %991 = vmatprep.mubr.f32.mxu1 %v2383_v19 }
  0xc6   : > { %2121 = vmatpush1.bf16.msra.mxu0 %v2120_v34  ;;  %1089 = vmatprep.mubr.f32.mxu0 %v2383_v19  ;;  %vm1130_vm11 = vcmp.ge.s32.totalorder %v1128_v10, 0  ;;  %vm1132_vm12 = vcmp.lt.s32.totalorder %v1128_v10, 32  ;;  %v2619_v34 = vld [vmem:[%s2715_s4] sm:$0xff] }
  0xc7   : > { %v901_v37 = vpop.permute.xlu0 %900  ;;  %vm1134_vm13 = vmand %vm1130_vm11, %vm1132_vm12 }
  0xc8   : > { %1995 = vmatmul.mubr.msk.f32.gmra.mrb[6].mxu1 %vm423_vm5, %v901_v37  ;;  %v2627_v37 = vld [vmem:[%s2715_s4 + $0x8] sm:$0xff] }
  0xc9   : > { %1996 = vmatmul.mubr.msk.f32.vlgmr.msra.gmra.mrb[16].mxu0 %vm423_vm5, %v1003_v36 }
  0xca   : > { %1095 = vmatprep.mubr.f32.mxu0 %v2383_v19 }
  0xcd   : > { %1997 = vmatmul.mubr.msk.f32.gmra.mrb[18].mxu0 %vm423_vm5, %v1005_v38  ;;  %v1828_v38 = vld [vmem:[%s2716_s5 + $0x8] sm:$0xff] }
  0xd1   : > { %v1116_v23 = vpop.permute.xlu1 %1115 }
  0xd8   : > { %v1111_v15 = vpop.permute.xlu0 %1110 }
 0x17b   : > { %v494_v39 = vpop.f32.mrb[0].mxu0 }
 0x17c   : > { %v496_v40 = vpop.f32.mrb[1].mxu0 }
 0x17f   : > { %v500_v41 = vpop.f32.mrb[2].mxu0 }
 0x180   : > { %v502_v42 = vpop.f32.mrb[3].mxu0 }
 0x183   : > { %v575_v43 = vpop.f32.mrb[4].mxu0 }
 0x184   : > { %v576_v44 = vadd.f32 %v575_v43, %v494_v39  ;;  %v577_v45 = vpop.f32.mrb[5].mxu0 }
 0x187   : > { %v581_v46 = vpop.f32.mrb[6].mxu0  ;;  %v779_v47 = vpop.f32.mrb[0].mxu1 }
 0x188   : > { %v582_v48 = vadd.f32 %v581_v46, %v500_v41  ;;  %v583_v49 = vpop.f32.mrb[7].mxu0  ;;  %v781_v50 = vpop.f32.mrb[1].mxu1 }
 0x18b   : > { %v675_v51 = vpop.f32.mrb[8].mxu0 }
 0x18c   : > { %v686_v52 = vadd.f32 %v675_v51, %v576_v44  ;;  %v677_v53 = vpop.f32.mrb[9].mxu0 }
 0x18e   : > { %v790_v54 = vadd.f32 %v779_v47, %v686_v52 }
 0x18f   : > { %v681_v55 = vpop.f32.mrb[10].mxu0  ;;  %v785_v56 = vpop.f32.mrb[2].mxu1 }
 0x190   : > { %v688_v58 = vadd.f32 %v681_v55, %v582_v48  ;;  %v683_v59 = vpop.f32.mrb[11].mxu0  ;;  %v787_v60 = vpop.f32.mrb[3].mxu1 }
 0x192   : > { %v792_v61 = vadd.f32 %v785_v56, %v688_v58 }
 0x193   : > { %v883_v62 = vpop.f32.mrb[12].mxu0 }
 0x194   : > { %v894_v0 = vadd.f32 %v883_v62, %v790_v54  ;;  %v885_v1 = vpop.f32.mrb[13].mxu0 }
 0x197   : > { %v889_v2 = vpop.f32.mrb[14].mxu0  ;;  %v987_v3 = vpop.f32.mrb[4].mxu1 }
 0x198   : > { %v896_v11 = vadd.f32 %v889_v2, %v792_v61  ;;  %v998_v12 = vadd.f32 %v987_v3, %v894_v0  ;;  %v891_v13 = vpop.f32.mrb[15].mxu0  ;;  %v989_v14 = vpop.f32.mrb[5].mxu1 }
 0x19b   : > { %v993_v4 = vpop.f32.mrb[6].mxu1 }
 0x19c   : > { %v1000_v16 = vadd.f32 %v993_v4, %v896_v11  ;;  %v1091_v17 = vpop.f32.mrb[16].mxu0  ;;  %v995_v18 = vpop.f32.mrb[7].mxu1 }
 0x19d   : > { %v1102_v20 = vadd.f32 %v1091_v17, %v998_v12  ;;  %v1093_v21 = vpop.f32.mrb[17].mxu0 }
 0x19f   : > { %v1118_v5 = vadd.f32 %v1111_v15, %v1102_v20 }
 0x1a0   : > { %v1097_v22 = vpop.f32.mrb[18].mxu0 }
 0x1a1   : > { %v1140_v24 = vsel %vm1134_vm13, %v1118_v5, 0.0  ;;  %v1104_v25 = vadd.f32 %v1097_v22, %v1000_v16  ;;  %v1099_v26 = vpop.f32.mrb[19].mxu0 }
 0x1a2   : > { %vm1144_vm14 = vcmp.ge.f32.partialorder %v1140_v24, 0.0  ;;  %v1148_v27 = vmul.f32 0.1, %v1140_v24 }
 0x1a3   : > { %v1120_v28 = vadd.f32 %v1116_v23, %v1104_v25 }
 0x1a4   : > { %v1152_v29 = vsel %vm1144_vm14, %v1140_v24, %v1148_v27 }
 0x1a5   : > { %v1142_v30 = vsel %vm1134_vm13, %v1120_v28, 0.0  ;;  %v2282_v31 = vpack.i.bf16 %v2383_v19, %v1152_v29 }
 0x1a6   : > { %vm1146_vm15 = vcmp.ge.f32.partialorder %v1142_v30, 0.0  ;;  %v1150_v32 = vmul.f32 0.1, %v1142_v30 }
 0x1a7   : > { %2283 = vrot.lane.b32.xlu1 %v2282_v31, %s2396_s11 }
 0x1a8   : > { %v1154_v33 = vsel %vm1146_vm15, %v1142_v30, %v1150_v32 }
 0x1a9   : > { %v2287_v35 = vpack.i.bf16 %v2383_v19, %v1154_v33  ;;  %v2126_v36 = vpack.c.bf16 %v1154_v33, %v1152_v29  ;;  %v1827_v19 = vld [vmem:[%s2716_s5] sm:$0xff] }
 0x1ab   : > { %2288 = vrot.lane.b32.xlu0 %v2287_v35, %s2396_s11  ;;  %1160 = vrot.lane.b32.xlu1 %v2619_v34, %s2382_s7 }
 0x1af   : > { %1162 = vrot.lane.b32.xlu0 %v2627_v37, %s2382_s7  ;;  %2293 = vrot.lane.b32.xlu1 %v2282_v31, %s2397_s28  ;;  %s2398_s7 = smov 124  }
 0x1b3   : > { %2298 = vrot.lane.b32.xlu0 %v2287_v35, %s2397_s28  ;;  %1339 = vrot.lane.b32.xlu1 %v2619_v34, %s2388_s16 }
 0x1b7   : > { %1341 = vrot.lane.b32.xlu0 %v2627_v37, %s2388_s16  ;;  %2303 = vrot.lane.b32.xlu1 %v2282_v31, %s2384_s21  ;;  %s2399_s16 = smov 123  }
 0x1bb   : > { %2308 = vrot.lane.b32.xlu0 %v2287_v35, %s2384_s21  ;;  %1437 = vrot.lane.b32.xlu1 %v2619_v34, %s2391_s19 }
 0x1bf   : > { %1439 = vrot.lane.b32.xlu0 %v2627_v37, %s2391_s19  ;;  %2313 = vrot.lane.b32.xlu1 %v2282_v31, %s2398_s7 }
 0x1c3   : > { %2318 = vrot.lane.b32.xlu0 %v2287_v35, %s2398_s7  ;;  %1534 = vrot.lane.b32.xlu1 %v2619_v34, %s2389_s17 }
 0x1c7   : > { %1536 = vrot.lane.b32.xlu0 %v2627_v37, %s2389_s17  ;;  %2323 = vrot.lane.b32.xlu1 %v2282_v31, %s2399_s16 }
 0x1cb   : > { %2328 = vrot.lane.b32.xlu0 %v2287_v35, %s2399_s16  ;;  %1632 = vrot.lane.b32.xlu1 %v2619_v34, %s2395_s8 }
 0x1cf   : > { %1634 = vrot.lane.b32.xlu0 %v2627_v37, %s2395_s8  ;;  %2333 = vrot.lane.b32.xlu1 %v2282_v31, %s2385_s13 }
 0x1d3   : > { %2338 = vrot.lane.b32.xlu0 %v2287_v35, %s2385_s13  ;;  %1730 = vrot.lane.b32.xlu1 %v2619_v34, %s2393_s27  ;;  %s2016_s13 = sshll.u32 %s2726_s23, 4 }
 0x1d4   : > { %s379_s8 = scalar_lea.vmem %s2717_s6, %s2016_s13 }
 0x1d7   : > { %1732 = vrot.lane.b32.xlu0 %v2627_v37, %s2393_s27  ;;  %1831 = vperm.xlu1 %2281, %v1827_v19  }
 0x1db   : > { %1836 = vperm.xlu0 %2280, %v1828_v38   ;;  %1845 = vrot.lane.b32.xlu1 %v2506_v6, %s2387_s15 }
 0x1df   : > { %1847 = vrot.lane.b32.xlu0 %v2510_v8, %s2387_s15  ;;  %1849 = vrot.lane.b32.xlu1 %v2508_v7, %s2387_s15 }
 0x1e3   : > { %1851 = vrot.lane.b32.xlu0 %v2512_v9, %s2387_s15 }
 0x219   : > { %v2284_v39 = vpop.permute.xlu1 %2283 }
 0x21a   : > { %v2286_v40 = vunpack.i.h.bf16 %v2284_v39  ;;  %v2285_v41 = vunpack.i.l.bf16 %v2284_v39 }
 0x21c   : > { %v1177_v6 = vsel %vm1176_vm0, %v2285_v41, %v2286_v40 }
 0x21d   : > { %v2289_v42 = vpop.permute.xlu0 %2288  ;;  %v1161_v43 = vpop.permute.xlu1 %1160 }
 0x21e   : > { %v2291_v44 = vunpack.i.h.bf16 %v2289_v42  ;;  %v2290_v45 = vunpack.i.l.bf16 %v2289_v42  ;;  %2049 = vmatprep.mubr.msk.f32.mxu1 %vm423_vm5, %v1161_v43 }
 0x220   : > { %v1178_v46 = vsel %vm1176_vm0, %v2290_v45, %v2291_v44 }
 0x221   : > { %v1163_v47 = vpop.permute.xlu0 %1162  ;;  %v2294_v8 = vpop.permute.xlu1 %2293  ;;  %v2122_v48 = vpack.c.bf16 %v1178_v46, %v1177_v6 }
 0x222   : > { %v2296_v7 = vunpack.i.h.bf16 %v2294_v8  ;;  %v2295_v49 = vunpack.i.l.bf16 %v2294_v8 }
 0x223   : > { %2123 = vmatprep.subr.bf16.mxu1 %v2122_v48 }
 0x224   : > { %2125 = vmatpush3.bf16.msra.mxu1 %v2122_v48  ;;  %v1352_v53 = vsel %vm1351_vm1, %v2295_v49, %v2296_v7 }
 0x225   : > { %v2299_v9 = vpop.permute.xlu0 %2298  ;;  %v1340_v50 = vpop.permute.xlu1 %1339  ;;  %2127 = vmatprep.subr.bf16.mxu1 %v2126_v36 }
 0x226   : > { %v2301_v51 = vunpack.i.h.bf16 %v2299_v9  ;;  %v2300_v52 = vunpack.i.l.bf16 %v2299_v9 }
 0x227   : > { %2050 = vmatmul.mubr.msk.f32.vlgmr.msra.gmra.mrb[8].mxu1 %vm423_vm5, %v1163_v47 }
 0x228   : > { %2129 = vmatpush3.bf16.msra.mxu1 %v2126_v36  ;;  %v1353_v54 = vsel %vm1351_vm1, %v2300_v52, %v2301_v51  ;;  %2056 = vmatprep.mubr.msk.f32.mxu1 %vm423_vm5, %v2619_v34 }
 0x229   : > { %v1342_v55 = vpop.permute.xlu0 %1341  ;;  %v2304_v56 = vpop.permute.xlu1 %2303  ;;  %v2130_v57 = vpack.c.bf16 %v1353_v54, %v1352_v53 }
 0x22a   : > { %v2306_v58 = vunpack.i.h.bf16 %v2304_v56  ;;  %v2305_v59 = vunpack.i.l.bf16 %v2304_v56 }
 0x22b   : > { %2131 = vmatprep.subr.bf16.mxu1 %v2130_v57 }
 0x22c   : > { %v1449_v0 = vsel %vm416_vm4, %v2305_v59, %v2306_v58 }
 0x22d   : > { %v2309_v60 = vpop.permute.xlu0 %2308  ;;  %v1438_v61 = vpop.permute.xlu1 %1437 }
 0x22e   : > { %v2311_v62 = vunpack.i.h.bf16 %v2309_v60  ;;  %v2310_v63 = vunpack.i.l.bf16 %v2309_v60 }
 0x22f   : > { %2057 = vmatmul.mubr.msk.f32.vlgmr.msra.gmra.mrb[8].mxu1 %vm423_vm5, %v2627_v37 }
 0x230   : > { %2133 = vmatpush3.bf16.msra.mxu1 %v2130_v57  ;;  %2063 = vmatprep.mubr.msk.f32.mxu1 %vm423_vm5, %v1340_v50  ;;  %v1450_v1 = vsel %vm416_vm4, %v2310_v63, %v2311_v62 }
 0x231   : > { %v1440_v2 = vpop.permute.xlu0 %1439  ;;  %v2314_v3 = vpop.permute.xlu1 %2313  ;;  %v2134_v10 = vpack.c.bf16 %v1450_v1, %v1449_v0 }
 0x232   : > { %v2316_v11 = vunpack.i.h.bf16 %v2314_v3  ;;  %v2315_v12 = vunpack.i.l.bf16 %v2314_v3 }
 0x233   : > { %2135 = vmatprep.subr.bf16.mxu1 %v2134_v10 }
 0x234   : > { %v1547_v16 = vsel %vm1546_vm2, %v2315_v12, %v2316_v11 }
 0x235   : > { %v2319_v13 = vpop.permute.xlu0 %2318  ;;  %v1535_v14 = vpop.permute.xlu1 %1534 }
 0x236   : > { %v2321_v4 = vunpack.i.h.bf16 %v2319_v13  ;;  %v2320_v15 = vunpack.i.l.bf16 %v2319_v13 }
 0x237   : > { %2064 = vmatmul.mubr.msk.f32.vlgmr.msra.gmra.mrb[8].mxu1 %vm423_vm5, %v1342_v55 }
 0x238   : > { %2137 = vmatpush3.bf16.msra.mxu1 %v2134_v10  ;;  %2070 = vmatprep.mubr.msk.f32.mxu1 %vm423_vm5, %v1438_v61  ;;  %v1548_v17 = vsel %vm1546_vm2, %v2320_v15, %v2321_v4 }
 0x239   : > { %v1537_v18 = vpop.permute.xlu0 %1536  ;;  %v2324_v20 = vpop.permute.xlu1 %2323  ;;  %v2138_v21 = vpack.c.bf16 %v1548_v17, %v1547_v16 }
 0x23a   : > { %v2326_v5 = vunpack.i.h.bf16 %v2324_v20  ;;  %v2325_v22 = vunpack.i.l.bf16 %v2324_v20 }
 0x23b   : > { %2139 = vmatprep.subr.bf16.mxu1 %v2138_v21 }
 0x23c   : > { %v1645_v27 = vsel %vm1644_vm3, %v2325_v22, %v2326_v5 }
 0x23d   : > { %v2329_v23 = vpop.permute.xlu0 %2328  ;;  %v1633_v24 = vpop.permute.xlu1 %1632 }
 0x23e   : > { %v2331_v25 = vunpack.i.h.bf16 %v2329_v23  ;;  %v2330_v26 = vunpack.i.l.bf16 %v2329_v23 }
 0x23f   : > { %2071 = vmatmul.mubr.msk.f32.vlgmr.msra.gmra.mrb[8].mxu1 %vm423_vm5, %v1440_v2 }
 0x240   : > { %2141 = vmatpush3.bf16.msra.mxu1 %v2138_v21  ;;  %2077 = vmatprep.mubr.msk.f32.mxu1 %vm423_vm5, %v1535_v14  ;;  %v1646_v28 = vsel %vm1644_vm3, %v2330_v26, %v2331_v25 }
 0x241   : > { %v1635_v29 = vpop.permute.xlu0 %1634  ;;  %v2334_v30 = vpop.permute.xlu1 %2333  ;;  %v2142_v31 = vpack.c.bf16 %v1646_v28, %v1645_v27 }
 0x242   : > { %v2336_v32 = vunpack.i.h.bf16 %v2334_v30  ;;  %v2335_v33 = vunpack.i.l.bf16 %v2334_v30 }
 0x243   : > { %2143 = vmatprep.subr.bf16.mxu1 %v2142_v31 }
 0x244   : > { %v1742_v37 = vsel %vm598_vm6, %v2335_v33, %v2336_v32 }
 0x245   : > { %v2339_v34 = vpop.permute.xlu0 %2338  ;;  %v1731_v39 = vpop.permute.xlu1 %1730 }
 0x246   : > { %v2341_v35 = vunpack.i.h.bf16 %v2339_v34  ;;  %v2340_v36 = vunpack.i.l.bf16 %v2339_v34 }
 0x247   : > { %2078 = vmatmul.mubr.msk.f32.vlgmr.msra.gmra.mrb[8].mxu1 %vm423_vm5, %v1537_v18 }
 0x248   : > { %2145 = vmatpush3.bf16.msra.mxu1 %v2142_v31  ;;  %2084 = vmatprep.mubr.msk.f32.mxu1 %vm423_vm5, %v1633_v24  ;;  %v1743_v19 = vsel %vm598_vm6, %v2340_v36, %v2341_v35 }
 0x249   : > { %v2146_v38 = vpack.c.bf16 %v1743_v19, %v1742_v37  ;;  %v1733_v40 = vpop.permute.xlu0 %1732 }
 0x24b   : > { %2147 = vmatprep.subr.bf16.mxu1 %v2146_v38 }
 0x24f   : > { %2085 = vmatmul.mubr.msk.f32.vlgmr.msra.gmra.mrb[8].mxu1 %vm423_vm5, %v1635_v29 }
 0x250   : > { %2149 = vmatpush3.bf16.msra.mxu1 %v2146_v38  ;;  %2091 = vmatprep.mubr.msk.f32.mxu1 %vm423_vm5, %v1731_v39 }
 0x256   : > { %v1832_v41 = vpop.permute.xlu1 %1831 }
 0x257   : > { %2092 = vmatmul.mubr.msk.f32.vlgmr.msra.gmra.mrb[8].mxu1 %vm423_vm5, %v1733_v40 }
 0x25a   : > { %v1837_v42 = vpop.permute.xlu0 %1836  ;;  %v1846_v44 = vpop.permute.xlu1 %1845 }
 0x25e   : > { %v1848_v43 = vpop.permute.xlu0 %1847  ;;  %v1850_v6 = vpop.permute.xlu1 %1849 }
 0x25f   : > { %v1853_v49 = vsel %vm806_vm8, %v1846_v44, %v1848_v43 }
 0x262   : > { %v1852_v45 = vpop.permute.xlu0 %1851 }
 0x263   : > { %v1854_v47 = vsel %vm806_vm8, %v1850_v6, %v1852_v45 }
 0x32a   : > { %v2093_v46 = vpop.f32.mrb[8].mxu1 }
 0x32b   : > { %v1840_v8 = vadd.f32 %v2093_v46, %v1837_v42  ;;  %v1816_v48 = vpop.f32.mrb[9].mxu1 }
 0x32c   : > { %v1839_v7 = vadd.f32 %v1832_v41, %v1816_v48 }
 0x32d   : > { %v1858_v9 = vadd.f32 %v1854_v47, %v1840_v8 }
 0x32e   : > { %v1857_v50 = vadd.f32 %v1853_v49, %v1839_v7 }
 0x32f   : > { %1860 = vst [vmem:[%s379_s8 + $0x8] sm:$0xff] %v1858_v9 }
 0x330   : > { %1859 = vst [vmem:[%s379_s8] sm:$0xff] %v1857_v50 }
 0x331 PF: > { %s16_s25 = sadd.s32 1, %s2380_s25   ;;  %s2719_s21 = smov %s2368_s22 }
 0x332   : > { %p13_p10 = scmp.ge.s32.totalorder %s16_s25, 4   ;;  %s2720_s22 = smov %s2474_s30 }
 0x333   : > { %s2721_s23 = smov %s2376_s24  ;;  %s2722_s24 = smov %s2724_s26 }
 0x334   :  { %15 = sbr.rel (!%p13_p10) target bundleno = 3 (0x3), region = 163 }

// kernel: generator_forward.24
= control target key start
LH: loop header
LB: loop body
LE: loop exit
PB: predicated region body
PF: predicated region fallthrough
CT: control target
= control target key end

     0   :  { %s768_s15 = smov 0   ;;  %s770_s16 = smov 0   ;;  %s861_s0 = inlined_call_operand.vmem [shape: f32[2,16,256], index: 0, kind: input, shape index: {}, may-alias: {0,1}]   ;;  %s862_s1 = inlined_call_operand.vmem [shape: f32[2,16,256], index: 1, kind: input, shape index: {}, may-alias: {0,1}]   ;;  %s863_s2 = inlined_call_operand.vmem [shape: f32[16,48], index: 2, kind: input, shape index: {}]   ;;  %s864_s3 = inlined_call_operand.vmem [shape: f32[16,1], index: 3, kind: input, shape index: {}]   ;;  %s865_s4 = inlined_call_operand.vmem [shape: f32[2,16,32], index: 4, kind: output, shape index: {}]  }
   0x1   :  { %s772_s17 = smov 0   ;;  %s774_s18 = smov 0  }
   0x2   :  { %s776_s19 = smov 0  }
   0x3 LB: > { %s26_s20 = sadd.s32 1, %s734_s18  ;;  %p42_p1 = scmp.ne.s32.totalorder %s726_s16, %s722_s15  ;;  %s738_s19 = sphi %s776_s19, %s14_s19   ;;  %s734_s18 = sphi %s774_s18, %s870_s18   ;;  %s730_s17 = sphi %s772_s17, %s869_s17   ;;  %s726_s16 = sphi %s770_s16, %s868_s16   ;;  %s722_s15 = sphi %s768_s15, %s867_s15  }
   0x4   : > { %p28_p0 = scmp.ge.s32.totalorder %s26_s20, 2  ;;  %p43_p2 = scmp.eq.s32.totalorder %s738_s19, 0 }
   0x5   : > { %s35_s23 = sadd.s32 1, %s726_s16  ;;  %p579_p5 = scmp.ge.s32.totalorder %s738_s19, 2 }
   0x6   : > { %s872_s20 = smov (%p28_p0, %s26_s20), 0  ;;  %p799_p3 = por %p43_p2, %p42_p1 }
   0x7   : > { %s30_s22 = ssub.s32 %s734_s18, %s872_s20  ;;  %174 = sbr.rel (%p579_p5) target bundleno = 28 (0x1c), region = 24 }
   0x8   : > { %p33_p4 = scmp.eq.s32.totalorder %s30_s22, 0 }
   0xa   : > { %s807_s24 = scalar_select %p33_p4, %s726_s16, %s35_s23  }
   0xe   : > { %177 = sbr.rel (!%p799_p3) target bundleno = 21 (0x15), region = 28  ;;  %s179_s25 = sand.u32 (%p799_p3), 1, %s726_s16  }
   0xf   : > { %s597_s26 = sshll.u32 (%p799_p3), %s734_s18, 5  ;;  %s580_s27 = sshll.u32 (%p799_p3), %s179_s25, 4 }
  0x10   : > { %s185_s30 = scalar_lea.vmem (%p799_p3), %s861_s0, %s597_s26  ;;  %s181_s5 = scalar_lea.vmem (%p799_p3), [#allocation2], %s580_s27 }
  0x11   : > { %v215_v0 = vld [vmem:[%s185_s30] sm:$0xff] (%p799_p3)  ;;  %v217_v1 = vld [vmem:[%s185_s30 + $0x10] sm:$0xff] (%p799_p3) }
  0x12   : > { %216 = vst [vmem:[%s181_s5] sm:$0xff] (%p799_p3), %v215_v0  ;;  %218 = vst [vmem:[%s181_s5 + $0x8] sm:$0xff] (%p799_p3), %v217_v1 }
  0x15 PF: > { %224 = sbr.rel (!%p799_p3) target bundleno = 28 (0x1c), region = 66  ;;  %s226_s6 = sand.u32 (%p799_p3), 1, %s726_s16  }
  0x16   : > { %s598_s7 = sshll.u32 (%p799_p3), %s734_s18, 5  ;;  %s583_s8 = sshll.u32 (%p799_p3), %s226_s6, 4 }
  0x17   : > { %s508_s11 = scalar_lea.vmem (%p799_p3), %s862_s1, %s598_s7  ;;  %s228_s12 = scalar_lea.vmem (%p799_p3), [#allocation3], %s583_s8 }
  0x18   : > { %v586_v2 = vld [vmem:[%s508_s11 + $0x8] sm:$0xff] (%p799_p3)  ;;  %v587_v3 = vld [vmem:[%s508_s11 + $0x18] sm:$0xff] (%p799_p3) }
  0x19   : > { %264 = vst [vmem:[%s228_s12] sm:$0xff] (%p799_p3), %v586_v2  ;;  %266 = vst [vmem:[%s228_s12 + $0x8] sm:$0xff] (%p799_p3), %v587_v3 }
  0x1c PF: > { %p588_p6 = scmp.ge.s32.totalorder %s738_s19, 1  ;;  %p271_p7 = scmp.lt.s32.totalorder %s738_s19, 3 }
  0x1e   : > { %p272_p8 = pnand %p588_p6, %p271_p7 }
  0x1f   : > { %s278_s13 = sand.u32 (!%p272_p8), 1, %s722_s15   ;;  %s740_s15 = smov (!%p272_p8), 126   ;;  %v372_v19 = vld [vmem:[%s863_s2] sm:$0xff] (!%p272_p8)  ;;  %vm386_vm4 = vcmask (!%p272_p8), 392192   ;;  %v742_v20 = vmov (!%p272_p8), 0   ;;  %v375_v21 = vld [vmem:[%s864_s3 + $0x8] sm:$0xff] (!%p272_p8) }
  0x20   : > { %275 = sbr.rel (%p272_p8) target bundleno = 389 (0x185), region = 104  ;;  %s589_s14 = sshll.u32 (!%p272_p8), %s278_s13, 4  ;;  %620 = vmatprep.mubr.msk.f32.mxu0 (!%p272_p8), %vm386_vm4, %v372_v19  ;;  %699 = vset.pattern.permute.xlu1 (!%p272_p8), %v742_v20  ;;  %v374_v22 = vld [vmem:[%s864_s3] sm:$0xff] (!%p272_p8)  ;;  %vm354_vm5 = vcmask (!%p272_p8), 1039360   ;;  %vm367_vm6 = vcmask (!%p272_p8), 1031168   ;;  %v373_v41 = vld [vmem:[%s863_s2 + $0x8] sm:$0xff] (!%p272_p8) }
  0x21   : > { %s280_s21 = scalar_lea.vmem (!%p272_p8), [#allocation2], %s589_s14  ;;  %s287_s22 = scalar_lea.vmem (!%p272_p8), [#allocation3], %s589_s14  ;;  %698 = vset.pattern.permute.xlu0 (!%p272_p8), %v742_v20 }
  0x22   : > { %v326_v4 = vld [vmem:[%s280_s21] sm:$0xff] (!%p272_p8)  ;;  %v327_v5 = vld [vmem:[%s280_s21 + $0x8] sm:$0xff] (!%p272_p8)  ;;  %s741_s23 = smov (!%p272_p8), 127   ;;  %p318_p9 = scmp.lt.s32.totalorder (!%p272_p8), %s730_s17, 1 }
  0x23   : > { %v328_v6 = vld [vmem:[%s287_s22] sm:$0xff] (!%p272_p8)  ;;  %v329_v7 = vld [vmem:[%s287_s22 + $0x8] sm:$0xff] (!%p272_p8)  ;;  %vm330_vm0 = vcmp.ge.f32.partialorder (!%p272_p8), %v326_v4, 0.0  ;;  %v334_v8 = vmul.f32 (!%p272_p8), 0.1, %v326_v4  ;;  %vm332_vm2 = vcmp.ge.f32.partialorder (!%p272_p8), %v327_v5, 0.0 }
  0x24   : > { %vm331_vm1 = vcmp.ge.f32.partialorder (!%p272_p8), %v328_v6, 0.0  ;;  %v335_v9 = vmul.f32 (!%p272_p8), 0.1, %v328_v6  ;;  %v336_v10 = vmul.f32 (!%p272_p8), 0.1, %v327_v5  ;;  %vm333_vm3 = vcmp.ge.f32.partialorder (!%p272_p8), %v329_v7, 0.0 }
  0x25   : > { %v337_v11 = vmul.f32 (!%p272_p8), 0.1, %v329_v7  ;;  %v338_v12 = vsel (!%p272_p8), %vm330_vm0, %v326_v4, %v334_v8 }
  0x26   : > { %v339_v13 = vsel (!%p272_p8), %vm331_vm1, %v328_v6, %v335_v9  ;;  %v340_v14 = vsel (!%p272_p8), %vm332_vm2, %v327_v5, %v336_v10 }
  0x27   : > { %v341_v15 = vsel %vm333_vm3, %v329_v7, %v337_v11  ;;  %v688_v16 = vpack.i.bf16 %v339_v13, %v338_v12  ;;  %v623_v17 = vpack.c.bf16 %v340_v14, %v338_v12  ;;  %s874_s17 = smov (!%p318_p9, %s730_s17), 1 }
  0x28   : > { %v693_v18 = vpack.i.bf16 %v341_v15, %v340_v14  ;;  %s599_s7 = sshll.u32 %s874_s17, 4 }
  0x29   : > { %689 = vrot.lane.b32.xlu1 %v688_v16, %s740_s15  ;;  %679 = vrot.lane.b32.xlu0 %v688_v16, %s741_s23  ;;  %s325_s10 = scalar_lea.vmem %s865_s4, %s599_s7 }
  0x2a   : > { %624 = vmatprep.subr.bf16.mxu0 %v623_v17 }
  0x2b   : > { %626 = vmatpush3.bf16.msra.mxu0 %v623_v17 }
  0x2d   : > { %694 = vrot.lane.b32.xlu1 %v693_v18, %s740_s15  ;;  %684 = vrot.lane.b32.xlu0 %v693_v18, %s741_s23 }
  0x31   : > { %383 = vperm.xlu1 %699, %v375_v21   ;;  %378 = vperm.xlu0 %698, %v374_v22  }
  0x9b   : > { %v690_v23 = vpop.permute.xlu1 %689  ;;  %v680_v24 = vpop.permute.xlu0 %679 }
  0x9c   : > { %v692_v25 = vunpack.i.h.bf16 %v690_v23  ;;  %v691_v26 = vunpack.i.l.bf16 %v690_v23  ;;  %v682_v27 = vunpack.i.h.bf16 %v680_v24  ;;  %v681_v28 = vunpack.i.l.bf16 %v680_v24 }
  0x9e   : > { %v355_v35 = vsel %vm354_vm5, %v681_v28, %v682_v27  ;;  %v368_v37 = vsel %vm367_vm6, %v691_v26, %v692_v25 }
  0x9f   : > { %v695_v29 = vpop.permute.xlu1 %694  ;;  %v685_v30 = vpop.permute.xlu0 %684 }
  0xa0   : > { %v697_v31 = vunpack.i.h.bf16 %v695_v29  ;;  %v696_v32 = vunpack.i.l.bf16 %v695_v29  ;;  %v687_v33 = vunpack.i.h.bf16 %v685_v30  ;;  %v686_v34 = vunpack.i.l.bf16 %v685_v30 }
  0xa2   : > { %v356_v36 = vsel %vm354_vm5, %v686_v34, %v687_v33  ;;  %v369_v38 = vsel %vm367_vm6, %v696_v32, %v697_v31 }
  0xa3   : > { %v627_v39 = vpack.c.bf16 %v356_v36, %v355_v35  ;;  %v631_v40 = vpack.c.bf16 %v369_v38, %v368_v37 }
  0xa5   : > { %628 = vmatprep.subr.bf16.mxu0 %v627_v39 }
  0xa6   : > { %630 = vmatpush3.bf16.msra.mxu0 %v627_v39 }
  0xa7   : > { %632 = vmatprep.subr.bf16.mxu0 %v631_v40 }
  0xaa   : > { %634 = vmatpush3.bf16.msra.mxu0 %v631_v40 }
  0xad   : > { %621 = vmatmul.mubr.msk.f32.vlgmr.msra.gmra.mrb[0].mxu0 %vm386_vm4, %v373_v41 }
  0xb0   : > { %v384_v42 = vpop.permute.xlu1 %383  ;;  %v379_v43 = vpop.permute.xlu0 %378 }
 0x180   : > { %v622_v44 = vpop.f32.mrb[0].mxu0 }
 0x181   : > { %v465_v45 = vadd.f32 %v622_v44, %v384_v42  ;;  %v459_v46 = vpop.f32.mrb[1].mxu0 }
 0x182   : > { %v460_v47 = vadd.f32 %v459_v46, %v379_v43 }
 0x183   : > { %469 = vst [vmem:[%s325_s10 + $0x8] sm:$0xff] %v465_v45 }
 0x184   : > { %468 = vst [vmem:[%s325_s10] sm:$0xff] %v460_v47 }
 0x185 PF: > { %s14_s19 = sadd.s32 1, %s738_s19   ;;  %s867_s15 = smov %s726_s16 }
 0x186   : > { %p11_p10 = scmp.ge.s32.totalorder %s14_s19, 4   ;;  %s868_s16 = smov %s807_s24 }
 0x187   : > { %s869_s17 = smov %s734_s18  ;;  %s870_s18 = smov %s872_s20 }
 0x188   :  { %13 = sbr.rel (!%p11_p10) target bundleno = 3 (0x3), region = 155 }

// kernel: generator_forward.23
= control target key start
LH: loop header
LB: loop body
LE: loop exit
PB: predicated region body
PF: predicated region fallthrough
CT: control target
= control target key end

     0   :  { %s2529_s24 = smov 0   ;;  %s2531_s25 = smov 0   ;;  %s2794_s0 = inlined_call_operand.vmem [shape: f32[2,16,256], index: 0, kind: input, shape index: {}, may-alias: {0,1}]   ;;  %s2795_s1 = inlined_call_operand.vmem [shape: f32[2,16,256], index: 1, kind: input, shape index: {}, may-alias: {0,1}]   ;;  %s2796_s2 = inlined_call_operand.vmem [shape: f32[16,112], index: 2, kind: input, shape index: {}]   ;;  %s2797_s3 = inlined_call_operand.vmem [shape: f32[16,1], index: 3, kind: input, shape index: {}]   ;;  %s2798_s4 = inlined_call_operand.vmem [shape: f32[16,112], index: 4, kind: input, shape index: {}]   ;;  %s2799_s5 = inlined_call_operand.vmem [shape: f32[16,1], index: 5, kind: input, shape index: {}]   ;;  %s2800_s6 = inlined_call_operand.vmem [shape: f32[2,16,32], index: 6, kind: input, shape index: {}]   ;;  %s2801_s7 = inlined_call_operand.vmem [shape: f32[2,16,32], index: 7, kind: output, shape index: {}]  }
   0x1   :  { %s2533_s26 = smov 0   ;;  %s2535_s27 = smov 0  }
   0x2   :  { %s2537_s28 = smov 0  }
   0x3 LB: > { %s29_s29 = sadd.s32 1, %s2463_s27  ;;  %p45_p1 = scmp.ne.s32.totalorder %s2455_s25, %s2451_s24  ;;  %s2467_s28 = sphi %s2537_s28, %s17_s28   ;;  %s2463_s27 = sphi %s2535_s27, %s2806_s27   ;;  %s2459_s26 = sphi %s2533_s26, %s2805_s26   ;;  %s2455_s25 = sphi %s2531_s25, %s2804_s25   ;;  %s2451_s24 = sphi %s2529_s24, %s2803_s24  }
   0x4   : > { %p31_p0 = scmp.ge.s32.totalorder %s29_s29, 2  ;;  %p46_p2 = scmp.eq.s32.totalorder %s2467_s28, 0 }
   0x5   : > { %s38_s9 = sadd.s32 1, %s2455_s25  ;;  %p2052_p5 = scmp.ge.s32.totalorder %s2467_s28, 2 }
   0x6   : > { %s2808_s29 = smov (%p31_p0, %s29_s29), 0  ;;  %p2560_p3 = por %p46_p2, %p45_p1 }
   0x7   : > { %s33_s8 = ssub.s32 %s2463_s27, %s2808_s29  ;;  %253 = sbr.rel (%p2052_p5) target bundleno = 28 (0x1c), region = 32 }
   0x8   : > { %p36_p4 = scmp.eq.s32.totalorder %s33_s8, 0 }
   0xa   : > { %s2568_s10 = scalar_select %p36_p4, %s2455_s25, %s38_s9  }
   0xe   : > { %256 = sbr.rel (!%p2560_p3) target bundleno = 21 (0x15), region = 36  ;;  %s258_s11 = sand.u32 (%p2560_p3), 1, %s2455_s25  }
   0xf   : > { %s2098_s12 = sshll.u32 (%p2560_p3), %s2463_s27, 5  ;;  %s2053_s13 = sshll.u32 (%p2560_p3), %s258_s11, 4 }
  0x10   : > { %s264_s16 = scalar_lea.vmem (%p2560_p3), %s2794_s0, %s2098_s12  ;;  %s260_s17 = scalar_lea.vmem (%p2560_p3), [#allocation2], %s2053_s13 }
  0x11   : > { %v294_v0 = vld [vmem:[%s264_s16] sm:$0xff] (%p2560_p3)  ;;  %v296_v1 = vld [vmem:[%s264_s16 + $0x10] sm:$0xff] (%p2560_p3) }
  0x12   : > { %295 = vst [vmem:[%s260_s17] sm:$0xff] (%p2560_p3), %v294_v0  ;;  %297 = vst [vmem:[%s260_s17 + $0x8] sm:$0xff] (%p2560_p3), %v296_v1 }
  0x15 PF: > { %303 = sbr.rel (!%p2560_p3) target bundleno = 28 (0x1c), region = 74  ;;  %s305_s18 = sand.u32 (%p2560_p3), 1, %s2455_s25  }
  0x16   : > { %s2099_s19 = sshll.u32 (%p2560_p3), %s2463_s27, 5  ;;  %s2056_s20 = sshll.u32 (%p2560_p3), %s305_s18, 4 }
  0x17   : > { %s1963_s23 = scalar_lea.vmem (%p2560_p3), %s2795_s1, %s2099_s19  ;;  %s307_s8 = scalar_lea.vmem (%p2560_p3), [#allocation3], %s2056_s20 }
  0x18   : > { %v2059_v2 = vld [vmem:[%s1963_s23 + $0x8] sm:$0xff] (%p2560_p3)  ;;  %v2060_v3 = vld [vmem:[%s1963_s23 + $0x18] sm:$0xff] (%p2560_p3) }
  0x19   : > { %343 = vst [vmem:[%s307_s8] sm:$0xff] (%p2560_p3), %v2059_v2  ;;  %345 = vst [vmem:[%s307_s8 + $0x8] sm:$0xff] (%p2560_p3), %v2060_v3 }
  0x1c PF: > { %p2061_p6 = scmp.ge.s32.totalorder %s2467_s28, 1  ;;  %p361_p7 = scmp.lt.s32.totalorder %s2467_s28, 3 }
  0x1e   : > { %p362_p8 = pnand %p2061_p6, %p361_p7 }
  0x1f   : > { %v2590_v4 = vld [vmem:[%s2796_s2] sm:$0xff] (!%p362_p8)  ;;  %s368_s11 = sand.u32 (!%p362_p8), 1, %s2451_s24   ;;  %s2469_s12 = smov (!%p362_p8), 112   ;;  %v2598_v5 = vld [vmem:[%s2796_s2 + $0x8] sm:$0xff] (!%p362_p8)  ;;  %v2470_v19 = vmov (!%p362_p8), 0.0   ;;  %v2481_v23 = vmov (!%p362_p8), 0  }
  0x20   : > { %365 = sbr.rel (%p362_p8) target bundleno = 819 (0x333), region = 116  ;;  %458 = vrot.lane.b32.xlu1 (!%p362_p8), %v2590_v4, %s2469_s12  ;;  %s2062_s13 = sshll.u32 (!%p362_p8), %s368_s11, 4  ;;  %550 = vmatprep.mubr.f32.mxu0 (!%p362_p8), %v2470_v19  ;;  %v1165_v24 = vld [vmem:[%s2797_s3 + $0x8] sm:$0xff] (!%p362_p8)  ;;  %v1164_v25 = vld [vmem:[%s2797_s3] sm:$0xff] (!%p362_p8)  ;;  %vm474_vm4 = vcmask (!%p362_p8), 1006592   ;;  %vm481_vm5 = vcmask (!%p362_p8), 130048  }
  0x21   : > { %s370_s16 = scalar_lea.vmem (!%p362_p8), [#allocation2], %s2062_s13  ;;  %s377_s17 = scalar_lea.vmem (!%p362_p8), [#allocation3], %s2062_s13  ;;  %835 = vmatprep.mubr.f32.mxu1 (!%p362_p8), %v2470_v19  ;;  %2367 = vset.pattern.permute.xlu0 (!%p362_p8), %v2481_v23  ;;  %vm656_vm6 = vcmask (!%p362_p8), 965632   ;;  %vm760_vm7 = vcmask (!%p362_p8), 924672   ;;  %vm864_vm8 = vcmask (!%p362_p8), 883712   ;;  %vm968_vm9 = vcmask (!%p362_p8), 842752  }
  0x22   : > { %v2600_v6 = vld [vmem:[%s370_s16] sm:$0xff] (!%p362_p8)  ;;  %v2602_v7 = vld [vmem:[%s370_s16 + $0x8] sm:$0xff] (!%p362_p8)  ;;  %s2471_s24 = smov (!%p362_p8), 123   ;;  %s2472_s18 = smov (!%p362_p8), 118   ;;  %2368 = vset.pattern.permute.xlu1 (!%p362_p8), %v2481_v23  ;;  %vm1072_vm10 = vcmask (!%p362_p8), 801792  }
  0x23   : > { %v2604_v8 = vld [vmem:[%s377_s17] sm:$0xff] (!%p362_p8)  ;;  %v2606_v9 = vld [vmem:[%s377_s17 + $0x8] sm:$0xff] (!%p362_p8)  ;;  %vm442_vm0 = vcmp.ge.f32.partialorder (!%p362_p8), %v2600_v6, 0.0  ;;  %v446_v10 = vmul.f32 (!%p362_p8), 0.1, %v2600_v6  ;;  %vm444_vm2 = vcmp.ge.f32.partialorder (!%p362_p8), %v2602_v7, 0.0 }
  0x24   : > { %vm443_vm1 = vcmp.ge.f32.partialorder (!%p362_p8), %v2604_v8, 0.0  ;;  %v447_v11 = vmul.f32 (!%p362_p8), 0.1, %v2604_v8  ;;  %460 = vrot.lane.b32.xlu1 (!%p362_p8), %v2598_v5, %s2469_s12  ;;  %vm445_vm3 = vcmp.ge.f32.partialorder (!%p362_p8), %v2606_v9, 0.0  ;;  %v448_v12 = vmul.f32 (!%p362_p8), 0.1, %v2602_v7 }
  0x25   : > { %v2618_v13 = vsel (!%p362_p8), %vm442_vm0, %v2600_v6, %v446_v10  ;;  %v449_v14 = vmul.f32 (!%p362_p8), 0.1, %v2606_v9  ;;  %s2473_s19 = smov (!%p362_p8), 113   ;;  %s2474_s20 = smov (!%p362_p8), 108   ;;  %vm1234_vm0 = vcmask (!%p362_p8), 1039360  }
  0x26   : > { %v2622_v15 = vsel (!%p362_p8), %vm443_vm1, %v2604_v8, %v447_v11  ;;  %v2625_v16 = vsel (!%p362_p8), %vm444_vm2, %v2602_v7, %v448_v12  ;;  %s2475_s21 = smov (!%p362_p8), 96   ;;  %s2476_s22 = smov (!%p362_p8), 64   ;;  %vm1409_vm1 = vcmask (!%p362_p8), 1031168   ;;  %vm1507_vm2 = vcmask (!%p362_p8), 1022976  }
  0x27   : > { %v2307_v17 = vpack.i.bf16 %v2622_v15, %v2618_v13  ;;  %v2630_v18 = vsel %vm445_vm3, %v2606_v9, %v449_v14  ;;  %v2185_v22 = vpack.c.bf16 %v2625_v16, %v2618_v13  ;;  %s2477_s23 = smov 103   ;;  %s2478_s8 = smov 80   ;;  %vm1605_vm3 = vcmask 1014784  }
  0x28   : > { %v2322_v20 = vpack.i.bf16 %v2630_v18, %v2625_v16  ;;  %v2183_v21 = vpack.c.bf16 %v2630_v18, %v2622_v15  ;;  %s2479_s30 = smov 98   ;;  %s2480_s9 = smov 32  }
  0x29   : > { %2308 = vrot.lane.b32.xlu0 %v2307_v17, %s2471_s24  ;;  %s2482_s14 = smov 48   ;;  %s2483_s17 = smov 127  }
  0x2a   : > { %2323 = vrot.lane.b32.xlu1 %v2322_v20, %s2472_s18  ;;  %s2485_s11 = smov 125   ;;  %s2486_s13 = smov 124  }
  0x2b   : > { %p422_p9 = scmp.lt.s32.totalorder %s2459_s26, 1 }
  0x2d   : > { %2313 = vrot.lane.b32.xlu0 %v2322_v20, %s2471_s24  ;;  %s2810_s26 = smov (!%p422_p9, %s2459_s26), 1 }
  0x2e   : > { %2328 = vrot.lane.b32.xlu1 %v2307_v17, %s2473_s19 }
  0x31   : > { %2318 = vrot.lane.b32.xlu0 %v2307_v17, %s2472_s18 }
  0x32   : > { %2338 = vrot.lane.b32.xlu1 %v2307_v17, %s2474_s20 }
  0x35   : > { %644 = vrot.lane.b32.xlu0 %v2590_v4, %s2475_s21 }
  0x36   : > { %646 = vrot.lane.b32.xlu1 %v2598_v5, %s2475_s21 }
  0x39   : > { %2333 = vrot.lane.b32.xlu0 %v2322_v20, %s2473_s19 }
  0x3a   : > { %852 = vrot.lane.b32.xlu1 %v2590_v4, %s2476_s22 }
  0x3d   : > { %2343 = vrot.lane.b32.xlu0 %v2322_v20, %s2474_s20 }
  0x3e   : > { %2353 = vrot.lane.b32.xlu1 %v2322_v20, %s2477_s23 }
  0x41   : > { %748 = vrot.lane.b32.xlu0 %v2590_v4, %s2478_s8 }
  0x42   : > { %2358 = vrot.lane.b32.xlu1 %v2307_v17, %s2479_s30 }
  0x45   : > { %2348 = vrot.lane.b32.xlu0 %v2307_v17, %s2477_s23 }
  0x46   : > { %854 = vrot.lane.b32.xlu1 %v2598_v5, %s2476_s22 }
  0x49   : > { %750 = vrot.lane.b32.xlu0 %v2598_v5, %s2478_s8 }
  0x4a   : > { %1060 = vrot.lane.b32.xlu1 %v2590_v4, %s2480_s9 }
  0x4d   : > { %2363 = vrot.lane.b32.xlu0 %v2322_v20, %s2479_s30  ;;  %s2484_s30 = smov 126  }
  0x4e   : > { %1062 = vrot.lane.b32.xlu1 %v2598_v5, %s2480_s9 }
  0x51   : > { %956 = vrot.lane.b32.xlu0 %v2590_v4, %s2482_s14 }
  0x52   : > { %1173 = vperm.xlu1 %2368, %v1165_v24  }
  0x55   : > { %958 = vrot.lane.b32.xlu0 %v2598_v5, %s2482_s14 }
  0x59   : > { %1168 = vperm.xlu0 %2367, %v1164_v25  }
  0x92   : > { %v459_v26 = vpop.permute.xlu1 %458 }
  0x96   : > { %v461_v27 = vpop.permute.xlu1 %460 }
  0x9b   : > { %v2309_v28 = vpop.permute.xlu0 %2308 }
  0x9c   : > { %v2324_v29 = vpop.permute.xlu1 %2323  ;;  %v2311_v30 = vunpack.i.h.bf16 %v2309_v28  ;;  %v2310_v31 = vunpack.i.l.bf16 %v2309_v28 }
  0x9d   : > { %v2326_v41 = vunpack.i.h.bf16 %v2324_v29  ;;  %v2325_v44 = vunpack.i.l.bf16 %v2324_v29 }
  0x9e   : > { %v475_v37 = vsel %vm474_vm4, %v2310_v31, %v2311_v30 }
  0x9f   : > { %v2314_v32 = vpop.permute.xlu0 %2313  ;;  %v658_v51 = vsel %vm656_vm6, %v2325_v44, %v2326_v41 }
  0xa0   : > { %v2316_v33 = vunpack.i.h.bf16 %v2314_v32  ;;  %v2315_v34 = vunpack.i.l.bf16 %v2314_v32  ;;  %v2329_v35 = vpop.permute.xlu1 %2328 }
  0xa1   : > { %v2331_v48 = vunpack.i.h.bf16 %v2329_v35  ;;  %v2330_v49 = vunpack.i.l.bf16 %v2329_v35 }
  0xa2   : > { %v2179_v36 = vpack.c.bf16 %v2316_v33, %v2311_v30  ;;  %v476_v38 = vsel %vm474_vm4, %v2315_v34, %v2316_v33 }
  0xa3   : > { %v2319_v39 = vpop.permute.xlu0 %2318  ;;  %v2181_v40 = vpack.c.bf16 %v476_v38, %v475_v37  ;;  %v761_v56 = vsel %vm760_vm7, %v2330_v49, %v2331_v48 }
  0xa4   : > { %v2321_v42 = vunpack.i.h.bf16 %v2319_v39  ;;  %2180 = vmatprep.subr.bf16.mxu0 %v2179_v36  ;;  %v2339_v43 = vpop.permute.xlu1 %2338  ;;  %v2320_v47 = vunpack.i.l.bf16 %v2319_v39 }
  0xa5   : > { %2182 = vmatpush1.bf16.msra.mxu0 %v2181_v40  ;;  %v2341_v58 = vunpack.i.h.bf16 %v2339_v43  ;;  %v2340_v0 = vunpack.i.l.bf16 %v2339_v43 }
  0xa6   : > { %2184 = vmatprep.subr.bf16.mxu0 %v2183_v21  ;;  %v2187_v46 = vpack.c.bf16 %v2326_v41, %v2321_v42  ;;  %v657_v53 = vsel %vm656_vm6, %v2320_v47, %v2321_v42  ;;  %vm1800_vm6 = vcmask 998400  }
  0xa7   : > { %v645_v45 = vpop.permute.xlu0 %644  ;;  %v2189_v61 = vpack.c.bf16 %v658_v51, %v657_v53  ;;  %v865_v12 = vsel %vm864_vm8, %v2340_v0, %v2341_v58 }
  0xa8   : > { %2068 = vmatmul.mubr.msk.f32.vlgmr.msra.gmra.mrb[0].mxu0 %vm481_vm5, %v459_v26  ;;  %v647_v50 = vpop.permute.xlu1 %646 }
  0xa9   : > { %2186 = vmatpush1.bf16.msra.mxu0 %v2185_v22  ;;  %556 = vmatprep.mubr.f32.mxu0 %v2470_v19 }
  0xaa   : > { %2188 = vmatprep.subr.bf16.mxu0 %v2187_v46 }
  0xab   : > { %v2334_v52 = vpop.permute.xlu0 %2333 }
  0xac   : > { %v2336_v54 = vunpack.i.h.bf16 %v2334_v52  ;;  %v2335_v55 = vunpack.i.l.bf16 %v2334_v52  ;;  %2069 = vmatmul.mubr.msk.f32.gmra.mrb[2].mxu0 %vm481_vm5, %v461_v27  ;;  %v853_v57 = vpop.permute.xlu1 %852 }
  0xad   : > { %631 = vmatprep.mubr.f32.mxu0 %v2470_v19 }
  0xae   : > { %v2191_v59 = vpack.c.bf16 %v2336_v54, %v2331_v48  ;;  %v762_v60 = vsel %vm760_vm7, %v2335_v55, %v2336_v54 }
  0xaf   : > { %v2344_v62 = vpop.permute.xlu0 %2343  ;;  %v2193_v63 = vpack.c.bf16 %v762_v60, %v761_v56 }
  0xb0   : > { %v2346_v1 = vunpack.i.h.bf16 %v2344_v62  ;;  %v2345_v2 = vunpack.i.l.bf16 %v2344_v62  ;;  %2070 = vmatmul.mubr.msk.f32.vlgmr.msra.gmra.mrb[4].mxu0 %vm481_vm5, %v2590_v4  ;;  %2192 = vmatprep.subr.bf16.mxu1 %v2191_v59  ;;  %v2354_v3 = vpop.permute.xlu1 %2353 }
  0xb1   : > { %2190 = vmatpush1.bf16.msra.mxu0 %v2189_v61  ;;  %2194 = vmatpush1.bf16.msra.mxu1 %v2193_v63  ;;  %v2356_v14 = vunpack.i.h.bf16 %v2354_v3  ;;  %v2355_v15 = vunpack.i.l.bf16 %v2354_v3 }
  0xb2   : > { %v2195_v10 = vpack.c.bf16 %v2346_v1, %v2341_v58  ;;  %637 = vmatprep.mubr.f32.mxu0 %v2470_v19  ;;  %v866_v13 = vsel %vm864_vm8, %v2345_v2, %v2346_v1 }
  0xb3   : > { %v749_v11 = vpop.permute.xlu0 %748  ;;  %v2197_v4 = vpack.c.bf16 %v866_v13, %v865_v12  ;;  %v970_v17 = vsel %vm968_vm9, %v2355_v15, %v2356_v14 }
  0xb4   : > { %2071 = vmatmul.mubr.msk.f32.gmra.mrb[6].mxu0 %vm481_vm5, %v2598_v5  ;;  %2074 = vmatmul.mubr.msk.f32.vlgmr.msra.gmra.mrb[0].mxu1 %vm481_vm5, %v749_v11  ;;  %v2359_v21 = vpop.permute.xlu1 %2358 }
  0xb5   : > { %2196 = vmatprep.subr.bf16.mxu0 %v2195_v10  ;;  %731 = vmatprep.mubr.f32.mxu0 %v2470_v19  ;;  %v2361_v25 = vunpack.i.h.bf16 %v2359_v21  ;;  %v2360_v26 = vunpack.i.l.bf16 %v2359_v21 }
  0xb6   : > { %841 = vmatprep.mubr.f32.mxu1 %v2470_v19 }
  0xb7   : > { %v2349_v16 = vpop.permute.xlu0 %2348  ;;  %v1073_v29 = vsel %vm1072_vm10, %v2360_v26, %v2361_v25 }
  0xb8   : > { %v2351_v18 = vunpack.i.h.bf16 %v2349_v16  ;;  %v2350_v20 = vunpack.i.l.bf16 %v2349_v16  ;;  %2072 = vmatmul.mubr.msk.f32.vlgmr.msra.gmra.mrb[8].mxu0 %vm481_vm5, %v645_v45  ;;  %v855_v27 = vpop.permute.xlu1 %854 }
  0xb9   : > { %2198 = vmatpush1.bf16.msra.mxu0 %v2197_v4  ;;  %737 = vmatprep.mubr.f32.mxu0 %v2470_v19 }
  0xba   : > { %v2199_v5 = vpack.c.bf16 %v2356_v14, %v2351_v18  ;;  %v969_v22 = vsel %vm968_vm9, %v2350_v20, %v2351_v18 }
  0xbb   : > { %v2201_v23 = vpack.c.bf16 %v970_v17, %v969_v22  ;;  %v751_v24 = vpop.permute.xlu0 %750 }
  0xbc   : > { %2073 = vmatmul.mubr.msk.f32.gmra.mrb[10].mxu0 %vm481_vm5, %v647_v50  ;;  %2075 = vmatmul.mubr.msk.f32.gmra.mrb[2].mxu1 %vm481_vm5, %v751_v24  ;;  %v1061_v36 = vpop.permute.xlu1 %1060 }
  0xbd   : > { %2200 = vmatprep.subr.bf16.mxu1 %v2199_v5  ;;  %939 = vmatprep.mubr.f32.mxu0 %v2470_v19 }
  0xbe   : > { %2202 = vmatpush1.bf16.msra.mxu1 %v2201_v23  ;;  %1043 = vmatprep.mubr.f32.mxu1 %v2470_v19 }
  0xbf   : > { %v2364_v28 = vpop.permute.xlu0 %2363 }
  0xc0   : > { %v2366_v30 = vunpack.i.h.bf16 %v2364_v28  ;;  %v2365_v31 = vunpack.i.l.bf16 %v2364_v28  ;;  %2076 = vmatmul.mubr.msk.f32.vlgmr.msra.gmra.mrb[12].mxu0 %vm481_vm5, %v853_v57  ;;  %v1063_v38 = vpop.permute.xlu1 %1062  ;;  %v1182_v57 = vlaneseq }
  0xc1   : > { %945 = vmatprep.mubr.f32.mxu0 %v2470_v19 }
  0xc2   : > { %v2203_v32 = vpack.c.bf16 %v2366_v30, %v2361_v25  ;;  %v1074_v33 = vsel %vm1072_vm10, %v2365_v31, %v2366_v30  ;;  %v1183_v63 = vand.u32 127, %v1182_v57 }
  0xc3   : > { %v2205_v34 = vpack.c.bf16 %v1074_v33, %v1073_v29  ;;  %v957_v35 = vpop.permute.xlu0 %956 }
  0xc4   : > { %2077 = vmatmul.mubr.msk.f32.gmra.mrb[14].mxu0 %vm481_vm5, %v855_v27  ;;  %2078 = vmatmul.mubr.msk.f32.vlgmr.msra.gmra.mrb[4].mxu1 %vm481_vm5, %v957_v35  ;;  %v1186_v10 = vadd.s32 4294967293, %v1183_v63 }
  0xc5   : > { %2204 = vmatprep.subr.bf16.mxu0 %v2203_v32  ;;  %1049 = vmatprep.mubr.f32.mxu1 %v2470_v19 }
  0xc6   : > { %2206 = vmatpush1.bf16.msra.mxu0 %v2205_v34  ;;  %1147 = vmatprep.mubr.f32.mxu0 %v2470_v19  ;;  %vm1188_vm11 = vcmp.ge.s32.totalorder %v1186_v10, 0  ;;  %vm1190_vm12 = vcmp.lt.s32.totalorder %v1186_v10, 32  ;;  %v2705_v34 = vld [vmem:[%s2798_s4] sm:$0xff] }
  0xc7   : > { %v959_v37 = vpop.permute.xlu0 %958  ;;  %vm1192_vm13 = vmand %vm1188_vm11, %vm1190_vm12 }
  0xc8   : > { %2079 = vmatmul.mubr.msk.f32.gmra.mrb[6].mxu1 %vm481_vm5, %v959_v37  ;;  %v2715_v37 = vld [vmem:[%s2798_s4 + $0x8] sm:$0xff] }
  0xc9   : > { %2080 = vmatmul.mubr.msk.f32.vlgmr.msra.gmra.mrb[16].mxu0 %vm481_vm5, %v1061_v36 }
  0xca   : > { %1153 = vmatprep.mubr.f32.mxu0 %v2470_v19 }
  0xcd   : > { %2081 = vmatmul.mubr.msk.f32.gmra.mrb[18].mxu0 %vm481_vm5, %v1063_v38  ;;  %v1887_v38 = vld [vmem:[%s2799_s5 + $0x8] sm:$0xff] }
  0xd1   : > { %v1174_v23 = vpop.permute.xlu1 %1173 }
  0xd8   : > { %v1169_v4 = vpop.permute.xlu0 %1168 }
 0x17b   : > { %v552_v39 = vpop.f32.mrb[0].mxu0 }
 0x17c   : > { %v554_v40 = vpop.f32.mrb[1].mxu0 }
 0x17f   : > { %v558_v41 = vpop.f32.mrb[2].mxu0 }
 0x180   : > { %v560_v42 = vpop.f32.mrb[3].mxu0 }
 0x183   : > { %v633_v43 = vpop.f32.mrb[4].mxu0 }
 0x184   : > { %v634_v44 = vadd.f32 %v633_v43, %v552_v39  ;;  %v635_v45 = vpop.f32.mrb[5].mxu0 }
 0x187   : > { %v639_v46 = vpop.f32.mrb[6].mxu0  ;;  %v837_v47 = vpop.f32.mrb[0].mxu1 }
 0x188   : > { %v640_v48 = vadd.f32 %v639_v46, %v558_v41  ;;  %v641_v49 = vpop.f32.mrb[7].mxu0  ;;  %v839_v50 = vpop.f32.mrb[1].mxu1 }
 0x18b   : > { %v733_v51 = vpop.f32.mrb[8].mxu0 }
 0x18c   : > { %v744_v52 = vadd.f32 %v733_v51, %v634_v44  ;;  %v735_v53 = vpop.f32.mrb[9].mxu0 }
 0x18e   : > { %v848_v54 = vadd.f32 %v837_v47, %v744_v52 }
 0x18f   : > { %v739_v55 = vpop.f32.mrb[10].mxu0  ;;  %v843_v56 = vpop.f32.mrb[2].mxu1 }
 0x190   : > { %v746_v58 = vadd.f32 %v739_v55, %v640_v48  ;;  %v741_v59 = vpop.f32.mrb[11].mxu0  ;;  %v845_v60 = vpop.f32.mrb[3].mxu1 }
 0x192   : > { %v850_v61 = vadd.f32 %v843_v56, %v746_v58 }
 0x193   : > { %v941_v62 = vpop.f32.mrb[12].mxu0 }
 0x194   : > { %v952_v0 = vadd.f32 %v941_v62, %v848_v54  ;;  %v943_v1 = vpop.f32.mrb[13].mxu0 }
 0x197   : > { %v947_v2 = vpop.f32.mrb[14].mxu0  ;;  %v1045_v3 = vpop.f32.mrb[4].mxu1 }
 0x198   : > { %v954_v11 = vadd.f32 %v947_v2, %v850_v61  ;;  %v1056_v12 = vadd.f32 %v1045_v3, %v952_v0  ;;  %v949_v13 = vpop.f32.mrb[15].mxu0  ;;  %v1047_v14 = vpop.f32.mrb[5].mxu1 }
 0x19b   : > { %v1051_v15 = vpop.f32.mrb[6].mxu1 }
 0x19c   : > { %v1058_v16 = vadd.f32 %v1051_v15, %v954_v11  ;;  %v1149_v17 = vpop.f32.mrb[16].mxu0  ;;  %v1053_v18 = vpop.f32.mrb[7].mxu1 }
 0x19d   : > { %v1160_v20 = vadd.f32 %v1149_v17, %v1056_v12  ;;  %v1151_v21 = vpop.f32.mrb[17].mxu0 }
 0x19f   : > { %v1176_v5 = vadd.f32 %v1169_v4, %v1160_v20 }
 0x1a0   : > { %v1155_v22 = vpop.f32.mrb[18].mxu0 }
 0x1a1   : > { %v1198_v24 = vsel %vm1192_vm13, %v1176_v5, 0.0  ;;  %v1162_v25 = vadd.f32 %v1155_v22, %v1058_v16  ;;  %v1157_v26 = vpop.f32.mrb[19].mxu0 }
 0x1a2   : > { %vm1202_vm14 = vcmp.ge.f32.partialorder %v1198_v24, 0.0  ;;  %v1206_v27 = vmul.f32 0.1, %v1198_v24 }
 0x1a3   : > { %v1178_v28 = vadd.f32 %v1174_v23, %v1162_v25 }
 0x1a4   : > { %v1210_v29 = vsel %vm1202_vm14, %v1198_v24, %v1206_v27 }
 0x1a5   : > { %v1200_v30 = vsel %vm1192_vm13, %v1178_v28, 0.0  ;;  %v2369_v31 = vpack.i.bf16 %v2470_v19, %v1210_v29 }
 0x1a6   : > { %vm1204_vm15 = vcmp.ge.f32.partialorder %v1200_v30, 0.0  ;;  %v1208_v32 = vmul.f32 0.1, %v1200_v30 }
 0x1a7   : > { %2370 = vrot.lane.b32.xlu1 %v2369_v31, %s2483_s17 }
 0x1a8   : > { %v1212_v33 = vsel %vm1204_vm15, %v1200_v30, %v1208_v32 }
 0x1a9   : > { %v2374_v35 = vpack.i.bf16 %v2470_v19, %v1212_v33  ;;  %v2708_v36 = vpack.c.bf16 %v1212_v33, %v1210_v29  ;;  %v1886_v19 = vld [vmem:[%s2799_s5] sm:$0xff] }
 0x1ab   : > { %2375 = vrot.lane.b32.xlu0 %v2374_v35, %s2483_s17  ;;  %1218 = vrot.lane.b32.xlu1 %v2705_v34, %s2469_s12 }
 0x1af   : > { %1220 = vrot.lane.b32.xlu0 %v2715_v37, %s2469_s12  ;;  %2380 = vrot.lane.b32.xlu1 %v2369_v31, %s2484_s30  ;;  %s2487_s12 = smov 122  }
 0x1b3   : > { %2385 = vrot.lane.b32.xlu0 %v2374_v35, %s2484_s30  ;;  %1397 = vrot.lane.b32.xlu1 %v2705_v34, %s2475_s21 }
 0x1b7   : > { %1399 = vrot.lane.b32.xlu0 %v2715_v37, %s2475_s21  ;;  %2390 = vrot.lane.b32.xlu1 %v2369_v31, %s2485_s11 }
 0x1bb   : > { %2395 = vrot.lane.b32.xlu0 %v2374_v35, %s2485_s11  ;;  %1495 = vrot.lane.b32.xlu1 %v2705_v34, %s2478_s8 }
 0x1bf   : > { %1497 = vrot.lane.b32.xlu0 %v2715_v37, %s2478_s8  ;;  %2400 = vrot.lane.b32.xlu1 %v2369_v31, %s2486_s13 }
 0x1c3   : > { %2405 = vrot.lane.b32.xlu0 %v2374_v35, %s2486_s13  ;;  %1593 = vrot.lane.b32.xlu1 %v2705_v34, %s2476_s22 }
 0x1c7   : > { %1595 = vrot.lane.b32.xlu0 %v2715_v37, %s2476_s22  ;;  %2410 = vrot.lane.b32.xlu1 %v2369_v31, %s2471_s24 }
 0x1cb   : > { %2415 = vrot.lane.b32.xlu0 %v2374_v35, %s2471_s24  ;;  %1691 = vrot.lane.b32.xlu1 %v2705_v34, %s2482_s14 }
 0x1cf   : > { %1693 = vrot.lane.b32.xlu0 %v2715_v37, %s2482_s14  ;;  %2420 = vrot.lane.b32.xlu1 %v2369_v31, %s2487_s12  ;;  %s2488_s14 = smov 110  }
 0x1d3   : > { %2425 = vrot.lane.b32.xlu0 %v2374_v35, %s2487_s12  ;;  %1788 = vrot.lane.b32.xlu1 %v2705_v34, %s2480_s9 }
 0x1d7   : > { %1790 = vrot.lane.b32.xlu0 %v2715_v37, %s2480_s9  ;;  %1890 = vperm.xlu1 %2368, %v1886_v19   ;;  %s2100_s9 = sshll.u32 %s2810_s26, 4 }
 0x1d8   : > { %s429_s17 = scalar_lea.vmem %s2800_s6, %s2100_s9  ;;  %s437_s26 = scalar_lea.vmem %s2801_s7, %s2100_s9 }
 0x1db   : > { %1895 = vperm.xlu0 %2367, %v1887_v38   ;;  %1904 = vrot.lane.b32.xlu1 %v2600_v6, %s2488_s14 }
 0x1df   : > { %1906 = vrot.lane.b32.xlu0 %v2604_v8, %s2488_s14  ;;  %1908 = vrot.lane.b32.xlu1 %v2602_v7, %s2488_s14 }
 0x1e3   : > { %1910 = vrot.lane.b32.xlu0 %v2606_v9, %s2488_s14 }
 0x219   : > { %v2371_v39 = vpop.permute.xlu1 %2370 }
 0x21a   : > { %v2373_v40 = vunpack.i.h.bf16 %v2371_v39  ;;  %v2372_v41 = vunpack.i.l.bf16 %v2371_v39 }
 0x21c   : > { %v1235_v46 = vsel %vm1234_vm0, %v2372_v41, %v2373_v40 }
 0x21d   : > { %v2376_v42 = vpop.permute.xlu0 %2375  ;;  %v1219_v43 = vpop.permute.xlu1 %1218 }
 0x21e   : > { %v2378_v44 = vunpack.i.h.bf16 %v2376_v42  ;;  %v2377_v45 = vunpack.i.l.bf16 %v2376_v42  ;;  %2134 = vmatprep.mubr.msk.f32.mxu1 %vm481_vm5, %v1219_v43 }
 0x220   : > { %v1236_v47 = vsel %vm1234_vm0, %v2377_v45, %v2378_v44 }
 0x221   : > { %v1221_v48 = vpop.permute.xlu0 %1220  ;;  %v2381_v6 = vpop.permute.xlu1 %2380  ;;  %v2207_v49 = vpack.c.bf16 %v1236_v47, %v1235_v46 }
 0x222   : > { %v2383_v8 = vunpack.i.h.bf16 %v2381_v6  ;;  %v2382_v7 = vunpack.i.l.bf16 %v2381_v6 }
 0x223   : > { %2208 = vmatprep.subr.bf16.mxu1 %v2207_v49 }
 0x224   : > { %2210 = vmatpush3.bf16.msra.mxu1 %v2207_v49  ;;  %v1410_v53 = vsel %vm1409_vm1, %v2382_v7, %v2383_v8  ;;  %v1920_v8 = vld [vmem:[%s429_s17 + $0x8] sm:$0xff] }
 0x225   : > { %v2386_v9 = vpop.permute.xlu0 %2385  ;;  %v1398_v50 = vpop.permute.xlu1 %1397  ;;  %2212 = vmatprep.subr.bf16.mxu1 %v2708_v36 }
 0x226   : > { %v2388_v51 = vunpack.i.h.bf16 %v2386_v9  ;;  %v2387_v52 = vunpack.i.l.bf16 %v2386_v9 }
 0x227   : > { %2135 = vmatmul.mubr.msk.f32.vlgmr.msra.gmra.mrb[8].mxu1 %vm481_vm5, %v1221_v48 }
 0x228   : > { %2214 = vmatpush3.bf16.msra.mxu1 %v2708_v36  ;;  %v1411_v54 = vsel %vm1409_vm1, %v2387_v52, %v2388_v51  ;;  %2141 = vmatprep.mubr.msk.f32.mxu1 %vm481_vm5, %v2705_v34  ;;  %v1919_v51 = vld [vmem:[%s429_s17] sm:$0xff] }
 0x229   : > { %v1400_v55 = vpop.permute.xlu0 %1399  ;;  %v2391_v56 = vpop.permute.xlu1 %2390  ;;  %v2215_v57 = vpack.c.bf16 %v1411_v54, %v1410_v53 }
 0x22a   : > { %v2393_v58 = vunpack.i.h.bf16 %v2391_v56  ;;  %v2392_v59 = vunpack.i.l.bf16 %v2391_v56 }
 0x22b   : > { %2216 = vmatprep.subr.bf16.mxu1 %v2215_v57 }
 0x22c   : > { %v1508_v0 = vsel %vm1507_vm2, %v2392_v59, %v2393_v58 }
 0x22d   : > { %v2396_v60 = vpop.permute.xlu0 %2395  ;;  %v1496_v61 = vpop.permute.xlu1 %1495 }
 0x22e   : > { %v2398_v62 = vunpack.i.h.bf16 %v2396_v60  ;;  %v2397_v63 = vunpack.i.l.bf16 %v2396_v60 }
 0x22f   : > { %2142 = vmatmul.mubr.msk.f32.vlgmr.msra.gmra.mrb[8].mxu1 %vm481_vm5, %v2715_v37 }
 0x230   : > { %2218 = vmatpush3.bf16.msra.mxu1 %v2215_v57  ;;  %2148 = vmatprep.mubr.msk.f32.mxu1 %vm481_vm5, %v1398_v50  ;;  %v1509_v1 = vsel %vm1507_vm2, %v2397_v63, %v2398_v62 }
 0x231   : > { %v1498_v2 = vpop.permute.xlu0 %1497  ;;  %v2401_v3 = vpop.permute.xlu1 %2400  ;;  %v2219_v10 = vpack.c.bf16 %v1509_v1, %v1508_v0 }
 0x232   : > { %v2403_v11 = vunpack.i.h.bf16 %v2401_v3  ;;  %v2402_v12 = vunpack.i.l.bf16 %v2401_v3 }
 0x233   : > { %2220 = vmatprep.subr.bf16.mxu1 %v2219_v10 }
 0x234   : > { %v1606_v16 = vsel %vm1605_vm3, %v2402_v12, %v2403_v11 }
 0x235   : > { %v2406_v13 = vpop.permute.xlu0 %2405  ;;  %v1594_v14 = vpop.permute.xlu1 %1593 }
 0x236   : > { %v2408_v15 = vunpack.i.h.bf16 %v2406_v13  ;;  %v2407_v4 = vunpack.i.l.bf16 %v2406_v13 }
 0x237   : > { %2149 = vmatmul.mubr.msk.f32.vlgmr.msra.gmra.mrb[8].mxu1 %vm481_vm5, %v1400_v55 }
 0x238   : > { %2222 = vmatpush3.bf16.msra.mxu1 %v2219_v10  ;;  %2155 = vmatprep.mubr.msk.f32.mxu1 %vm481_vm5, %v1496_v61  ;;  %v1607_v17 = vsel %vm1605_vm3, %v2407_v4, %v2408_v15 }
 0x239   : > { %v1596_v18 = vpop.permute.xlu0 %1595  ;;  %v2411_v20 = vpop.permute.xlu1 %2410  ;;  %v2223_v21 = vpack.c.bf16 %v1607_v17, %v1606_v16 }
 0x23a   : > { %v2413_v5 = vunpack.i.h.bf16 %v2411_v20  ;;  %v2412_v22 = vunpack.i.l.bf16 %v2411_v20 }
 0x23b   : > { %2224 = vmatprep.subr.bf16.mxu1 %v2223_v21 }
 0x23c   : > { %v1703_v27 = vsel %vm474_vm4, %v2412_v22, %v2413_v5 }
 0x23d   : > { %v2416_v23 = vpop.permute.xlu0 %2415  ;;  %v1692_v24 = vpop.permute.xlu1 %1691 }
 0x23e   : > { %v2418_v25 = vunpack.i.h.bf16 %v2416_v23  ;;  %v2417_v26 = vunpack.i.l.bf16 %v2416_v23 }
 0x23f   : > { %2156 = vmatmul.mubr.msk.f32.vlgmr.msra.gmra.mrb[8].mxu1 %vm481_vm5, %v1498_v2 }
 0x240   : > { %2226 = vmatpush3.bf16.msra.mxu1 %v2223_v21  ;;  %2162 = vmatprep.mubr.msk.f32.mxu1 %vm481_vm5, %v1594_v14  ;;  %v1704_v28 = vsel %vm474_vm4, %v2417_v26, %v2418_v25  ;;  %vm1912_vm4 = vcmask 900096  }
 0x241   : > { %v1694_v29 = vpop.permute.xlu0 %1693  ;;  %v2421_v30 = vpop.permute.xlu1 %2420  ;;  %v2227_v31 = vpack.c.bf16 %v1704_v28, %v1703_v27 }
 0x242   : > { %v2423_v32 = vunpack.i.h.bf16 %v2421_v30  ;;  %v2422_v33 = vunpack.i.l.bf16 %v2421_v30 }
 0x243   : > { %2228 = vmatprep.subr.bf16.mxu1 %v2227_v31 }
 0x244   : > { %v1801_v37 = vsel %vm1800_vm6, %v2422_v33, %v2423_v32 }
 0x245   : > { %v2426_v34 = vpop.permute.xlu0 %2425  ;;  %v1789_v39 = vpop.permute.xlu1 %1788 }
 0x246   : > { %v2428_v35 = vunpack.i.h.bf16 %v2426_v34  ;;  %v2427_v36 = vunpack.i.l.bf16 %v2426_v34 }
 0x247   : > { %2163 = vmatmul.mubr.msk.f32.vlgmr.msra.gmra.mrb[8].mxu1 %vm481_vm5, %v1596_v18 }
 0x248   : > { %2230 = vmatpush3.bf16.msra.mxu1 %v2227_v31  ;;  %2169 = vmatprep.mubr.msk.f32.mxu1 %vm481_vm5, %v1692_v24  ;;  %v1802_v19 = vsel %vm1800_vm6, %v2427_v36, %v2428_v35 }
 0x249   : > { %v2231_v38 = vpack.c.bf16 %v1802_v19, %v1801_v37  ;;  %v1791_v40 = vpop.permute.xlu0 %1790 }
 0x24b   : > { %2232 = vmatprep.subr.bf16.mxu1 %v2231_v38 }
 0x24f   : > { %2170 = vmatmul.mubr.msk.f32.vlgmr.msra.gmra.mrb[8].mxu1 %vm481_vm5, %v1694_v29 }
 0x250   : > { %2234 = vmatpush3.bf16.msra.mxu1 %v2231_v38  ;;  %2176 = vmatprep.mubr.msk.f32.mxu1 %vm481_vm5, %v1789_v39 }
 0x256   : > { %v1891_v41 = vpop.permute.xlu1 %1890 }
 0x257   : > { %2177 = vmatmul.mubr.msk.f32.vlgmr.msra.gmra.mrb[8].mxu1 %vm481_vm5, %v1791_v40 }
 0x25a   : > { %v1896_v42 = vpop.permute.xlu0 %1895  ;;  %v1905_v44 = vpop.permute.xlu1 %1904 }
 0x25e   : > { %v1907_v43 = vpop.permute.xlu0 %1906  ;;  %v1909_v46 = vpop.permute.xlu1 %1908 }
 0x25f   : > { %v1913_v9 = vsel %vm1912_vm4, %v1905_v44, %v1907_v43 }
 0x262   : > { %v1911_v45 = vpop.permute.xlu0 %1910 }
 0x263   : > { %v1914_v48 = vsel %vm1912_vm4, %v1909_v46, %v1911_v45 }
 0x32a   : > { %v2178_v47 = vpop.f32.mrb[8].mxu1 }
 0x32b   : > { %v1899_v6 = vadd.f32 %v2178_v47, %v1896_v42  ;;  %v1875_v49 = vpop.f32.mrb[9].mxu1 }
 0x32c   : > { %v1898_v7 = vadd.f32 %v1891_v41, %v1875_v49 }
 0x32d   : > { %v1918_v50 = vadd.f32 %v1914_v48, %v1899_v6 }
 0x32e   : > { %v1917_v52 = vadd.f32 %v1913_v9, %v1898_v7 }
 0x32f   : > { %v1922_v53 = vadd.f32 %v1920_v8, %v1918_v50 }
 0x330   : > { %v1921_v54 = vadd.f32 %v1919_v51, %v1917_v52 }
 0x331   : > { %1924 = vst [vmem:[%s437_s26 + $0x8] sm:$0xff] %v1922_v53 }
 0x332   : > { %1923 = vst [vmem:[%s437_s26] sm:$0xff] %v1921_v54 }
 0x333 PF: > { %s17_s28 = sadd.s32 1, %s2467_s28   ;;  %s2803_s24 = smov %s2455_s25 }
 0x334   : > { %p14_p10 = scmp.ge.s32.totalorder %s17_s28, 4   ;;  %s2804_s25 = smov %s2568_s10 }
 0x335   : > { %s2805_s26 = smov %s2463_s27  ;;  %s2806_s27 = smov %s2808_s29 }
 0x336   :  { %16 = sbr.rel (!%p14_p10) target bundleno = 3 (0x3), region = 170 }

// kernel: generator_forward.26
= control target key start
LH: loop header
LB: loop body
LE: loop exit
PB: predicated region body
PF: predicated region fallthrough
CT: control target
= control target key end

     0   :  { %s806_s21 = smov 0   ;;  %s808_s22 = smov 0   ;;  %s877_s0 = inlined_call_operand.vmem [shape: f32[2,8,256], index: 0, kind: input, shape index: {}, may-alias: {0,1}]   ;;  %s878_s1 = inlined_call_operand.vmem [shape: f32[2,8,256], index: 1, kind: input, shape index: {}, may-alias: {0,1}]   ;;  %s879_s2 = inlined_call_operand.vmem [shape: f32[8,24], index: 2, kind: input, shape index: {}]   ;;  %s880_s3 = inlined_call_operand.vmem [shape: f32[8,1], index: 3, kind: input, shape index: {}]   ;;  %s881_s4 = inlined_call_operand.vmem [shape: f32[8,24], index: 4, kind: input, shape index: {}]   ;;  %s882_s5 = inlined_call_operand.vmem [shape: f32[8,1], index: 5, kind: input, shape index: {}]   ;;  %s883_s6 = inlined_call_operand.vmem [shape: f32[2,8,64], index: 6, kind: output, shape index: {}]  }
   0x1   :  { %s810_s23 = smov 0  }
   0x2 LB: > { %s28_s24 = sadd.s32 1, %s756_s22  ;;  %p659_p0 = scmp.ge.s32.totalorder %s760_s23, 1  ;;  %s760_s23 = sphi %s810_s23, %s16_s23   ;;  %s756_s22 = sphi %s808_s22, %s885_s22   ;;  %s752_s21 = sphi %s806_s21, %s884_s21  }
   0x3   : > { %p30_p1 = scmp.ge.s32.totalorder %s28_s24, 2  ;;  %p250_p2 = scmp.lt.s32.totalorder %s760_s23, 3 }
   0x5   : > { %s887_s24 = smov (%p30_p1, %s28_s24), 0  ;;  %p251_p3 = pnand %p659_p0, %p250_p2 }
   0x6   : > { %p294_p4 = scmp.lt.s32.totalorder (!%p251_p3), %s752_s21, 1  ;;  %v762_v5 = vmov (!%p251_p3), 0.0   ;;  %s763_s9 = smov (!%p251_p3), 122   ;;  %v764_v8 = vmov (!%p251_p3), 0   ;;  %v346_v9 = vld [vmem:[%s880_s3] sm:$0xff] (!%p251_p3)  ;;  %vm333_vm2 = vcmask (!%p251_p3), 1022976   ;;  %v429_v20 = vlaneseq (!%p251_p3) }
   0x7   : > { %254 = sbr.rel (%p251_p3) target bundleno = 711 (0x2c7), region = 44  ;;  %420 = vmatprep.mubr.f32.mxu0 (!%p251_p3), %v762_v5  ;;  %737 = vset.pattern.permute.xlu0 (!%p251_p3), %v764_v8  ;;  %s765_s12 = smov (!%p251_p3), 125   ;;  %vm341_vm3 = vcmask (!%p251_p3), 998400   ;;  %v345_v19 = vld [vmem:[%s879_s2] sm:$0xff] (!%p251_p3)  ;;  %vm352_vm4 = vcmask (!%p251_p3), 195584   ;;  %v766_v25 = vmov (!%p251_p3), 0.0|0.0  }
   0x8   : > { %731 = vset.pattern.permute.xlu1 (!%p251_p3), %v764_v8  ;;  %v430_v21 = vand.u32 (!%p251_p3), 127, %v429_v20  ;;  %690 = vmatprep.subr.bf16.mxu1 (!%p251_p3), %v766_v25  ;;  %vm767_vm9 = vmmov (!%p251_p3), 0   ;;  %s768_s15 = smov (!%p251_p3), 126   ;;  %v470_v32 = vld [vmem:[%s882_s5] sm:$0xff] (!%p251_p3)  ;;  %s769_s18 = smov (!%p251_p3), 127   ;;  %vm459_vm10 = vcmask (!%p251_p3), 1039360  }
   0x9   : > { %683 = vmatprep.mubr.msk.f32.mxu1 (!%p251_p3), %vm767_vm9, %v762_v5  ;;  %s770_s19 = smov (!%p251_p3), 124   ;;  %vm466_vm11 = vcmask (!%p251_p3), 1031168   ;;  %v469_v40 = vld [vmem:[%s881_s4] sm:$0xff] (!%p251_p3)  ;;  %vm555_vm12 = vcmask (!%p251_p3), 1014784  }
   0xa   : > { %v433_v22 = vadd.s32 (!%p251_p3), 4294967295, %v430_v21 }
   0xc   : > { %vm435_vm5 = vcmp.ge.s32.totalorder (!%p251_p3), %v433_v22, 0  ;;  %vm437_vm6 = vcmp.lt.s32.totalorder (!%p251_p3), %v433_v22, 64 }
   0xd   : > { %vm439_vm7 = vmand (!%p251_p3), %vm435_vm5, %vm437_vm6 }
   0xe   : > { %s889_s21 = smov (!%p294_p4, %s752_s21), 1 }
   0xf   : > { %s669_s25 = sshll.u32 %s889_s21, 4  ;;  %s664_s26 = sshll.u32 %s889_s21, 3 }
  0x10   : > { %s301_s28 = scalar_lea.vmem %s877_s0, %s669_s25  ;;  %s671_s29 = sadd.s32 8, %s669_s25 }
  0x11   : > { %s310_s8 = scalar_lea.vmem %s878_s1, %s671_s29  ;;  %v833_v0 = vld [vmem:[%s301_s28] sm:$0xff]  ;;  %s318_s29 = scalar_lea.vmem %s883_s6, %s664_s26 }
  0x12   : > { %v835_v1 = vld [vmem:[%s310_s8] sm:$0xff]  ;;  %vm321_vm0 = vcmp.ge.f32.partialorder %v833_v0, 0.0  ;;  %v323_v2 = vmul.f32 0.1, %v833_v0 }
  0x13   : > { %vm322_vm1 = vcmp.ge.f32.partialorder %v835_v1, 0.0  ;;  %v324_v3 = vmul.f32 0.1, %v835_v1 }
  0x14   : > { %v325_v4 = vsel %vm321_vm0, %v833_v0, %v323_v2 }
  0x15   : > { %v326_v6 = vsel %vm322_vm1, %v835_v1, %v324_v3 }
  0x16   : > { %v726_v7 = vpack.i.bf16 %v326_v6, %v325_v4  ;;  %339 = vrot.lane.b32.xlu1 %v326_v6, %s763_s9 }
  0x18   : > { %727 = vrot.lane.b32.xlu0 %v726_v7, %s765_s12 }
  0x1a   : > { %349 = vperm.xlu1 %731, %v346_v9  }
  0x1c   : > { %337 = vrot.lane.b32.xlu0 %v325_v4, %s763_s9 }
  0x88   : > { %v340_v16 = vpop.permute.xlu1 %339 }
  0x8a   : > { %v728_v10 = vpop.permute.xlu0 %727 }
  0x8b   : > { %v730_v11 = vunpack.i.h.bf16 %v728_v10  ;;  %v729_v12 = vunpack.i.l.bf16 %v728_v10 }
  0x8d   : > { %v686_v13 = vpack.c.bf16 %v730_v11, %v326_v6  ;;  %v334_v14 = vsel %vm333_vm2, %v729_v12, %v730_v11 }
  0x8e   : > { %v688_v15 = vpack.c.bf16 %v334_v14, %v325_v4  ;;  %v338_v17 = vpop.permute.xlu0 %337 }
  0x8f   : > { %687 = vmatprep.subr.bf16.mxu0 %v686_v13  ;;  %v342_v18 = vsel %vm341_vm3, %v338_v17, %v340_v16 }
  0x90   : > { %689 = vmatpush1.bf16.msra.mxu0 %v688_v15 }
  0x91   : > { %360 = vmatprep.subr.mxu0 %v340_v16 }
  0x94   : > { %361 = vmatpush1.msra.mxu0 %v342_v18 }
  0x95   : > { %665 = vmatmul.mubr.msk.f32.vlgmr.msra.gmra.mrb[0].mxu0 %vm352_vm4, %v345_v19 }
  0x99   : > { %v350_v23 = vpop.permute.xlu1 %349 }
 0x168   : > { %v422_v24 = vpop.f32.mrb[0].mxu0 }
 0x169   : > { %v423_v26 = vadd.f32 %v422_v24, %v350_v23  ;;  %v424_v27 = vpop.f32.mrb[1].mxu0 }
 0x16b   : > { %v445_v28 = vsel %vm439_vm7, %v423_v26, 0.0 }
 0x16c   : > { %v449_v29 = vmul.f32 0.1, %v445_v28  ;;  %vm447_vm8 = vcmp.ge.f32.partialorder %v445_v28, 0.0 }
 0x16e   : > { %v451_v30 = vsel %vm447_vm8, %v445_v28, %v449_v29 }
 0x16f   : > { %462 = vrot.lane.b32.xlu1 %v451_v30, %s768_s15  ;;  %v732_v31 = vpack.i.bf16 %v762_v5, %v451_v30 }
 0x171   : > { %733 = vrot.lane.b32.xlu0 %v732_v31, %s769_s18 }
 0x173   : > { %473 = vperm.xlu1 %731, %v470_v32  }
 0x175   : > { %464 = vrot.lane.b32.xlu0 %v762_v5, %s768_s15 }
 0x177   : > { %553 = vrot.lane.b32.xlu1 %v835_v1, %s770_s19 }
 0x179   : > { %551 = vrot.lane.b32.xlu0 %v833_v0, %s770_s19 }
 0x1e1   : > { %v463_v39 = vpop.permute.xlu1 %462 }
 0x1e3   : > { %v734_v33 = vpop.permute.xlu0 %733 }
 0x1e4   : > { %v736_v34 = vunpack.i.h.bf16 %v734_v33  ;;  %v735_v35 = vunpack.i.l.bf16 %v734_v33 }
 0x1e6   : > { %v460_v36 = vsel %vm459_vm10, %v735_v35, %v736_v34 }
 0x1e7   : > { %v691_v37 = vpack.c.bf16 %v460_v36, %v451_v30  ;;  %v465_v38 = vpop.permute.xlu0 %464 }
 0x1e8   : > { %v467_v41 = vsel %vm466_vm11, %v463_v39, %v465_v38 }
 0x1e9   : > { %692 = vmatpush3.bf16.msra.mxu1 %v691_v37 }
 0x1ea   : > { %681 = vmatprep.subr.mxu1 %v762_v5 }
 0x1eb   : > { %v552_v44 = vpop.permute.xlu0 %551 }
 0x1ed   : > { %682 = vmatpush3.msra.mxu1 %v467_v41 }
 0x1ee   : > { %684 = vmatmul.mubr.msk.f32.vlgmr.msra.gmra.mrb[0].mxu1 %vm352_vm4, %v469_v40 }
 0x1f2   : > { %v474_v42 = vpop.permute.xlu1 %473 }
 0x1f6   : > { %v554_v43 = vpop.permute.xlu1 %553 }
 0x1f7   : > { %v556_v46 = vsel %vm555_vm12, %v552_v44, %v554_v43 }
 0x2c1   : > { %v545_v45 = vpop.f32.mrb[0].mxu1 }
 0x2c2   : > { %v546_v47 = vadd.f32 %v545_v45, %v474_v42  ;;  %v685_v48 = vpop.f32.mrb[1].mxu1 }
 0x2c4   : > { %v558_v49 = vadd.f32 %v556_v46, %v546_v47 }
 0x2c6   : > { %559 = vst [vmem:[%s318_s29] sm:$0xff] %v558_v49 }
 0x2c7 PF: > { %s16_s23 = sadd.s32 1, %s760_s23   ;;  %s884_s21 = smov %s756_s22 }
 0x2c8   : > { %p13_p5 = scmp.ge.s32.totalorder %s16_s23, 4   ;;  %s885_s22 = smov %s887_s24 }
 0x2ca   :  { %15 = sbr.rel (!%p13_p5) target bundleno = 2 (0x2), region = 77 }

// kernel: generator_forward.25
= control target key start
LH: loop header
LB: loop body
LE: loop exit
PB: predicated region body
PF: predicated region fallthrough
CT: control target
= control target key end

     0   :  { %s797_s21 = smov 0   ;;  %s799_s22 = smov 0   ;;  %s875_s0 = inlined_call_operand.vmem [shape: f32[2,8,256], index: 0, kind: input, shape index: {}, may-alias: {0,1}]   ;;  %s876_s1 = inlined_call_operand.vmem [shape: f32[2,8,256], index: 1, kind: input, shape index: {}, may-alias: {0,1}]   ;;  %s877_s2 = inlined_call_operand.vmem [shape: f32[8,24], index: 2, kind: input, shape index: {}]   ;;  %s878_s3 = inlined_call_operand.vmem [shape: f32[8,1], index: 3, kind: input, shape index: {}]   ;;  %s879_s4 = inlined_call_operand.vmem [shape: f32[8,24], index: 4, kind: input, shape index: {}]   ;;  %s880_s5 = inlined_call_operand.vmem [shape: f32[8,1], index: 5, kind: input, shape index: {}]   ;;  %s881_s6 = inlined_call_operand.vmem [shape: f32[2,8,64], index: 6, kind: output, shape index: {}]  }
   0x1   :  { %s801_s23 = smov 0  }
   0x2 LB: > { %s28_s24 = sadd.s32 1, %s750_s22  ;;  %p656_p0 = scmp.ge.s32.totalorder %s754_s23, 1  ;;  %s754_s23 = sphi %s801_s23, %s16_s23   ;;  %s750_s22 = sphi %s799_s22, %s883_s22   ;;  %s746_s21 = sphi %s797_s21, %s882_s21  }
   0x3   : > { %p30_p1 = scmp.ge.s32.totalorder %s28_s24, 2  ;;  %p250_p2 = scmp.lt.s32.totalorder %s754_s23, 3 }
   0x5   : > { %s885_s24 = smov (%p30_p1, %s28_s24), 0  ;;  %p251_p3 = pnand %p656_p0, %p250_p2 }
   0x6   : > { %p294_p4 = scmp.lt.s32.totalorder (!%p251_p3), %s746_s21, 1  ;;  %v756_v5 = vmov (!%p251_p3), 0.0   ;;  %s757_s9 = smov (!%p251_p3), 126   ;;  %v758_v8 = vmov (!%p251_p3), 0   ;;  %v346_v9 = vld [vmem:[%s878_s3] sm:$0xff] (!%p251_p3)  ;;  %vm333_vm2 = vcmask (!%p251_p3), 1039360   ;;  %v429_v20 = vlaneseq (!%p251_p3) }
   0x7   : > { %254 = sbr.rel (%p251_p3) target bundleno = 711 (0x2c7), region = 44  ;;  %420 = vmatprep.mubr.f32.mxu0 (!%p251_p3), %v756_v5  ;;  %731 = vset.pattern.permute.xlu0 (!%p251_p3), %v758_v8  ;;  %s759_s12 = smov (!%p251_p3), 127   ;;  %vm341_vm3 = vcmask (!%p251_p3), 1031168   ;;  %v345_v19 = vld [vmem:[%s877_s2] sm:$0xff] (!%p251_p3)  ;;  %vm352_vm4 = vcmask (!%p251_p3), 195584   ;;  %v760_v25 = vmov (!%p251_p3), 0.0|0.0  }
   0x8   : > { %725 = vset.pattern.permute.xlu1 (!%p251_p3), %v758_v8  ;;  %v430_v21 = vand.u32 (!%p251_p3), 127, %v429_v20  ;;  %687 = vmatprep.subr.bf16.mxu1 (!%p251_p3), %v760_v25  ;;  %vm761_vm9 = vmmov (!%p251_p3), 0   ;;  %v468_v32 = vld [vmem:[%s880_s5] sm:$0xff] (!%p251_p3) }
   0x9   : > { %680 = vmatprep.mubr.msk.f32.mxu1 (!%p251_p3), %vm761_vm9, %v756_v5  ;;  %v467_v40 = vld [vmem:[%s879_s4] sm:$0xff] (!%p251_p3) }
   0xa   : > { %v433_v22 = vadd.s32 (!%p251_p3), 4294967295, %v430_v21 }
   0xc   : > { %vm435_vm5 = vcmp.ge.s32.totalorder (!%p251_p3), %v433_v22, 0  ;;  %vm437_vm6 = vcmp.lt.s32.totalorder (!%p251_p3), %v433_v22, 64 }
   0xd   : > { %vm439_vm7 = vmand (!%p251_p3), %vm435_vm5, %vm437_vm6 }
   0xe   : > { %s887_s21 = smov (!%p294_p4, %s746_s21), 1 }
   0xf   : > { %s666_s25 = sshll.u32 %s887_s21, 4  ;;  %s661_s19 = sshll.u32 %s887_s21, 3 }
  0x10   : > { %s301_s28 = scalar_lea.vmem %s875_s0, %s666_s25  ;;  %s668_s29 = sadd.s32 8, %s666_s25 }
  0x11   : > { %s310_s8 = scalar_lea.vmem %s876_s1, %s668_s29  ;;  %v824_v0 = vld [vmem:[%s301_s28] sm:$0xff]  ;;  %s318_s26 = scalar_lea.vmem %s881_s6, %s661_s19 }
  0x12   : > { %v320_v1 = vld [vmem:[%s310_s8] sm:$0xff]  ;;  %vm321_vm0 = vcmp.ge.f32.partialorder %v824_v0, 0.0  ;;  %v323_v2 = vmul.f32 0.1, %v824_v0 }
  0x13   : > { %vm322_vm1 = vcmp.ge.f32.partialorder %v320_v1, 0.0  ;;  %v324_v3 = vmul.f32 0.1, %v320_v1 }
  0x14   : > { %v325_v4 = vsel %vm321_vm0, %v824_v0, %v323_v2 }
  0x15   : > { %v326_v6 = vsel %vm322_vm1, %v320_v1, %v324_v3 }
  0x16   : > { %v720_v7 = vpack.i.bf16 %v326_v6, %v325_v4  ;;  %339 = vrot.lane.b32.xlu1 %v326_v6, %s757_s9 }
  0x18   : > { %721 = vrot.lane.b32.xlu0 %v720_v7, %s759_s12 }
  0x1a   : > { %349 = vperm.xlu1 %725, %v346_v9  }
  0x1c   : > { %337 = vrot.lane.b32.xlu0 %v325_v4, %s757_s9 }
  0x88   : > { %v340_v16 = vpop.permute.xlu1 %339 }
  0x8a   : > { %v722_v10 = vpop.permute.xlu0 %721 }
  0x8b   : > { %v724_v11 = vunpack.i.h.bf16 %v722_v10  ;;  %v723_v12 = vunpack.i.l.bf16 %v722_v10 }
  0x8d   : > { %v683_v13 = vpack.c.bf16 %v724_v11, %v326_v6  ;;  %v334_v14 = vsel %vm333_vm2, %v723_v12, %v724_v11 }
  0x8e   : > { %v685_v15 = vpack.c.bf16 %v334_v14, %v325_v4  ;;  %v338_v17 = vpop.permute.xlu0 %337 }
  0x8f   : > { %684 = vmatprep.subr.bf16.mxu0 %v683_v13  ;;  %v342_v18 = vsel %vm341_vm3, %v338_v17, %v340_v16 }
  0x90   : > { %686 = vmatpush1.bf16.msra.mxu0 %v685_v15 }
  0x91   : > { %360 = vmatprep.subr.mxu0 %v340_v16 }
  0x94   : > { %361 = vmatpush1.msra.mxu0 %v342_v18 }
  0x95   : > { %662 = vmatmul.mubr.msk.f32.vlgmr.msra.gmra.mrb[0].mxu0 %vm352_vm4, %v345_v19 }
  0x99   : > { %v350_v23 = vpop.permute.xlu1 %349 }
 0x168   : > { %v422_v24 = vpop.f32.mrb[0].mxu0 }
 0x169   : > { %v423_v26 = vadd.f32 %v422_v24, %v350_v23  ;;  %v424_v27 = vpop.f32.mrb[1].mxu0 }
 0x16b   : > { %v445_v28 = vsel %vm439_vm7, %v423_v26, 0.0 }
 0x16c   : > { %v449_v29 = vmul.f32 0.1, %v445_v28  ;;  %vm447_vm8 = vcmp.ge.f32.partialorder %v445_v28, 0.0 }
 0x16e   : > { %v451_v30 = vsel %vm447_vm8, %v445_v28, %v449_v29 }
 0x16f   : > { %461 = vrot.lane.b32.xlu1 %v451_v30, %s757_s9  ;;  %v726_v31 = vpack.i.bf16 %v756_v5, %v451_v30 }
 0x171   : > { %727 = vrot.lane.b32.xlu0 %v726_v31, %s759_s12 }
 0x173   : > { %471 = vperm.xlu1 %725, %v468_v32  }
 0x175   : > { %463 = vrot.lane.b32.xlu0 %v756_v5, %s757_s9 }
 0x177   : > { %551 = vrot.lane.b32.xlu1 %v320_v1, %s757_s9 }
 0x179   : > { %549 = vrot.lane.b32.xlu0 %v824_v0, %s757_s9 }
 0x1e1   : > { %v462_v39 = vpop.permute.xlu1 %461 }
 0x1e3   : > { %v728_v33 = vpop.permute.xlu0 %727 }
 0x1e4   : > { %v730_v34 = vunpack.i.h.bf16 %v728_v33  ;;  %v729_v35 = vunpack.i.l.bf16 %v728_v33 }
 0x1e6   : > { %v459_v36 = vsel %vm333_vm2, %v729_v35, %v730_v34 }
 0x1e7   : > { %v688_v37 = vpack.c.bf16 %v459_v36, %v451_v30  ;;  %v464_v38 = vpop.permute.xlu0 %463 }
 0x1e8   : > { %v465_v41 = vsel %vm341_vm3, %v462_v39, %v464_v38 }
 0x1e9   : > { %689 = vmatpush3.bf16.msra.mxu1 %v688_v37 }
 0x1ea   : > { %678 = vmatprep.subr.mxu1 %v756_v5 }
 0x1eb   : > { %v550_v44 = vpop.permute.xlu0 %549 }
 0x1ed   : > { %679 = vmatpush3.msra.mxu1 %v465_v41 }
 0x1ee   : > { %681 = vmatmul.mubr.msk.f32.vlgmr.msra.gmra.mrb[0].mxu1 %vm352_vm4, %v467_v40 }
 0x1f2   : > { %v472_v42 = vpop.permute.xlu1 %471 }
 0x1f6   : > { %v552_v43 = vpop.permute.xlu1 %551 }
 0x1f7   : > { %v553_v46 = vsel %vm341_vm3, %v550_v44, %v552_v43 }
 0x2c1   : > { %v543_v45 = vpop.f32.mrb[0].mxu1 }
 0x2c2   : > { %v544_v47 = vadd.f32 %v543_v45, %v472_v42  ;;  %v682_v48 = vpop.f32.mrb[1].mxu1 }
 0x2c4   : > { %v555_v49 = vadd.f32 %v553_v46, %v544_v47 }
 0x2c6   : > { %556 = vst [vmem:[%s318_s26] sm:$0xff] %v555_v49 }
 0x2c7 PF: > { %s16_s23 = sadd.s32 1, %s754_s23   ;;  %s882_s21 = smov %s750_s22 }
 0x2c8   : > { %p13_p5 = scmp.ge.s32.totalorder %s16_s23, 4   ;;  %s883_s22 = smov %s885_s24 }
 0x2ca   :  { %15 = sbr.rel (!%p13_p5) target bundleno = 2 (0x2), region = 77 }

// kernel: generator_forward.27
= control target key start
LH: loop header
LB: loop body
LE: loop exit
PB: predicated region body
PF: predicated region fallthrough
CT: control target
= control target key end

     0   :  { %s806_s21 = smov 0   ;;  %s808_s22 = smov 0   ;;  %s877_s0 = inlined_call_operand.vmem [shape: f32[2,8,256], index: 0, kind: input, shape index: {}, may-alias: {0,1}]   ;;  %s878_s1 = inlined_call_operand.vmem [shape: f32[2,8,256], index: 1, kind: input, shape index: {}, may-alias: {0,1}]   ;;  %s879_s2 = inlined_call_operand.vmem [shape: f32[8,24], index: 2, kind: input, shape index: {}]   ;;  %s880_s3 = inlined_call_operand.vmem [shape: f32[8,1], index: 3, kind: input, shape index: {}]   ;;  %s881_s4 = inlined_call_operand.vmem [shape: f32[8,24], index: 4, kind: input, shape index: {}]   ;;  %s882_s5 = inlined_call_operand.vmem [shape: f32[8,1], index: 5, kind: input, shape index: {}]   ;;  %s883_s6 = inlined_call_operand.vmem [shape: f32[2,8,64], index: 6, kind: output, shape index: {}]  }
   0x1   :  { %s810_s23 = smov 0  }
   0x2 LB: > { %s28_s24 = sadd.s32 1, %s756_s22  ;;  %p659_p0 = scmp.ge.s32.totalorder %s760_s23, 1  ;;  %s760_s23 = sphi %s810_s23, %s16_s23   ;;  %s756_s22 = sphi %s808_s22, %s885_s22   ;;  %s752_s21 = sphi %s806_s21, %s884_s21  }
   0x3   : > { %p30_p1 = scmp.ge.s32.totalorder %s28_s24, 2  ;;  %p250_p2 = scmp.lt.s32.totalorder %s760_s23, 3 }
   0x5   : > { %s887_s24 = smov (%p30_p1, %s28_s24), 0  ;;  %p251_p3 = pnand %p659_p0, %p250_p2 }
   0x6   : > { %p294_p4 = scmp.lt.s32.totalorder (!%p251_p3), %s752_s21, 1  ;;  %v762_v5 = vmov (!%p251_p3), 0.0   ;;  %s763_s9 = smov (!%p251_p3), 118   ;;  %v764_v8 = vmov (!%p251_p3), 0   ;;  %v346_v9 = vld [vmem:[%s880_s3] sm:$0xff] (!%p251_p3)  ;;  %vm333_vm2 = vcmask (!%p251_p3), 1006592   ;;  %v429_v20 = vlaneseq (!%p251_p3) }
   0x7   : > { %254 = sbr.rel (%p251_p3) target bundleno = 711 (0x2c7), region = 44  ;;  %420 = vmatprep.mubr.f32.mxu0 (!%p251_p3), %v762_v5  ;;  %737 = vset.pattern.permute.xlu0 (!%p251_p3), %v764_v8  ;;  %s765_s12 = smov (!%p251_p3), 123   ;;  %vm341_vm3 = vcmask (!%p251_p3), 965632   ;;  %v345_v19 = vld [vmem:[%s879_s2] sm:$0xff] (!%p251_p3)  ;;  %vm352_vm4 = vcmask (!%p251_p3), 195584   ;;  %v766_v25 = vmov (!%p251_p3), 0.0|0.0  }
   0x8   : > { %731 = vset.pattern.permute.xlu1 (!%p251_p3), %v764_v8  ;;  %v430_v21 = vand.u32 (!%p251_p3), 127, %v429_v20  ;;  %690 = vmatprep.subr.bf16.mxu1 (!%p251_p3), %v766_v25  ;;  %vm767_vm9 = vmmov (!%p251_p3), 0   ;;  %s768_s15 = smov (!%p251_p3), 126   ;;  %v470_v32 = vld [vmem:[%s882_s5] sm:$0xff] (!%p251_p3)  ;;  %s769_s18 = smov (!%p251_p3), 127   ;;  %vm459_vm10 = vcmask (!%p251_p3), 1039360  }
   0x9   : > { %683 = vmatprep.mubr.msk.f32.mxu1 (!%p251_p3), %vm767_vm9, %v762_v5  ;;  %s770_s19 = smov (!%p251_p3), 122   ;;  %vm466_vm11 = vcmask (!%p251_p3), 1031168   ;;  %v469_v40 = vld [vmem:[%s881_s4] sm:$0xff] (!%p251_p3)  ;;  %vm555_vm12 = vcmask (!%p251_p3), 998400  }
   0xa   : > { %v433_v22 = vadd.s32 (!%p251_p3), 4294967295, %v430_v21 }
   0xc   : > { %vm435_vm5 = vcmp.ge.s32.totalorder (!%p251_p3), %v433_v22, 0  ;;  %vm437_vm6 = vcmp.lt.s32.totalorder (!%p251_p3), %v433_v22, 64 }
   0xd   : > { %vm439_vm7 = vmand (!%p251_p3), %vm435_vm5, %vm437_vm6 }
   0xe   : > { %s889_s21 = smov (!%p294_p4, %s752_s21), 1 }
   0xf   : > { %s669_s25 = sshll.u32 %s889_s21, 4  ;;  %s664_s26 = sshll.u32 %s889_s21, 3 }
  0x10   : > { %s301_s28 = scalar_lea.vmem %s877_s0, %s669_s25  ;;  %s671_s29 = sadd.s32 8, %s669_s25 }
  0x11   : > { %s310_s8 = scalar_lea.vmem %s878_s1, %s671_s29  ;;  %v833_v0 = vld [vmem:[%s301_s28] sm:$0xff]  ;;  %s318_s29 = scalar_lea.vmem %s883_s6, %s664_s26 }
  0x12   : > { %v835_v1 = vld [vmem:[%s310_s8] sm:$0xff]  ;;  %vm321_vm0 = vcmp.ge.f32.partialorder %v833_v0, 0.0  ;;  %v323_v2 = vmul.f32 0.1, %v833_v0 }
  0x13   : > { %vm322_vm1 = vcmp.ge.f32.partialorder %v835_v1, 0.0  ;;  %v324_v3 = vmul.f32 0.1, %v835_v1 }
  0x14   : > { %v325_v4 = vsel %vm321_vm0, %v833_v0, %v323_v2 }
  0x15   : > { %v326_v6 = vsel %vm322_vm1, %v835_v1, %v324_v3 }
  0x16   : > { %v726_v7 = vpack.i.bf16 %v326_v6, %v325_v4  ;;  %339 = vrot.lane.b32.xlu1 %v326_v6, %s763_s9 }
  0x18   : > { %727 = vrot.lane.b32.xlu0 %v726_v7, %s765_s12 }
  0x1a   : > { %349 = vperm.xlu1 %731, %v346_v9  }
  0x1c   : > { %337 = vrot.lane.b32.xlu0 %v325_v4, %s763_s9 }
  0x88   : > { %v340_v16 = vpop.permute.xlu1 %339 }
  0x8a   : > { %v728_v10 = vpop.permute.xlu0 %727 }
  0x8b   : > { %v730_v11 = vunpack.i.h.bf16 %v728_v10  ;;  %v729_v12 = vunpack.i.l.bf16 %v728_v10 }
  0x8d   : > { %v686_v13 = vpack.c.bf16 %v730_v11, %v326_v6  ;;  %v334_v14 = vsel %vm333_vm2, %v729_v12, %v730_v11 }
  0x8e   : > { %v688_v15 = vpack.c.bf16 %v334_v14, %v325_v4  ;;  %v338_v17 = vpop.permute.xlu0 %337 }
  0x8f   : > { %687 = vmatprep.subr.bf16.mxu0 %v686_v13  ;;  %v342_v18 = vsel %vm341_vm3, %v338_v17, %v340_v16 }
  0x90   : > { %689 = vmatpush1.bf16.msra.mxu0 %v688_v15 }
  0x91   : > { %360 = vmatprep.subr.mxu0 %v340_v16 }
  0x94   : > { %361 = vmatpush1.msra.mxu0 %v342_v18 }
  0x95   : > { %665 = vmatmul.mubr.msk.f32.vlgmr.msra.gmra.mrb[0].mxu0 %vm352_vm4, %v345_v19 }
  0x99   : > { %v350_v23 = vpop.permute.xlu1 %349 }
 0x168   : > { %v422_v24 = vpop.f32.mrb[0].mxu0 }
 0x169   : > { %v423_v26 = vadd.f32 %v422_v24, %v350_v23  ;;  %v424_v27 = vpop.f32.mrb[1].mxu0 }
 0x16b   : > { %v445_v28 = vsel %vm439_vm7, %v423_v26, 0.0 }
 0x16c   : > { %v449_v29 = vmul.f32 0.1, %v445_v28  ;;  %vm447_vm8 = vcmp.ge.f32.partialorder %v445_v28, 0.0 }
 0x16e   : > { %v451_v30 = vsel %vm447_vm8, %v445_v28, %v449_v29 }
 0x16f   : > { %462 = vrot.lane.b32.xlu1 %v451_v30, %s768_s15  ;;  %v732_v31 = vpack.i.bf16 %v762_v5, %v451_v30 }
 0x171   : > { %733 = vrot.lane.b32.xlu0 %v732_v31, %s769_s18 }
 0x173   : > { %473 = vperm.xlu1 %731, %v470_v32  }
 0x175   : > { %464 = vrot.lane.b32.xlu0 %v762_v5, %s768_s15 }
 0x177   : > { %553 = vrot.lane.b32.xlu1 %v835_v1, %s770_s19 }
 0x179   : > { %551 = vrot.lane.b32.xlu0 %v833_v0, %s770_s19 }
 0x1e1   : > { %v463_v39 = vpop.permute.xlu1 %462 }
 0x1e3   : > { %v734_v33 = vpop.permute.xlu0 %733 }
 0x1e4   : > { %v736_v34 = vunpack.i.h.bf16 %v734_v33  ;;  %v735_v35 = vunpack.i.l.bf16 %v734_v33 }
 0x1e6   : > { %v460_v36 = vsel %vm459_vm10, %v735_v35, %v736_v34 }
 0x1e7   : > { %v691_v37 = vpack.c.bf16 %v460_v36, %v451_v30  ;;  %v465_v38 = vpop.permute.xlu0 %464 }
 0x1e8   : > { %v467_v41 = vsel %vm466_vm11, %v463_v39, %v465_v38 }
 0x1e9   : > { %692 = vmatpush3.bf16.msra.mxu1 %v691_v37 }
 0x1ea   : > { %681 = vmatprep.subr.mxu1 %v762_v5 }
 0x1eb   : > { %v552_v44 = vpop.permute.xlu0 %551 }
 0x1ed   : > { %682 = vmatpush3.msra.mxu1 %v467_v41 }
 0x1ee   : > { %684 = vmatmul.mubr.msk.f32.vlgmr.msra.gmra.mrb[0].mxu1 %vm352_vm4, %v469_v40 }
 0x1f2   : > { %v474_v42 = vpop.permute.xlu1 %473 }
 0x1f6   : > { %v554_v43 = vpop.permute.xlu1 %553 }
 0x1f7   : > { %v556_v46 = vsel %vm555_vm12, %v552_v44, %v554_v43 }
 0x2c1   : > { %v545_v45 = vpop.f32.mrb[0].mxu1 }
 0x2c2   : > { %v546_v47 = vadd.f32 %v545_v45, %v474_v42  ;;  %v685_v48 = vpop.f32.mrb[1].mxu1 }
 0x2c4   : > { %v558_v49 = vadd.f32 %v556_v46, %v546_v47 }
 0x2c6   : > { %559 = vst [vmem:[%s318_s29] sm:$0xff] %v558_v49 }
 0x2c7 PF: > { %s16_s23 = sadd.s32 1, %s760_s23   ;;  %s884_s21 = smov %s756_s22 }
 0x2c8   : > { %p13_p5 = scmp.ge.s32.totalorder %s16_s23, 4   ;;  %s885_s22 = smov %s887_s24 }
 0x2ca   :  { %15 = sbr.rel (!%p13_p5) target bundleno = 2 (0x2), region = 77 }

// kernel: generator_forward.28
= control target key start
LH: loop header
LB: loop body
LE: loop exit
PB: predicated region body
PF: predicated region fallthrough
CT: control target
= control target key end

     0   :  { %s927_s21 = smov 0   ;;  %s929_s22 = smov 0   ;;  %s1027_s0 = inlined_call_operand.vmem [shape: f32[2,8,256], index: 0, kind: input, shape index: {}, may-alias: {0,1}]   ;;  %s1028_s1 = inlined_call_operand.vmem [shape: f32[2,8,256], index: 1, kind: input, shape index: {}, may-alias: {0,1}]   ;;  %s1029_s2 = inlined_call_operand.vmem [shape: f32[8,56], index: 2, kind: input, shape index: {}]   ;;  %s1030_s3 = inlined_call_operand.vmem [shape: f32[8,1], index: 3, kind: input, shape index: {}]   ;;  %s1031_s4 = inlined_call_operand.vmem [shape: f32[8,56], index: 4, kind: input, shape index: {}]   ;;  %s1032_s5 = inlined_call_operand.vmem [shape: f32[8,1], index: 5, kind: input, shape index: {}]   ;;  %s1033_s6 = inlined_call_operand.vmem [shape: f32[2,8,64], index: 6, kind: output, shape index: {}]  }
   0x1   :  { %s931_s23 = smov 0  }
   0x2 LB: > { %s28_s24 = sadd.s32 1, %s876_s22  ;;  %p712_p0 = scmp.ge.s32.totalorder %s880_s23, 1  ;;  %s880_s23 = sphi %s931_s23, %s16_s23   ;;  %s876_s22 = sphi %s929_s22, %s1035_s22   ;;  %s872_s21 = sphi %s927_s21, %s1034_s21  }
   0x3   : > { %p30_p1 = scmp.ge.s32.totalorder %s28_s24, 2  ;;  %p250_p2 = scmp.lt.s32.totalorder %s880_s23, 3 }
   0x5   : > { %s1037_s24 = smov (%p30_p1, %s28_s24), 0  ;;  %p251_p3 = pnand %p712_p0, %p250_p2 }
   0x6   : > { %p294_p4 = scmp.lt.s32.totalorder (!%p251_p3), %s872_s21, 1  ;;  %s882_s9 = smov (!%p251_p3), 127   ;;  %v886_v7 = vmov (!%p251_p3), 0.0   ;;  %v887_v8 = vmov (!%p251_p3), 0   ;;  %v378_v9 = vld [vmem:[%s1030_s3] sm:$0xff] (!%p251_p3)  ;;  %vm333_vm2 = vcmask (!%p251_p3), 1039360   ;;  %v461_v40 = vlaneseq (!%p251_p3) }
   0x7   : > { %254 = sbr.rel (%p251_p3) target bundleno = 727 (0x2d7), region = 44  ;;  %s883_s10 = smov (!%p251_p3), 125   ;;  %452 = vmatprep.mubr.f32.mxu0 (!%p251_p3), %v886_v7  ;;  %831 = vset.pattern.permute.xlu1 (!%p251_p3), %v887_v8  ;;  %vm349_vm3 = vcmask (!%p251_p3), 1022976   ;;  %vm341_vm4 = vcmask (!%p251_p3), 1031168   ;;  %vm357_vm5 = vcmask (!%p251_p3), 1014784   ;;  %vm365_vm6 = vcmask (!%p251_p3), 1006592  }
   0x8   : > { %s884_s11 = smov (!%p251_p3), 126   ;;  %s885_s12 = smov (!%p251_p3), 124   ;;  %857 = vset.pattern.permute.xlu0 (!%p251_p3), %v887_v8  ;;  %vm373_vm7 = vcmask (!%p251_p3), 998400   ;;  %v377_v39 = vld [vmem:[%s1029_s2] sm:$0xff] (!%p251_p3)  ;;  %vm384_vm8 = vcmask (!%p251_p3), 457728   ;;  %v462_v41 = vand.u32 (!%p251_p3), 127, %v461_v40 }
   0x9   : > { %s888_s13 = smov (!%p251_p3), 123   ;;  %s889_s14 = smov (!%p251_p3), 122   ;;  %v890_v47 = vmov (!%p251_p3), 0.0|0.0   ;;  %vm891_vm13 = vmmov (!%p251_p3), 0   ;;  %v524_v52 = vld [vmem:[%s1032_s5] sm:$0xff] (!%p251_p3) }
   0xa   : > { %v465_v42 = vadd.s32 (!%p251_p3), 4294967293, %v462_v41  ;;  %763 = vmatprep.subr.bf16.mxu1 (!%p251_p3), %v890_v47  ;;  %748 = vmatprep.mubr.msk.f32.mxu1 (!%p251_p3), %vm891_vm13, %v886_v7 }
   0xc   : > { %vm467_vm9 = vcmp.ge.s32.totalorder (!%p251_p3), %v465_v42, 0  ;;  %vm469_vm10 = vcmp.lt.s32.totalorder (!%p251_p3), %v465_v42, 64 }
   0xd   : > { %vm471_vm11 = vmand (!%p251_p3), %vm467_vm9, %vm469_vm10 }
   0xe   : > { %s1039_s21 = smov (!%p294_p4, %s872_s21), 1 }
   0xf   : > { %s722_s25 = sshll.u32 %s1039_s21, 4  ;;  %s717_s27 = sshll.u32 %s1039_s21, 3 }
  0x10   : > { %s301_s28 = scalar_lea.vmem %s1027_s0, %s722_s25  ;;  %s724_s29 = sadd.s32 8, %s722_s25 }
  0x11   : > { %s310_s8 = scalar_lea.vmem %s1028_s1, %s724_s29  ;;  %v954_v0 = vld [vmem:[%s301_s28] sm:$0xff]  ;;  %s318_s30 = scalar_lea.vmem %s1033_s6, %s717_s27 }
  0x12   : > { %v956_v1 = vld [vmem:[%s310_s8] sm:$0xff]  ;;  %vm321_vm0 = vcmp.ge.f32.partialorder %v954_v0, 0.0  ;;  %v323_v2 = vmul.f32 0.1, %v954_v0 }
  0x13   : > { %vm322_vm1 = vcmp.ge.f32.partialorder %v956_v1, 0.0  ;;  %v324_v3 = vmul.f32 0.1, %v956_v1 }
  0x14   : > { %v325_v4 = vsel %vm321_vm0, %v954_v0, %v323_v2 }
  0x15   : > { %v326_v5 = vsel %vm322_vm1, %v956_v1, %v324_v3 }
  0x16   : > { %v806_v6 = vpack.i.bf16 %v326_v5, %v325_v4 }
  0x18   : > { %807 = vrot.lane.b32.xlu0 %v806_v6, %s882_s9  ;;  %817 = vrot.lane.b32.xlu1 %v806_v6, %s883_s10 }
  0x1c   : > { %812 = vrot.lane.b32.xlu0 %v806_v6, %s884_s11  ;;  %822 = vrot.lane.b32.xlu1 %v806_v6, %s885_s12 }
  0x20   : > { %827 = vrot.lane.b32.xlu0 %v806_v6, %s888_s13  ;;  %369 = vrot.lane.b32.xlu1 %v325_v4, %s889_s14 }
  0x24   : > { %371 = vrot.lane.b32.xlu0 %v326_v5, %s889_s14  ;;  %381 = vperm.xlu1 %831, %v378_v9  }
  0x8a   : > { %v808_v10 = vpop.permute.xlu0 %807  ;;  %v818_v11 = vpop.permute.xlu1 %817 }
  0x8b   : > { %v810_v12 = vunpack.i.h.bf16 %v808_v10  ;;  %v809_v13 = vunpack.i.l.bf16 %v808_v10  ;;  %v820_v14 = vunpack.i.h.bf16 %v818_v11  ;;  %v819_v15 = vunpack.i.l.bf16 %v818_v11 }
  0x8d   : > { %v751_v16 = vpack.c.bf16 %v810_v12, %v326_v5  ;;  %v334_v17 = vsel %vm333_vm2, %v809_v13, %v810_v12  ;;  %v350_v21 = vsel %vm349_vm3, %v819_v15, %v820_v14  ;;  %v523_v15 = vld [vmem:[%s1031_s4] sm:$0xff] }
  0x8e   : > { %v813_v18 = vpop.permute.xlu0 %812  ;;  %v753_v19 = vpack.c.bf16 %v334_v17, %v325_v4  ;;  %v823_v20 = vpop.permute.xlu1 %822 }
  0x8f   : > { %v815_v22 = vunpack.i.h.bf16 %v813_v18  ;;  %v814_v23 = vunpack.i.l.bf16 %v813_v18  ;;  %752 = vmatprep.subr.bf16.mxu0 %v751_v16  ;;  %v825_v24 = vunpack.i.h.bf16 %v823_v20  ;;  %v824_v25 = vunpack.i.l.bf16 %v823_v20 }
  0x90   : > { %754 = vmatpush1.bf16.msra.mxu0 %v753_v19 }
  0x91   : > { %v755_v26 = vpack.c.bf16 %v820_v14, %v815_v22  ;;  %v342_v27 = vsel %vm341_vm4, %v814_v23, %v815_v22  ;;  %v358_v32 = vsel %vm357_vm5, %v824_v25, %v825_v24 }
  0x92   : > { %v828_v28 = vpop.permute.xlu0 %827  ;;  %v757_v29 = vpack.c.bf16 %v350_v21, %v342_v27  ;;  %v370_v36 = vpop.permute.xlu1 %369 }
  0x93   : > { %v830_v30 = vunpack.i.h.bf16 %v828_v28  ;;  %v829_v31 = vunpack.i.l.bf16 %v828_v28  ;;  %756 = vmatprep.subr.bf16.mxu0 %v755_v26 }
  0x94   : > { %758 = vmatpush1.bf16.msra.mxu0 %v757_v29 }
  0x95   : > { %v759_v33 = vpack.c.bf16 %v830_v30, %v825_v24  ;;  %v366_v34 = vsel %vm365_vm6, %v829_v31, %v830_v30 }
  0x96   : > { %v761_v35 = vpack.c.bf16 %v366_v34, %v358_v32  ;;  %v372_v37 = vpop.permute.xlu0 %371 }
  0x97   : > { %760 = vmatprep.subr.bf16.mxu0 %v759_v33  ;;  %v374_v38 = vsel %vm373_vm7, %v370_v36, %v372_v37 }
  0x98   : > { %762 = vmatpush1.bf16.msra.mxu0 %v761_v35 }
  0x99   : > { %400 = vmatprep.subr.mxu0 %v372_v37 }
  0x9c   : > { %401 = vmatpush1.msra.mxu0 %v374_v38 }
  0x9d   : > { %718 = vmatmul.mubr.msk.f32.vlgmr.msra.gmra.mrb[0].mxu0 %vm384_vm8, %v377_v39 }
  0xa3   : > { %v382_v43 = vpop.permute.xlu1 %381 }
 0x170   : > { %v454_v44 = vpop.f32.mrb[0].mxu0 }
 0x171   : > { %v455_v45 = vadd.f32 %v454_v44, %v382_v43  ;;  %v456_v46 = vpop.f32.mrb[1].mxu0 }
 0x173   : > { %v477_v48 = vsel %vm471_vm11, %v455_v45, 0.0 }
 0x174   : > { %vm479_vm12 = vcmp.ge.f32.partialorder %v477_v48, 0.0  ;;  %v481_v49 = vmul.f32 0.1, %v477_v48 }
 0x176   : > { %v483_v50 = vsel %vm479_vm12, %v477_v48, %v481_v49 }
 0x177   : > { %v837_v51 = vpack.i.bf16 %v886_v7, %v483_v50 }
 0x179   : > { %838 = vrot.lane.b32.xlu1 %v837_v51, %s884_s11  ;;  %833 = vrot.lane.b32.xlu0 %v837_v51, %s882_s9 }
 0x17d   : > { %848 = vrot.lane.b32.xlu1 %v837_v51, %s885_s12  ;;  %843 = vrot.lane.b32.xlu0 %v837_v51, %s883_s10 }
 0x181   : > { %517 = vrot.lane.b32.xlu1 %v483_v50, %s889_s14  ;;  %853 = vrot.lane.b32.xlu0 %v837_v51, %s888_s13 }
 0x185   : > { %527 = vperm.xlu1 %831, %v524_v52   ;;  %519 = vrot.lane.b32.xlu0 %v886_v7, %s889_s14 }
 0x189   : > { %607 = vrot.lane.b32.xlu1 %v956_v1, %s889_s14  ;;  %605 = vrot.lane.b32.xlu0 %v954_v0, %s889_s14 }
 0x1eb   : > { %v839_v53 = vpop.permute.xlu1 %838  ;;  %v834_v54 = vpop.permute.xlu0 %833 }
 0x1ec   : > { %v836_v55 = vunpack.i.h.bf16 %v834_v54  ;;  %v835_v56 = vunpack.i.l.bf16 %v834_v54  ;;  %v841_v57 = vunpack.i.h.bf16 %v839_v53  ;;  %v840_v58 = vunpack.i.l.bf16 %v839_v53 }
 0x1ee   : > { %v491_v59 = vsel %vm333_vm2, %v835_v56, %v836_v55  ;;  %v497_v1 = vsel %vm341_vm4, %v840_v58, %v841_v57 }
 0x1ef   : > { %v849_v60 = vpop.permute.xlu1 %848  ;;  %v844_v61 = vpop.permute.xlu0 %843  ;;  %v764_v62 = vpack.c.bf16 %v491_v59, %v483_v50 }
 0x1f0   : > { %v846_v63 = vunpack.i.h.bf16 %v844_v61  ;;  %v845_v2 = vunpack.i.l.bf16 %v844_v61  ;;  %v851_v3 = vunpack.i.h.bf16 %v849_v60  ;;  %v850_v4 = vunpack.i.l.bf16 %v849_v60 }
 0x1f1   : > { %765 = vmatpush3.bf16.msra.mxu1 %v764_v62 }
 0x1f2   : > { %766 = vmatprep.subr.bf16.mxu1 %v890_v47  ;;  %v503_v0 = vsel %vm349_vm3, %v845_v2, %v846_v63  ;;  %v509_v10 = vsel %vm357_vm5, %v850_v4, %v851_v3 }
 0x1f3   : > { %v854_v5 = vpop.permute.xlu0 %853  ;;  %v767_v6 = vpack.c.bf16 %v503_v0, %v497_v1  ;;  %v518_v14 = vpop.permute.xlu1 %517 }
 0x1f4   : > { %v856_v8 = vunpack.i.h.bf16 %v854_v5  ;;  %v855_v9 = vunpack.i.l.bf16 %v854_v5 }
 0x1f5   : > { %768 = vmatpush3.bf16.msra.mxu1 %v767_v6 }
 0x1f6   : > { %769 = vmatprep.subr.bf16.mxu1 %v890_v47  ;;  %v515_v11 = vsel %vm365_vm6, %v855_v9, %v856_v8 }
 0x1f7   : > { %v770_v12 = vpack.c.bf16 %v515_v11, %v509_v10  ;;  %v520_v13 = vpop.permute.xlu0 %519 }
 0x1f8   : > { %v521_v16 = vsel %vm373_vm7, %v518_v14, %v520_v13 }
 0x1f9   : > { %771 = vmatpush3.bf16.msra.mxu1 %v770_v12 }
 0x1fa   : > { %746 = vmatprep.subr.mxu1 %v886_v7 }
 0x1fb   : > { %v606_v19 = vpop.permute.xlu0 %605 }
 0x1fd   : > { %747 = vmatpush3.msra.mxu1 %v521_v16 }
 0x1fe   : > { %749 = vmatmul.mubr.msk.f32.vlgmr.msra.gmra.mrb[0].mxu1 %vm384_vm8, %v523_v15 }
 0x204   : > { %v528_v17 = vpop.permute.xlu1 %527 }
 0x208   : > { %v608_v18 = vpop.permute.xlu1 %607 }
 0x209   : > { %v609_v21 = vsel %vm373_vm7, %v606_v19, %v608_v18 }
 0x2d1   : > { %v599_v20 = vpop.f32.mrb[0].mxu1 }
 0x2d2   : > { %v600_v22 = vadd.f32 %v599_v20, %v528_v17  ;;  %v750_v23 = vpop.f32.mrb[1].mxu1 }
 0x2d4   : > { %v611_v7 = vadd.f32 %v609_v21, %v600_v22 }
 0x2d6   : > { %612 = vst [vmem:[%s318_s30] sm:$0xff] %v611_v7 }
 0x2d7 PF: > { %s16_s23 = sadd.s32 1, %s880_s23   ;;  %s1034_s21 = smov %s876_s22 }
 0x2d8   : > { %p13_p5 = scmp.ge.s32.totalorder %s16_s23, 4   ;;  %s1035_s22 = smov %s1037_s24 }
 0x2da   :  { %15 = sbr.rel (!%p13_p5) target bundleno = 2 (0x2), region = 77 }

// kernel: generator_forward.29
= control target key start
LH: loop header
LB: loop body
LE: loop exit
PB: predicated region body
PF: predicated region fallthrough
CT: control target
= control target key end

     0   :  { %s939_s21 = smov 0   ;;  %s941_s22 = smov 0   ;;  %s1024_s0 = inlined_call_operand.vmem [shape: f32[2,8,256], index: 0, kind: input, shape index: {}, may-alias: {0,1}]   ;;  %s1025_s1 = inlined_call_operand.vmem [shape: f32[2,8,256], index: 1, kind: input, shape index: {}, may-alias: {0,1}]   ;;  %s1026_s2 = inlined_call_operand.vmem [shape: f32[8,56], index: 2, kind: input, shape index: {}]   ;;  %s1027_s3 = inlined_call_operand.vmem [shape: f32[8,1], index: 3, kind: input, shape index: {}]   ;;  %s1028_s4 = inlined_call_operand.vmem [shape: f32[8,56], index: 4, kind: input, shape index: {}]   ;;  %s1029_s5 = inlined_call_operand.vmem [shape: f32[8,1], index: 5, kind: input, shape index: {}]   ;;  %s1030_s6 = inlined_call_operand.vmem [shape: f32[2,8,64], index: 6, kind: output, shape index: {}]  }
   0x1   :  { %s943_s23 = smov 0  }
   0x2 LB: > { %s28_s24 = sadd.s32 1, %s884_s22  ;;  %p716_p0 = scmp.ge.s32.totalorder %s888_s23, 1  ;;  %s888_s23 = sphi %s943_s23, %s16_s23   ;;  %s884_s22 = sphi %s941_s22, %s1032_s22   ;;  %s880_s21 = sphi %s939_s21, %s1031_s21  }
   0x3   : > { %p30_p1 = scmp.ge.s32.totalorder %s28_s24, 2  ;;  %p250_p2 = scmp.lt.s32.totalorder %s888_s23, 3 }
   0x5   : > { %s1034_s24 = smov (%p30_p1, %s28_s24), 0  ;;  %p251_p3 = pnand %p716_p0, %p250_p2 }
   0x6   : > { %p294_p4 = scmp.lt.s32.totalorder (!%p251_p3), %s880_s21, 1  ;;  %s890_s9 = smov (!%p251_p3), 125   ;;  %v894_v7 = vmov (!%p251_p3), 0.0   ;;  %v895_v8 = vmov (!%p251_p3), 0   ;;  %v378_v9 = vld [vmem:[%s1027_s3] sm:$0xff] (!%p251_p3)  ;;  %vm333_vm2 = vcmask (!%p251_p3), 1022976   ;;  %v461_v40 = vlaneseq (!%p251_p3) }
   0x7   : > { %254 = sbr.rel (%p251_p3) target bundleno = 727 (0x2d7), region = 44  ;;  %s891_s10 = smov (!%p251_p3), 119   ;;  %452 = vmatprep.mubr.f32.mxu0 (!%p251_p3), %v894_v7  ;;  %839 = vset.pattern.permute.xlu1 (!%p251_p3), %v895_v8  ;;  %vm349_vm3 = vcmask (!%p251_p3), 973824   ;;  %vm341_vm4 = vcmask (!%p251_p3), 998400   ;;  %vm357_vm5 = vcmask (!%p251_p3), 949248   ;;  %vm365_vm6 = vcmask (!%p251_p3), 924672  }
   0x8   : > { %s892_s11 = smov (!%p251_p3), 122   ;;  %s893_s12 = smov (!%p251_p3), 116   ;;  %865 = vset.pattern.permute.xlu0 (!%p251_p3), %v895_v8  ;;  %vm373_vm7 = vcmask (!%p251_p3), 900096   ;;  %v377_v39 = vld [vmem:[%s1026_s2] sm:$0xff] (!%p251_p3)  ;;  %vm384_vm8 = vcmask (!%p251_p3), 457728   ;;  %v462_v41 = vand.u32 (!%p251_p3), 127, %v461_v40 }
   0x9   : > { %s896_s13 = smov (!%p251_p3), 113   ;;  %s897_s14 = smov (!%p251_p3), 110   ;;  %v898_v47 = vmov (!%p251_p3), 0.0|0.0   ;;  %vm902_vm13 = vmmov (!%p251_p3), 0   ;;  %v528_v52 = vld [vmem:[%s1029_s5] sm:$0xff] (!%p251_p3)  ;;  %vm491_vm14 = vcmask (!%p251_p3), 1039360  }
   0xa   : > { %v465_v42 = vadd.s32 (!%p251_p3), 4294967293, %v462_v41  ;;  %767 = vmatprep.subr.bf16.mxu1 (!%p251_p3), %v898_v47  ;;  %s899_s19 = smov (!%p251_p3), 126   ;;  %s900_s20 = smov (!%p251_p3), 127   ;;  %752 = vmatprep.mubr.msk.f32.mxu1 (!%p251_p3), %vm902_vm13, %v894_v7  ;;  %vm498_vm15 = vcmask (!%p251_p3), 1031168  }
   0xb   : > { %s903_s26 = smov (!%p251_p3), 123  }
   0xc   : > { %vm467_vm9 = vcmp.ge.s32.totalorder (!%p251_p3), %v465_v42, 0  ;;  %vm469_vm10 = vcmp.lt.s32.totalorder (!%p251_p3), %v465_v42, 64 }
   0xd   : > { %vm471_vm11 = vmand (!%p251_p3), %vm467_vm9, %vm469_vm10 }
   0xe   : > { %s1036_s21 = smov (!%p294_p4, %s880_s21), 1 }
   0xf   : > { %s726_s25 = sshll.u32 %s1036_s21, 4  ;;  %s721_s7 = sshll.u32 %s1036_s21, 3 }
  0x10   : > { %s301_s28 = scalar_lea.vmem %s1024_s0, %s726_s25  ;;  %s728_s29 = sadd.s32 8, %s726_s25 }
  0x11   : > { %s310_s8 = scalar_lea.vmem %s1025_s1, %s728_s29  ;;  %v966_v0 = vld [vmem:[%s301_s28] sm:$0xff]  ;;  %s901_s25 = smov 124  }
  0x12   : > { %v968_v1 = vld [vmem:[%s310_s8] sm:$0xff]  ;;  %vm321_vm0 = vcmp.ge.f32.partialorder %v966_v0, 0.0  ;;  %v323_v2 = vmul.f32 0.1, %v966_v0 }
  0x13   : > { %vm322_vm1 = vcmp.ge.f32.partialorder %v968_v1, 0.0  ;;  %v324_v3 = vmul.f32 0.1, %v968_v1 }
  0x14   : > { %v325_v4 = vsel %vm321_vm0, %v966_v0, %v323_v2  ;;  %vm511_vm0 = vcmask 1014784  }
  0x15   : > { %v326_v5 = vsel %vm322_vm1, %v968_v1, %v324_v3  ;;  %vm518_vm1 = vcmask 1006592  }
  0x16   : > { %v814_v6 = vpack.i.bf16 %v326_v5, %v325_v4 }
  0x18   : > { %815 = vrot.lane.b32.xlu0 %v814_v6, %s890_s9  ;;  %825 = vrot.lane.b32.xlu1 %v814_v6, %s891_s10  ;;  %s318_s10 = scalar_lea.vmem %s1030_s6, %s721_s7 }
  0x1c   : > { %820 = vrot.lane.b32.xlu0 %v814_v6, %s892_s11  ;;  %830 = vrot.lane.b32.xlu1 %v814_v6, %s893_s12 }
  0x20   : > { %835 = vrot.lane.b32.xlu0 %v814_v6, %s896_s13  ;;  %369 = vrot.lane.b32.xlu1 %v325_v4, %s897_s14 }
  0x24   : > { %371 = vrot.lane.b32.xlu0 %v326_v5, %s897_s14  ;;  %381 = vperm.xlu1 %839, %v378_v9  }
  0x8a   : > { %v816_v10 = vpop.permute.xlu0 %815  ;;  %v826_v11 = vpop.permute.xlu1 %825 }
  0x8b   : > { %v818_v12 = vunpack.i.h.bf16 %v816_v10  ;;  %v817_v13 = vunpack.i.l.bf16 %v816_v10  ;;  %v828_v14 = vunpack.i.h.bf16 %v826_v11  ;;  %v827_v15 = vunpack.i.l.bf16 %v826_v11 }
  0x8d   : > { %v755_v16 = vpack.c.bf16 %v818_v12, %v326_v5  ;;  %v334_v17 = vsel %vm333_vm2, %v817_v13, %v818_v12  ;;  %v350_v21 = vsel %vm349_vm3, %v827_v15, %v828_v14  ;;  %v527_v15 = vld [vmem:[%s1028_s4] sm:$0xff] }
  0x8e   : > { %v821_v18 = vpop.permute.xlu0 %820  ;;  %v757_v19 = vpack.c.bf16 %v334_v17, %v325_v4  ;;  %v831_v20 = vpop.permute.xlu1 %830 }
  0x8f   : > { %v823_v22 = vunpack.i.h.bf16 %v821_v18  ;;  %v822_v23 = vunpack.i.l.bf16 %v821_v18  ;;  %756 = vmatprep.subr.bf16.mxu0 %v755_v16  ;;  %v833_v24 = vunpack.i.h.bf16 %v831_v20  ;;  %v832_v25 = vunpack.i.l.bf16 %v831_v20 }
  0x90   : > { %758 = vmatpush1.bf16.msra.mxu0 %v757_v19 }
  0x91   : > { %v759_v26 = vpack.c.bf16 %v828_v14, %v823_v22  ;;  %v342_v27 = vsel %vm341_vm4, %v822_v23, %v823_v22  ;;  %v358_v32 = vsel %vm357_vm5, %v832_v25, %v833_v24 }
  0x92   : > { %v836_v28 = vpop.permute.xlu0 %835  ;;  %v761_v29 = vpack.c.bf16 %v350_v21, %v342_v27  ;;  %v370_v36 = vpop.permute.xlu1 %369 }
  0x93   : > { %v838_v30 = vunpack.i.h.bf16 %v836_v28  ;;  %v837_v31 = vunpack.i.l.bf16 %v836_v28  ;;  %760 = vmatprep.subr.bf16.mxu0 %v759_v26 }
  0x94   : > { %762 = vmatpush1.bf16.msra.mxu0 %v761_v29 }
  0x95   : > { %v763_v33 = vpack.c.bf16 %v838_v30, %v833_v24  ;;  %v366_v34 = vsel %vm365_vm6, %v837_v31, %v838_v30 }
  0x96   : > { %v765_v35 = vpack.c.bf16 %v366_v34, %v358_v32  ;;  %v372_v37 = vpop.permute.xlu0 %371 }
  0x97   : > { %764 = vmatprep.subr.bf16.mxu0 %v763_v33  ;;  %v374_v38 = vsel %vm373_vm7, %v370_v36, %v372_v37 }
  0x98   : > { %766 = vmatpush1.bf16.msra.mxu0 %v765_v35 }
  0x99   : > { %400 = vmatprep.subr.mxu0 %v372_v37 }
  0x9c   : > { %401 = vmatpush1.msra.mxu0 %v374_v38 }
  0x9d   : > { %722 = vmatmul.mubr.msk.f32.vlgmr.msra.gmra.mrb[0].mxu0 %vm384_vm8, %v377_v39 }
  0xa3   : > { %v382_v43 = vpop.permute.xlu1 %381 }
 0x170   : > { %v454_v44 = vpop.f32.mrb[0].mxu0 }
 0x171   : > { %v455_v45 = vadd.f32 %v454_v44, %v382_v43  ;;  %v456_v46 = vpop.f32.mrb[1].mxu0 }
 0x173   : > { %v477_v48 = vsel %vm471_vm11, %v455_v45, 0.0 }
 0x174   : > { %vm479_vm12 = vcmp.ge.f32.partialorder %v477_v48, 0.0  ;;  %v481_v49 = vmul.f32 0.1, %v477_v48 }
 0x176   : > { %v483_v50 = vsel %vm479_vm12, %v477_v48, %v481_v49 }
 0x177   : > { %v845_v51 = vpack.i.bf16 %v894_v7, %v483_v50 }
 0x179   : > { %846 = vrot.lane.b32.xlu1 %v845_v51, %s899_s19  ;;  %841 = vrot.lane.b32.xlu0 %v845_v51, %s900_s20 }
 0x17d   : > { %856 = vrot.lane.b32.xlu1 %v845_v51, %s901_s25  ;;  %851 = vrot.lane.b32.xlu0 %v845_v51, %s890_s9 }
 0x181   : > { %521 = vrot.lane.b32.xlu1 %v483_v50, %s892_s11  ;;  %861 = vrot.lane.b32.xlu0 %v845_v51, %s903_s26 }
 0x185   : > { %531 = vperm.xlu1 %839, %v528_v52   ;;  %523 = vrot.lane.b32.xlu0 %v894_v7, %s892_s11 }
 0x189   : > { %611 = vrot.lane.b32.xlu1 %v968_v1, %s893_s12  ;;  %609 = vrot.lane.b32.xlu0 %v966_v0, %s893_s12 }
 0x1eb   : > { %v847_v53 = vpop.permute.xlu1 %846  ;;  %v842_v54 = vpop.permute.xlu0 %841 }
 0x1ec   : > { %v844_v55 = vunpack.i.h.bf16 %v842_v54  ;;  %v843_v56 = vunpack.i.l.bf16 %v842_v54  ;;  %v849_v57 = vunpack.i.h.bf16 %v847_v53  ;;  %v848_v58 = vunpack.i.l.bf16 %v847_v53 }
 0x1ee   : > { %v492_v59 = vsel %vm491_vm14, %v843_v56, %v844_v55  ;;  %v499_v4 = vsel %vm498_vm15, %v848_v58, %v849_v57 }
 0x1ef   : > { %v857_v60 = vpop.permute.xlu1 %856  ;;  %v852_v61 = vpop.permute.xlu0 %851  ;;  %v768_v62 = vpack.c.bf16 %v492_v59, %v483_v50 }
 0x1f0   : > { %v854_v63 = vunpack.i.h.bf16 %v852_v61  ;;  %v853_v2 = vunpack.i.l.bf16 %v852_v61  ;;  %v859_v3 = vunpack.i.h.bf16 %v857_v60  ;;  %v858_v1 = vunpack.i.l.bf16 %v857_v60 }
 0x1f1   : > { %769 = vmatpush3.bf16.msra.mxu1 %v768_v62 }
 0x1f2   : > { %770 = vmatprep.subr.bf16.mxu1 %v898_v47  ;;  %v505_v0 = vsel %vm333_vm2, %v853_v2, %v854_v63  ;;  %v512_v10 = vsel %vm511_vm0, %v858_v1, %v859_v3 }
 0x1f3   : > { %v862_v5 = vpop.permute.xlu0 %861  ;;  %v771_v6 = vpack.c.bf16 %v505_v0, %v499_v4  ;;  %v522_v14 = vpop.permute.xlu1 %521 }
 0x1f4   : > { %v864_v8 = vunpack.i.h.bf16 %v862_v5  ;;  %v863_v9 = vunpack.i.l.bf16 %v862_v5 }
 0x1f5   : > { %772 = vmatpush3.bf16.msra.mxu1 %v771_v6 }
 0x1f6   : > { %773 = vmatprep.subr.bf16.mxu1 %v898_v47  ;;  %v519_v11 = vsel %vm518_vm1, %v863_v9, %v864_v8 }
 0x1f7   : > { %v774_v12 = vpack.c.bf16 %v519_v11, %v512_v10  ;;  %v524_v13 = vpop.permute.xlu0 %523 }
 0x1f8   : > { %v525_v16 = vsel %vm341_vm4, %v522_v14, %v524_v13 }
 0x1f9   : > { %775 = vmatpush3.bf16.msra.mxu1 %v774_v12 }
 0x1fa   : > { %750 = vmatprep.subr.mxu1 %v894_v7 }
 0x1fb   : > { %v610_v19 = vpop.permute.xlu0 %609 }
 0x1fd   : > { %751 = vmatpush3.msra.mxu1 %v525_v16 }
 0x1fe   : > { %753 = vmatmul.mubr.msk.f32.vlgmr.msra.gmra.mrb[0].mxu1 %vm384_vm8, %v527_v15 }
 0x204   : > { %v532_v17 = vpop.permute.xlu1 %531 }
 0x208   : > { %v612_v18 = vpop.permute.xlu1 %611 }
 0x209   : > { %v613_v21 = vsel %vm357_vm5, %v610_v19, %v612_v18 }
 0x2d1   : > { %v603_v20 = vpop.f32.mrb[0].mxu1 }
 0x2d2   : > { %v604_v22 = vadd.f32 %v603_v20, %v532_v17  ;;  %v754_v23 = vpop.f32.mrb[1].mxu1 }
 0x2d4   : > { %v615_v7 = vadd.f32 %v613_v21, %v604_v22 }
 0x2d6   : > { %616 = vst [vmem:[%s318_s10] sm:$0xff] %v615_v7 }
 0x2d7 PF: > { %s16_s23 = sadd.s32 1, %s888_s23   ;;  %s1031_s21 = smov %s884_s22 }
 0x2d8   : > { %p13_p5 = scmp.ge.s32.totalorder %s16_s23, 4   ;;  %s1032_s22 = smov %s1034_s24 }
 0x2da   :  { %15 = sbr.rel (!%p13_p5) target bundleno = 2 (0x2), region = 77 }

// kernel: generator_forward.30
= control target key start
LH: loop header
LB: loop body
LE: loop exit
PB: predicated region body
PF: predicated region fallthrough
CT: control target
= control target key end

     0   :  { %s1023_s24 = smov 0   ;;  %s1025_s25 = smov 0   ;;  %s1101_s0 = inlined_call_operand.vmem [shape: f32[2,8,256], index: 0, kind: input, shape index: {}, may-alias: {0,1}]   ;;  %s1102_s1 = inlined_call_operand.vmem [shape: f32[2,8,256], index: 1, kind: input, shape index: {}, may-alias: {0,1}]   ;;  %s1103_s2 = inlined_call_operand.vmem [shape: f32[8,56], index: 2, kind: input, shape index: {}]   ;;  %s1104_s3 = inlined_call_operand.vmem [shape: f32[8,1], index: 3, kind: input, shape index: {}]   ;;  %s1105_s4 = inlined_call_operand.vmem [shape: f32[8,56], index: 4, kind: input, shape index: {}]   ;;  %s1106_s5 = inlined_call_operand.vmem [shape: f32[8,1], index: 5, kind: input, shape index: {}]   ;;  %s1107_s6 = inlined_call_operand.vmem [shape: f32[2,8,64], index: 6, kind: input, shape index: {}]   ;;  %s1108_s7 = inlined_call_operand.vmem [shape: f32[2,8,64], index: 7, kind: output, shape index: {}]  }
   0x1   :  { %s1027_s26 = smov 0  }
   0x2 LB: > { %s29_s27 = sadd.s32 1, %s961_s25  ;;  %p790_p0 = scmp.ge.s32.totalorder %s965_s26, 1  ;;  %s965_s26 = sphi %s1027_s26, %s17_s26   ;;  %s961_s25 = sphi %s1025_s25, %s1110_s25   ;;  %s957_s24 = sphi %s1023_s24, %s1109_s24  }
   0x3   : > { %p31_p1 = scmp.ge.s32.totalorder %s29_s27, 2  ;;  %p289_p2 = scmp.lt.s32.totalorder %s965_s26, 3 }
   0x5   : > { %s1112_s27 = smov (%p31_p1, %s29_s27), 0  ;;  %p290_p3 = pnand %p790_p0, %p289_p2 }
   0x6   : > { %p342_p4 = scmp.lt.s32.totalorder (!%p290_p3), %s957_s24, 1  ;;  %s967_s13 = smov (!%p290_p3), 123   ;;  %v971_v7 = vmov (!%p290_p3), 0.0   ;;  %v972_v8 = vmov (!%p290_p3), 0   ;;  %v433_v9 = vld [vmem:[%s1104_s3] sm:$0xff] (!%p290_p3)  ;;  %vm388_vm2 = vcmask (!%p290_p3), 1006592   ;;  %v516_v40 = vlaneseq (!%p290_p3) }
   0x7   : > { %293 = sbr.rel (%p290_p3) target bundleno = 729 (0x2d9), region = 48  ;;  %s968_s14 = smov (!%p290_p3), 113   ;;  %507 = vmatprep.mubr.f32.mxu0 (!%p290_p3), %v971_v7  ;;  %916 = vset.pattern.permute.xlu1 (!%p290_p3), %v972_v8  ;;  %vm404_vm3 = vcmask (!%p290_p3), 924672   ;;  %vm396_vm4 = vcmask (!%p290_p3), 965632   ;;  %vm412_vm5 = vcmask (!%p290_p3), 883712   ;;  %vm420_vm6 = vcmask (!%p290_p3), 842752  }
   0x8   : > { %s969_s15 = smov (!%p290_p3), 118   ;;  %s970_s16 = smov (!%p290_p3), 108   ;;  %942 = vset.pattern.permute.xlu0 (!%p290_p3), %v972_v8  ;;  %vm428_vm7 = vcmask (!%p290_p3), 801792   ;;  %v432_v39 = vld [vmem:[%s1103_s2] sm:$0xff] (!%p290_p3)  ;;  %vm439_vm8 = vcmask (!%p290_p3), 457728   ;;  %v517_v41 = vand.u32 (!%p290_p3), 127, %v516_v40 }
   0x9   : > { %s973_s17 = smov (!%p290_p3), 103   ;;  %s974_s18 = smov (!%p290_p3), 98   ;;  %v975_v47 = vmov (!%p290_p3), 0.0|0.0   ;;  %vm980_vm13 = vmmov (!%p290_p3), 0   ;;  %v584_v52 = vld [vmem:[%s1106_s5] sm:$0xff] (!%p290_p3)  ;;  %vm546_vm14 = vcmask (!%p290_p3), 1039360  }
   0xa   : > { %v520_v42 = vadd.s32 (!%p290_p3), 4294967293, %v517_v41  ;;  %842 = vmatprep.subr.bf16.mxu1 (!%p290_p3), %v975_v47  ;;  %s976_s23 = smov (!%p290_p3), 126   ;;  %s978_s29 = smov (!%p290_p3), 124   ;;  %827 = vmatprep.mubr.msk.f32.mxu1 (!%p290_p3), %vm980_vm13, %v971_v7  ;;  %vm553_vm15 = vcmask (!%p290_p3), 1031168  }
   0xb   : > { %s979_s30 = smov (!%p290_p3), 125   ;;  %s982_s11 = smov (!%p290_p3), 110  }
   0xc   : > { %vm522_vm9 = vcmp.ge.s32.totalorder (!%p290_p3), %v520_v42, 0  ;;  %vm524_vm10 = vcmp.lt.s32.totalorder (!%p290_p3), %v520_v42, 64 }
   0xd   : > { %vm526_vm11 = vmand (!%p290_p3), %vm522_vm9, %vm524_vm10 }
   0xe   : > { %s1114_s24 = smov (!%p342_p4, %s957_s24), 1 }
   0xf   : > { %s801_s28 = sshll.u32 %s1114_s24, 4 }
  0x10   : > { %s349_s8 = scalar_lea.vmem %s1101_s0, %s801_s28  ;;  %s803_s9 = sadd.s32 8, %s801_s28 }
  0x11   : > { %s358_s12 = scalar_lea.vmem %s1102_s1, %s803_s9  ;;  %v1050_v0 = vld [vmem:[%s349_s8] sm:$0xff]  ;;  %s977_s28 = smov 127  }
  0x12   : > { %v1052_v1 = vld [vmem:[%s358_s12] sm:$0xff]  ;;  %vm376_vm0 = vcmp.ge.f32.partialorder %v1050_v0, 0.0  ;;  %v378_v2 = vmul.f32 0.1, %v1050_v0  ;;  %s981_s8 = smov 122  }
  0x13   : > { %vm377_vm1 = vcmp.ge.f32.partialorder %v1052_v1, 0.0  ;;  %v379_v3 = vmul.f32 0.1, %v1052_v1 }
  0x14   : > { %v380_v4 = vsel %vm376_vm0, %v1050_v0, %v378_v2  ;;  %vm560_vm0 = vcmask 1022976  }
  0x15   : > { %v381_v5 = vsel %vm377_vm1, %v1052_v1, %v379_v3  ;;  %vm567_vm1 = vcmask 1014784  }
  0x16   : > { %v891_v6 = vpack.i.bf16 %v381_v5, %v380_v4 }
  0x18   : > { %892 = vrot.lane.b32.xlu0 %v891_v6, %s967_s13  ;;  %902 = vrot.lane.b32.xlu1 %v891_v6, %s968_s14  ;;  %s795_s14 = sshll.u32 %s1114_s24, 3 }
  0x19   : > { %s373_s20 = scalar_lea.vmem %s1108_s7, %s795_s14 }
  0x1c   : > { %897 = vrot.lane.b32.xlu0 %v891_v6, %s969_s15  ;;  %907 = vrot.lane.b32.xlu1 %v891_v6, %s970_s16 }
  0x20   : > { %912 = vrot.lane.b32.xlu0 %v891_v6, %s973_s17  ;;  %424 = vrot.lane.b32.xlu1 %v380_v4, %s974_s18  ;;  %s366_s17 = scalar_lea.vmem %s1107_s6, %s795_s14 }
  0x24   : > { %426 = vrot.lane.b32.xlu0 %v381_v5, %s974_s18  ;;  %436 = vperm.xlu1 %916, %v433_v9  }
  0x8a   : > { %v893_v10 = vpop.permute.xlu0 %892  ;;  %v903_v11 = vpop.permute.xlu1 %902 }
  0x8b   : > { %v895_v12 = vunpack.i.h.bf16 %v893_v10  ;;  %v894_v13 = vunpack.i.l.bf16 %v893_v10  ;;  %v905_v14 = vunpack.i.h.bf16 %v903_v11  ;;  %v904_v15 = vunpack.i.l.bf16 %v903_v11 }
  0x8d   : > { %v830_v16 = vpack.c.bf16 %v895_v12, %v381_v5  ;;  %v389_v17 = vsel %vm388_vm2, %v894_v13, %v895_v12  ;;  %v405_v21 = vsel %vm404_vm3, %v904_v15, %v905_v14  ;;  %vm580_vm3 = vcmask 998400   ;;  %v583_v15 = vld [vmem:[%s1105_s4] sm:$0xff] }
  0x8e   : > { %v898_v18 = vpop.permute.xlu0 %897  ;;  %v832_v19 = vpack.c.bf16 %v389_v17, %v380_v4  ;;  %v908_v20 = vpop.permute.xlu1 %907 }
  0x8f   : > { %v900_v22 = vunpack.i.h.bf16 %v898_v18  ;;  %v899_v23 = vunpack.i.l.bf16 %v898_v18  ;;  %831 = vmatprep.subr.bf16.mxu0 %v830_v16  ;;  %v910_v24 = vunpack.i.h.bf16 %v908_v20  ;;  %v909_v25 = vunpack.i.l.bf16 %v908_v20 }
  0x90   : > { %833 = vmatpush1.bf16.msra.mxu0 %v832_v19 }
  0x91   : > { %v834_v26 = vpack.c.bf16 %v905_v14, %v900_v22  ;;  %v397_v27 = vsel %vm396_vm4, %v899_v23, %v900_v22  ;;  %v413_v32 = vsel %vm412_vm5, %v909_v25, %v910_v24  ;;  %vm669_vm4 = vcmask 900096   ;;  %v673_v23 = vld [vmem:[%s366_s17] sm:$0xff] }
  0x92   : > { %v913_v28 = vpop.permute.xlu0 %912  ;;  %v836_v29 = vpack.c.bf16 %v405_v21, %v397_v27  ;;  %v425_v36 = vpop.permute.xlu1 %424 }
  0x93   : > { %v915_v30 = vunpack.i.h.bf16 %v913_v28  ;;  %v914_v31 = vunpack.i.l.bf16 %v913_v28  ;;  %835 = vmatprep.subr.bf16.mxu0 %v834_v26 }
  0x94   : > { %837 = vmatpush1.bf16.msra.mxu0 %v836_v29 }
  0x95   : > { %v838_v33 = vpack.c.bf16 %v915_v30, %v910_v24  ;;  %v421_v34 = vsel %vm420_vm6, %v914_v31, %v915_v30 }
  0x96   : > { %v840_v35 = vpack.c.bf16 %v421_v34, %v413_v32  ;;  %v427_v37 = vpop.permute.xlu0 %426 }
  0x97   : > { %839 = vmatprep.subr.bf16.mxu0 %v838_v33  ;;  %v429_v38 = vsel %vm428_vm7, %v425_v36, %v427_v37 }
  0x98   : > { %841 = vmatpush1.bf16.msra.mxu0 %v840_v35 }
  0x99   : > { %455 = vmatprep.subr.mxu0 %v427_v37 }
  0x9c   : > { %456 = vmatpush1.msra.mxu0 %v429_v38 }
  0x9d   : > { %797 = vmatmul.mubr.msk.f32.vlgmr.msra.gmra.mrb[0].mxu0 %vm439_vm8, %v432_v39 }
  0xa3   : > { %v437_v43 = vpop.permute.xlu1 %436 }
 0x170   : > { %v509_v44 = vpop.f32.mrb[0].mxu0 }
 0x171   : > { %v510_v45 = vadd.f32 %v509_v44, %v437_v43  ;;  %v511_v46 = vpop.f32.mrb[1].mxu0 }
 0x173   : > { %v532_v48 = vsel %vm526_vm11, %v510_v45, 0.0 }
 0x174   : > { %vm534_vm12 = vcmp.ge.f32.partialorder %v532_v48, 0.0  ;;  %v536_v49 = vmul.f32 0.1, %v532_v48 }
 0x176   : > { %v538_v50 = vsel %vm534_vm12, %v532_v48, %v536_v49 }
 0x177   : > { %v922_v51 = vpack.i.bf16 %v971_v7, %v538_v50 }
 0x179   : > { %923 = vrot.lane.b32.xlu1 %v922_v51, %s976_s23  ;;  %918 = vrot.lane.b32.xlu0 %v922_v51, %s977_s28 }
 0x17d   : > { %933 = vrot.lane.b32.xlu1 %v922_v51, %s978_s29  ;;  %928 = vrot.lane.b32.xlu0 %v922_v51, %s979_s30 }
 0x181   : > { %576 = vrot.lane.b32.xlu1 %v538_v50, %s981_s8  ;;  %938 = vrot.lane.b32.xlu0 %v922_v51, %s967_s13 }
 0x185   : > { %587 = vperm.xlu1 %916, %v584_v52   ;;  %578 = vrot.lane.b32.xlu0 %v971_v7, %s981_s8 }
 0x189   : > { %667 = vrot.lane.b32.xlu1 %v1052_v1, %s982_s11  ;;  %665 = vrot.lane.b32.xlu0 %v1050_v0, %s982_s11 }
 0x1eb   : > { %v924_v53 = vpop.permute.xlu1 %923  ;;  %v919_v54 = vpop.permute.xlu0 %918 }
 0x1ec   : > { %v921_v55 = vunpack.i.h.bf16 %v919_v54  ;;  %v920_v56 = vunpack.i.l.bf16 %v919_v54  ;;  %v926_v57 = vunpack.i.h.bf16 %v924_v53  ;;  %v925_v58 = vunpack.i.l.bf16 %v924_v53 }
 0x1ee   : > { %v547_v59 = vsel %vm546_vm14, %v920_v56, %v921_v55  ;;  %v554_v0 = vsel %vm553_vm15, %v925_v58, %v926_v57 }
 0x1ef   : > { %v934_v60 = vpop.permute.xlu1 %933  ;;  %v929_v61 = vpop.permute.xlu0 %928  ;;  %v843_v62 = vpack.c.bf16 %v547_v59, %v538_v50 }
 0x1f0   : > { %v931_v63 = vunpack.i.h.bf16 %v929_v61  ;;  %v930_v2 = vunpack.i.l.bf16 %v929_v61  ;;  %v936_v3 = vunpack.i.h.bf16 %v934_v60  ;;  %v935_v1 = vunpack.i.l.bf16 %v934_v60 }
 0x1f1   : > { %844 = vmatpush3.bf16.msra.mxu1 %v843_v62 }
 0x1f2   : > { %845 = vmatprep.subr.bf16.mxu1 %v975_v47  ;;  %v561_v4 = vsel %vm560_vm0, %v930_v2, %v931_v63  ;;  %v568_v10 = vsel %vm567_vm1, %v935_v1, %v936_v3 }
 0x1f3   : > { %v939_v5 = vpop.permute.xlu0 %938  ;;  %v846_v6 = vpack.c.bf16 %v561_v4, %v554_v0  ;;  %v577_v14 = vpop.permute.xlu1 %576 }
 0x1f4   : > { %v941_v8 = vunpack.i.h.bf16 %v939_v5  ;;  %v940_v9 = vunpack.i.l.bf16 %v939_v5 }
 0x1f5   : > { %847 = vmatpush3.bf16.msra.mxu1 %v846_v6 }
 0x1f6   : > { %848 = vmatprep.subr.bf16.mxu1 %v975_v47  ;;  %v574_v11 = vsel %vm388_vm2, %v940_v9, %v941_v8 }
 0x1f7   : > { %v849_v12 = vpack.c.bf16 %v574_v11, %v568_v10  ;;  %v579_v13 = vpop.permute.xlu0 %578 }
 0x1f8   : > { %v581_v16 = vsel %vm580_vm3, %v577_v14, %v579_v13 }
 0x1f9   : > { %850 = vmatpush3.bf16.msra.mxu1 %v849_v12 }
 0x1fa   : > { %825 = vmatprep.subr.mxu1 %v971_v7 }
 0x1fb   : > { %v666_v19 = vpop.permute.xlu0 %665 }
 0x1fd   : > { %826 = vmatpush3.msra.mxu1 %v581_v16 }
 0x1fe   : > { %828 = vmatmul.mubr.msk.f32.vlgmr.msra.gmra.mrb[0].mxu1 %vm439_vm8, %v583_v15 }
 0x204   : > { %v588_v17 = vpop.permute.xlu1 %587 }
 0x208   : > { %v668_v18 = vpop.permute.xlu1 %667 }
 0x209   : > { %v670_v7 = vsel %vm669_vm4, %v666_v19, %v668_v18 }
 0x2d1   : > { %v659_v20 = vpop.f32.mrb[0].mxu1 }
 0x2d2   : > { %v660_v21 = vadd.f32 %v659_v20, %v588_v17  ;;  %v829_v22 = vpop.f32.mrb[1].mxu1 }
 0x2d4   : > { %v672_v24 = vadd.f32 %v670_v7, %v660_v21 }
 0x2d6   : > { %v674_v25 = vadd.f32 %v673_v23, %v672_v24 }
 0x2d8   : > { %675 = vst [vmem:[%s373_s20] sm:$0xff] %v674_v25 }
 0x2d9 PF: > { %s17_s26 = sadd.s32 1, %s965_s26   ;;  %s1109_s24 = smov %s961_s25 }
 0x2da   : > { %p14_p5 = scmp.ge.s32.totalorder %s17_s26, 4   ;;  %s1110_s25 = smov %s1112_s27 }
 0x2dc   :  { %16 = sbr.rel (!%p14_p5) target bundleno = 2 (0x2), region = 84 }

// kernel: generator_forward.31
= control target key start
LH: loop header
LB: loop body
LE: loop exit
PB: predicated region body
PF: predicated region fallthrough
CT: control target
= control target key end

     0   :  { %s886_s0 = inlined_call_operand.vmem [shape: f32[2,8,256], index: 0, kind: input, shape index: {}, may-alias: {0,1}]   ;;  %s887_s1 = inlined_call_operand.vmem [shape: f32[2,8,256], index: 1, kind: input, shape index: {}, may-alias: {0,1}]   ;;  %s888_s2 = inlined_call_operand.vmem [shape: f32[1,56], index: 2, kind: input, shape index: {}]   ;;  %s889_s3 = inlined_call_operand.<no memory space> [shape: f32[1,1], index: 3, kind: input, shape index: {}]   ;;  %s890_s4 = inlined_call_operand.hbm [shape: f32[2,1,64], index: 4, kind: output, shape index: {}]  }
   0x1   :  { %v9_v0 = vstv %s889_s3 }
   0x2   :  { %10 = vst [vmem:[#allocation2] sm:$0x1] %v9_v0 }
   0x3   :  { %11 = vsyncpa [#allocation4], 0 }
   0x4   :  { %13 = vsyncpa [#allocation4 + $0x1], 0  ;;  %s765_s17 = smov 0   ;;  %s767_s18 = smov 0  }
   0x5   :  { %s769_s19 = smov 0   ;;  %s771_s20 = smov 0  }
   0x6   :  { %s773_s21 = smov 0   ;;  %s775_s22 = smov 0  }
   0x7 LB: > { %s501_s3 = sadd.s32 4294967295, %s724_s22   ;;  %s502_s23 = sadd.s32 4294967294, %s724_s22   ;;  %s724_s22 = sphi %s775_s22, %s19_s22   ;;  %s720_s21 = sphi %s773_s21, %s897_s21   ;;  %s716_s20 = sphi %s771_s20, %s896_s20   ;;  %s712_s19 = sphi %s769_s19, %s895_s19   ;;  %s708_s18 = sphi %s767_s18, %s894_s18   ;;  %s704_s17 = sphi %s765_s17, %s893_s17  }
   0x8   : > { %s31_s24 = sadd.s32 1, %s720_s21  ;;  %s140_s25 = sadd.s32 1, %s712_s19 }
   0x9   : > { %p33_p0 = scmp.ge.s32.totalorder %s31_s24, 2  ;;  %p150_p1 = scmp.ne.s32.totalorder %s712_s19, %s708_s18 }
   0xa   : > { %p151_p2 = scmp.eq.s32.totalorder %s501_s3, 1  ;;  %p156_p3 = scmp.ne.s32.totalorder %s708_s18, %s704_s17 }
   0xb   : > { %s899_s24 = smov (%p33_p0, %s31_s24), 0  ;;  %p157_p5 = scmp.eq.s32.totalorder %s502_s23, 1 }
   0xc   : > { %p805_p4 = por %p151_p2, %p150_p1  ;;  %s135_s27 = ssub.s32 %s720_s21, %s899_s24 }
   0xd   : > { %p505_p6 = scmp.ge.s32.totalorder %s724_s22, 1  ;;  %p138_p7 = scmp.eq.s32.totalorder %s135_s27, 0 }
   0xe   : > { %p812_p8 = por %p157_p5, %p156_p3  ;;  %p205_p9 = scmp.lt.s32.totalorder %s724_s22, 3 }
   0xf   : > { %s818_s29 = scalar_select %p138_p7, %s712_s19, %s140_s25  }
  0x10   : > { %p206_p10 = pnand %p505_p6, %p205_p9 }
  0x11   : > { %p242_p11 = scmp.lt.s32.totalorder (!%p206_p10), %s716_s20, 1  ;;  %v726_v1 = vmov (!%p206_p10), 0.0|0.0   ;;  %s727_s13 = smov (!%p206_p10), 127   ;;  %vm731_vm2 = vmmov (!%p206_p10), 0   ;;  %v732_v9 = vmov (!%p206_p10), 0.0   ;;  %v733_v10 = vmov (!%p206_p10), 0  }
  0x12   : > { %209 = sbr.rel (%p206_p10) target bundleno = 408 (0x198), region = 36  ;;  %543 = vmatprep.subr.bf16.mxu0 (!%p206_p10), %v726_v1  ;;  %s728_s14 = smov (!%p206_p10), 125   ;;  %540 = vmatprep.mubr.msk.f32.mxu0 (!%p206_p10), %vm731_vm2, %v732_v9  ;;  %v313_v11 = vld [vmem:[#allocation2] sm:$0x1] (!%p206_p10)  ;;  %vm274_vm3 = vcmask (!%p206_p10), 1039360   ;;  %vm288_vm4 = vcmask (!%p206_p10), 1022976   ;;  %v319_v39 = vlaneseq (!%p206_p10) }
  0x13   : > { %s729_s15 = smov (!%p206_p10), 126   ;;  %s730_s16 = smov (!%p206_p10), 124   ;;  %642 = vset.pattern.permute.xlu1 (!%p206_p10), %v733_v10  ;;  %643 = vset.pattern.permute.xlu0 (!%p206_p10), %v733_v10  ;;  %vm281_vm5 = vcmask (!%p206_p10), 1031168   ;;  %vm295_vm6 = vcmask (!%p206_p10), 1014784   ;;  %vm302_vm7 = vcmask (!%p206_p10), 1006592   ;;  %vm309_vm8 = vcmask (!%p206_p10), 998400  }
  0x14   : > { %s734_s3 = smov (!%p206_p10), 123   ;;  %s735_s23 = smov (!%p206_p10), 122   ;;  %v312_v38 = vld [vmem:[%s888_s2] sm:$0x1] (!%p206_p10)  ;;  %vm323_vm9 = vcmask (!%p206_p10), 457728   ;;  %v320_v40 = vshrl.u32 (!%p206_p10), %v319_v39, 7 }
  0x16   : > { %v321_v41 = vsub.s32 (!%p206_p10), 0, %v320_v40 }
  0x19   : > { %s243_s30 = scalar_select %p242_p11, %s716_s20, 1 }
  0x1b   : > { %s514_s5 = sshll.u32 %s243_s30, 4  ;;  %s240_s30 = sand.u32 1, %s708_s18  }
  0x1c   : > { %s249_s8 = scalar_lea.vmem %s886_s0, %s514_s5  ;;  %s516_s9 = sadd.s32 8, %s514_s5 }
  0x1d   : > { %s258_s12 = scalar_lea.vmem %s887_s1, %s516_s9  ;;  %v260_v2 = vld [vmem:[%s249_s8] sm:$0xff]  ;;  %s511_s5 = sshll.u32 %s716_s20, 4 }
  0x1e   : > { %v261_v3 = vld [vmem:[%s258_s12] sm:$0xff]  ;;  %vm262_vm0 = vcmp.ge.f32.partialorder %v260_v2, 0.0  ;;  %v264_v4 = vmul.f32 0.01, %v260_v2  ;;  %s241_s6 = scalar_lea.vmem [#allocation3], %s240_s30  ;;  %s839_s10 = scalar_lea.hbm %s890_s4, %s511_s5 }
  0x1f   : > { %vm263_vm1 = vcmp.ge.f32.partialorder %v261_v3, 0.0  ;;  %v265_v5 = vmul.f32 0.01, %v261_v3  ;;  %s413_s7 = sshll.u32 %s241_s6, 4  ;;  %s400_s11 = scalar_lea.sflag [#allocation4], %s240_s30  ;;  %s841_s7 = int_to_ptr.vmem [resolvable:$true] %s413_s7 }
  0x20   : > { %v266_v6 = vsel %vm262_vm0, %v260_v2, %v264_v4  ;;  %s646_s12 = scalar_lea.vmem %s841_s7, 16  ;;  %s736_s20 = smov [#allocation3]  }
  0x21   : > { %v267_v7 = vsel %vm263_vm1, %v261_v3, %v265_v5  ;;  %p647_p12 = scmp.ne.s32.totalorder %s841_s7, %s646_s12 }
  0x22   : > { %v617_v8 = vpack.i.bf16 %v267_v7, %v266_v6 }
  0x23   : > { %p648_p13 = pnand %p647_p12, %p805_p4 }
  0x24   : > { %618 = vrot.lane.b32.xlu0 %v617_v8, %s727_s13  ;;  %628 = vrot.lane.b32.xlu1 %v617_v8, %s728_s14  ;;  %s650_s13 = sshll.u32 %s736_s20, 4  ;;  %s651_s13 = int_to_ptr.vmem [resolvable:$false] %s650_s13 }
  0x25   : > { %p649_p0 = pneg %p648_p13  ;;  %s652_s14 = scalar_lea.vmem %s651_s13, 32 }
  0x26   : > { %p653_p1 = scmp.lt.s32.totalorder %s841_s7, %s651_s13  ;;  %p654_p2 = scmp.lt.s32.totalorder %s652_s14, %s646_s12 }
  0x28   : > { %623 = vrot.lane.b32.xlu0 %v617_v8, %s729_s15  ;;  %633 = vrot.lane.b32.xlu1 %v617_v8, %s730_s16  ;;  %p655_p3 = por %p654_p2, %p653_p1 }
  0x2a   : > { %p656_p5 = pnand %p655_p3, %p649_p0 }
  0x2c   : > { %638 = vrot.lane.b32.xlu0 %v617_v8, %s734_s3  ;;  %305 = vrot.lane.b32.xlu1 %v266_v6, %s735_s23 }
  0x30   : > { %307 = vrot.lane.b32.xlu0 %v267_v7, %s735_s23  ;;  %316 = vperm.xlu1 %642, %v313_v11  }
  0x96   : > { %v619_v12 = vpop.permute.xlu0 %618  ;;  %v629_v13 = vpop.permute.xlu1 %628 }
  0x97   : > { %v621_v14 = vunpack.i.h.bf16 %v619_v12  ;;  %v620_v15 = vunpack.i.l.bf16 %v619_v12  ;;  %v631_v16 = vunpack.i.h.bf16 %v629_v13  ;;  %v630_v17 = vunpack.i.l.bf16 %v629_v13 }
  0x99   : > { %v275_v18 = vsel %vm274_vm3, %v620_v15, %v621_v14  ;;  %v289_v22 = vsel %vm288_vm4, %v630_v17, %v631_v16 }
  0x9a   : > { %v624_v19 = vpop.permute.xlu0 %623  ;;  %v544_v20 = vpack.c.bf16 %v275_v18, %v266_v6  ;;  %v634_v21 = vpop.permute.xlu1 %633 }
  0x9b   : > { %v626_v23 = vunpack.i.h.bf16 %v624_v19  ;;  %v625_v24 = vunpack.i.l.bf16 %v624_v19  ;;  %v636_v25 = vunpack.i.h.bf16 %v634_v21  ;;  %v635_v26 = vunpack.i.l.bf16 %v634_v21 }
  0x9c   : > { %545 = vmatpush3.bf16.msra.mxu0 %v544_v20 }
  0x9d   : > { %546 = vmatprep.subr.bf16.mxu0 %v726_v1  ;;  %v282_v27 = vsel %vm281_vm5, %v625_v24, %v626_v23  ;;  %v296_v32 = vsel %vm295_vm6, %v635_v26, %v636_v25 }
  0x9e   : > { %v639_v28 = vpop.permute.xlu0 %638  ;;  %v547_v29 = vpack.c.bf16 %v289_v22, %v282_v27  ;;  %v306_v35 = vpop.permute.xlu1 %305 }
  0x9f   : > { %v641_v30 = vunpack.i.h.bf16 %v639_v28  ;;  %v640_v31 = vunpack.i.l.bf16 %v639_v28 }
  0xa0   : > { %548 = vmatpush3.bf16.msra.mxu0 %v547_v29 }
  0xa1   : > { %549 = vmatprep.subr.bf16.mxu0 %v726_v1  ;;  %v303_v33 = vsel %vm302_vm7, %v640_v31, %v641_v30 }
  0xa2   : > { %v550_v34 = vpack.c.bf16 %v303_v33, %v296_v32  ;;  %v308_v36 = vpop.permute.xlu0 %307 }
  0xa3   : > { %v310_v37 = vsel %vm309_vm8, %v306_v35, %v308_v36 }
  0xa4   : > { %551 = vmatpush3.bf16.msra.mxu0 %v550_v34 }
  0xa5   : > { %538 = vmatprep.subr.mxu0 %v732_v9 }
  0xa8   : > { %539 = vmatpush3.msra.mxu0 %v310_v37 }
  0xa9   : > { %541 = vmatmul.mubr.msk.f32.vlgmr.msra.gmra.mrb[0].mxu0 %vm323_vm9, %v312_v38 }
  0xaf   : > { %v317_v42 = vpop.permute.xlu1 %316 }
  0xb0   : > { %v322_v43 = vrot.slane %v317_v42, %v321_v41 }
 0x17c   : > { %v393_v44 = vpop.f32.mrb[0].mxu0 }
 0x17d   : > { %v394_v45 = vadd.f32 %v393_v44, %v322_v43  ;;  %v542_v46 = vpop.f32.mrb[1].mxu0 }
 0x17f   : > { %644 = vtanh.f32 %v394_v45 }
 0x189   : > { %v645_v47 = vpop.eup %644 }
 0x18a   : > { %398 = vst [vmem:[%s241_s6] sm:$0x1] %v645_v47 }
 0x18b   : > { %659 = shalt.err (!%p656_p5)
}
 0x18c   : > { %s660_s15 = scalar_lea.hbm %s839_s10, 16  ;;  %s664_s23 = scalar_lea.hbm %s890_s4, 32 }
 0x18d   : > { %p661_p6 = scmp.ne.s32.totalorder %s839_s10, %s660_s15  ;;  %p665_p10 = scmp.lt.u32.totalorder %s839_s10, %s890_s4 }
 0x18e   : > { %p666_p11 = scmp.lt.u32.totalorder %s664_s23, %s660_s15  ;;  %p668_p13 = scmp.lt.u32.totalorder %s660_s15, %s839_s10 }
 0x18f   : > { %p662_p7 = pnand %p661_p6, %p805_p4 }
 0x190   : > { %p667_p12 = por %p666_p11, %p665_p10 }
 0x191   : > { %p663_p9 = pneg %p662_p7 }
 0x192   : > { %p669_p0 = por %p668_p13, %p667_p12 }
 0x194   : > { %p670_p1 = pnand %p669_p0, %p663_p9 }
 0x196   : > { %673 = shalt.err (!%p670_p1)
}
 0x197   : > { %552 = dma.vmem_to_hbm [thread:$0]  (%p805_p4), %s841_s7, 16, %s839_s10, %s400_s11  }
 0x198 PF: > { %p558_p2 = scmp.ge.s32.totalorder %s724_s22, 2  ;;  %s425_s30 = sand.u32 1, %s704_s17  }
 0x199   : > { %s426_s5 = scalar_lea.sflag [#allocation4], %s425_s30 }
 0x19a   : > { %p555_p3 = pnand %p558_p2, %p812_p8 }
 0x19c   : > { %699 = dma.done.wait (!%p555_p3), %s426_s5, 16  }
 0x19d   : > { %701 = vsyncadd (!%p555_p3), %s426_s5, 4294967280  ;;  %s19_s22 = sadd.s32 1, %s724_s22   ;;  %s893_s17 = smov %s708_s18 }
 0x19e   : > { %p16_p5 = scmp.ge.s32.totalorder %s19_s22, 4   ;;  %s894_s18 = smov %s712_s19 }
 0x19f   : > { %s895_s19 = smov %s818_s29  ;;  %s896_s20 = smov %s720_s21 }
 0x1a0   : > { %s897_s21 = smov %s899_s24  ;;  %18 = sbr.rel (!%p16_p5) target bundleno = 7 (0x7), region = 74 }
 0x1a7   :  { %430 = vsyncpa [#allocation4], 1 }
 0x1a8   :  { %432 = vsyncpa [#allocation4 + $0x1], 1 }

</bundles_post_ra>
